<compile_context>
chip_gen: v7x
topology: tpu7x:2x2x1
jax: 0.10.0
libtpu: 0.0.40
codegen_flags: <defaults>
</compile_context>

<pallas_src>
import functools
import math

import jax
import jax.numpy as jnp
import numpy as np
from jax.experimental import pallas as pl
from jax.experimental.pallas import tpu as pltpu


# ----------------------------------------------------------------------------
# Pallas kernel: one (batch, q-tile) step of the TransformerBlock forward.
# ----------------------------------------------------------------------------
def transformer_block_kernel(
    xq_ref, xkv_ref, bias_ref,
    wq_ref, bq_ref, wk_ref, bk_ref, wv_ref, bv_ref, wo_ref, bo_ref,
    g1_ref, be1_ref,
    w1_ref, b1_ref, w2_ref, b2_ref,
    g2_ref, be2_ref,
    o_ref,
    k_scr, v_scr,
    *, num_heads,
):
    bf16, f32 = jnp.bfloat16, jnp.float32
    qi = pl.program_id(1)

    S, D = xkv_ref.shape[1], xkv_ref.shape[2]
    block_q = xq_ref.shape[1]
    d_k = D // num_heads

    def split_heads(t2d, rows):
        # (rows, D) -> (H, rows, d_k)
        return jnp.transpose(t2d.reshape(rows, num_heads, d_k), (1, 0, 2))

    # ---- K/V projections: once per batch element, cached in bf16 VMEM scratch.
    #      Single lane-dense (S, D) @ (D, D) matmuls (full MXU width/depth).
    @pl.when(qi == 0)
    def _():
        xf = xkv_ref[0].astype(bf16)                               # (S, D)
        k = jnp.dot(xf, wk_ref[...], preferred_element_type=f32) + bk_ref[...]
        v = jnp.dot(xf, wv_ref[...], preferred_element_type=f32) + bv_ref[...]
        k_scr[...] = split_heads(k.astype(bf16), S)                # (H, S, dk)
        v_scr[...] = split_heads(v.astype(bf16), S)

    # ---- Q projection for this tile (scale 1/sqrt(d_k) already folded in Wq).
    xq = xq_ref[0]                                                 # (TQ, D) f32
    q = jnp.dot(xq.astype(bf16), wq_ref[...],
                preferred_element_type=f32) + bq_ref[...]          # (TQ, D)
    qh = split_heads(q.astype(bf16), block_q)                      # (H, TQ, dk)

    # ---- Scaled-dot-product attention (softmax in f32, matmuls in bf16).
    s = jnp.einsum("hqd,hkd->hqk", qh, k_scr[...],
                   preferred_element_type=f32)                     # (H, TQ, S)
    s = s + bias_ref[0][None, :, :].astype(f32)                    # additive mask
    m = jnp.max(s, axis=-1, keepdims=True)
    p = jnp.exp(s - m)
    denom = jnp.sum(p, axis=-1, keepdims=True)
    p = (p * pl.reciprocal(denom, approx=True)).astype(bf16)

    ah = jnp.einsum("hqk,hkd->hqd", p, v_scr[...],
                    preferred_element_type=f32)                    # (H, TQ, dk)
    # Concatenate heads -> (TQ, D), then a single full-depth output projection.
    ah_cat = jnp.transpose(ah.astype(bf16), (1, 0, 2)).reshape(block_q, D)
    attn = jnp.dot(ah_cat, wo_ref[...],
                   preferred_element_type=f32) + bo_ref[...]       # (TQ, D)

    def layer_norm(y, gamma, beta, eps=1e-5):
        # One-pass mean / variance (var = E[y^2] - mu^2).
        mu = jnp.mean(y, axis=-1, keepdims=True)
        mu2 = jnp.mean(y * y, axis=-1, keepdims=True)
        var = mu2 - mu * mu
        return (y - mu) * jax.lax.rsqrt(var + eps) * gamma + beta

    # Dropout is identity in deterministic/eval mode.
    h1 = layer_norm(xq + attn, g1_ref[...], be1_ref[...])

    # ---- Feed-forward (ReLU MLP) on this tile.
    ff = jnp.dot(h1.astype(bf16), w1_ref[...],
                 preferred_element_type=f32) + b1_ref[...]
    ff = jnp.maximum(ff, 0.0)
    ff = jnp.dot(ff.astype(bf16), w2_ref[...],
                 preferred_element_type=f32) + b2_ref[...]

    h2 = layer_norm(h1 + ff, g2_ref[...], be2_ref[...])
    o_ref[0] = h2.astype(o_ref.dtype)


def _default_vmem_limit():
    # ~75% of physical VMEM: 96 MiB on v5e/v6e (128 MiB), 48 MiB on v7x (64 MiB).
    try:
        cap = pltpu.get_tpu_info().vmem_capacity_bytes
        return int(cap) * 3 // 4
    except Exception:  # pragma: no cover - fall back to compiler default
        return None


# ----------------------------------------------------------------------------
# Wrapper
# ----------------------------------------------------------------------------
def transformer_block(x, mask, params, num_heads, *, block_q=256):
    B, S, D = x.shape
    assert D % num_heads == 0
    d_k = D // num_heads
    block_q = min(block_q, S)
    assert S % block_q == 0 and block_q % 8 == 0
    n_q = S // block_q

    bf16, f32 = jnp.bfloat16, jnp.float32
    scale = 1.0 / math.sqrt(d_k)

    # Plain (D, D) / (D, d_ff) weight layouts; softmax scale folded into Wq/bq.
    wq = (params["wq"] * scale).astype(bf16)
    bq = (params["bq"] * scale).astype(f32)
    wk, bk = params["wk"].astype(bf16), params["bk"].astype(f32)
    wv, bv = params["wv"].astype(bf16), params["bv"].astype(f32)
    wo, bo = params["wo"].astype(bf16), params["bo"].astype(f32)
    w1, b1 = params["w1"].astype(bf16), params["b1"].astype(f32)
    w2, b2 = params["w2"].astype(bf16), params["b2"].astype(f32)
    g1, be1 = params["g1"].astype(f32), params["be1"].astype(f32)
    g2, be2 = params["g2"].astype(f32), params["be2"].astype(f32)

    # Mask pre-converted to a bf16 additive bias (0 = keep, -1e9 = masked):
    # half the HBM traffic of an f32 bias.
    attn_bias = jnp.where(mask == 0.0, -1e9, 0.0).astype(bf16)

    weights = (wq, bq, wk, bk, wv, bv, wo, bo,
               g1, be1, w1, b1, w2, b2, g2, be2)

    # Weights are small & constant across the grid: keep them whole in VMEM
    # (single copy, no per-step double-buffering).
    vmem_spec = pl.BlockSpec(memory_space=pltpu.MemorySpace.VMEM)

    in_specs = [
        pl.BlockSpec((1, block_q, D), lambda b, q: (b, q, 0)),   # x: q tile
        pl.BlockSpec((1, S, D), lambda b, q: (b, 0, 0)),         # x: full seq (K/V)
        pl.BlockSpec((1, block_q, S), lambda b, q: (b, q, 0)),   # mask bias tile
    ] + [vmem_spec] * len(weights)

    d_ff = w1.shape[-1]
    flops = 8 * B * S * D * D + 4 * B * S * S * D + 4 * B * S * D * d_ff
    bytes_accessed = (3 * B * S * D * 4                       # x (2 views) + out
                      + B * S * S * 2                         # bf16 mask bias
                      + sum(int(w.size) * w.dtype.itemsize for w in weights))
    cost = pl.CostEstimate(flops=int(flops),
                           transcendentals=int(B * num_heads * S * S),
                           bytes_accessed=int(bytes_accessed))

    kernel = functools.partial(transformer_block_kernel, num_heads=num_heads)

    return pl.pallas_call(
        kernel,
        out_shape=jax.ShapeDtypeStruct((B, S, D), x.dtype),
        grid=(B, n_q),
        in_specs=in_specs,
        out_specs=pl.BlockSpec((1, block_q, D), lambda b, q: (b, q, 0)),
        scratch_shapes=[pltpu.VMEM((num_heads, S, d_k), jnp.bfloat16),
                        pltpu.VMEM((num_heads, S, d_k), jnp.bfloat16)],
        compiler_params=pltpu.CompilerParams(
            dimension_semantics=("parallel", "arbitrary"),
            vmem_limit_bytes=_default_vmem_limit()),
        cost_estimate=cost,
    )(x, x, attn_bias, *weights)


# ----------------------------------------------------------------------------
# Pure-JAX reference (mirrors the PyTorch module, dropout in eval mode).
# Matmul operands are cast to bf16 like the kernel (f32 accumulation), so the
# comparison validates the kernel structure tightly.
# ----------------------------------------------------------------------------
def reference_forward(x, mask, p, num_heads):
    B, S, D = x.shape
    d_k = D // num_heads
    bf16 = jnp.bfloat16

    def mm(a, b):
        return jnp.dot(a.astype(bf16), b.astype(bf16),
                       preferred_element_type=jnp.float32)

    def split(t):
        return t.reshape(B, S, num_heads, d_k).transpose(0, 2, 1, 3)

    q = split(mm(x, p["wq"]) + p["bq"])
    k = split(mm(x, p["wk"]) + p["bk"])
    v = split(mm(x, p["wv"]) + p["bv"])

    scores = jnp.einsum("bhqd,bhkd->bhqk", q.astype(bf16), k.astype(bf16),
                        preferred_element_type=jnp.float32) / math.sqrt(d_k)
    scores = jnp.where(mask[:, None, :, :] == 0.0, -1e9, scores)
    w = jax.nn.softmax(scores, axis=-1)
    o = jnp.einsum("bhqk,bhkd->bhqd", w.astype(bf16), v.astype(bf16),
                   preferred_element_type=jnp.float32)
    o = o.transpose(0, 2, 1, 3).reshape(B, S, D)
    attn = mm(o, p["wo"]) + p["bo"]

    def layer_norm(y, gamma, beta, eps=1e-5):
        mu = jnp.mean(y, axis=-1, keepdims=True)
        var = jnp.mean((y - mu) ** 2, axis=-1, keepdims=True)
        return (y - mu) * jax.lax.rsqrt(var + eps) * gamma + beta

    h1 = layer_norm(x + attn, p["g1"], p["be1"])
    ff = jnp.maximum(mm(h1, p["w1"]) + p["b1"], 0.0)
    ff = mm(ff, p["w2"]) + p["b2"]
    return layer_norm(h1 + ff, p["g2"], p["be2"])


# ----------------------------------------------------------------------------
# Deterministic parameter init (PyTorch nn.Linear-style uniform bounds).
# Linear weights stored transposed: (in_features, out_features), so the kernel
# computes x @ W + b (equivalent to PyTorch's x @ W_pt.T + b).
# ----------------------------------------------------------------------------
def init_params(key, d_model, d_ff):
    keys = jax.random.split(key, 12)

    def linear(kw, kb, fan_in, fan_out):
        bound = 1.0 / math.sqrt(fan_in)
        w = jax.random.uniform(kw, (fan_in, fan_out), jnp.float32, -bound, bound)
        b = jax.random.uniform(kb, (1, fan_out), jnp.float32, -bound, bound)
        return w, b

    wq, bq = linear(keys[0], keys[1], d_model, d_model)
    wk, bk = linear(keys[2], keys[3], d_model, d_model)
    wv, bv = linear(keys[4], keys[5], d_model, d_model)
    wo, bo = linear(keys[6], keys[7], d_model, d_model)
    w1, b1 = linear(keys[8], keys[9], d_model, d_ff)
    w2, b2 = linear(keys[10], keys[11], d_ff, d_model)

    return {
        "wq": wq, "bq": bq, "wk": wk, "bk": bk, "wv": wv, "bv": bv,
        "wo": wo, "bo": bo,
        "g1": jnp.ones((1, d_model), jnp.float32),
        "be1": jnp.zeros((1, d_model), jnp.float32),
        "w1": w1, "b1": b1, "w2": w2, "b2": b2,
        "g2": jnp.ones((1, d_model), jnp.float32),
        "be2": jnp.zeros((1, d_model), jnp.float32),
    }


if __name__ == "__main__":
    # Small but TPU-tile-aligned shapes (last dims multiples of 128, q tiles of 64).
    B, S, D, H, D_FF = 2, 128, 128, 4, 256

    root = jax.random.PRNGKey(0)
    k_x, k_p = jax.random.split(root)

    x = jax.random.normal(k_x, (B, S, D), jnp.float32)
    # Causal mask (1 = attend, 0 = masked), broadcast over heads like PyTorch.
    mask = jnp.broadcast_to(jnp.tril(jnp.ones((S, S), jnp.float32)), (B, S, S))

    params = init_params(k_p, D, D_FF)

    out = transformer_block(x, mask, params, num_heads=H, block_q=64)
    out = jax.block_until_ready(out)

    ref = reference_forward(x, mask, params, num_heads=H)
    np.testing.assert_allclose(np.asarray(out), np.asarray(ref),
                               rtol=2e-2, atol=2e-2)

    print("KERNEL_OK")
</pallas_src>

<mosaic_0001>
module attributes {stable_mosaic.version = 11 : i64} {
  func.func @transformer_block_kernel(%arg0: i32, %arg1: i32, %arg2: memref<1x64x128xf32, #tpu.memory_space<vmem>>, %arg3: memref<1x128x128xf32, #tpu.memory_space<vmem>>, %arg4: memref<1x64x128xbf16, #tpu.memory_space<vmem>>, %arg5: memref<128x128xbf16, #tpu.memory_space<vmem>>, %arg6: memref<1x128xf32, #tpu.memory_space<vmem>>, %arg7: memref<128x128xbf16, #tpu.memory_space<vmem>>, %arg8: memref<1x128xf32, #tpu.memory_space<vmem>>, %arg9: memref<128x128xbf16, #tpu.memory_space<vmem>>, %arg10: memref<1x128xf32, #tpu.memory_space<vmem>>, %arg11: memref<128x128xbf16, #tpu.memory_space<vmem>>, %arg12: memref<1x128xf32, #tpu.memory_space<vmem>>, %arg13: memref<1x128xf32, #tpu.memory_space<vmem>>, %arg14: memref<1x128xf32, #tpu.memory_space<vmem>>, %arg15: memref<128x256xbf16, #tpu.memory_space<vmem>>, %arg16: memref<1x256xf32, #tpu.memory_space<vmem>>, %arg17: memref<256x128xbf16, #tpu.memory_space<vmem>>, %arg18: memref<1x128xf32, #tpu.memory_space<vmem>>, %arg19: memref<1x128xf32, #tpu.memory_space<vmem>>, %arg20: memref<1x128xf32, #tpu.memory_space<vmem>>, %arg21: memref<1x64x128xf32, #tpu.memory_space<vmem>>, %arg22: memref<4x128x32xbf16, #tpu.memory_space<vmem>>, %arg23: memref<4x128x32xbf16, #tpu.memory_space<vmem>>) attributes {dimension_semantics = [#tpu.dimension_semantics<parallel>, #tpu.dimension_semantics<arbitrary>], iteration_bounds = array<i64: 2, 2>, scalar_prefetch = 0 : i64, scratch_operands = 2 : i64, tpu.core_type = #tpu.core_type<tc>, window_params = [{transform_indices = @transform_0, window_bounds = array<i64: 1, 64, 128>}, {transform_indices = @transform_1, window_bounds = array<i64: 1, 128, 128>}, {transform_indices = @transform_2, window_bounds = array<i64: 1, 64, 128>}, {pipeline_mode = #tpu.pipeline_mode<synchronous>, transform_indices = @transform_3, window_bounds = array<i64: 128, 128>}, {pipeline_mode = #tpu.pipeline_mode<synchronous>, transform_indices = @transform_4, window_bounds = array<i64: 1, 128>}, {pipeline_mode = #tpu.pipeline_mode<synchronous>, transform_indices = @transform_5, window_bounds = array<i64: 128, 128>}, {pipeline_mode = #tpu.pipeline_mode<synchronous>, transform_indices = @transform_6, window_bounds = array<i64: 1, 128>}, {pipeline_mode = #tpu.pipeline_mode<synchronous>, transform_indices = @transform_7, window_bounds = array<i64: 128, 128>}, {pipeline_mode = #tpu.pipeline_mode<synchronous>, transform_indices = @transform_8, window_bounds = array<i64: 1, 128>}, {pipeline_mode = #tpu.pipeline_mode<synchronous>, transform_indices = @transform_9, window_bounds = array<i64: 128, 128>}, {pipeline_mode = #tpu.pipeline_mode<synchronous>, transform_indices = @transform_10, window_bounds = array<i64: 1, 128>}, {pipeline_mode = #tpu.pipeline_mode<synchronous>, transform_indices = @transform_11, window_bounds = array<i64: 1, 128>}, {pipeline_mode = #tpu.pipeline_mode<synchronous>, transform_indices = @transform_12, window_bounds = array<i64: 1, 128>}, {pipeline_mode = #tpu.pipeline_mode<synchronous>, transform_indices = @transform_13, window_bounds = array<i64: 128, 256>}, {pipeline_mode = #tpu.pipeline_mode<synchronous>, transform_indices = @transform_14, window_bounds = array<i64: 1, 256>}, {pipeline_mode = #tpu.pipeline_mode<synchronous>, transform_indices = @transform_15, window_bounds = array<i64: 256, 128>}, {pipeline_mode = #tpu.pipeline_mode<synchronous>, transform_indices = @transform_16, window_bounds = array<i64: 1, 128>}, {pipeline_mode = #tpu.pipeline_mode<synchronous>, transform_indices = @transform_17, window_bounds = array<i64: 1, 128>}, {pipeline_mode = #tpu.pipeline_mode<synchronous>, transform_indices = @transform_18, window_bounds = array<i64: 1, 128>}, {transform_indices = @transform_19, window_bounds = array<i64: 1, 64, 128>}]} {
    %c0_i32 = arith.constant 0 : i32
    %0 = arith.cmpi eq, %arg1, %c0_i32 : i32
    %1 = arith.extui %0 : i1 to i32
    %c0_i32_0 = arith.constant 0 : i32
    %2 = arith.cmpi ne, %1, %c0_i32_0 : i32
    scf.if %2 {
      %c0_57 = arith.constant 0 : index
      %c0_58 = arith.constant 0 : index
      %c0_59 = arith.constant 0 : index
      %110 = vector.load %arg3[%c0_57, %c0_58, %c0_59] : memref<1x128x128xf32, #tpu.memory_space<vmem>>, vector<1x128x128xf32>
      %111 = vector.shape_cast %110 : vector<1x128x128xf32> to vector<128x128xf32>
      %112 = arith.truncf %111 : vector<128x128xf32> to vector<128x128xbf16>
      %c0_60 = arith.constant 0 : index
      %c0_61 = arith.constant 0 : index
      %113 = vector.load %arg7[%c0_60, %c0_61] : memref<128x128xbf16, #tpu.memory_space<vmem>>, vector<128x128xbf16>
      %cst_62 = arith.constant dense<0.000000e+00> : vector<128x128xf32>
      %114 = tpu.matmul %112, %113, %cst_62 {dimension_numbers = #tpu.dot_dimension_numbers<[1], [0], [0], [1], [0, 0, 1, 1], [], []>} : vector<128x128xbf16>, vector<128x128xbf16>, vector<128x128xf32> -> vector<128x128xf32>
      %c0_63 = arith.constant 0 : index
      %c0_64 = arith.constant 0 : index
      %115 = vector.load %arg8[%c0_63, %c0_64] : memref<1x128xf32, #tpu.memory_space<vmem>>, vector<1x128xf32>
      %116 = vector.broadcast %115 : vector<1x128xf32> to vector<128x128xf32>
      %117 = arith.addf %114, %116 : vector<128x128xf32>
      %c0_65 = arith.constant 0 : index
      %c0_66 = arith.constant 0 : index
      %118 = vector.load %arg9[%c0_65, %c0_66] : memref<128x128xbf16, #tpu.memory_space<vmem>>, vector<128x128xbf16>
      %cst_67 = arith.constant dense<0.000000e+00> : vector<128x128xf32>
      %119 = tpu.matmul %112, %118, %cst_67 {dimension_numbers = #tpu.dot_dimension_numbers<[1], [0], [0], [1], [0, 0, 1, 1], [], []>} : vector<128x128xbf16>, vector<128x128xbf16>, vector<128x128xf32> -> vector<128x128xf32>
      %c0_68 = arith.constant 0 : index
      %c0_69 = arith.constant 0 : index
      %120 = vector.load %arg10[%c0_68, %c0_69] : memref<1x128xf32, #tpu.memory_space<vmem>>, vector<1x128xf32>
      %121 = vector.broadcast %120 : vector<1x128xf32> to vector<128x128xf32>
      %122 = arith.addf %119, %121 : vector<128x128xf32>
      %123 = arith.truncf %117 : vector<128x128xf32> to vector<128x128xbf16>
      %124 = vector.shape_cast %123 : vector<128x128xbf16> to vector<128x4x32xbf16>
      %125 = tpu.transpose %124, [1, 0, 2] : vector<128x4x32xbf16> -> vector<4x128x32xbf16>
      %c0_70 = arith.constant 0 : index
      %c0_71 = arith.constant 0 : index
      %c0_72 = arith.constant 0 : index
      %126 = vector.load %arg22[%c0_70, %c0_71, %c0_72] : memref<4x128x32xbf16, #tpu.memory_space<vmem>>, vector<4x128x32xbf16>
      tpu.vector_store %arg22[%c0_70, %c0_71, %c0_72], %125 {strides = array<i32>} : memref<4x128x32xbf16, #tpu.memory_space<vmem>>, vector<4x128x32xbf16>,
      %127 = arith.truncf %122 : vector<128x128xf32> to vector<128x128xbf16>
      %128 = vector.shape_cast %127 : vector<128x128xbf16> to vector<128x4x32xbf16>
      %129 = tpu.transpose %128, [1, 0, 2] : vector<128x4x32xbf16> -> vector<4x128x32xbf16>
      %c0_73 = arith.constant 0 : index
      %c0_74 = arith.constant 0 : index
      %c0_75 = arith.constant 0 : index
      %130 = vector.load %arg23[%c0_73, %c0_74, %c0_75] : memref<4x128x32xbf16, #tpu.memory_space<vmem>>, vector<4x128x32xbf16>
      tpu.vector_store %arg23[%c0_73, %c0_74, %c0_75], %129 {strides = array<i32>} : memref<4x128x32xbf16, #tpu.memory_space<vmem>>, vector<4x128x32xbf16>,
    } else {
    }
    %c0 = arith.constant 0 : index
    %c0_1 = arith.constant 0 : index
    %c0_2 = arith.constant 0 : index
    %3 = vector.load %arg2[%c0, %c0_1, %c0_2] : memref<1x64x128xf32, #tpu.memory_space<vmem>>, vector<1x64x128xf32>
    %4 = vector.shape_cast %3 : vector<1x64x128xf32> to vector<64x128xf32>
    %5 = arith.truncf %4 : vector<64x128xf32> to vector<64x128xbf16>
    %c0_3 = arith.constant 0 : index
    %c0_4 = arith.constant 0 : index
    %6 = vector.load %arg5[%c0_3, %c0_4] : memref<128x128xbf16, #tpu.memory_space<vmem>>, vector<128x128xbf16>
    %cst = arith.constant dense<0.000000e+00> : vector<64x128xf32>
    %7 = tpu.matmul %5, %6, %cst {dimension_numbers = #tpu.dot_dimension_numbers<[1], [0], [0], [1], [0, 0, 1, 1], [], []>} : vector<64x128xbf16>, vector<128x128xbf16>, vector<64x128xf32> -> vector<64x128xf32>
    %c0_5 = arith.constant 0 : index
    %c0_6 = arith.constant 0 : index
    %8 = vector.load %arg6[%c0_5, %c0_6] : memref<1x128xf32, #tpu.memory_space<vmem>>, vector<1x128xf32>
    %9 = vector.broadcast %8 : vector<1x128xf32> to vector<64x128xf32>
    %10 = arith.addf %7, %9 : vector<64x128xf32>
    %11 = arith.truncf %10 : vector<64x128xf32> to vector<64x128xbf16>
    %12 = vector.shape_cast %11 : vector<64x128xbf16> to vector<64x4x32xbf16>
    %13 = tpu.transpose %12, [1, 0, 2] : vector<64x4x32xbf16> -> vector<4x64x32xbf16>
    %c0_7 = arith.constant 0 : index
    %c0_8 = arith.constant 0 : index
    %c0_9 = arith.constant 0 : index
    %14 = vector.load %arg22[%c0_7, %c0_8, %c0_9] : memref<4x128x32xbf16, #tpu.memory_space<vmem>>, vector<4x128x32xbf16>
    "tpu.trace_start"() <{level = 10 : i32, message = "hqd,hkd->hqk"}> : () -> ()
    %cst_10 = arith.constant dense<0.000000e+00> : vector<4x64x128xf32>
    %15 = tpu.matmul %13, %14, %cst_10 {dimension_numbers = #tpu.dot_dimension_numbers<[2], [2], [1], [1], [0, 0, 0, 1, 1, 1], [0], [0]>} : vector<4x64x32xbf16>, vector<4x128x32xbf16>, vector<4x64x128xf32> -> vector<4x64x128xf32>
    "tpu.trace_stop"() : () -> ()
    %c0_11 = arith.constant 0 : index
    %c0_12 = arith.constant 0 : index
    %c0_13 = arith.constant 0 : index
    %16 = vector.load %arg4[%c0_11, %c0_12, %c0_13] : memref<1x64x128xbf16, #tpu.memory_space<vmem>>, vector<1x64x128xbf16>
    %17 = vector.shape_cast %16 : vector<1x64x128xbf16> to vector<64x128xbf16>
    %18 = vector.shape_cast %17 : vector<64x128xbf16> to vector<1x64x128xbf16>
    %19 = arith.extf %18 : vector<1x64x128xbf16> to vector<1x64x128xf32>
    %20 = vector.broadcast %19 : vector<1x64x128xf32> to vector<4x64x128xf32>
    %21 = arith.addf %15, %20 : vector<4x64x128xf32>
    %cst_14 = arith.constant dense<0xFF800000> : vector<4x64xf32>
    %22 = vector.multi_reduction <maximumf>, %21, %cst_14 [2] : vector<4x64x128xf32> to vector<4x64xf32>
    %23 = vector.shape_cast %22 : vector<4x64xf32> to vector<4x64x1xf32>
    %24 = vector.broadcast %23 : vector<4x64x1xf32> to vector<4x64x128xf32>
    %25 = arith.subf %21, %24 : vector<4x64x128xf32>
    %26 = math.exp %25 : vector<4x64x128xf32>
    %cst_15 = arith.constant dense<0.000000e+00> : vector<4x64xf32>
    %27 = vector.multi_reduction <add>, %26, %cst_15 [2] : vector<4x64x128xf32> to vector<4x64xf32>
    %28 = vector.shape_cast %27 : vector<4x64xf32> to vector<4x64x1xf32>
    %29 = tpu.reciprocal %28 {approx = true} : vector<4x64x1xf32> -> vector<4x64x1xf32>
    %30 = vector.broadcast %29 : vector<4x64x1xf32> to vector<4x64x128xf32>
    %31 = arith.mulf %26, %30 : vector<4x64x128xf32>
    %32 = arith.truncf %31 : vector<4x64x128xf32> to vector<4x64x128xbf16>
    %c0_16 = arith.constant 0 : index
    %c0_17 = arith.constant 0 : index
    %c0_18 = arith.constant 0 : index
    %33 = vector.load %arg23[%c0_16, %c0_17, %c0_18] : memref<4x128x32xbf16, #tpu.memory_space<vmem>>, vector<4x128x32xbf16>
    "tpu.trace_start"() <{level = 10 : i32, message = "hqk,hkd->hqd"}> : () -> ()
    %cst_19 = arith.constant dense<0.000000e+00> : vector<4x64x32xf32>
    %34 = tpu.matmul %32, %33, %cst_19 {dimension_numbers = #tpu.dot_dimension_numbers<[2], [1], [1], [2], [0, 0, 0, 1, 1, 2], [0], [0]>} : vector<4x64x128xbf16>, vector<4x128x32xbf16>, vector<4x64x32xf32> -> vector<4x64x32xf32>
    "tpu.trace_stop"() : () -> ()
    %35 = arith.truncf %34 : vector<4x64x32xf32> to vector<4x64x32xbf16>
    %36 = tpu.transpose %35, [1, 0, 2] : vector<4x64x32xbf16> -> vector<64x4x32xbf16>
    %37 = vector.shape_cast %36 : vector<64x4x32xbf16> to vector<64x128xbf16>
    %c0_20 = arith.constant 0 : index
    %c0_21 = arith.constant 0 : index
    %38 = vector.load %arg11[%c0_20, %c0_21] : memref<128x128xbf16, #tpu.memory_space<vmem>>, vector<128x128xbf16>
    %cst_22 = arith.constant dense<0.000000e+00> : vector<64x128xf32>
    %39 = tpu.matmul %37, %38, %cst_22 {dimension_numbers = #tpu.dot_dimension_numbers<[1], [0], [0], [1], [0, 0, 1, 1], [], []>} : vector<64x128xbf16>, vector<128x128xbf16>, vector<64x128xf32> -> vector<64x128xf32>
    %c0_23 = arith.constant 0 : index
    %c0_24 = arith.constant 0 : index
    %40 = vector.load %arg12[%c0_23, %c0_24] : memref<1x128xf32, #tpu.memory_space<vmem>>, vector<1x128xf32>
    %41 = vector.broadcast %40 : vector<1x128xf32> to vector<64x128xf32>
    %42 = arith.addf %39, %41 : vector<64x128xf32>
    %43 = arith.addf %4, %42 : vector<64x128xf32>
    %c0_25 = arith.constant 0 : index
    %c0_26 = arith.constant 0 : index
    %44 = vector.load %arg13[%c0_25, %c0_26] : memref<1x128xf32, #tpu.memory_space<vmem>>, vector<1x128xf32>
    %c0_27 = arith.constant 0 : index
    %c0_28 = arith.constant 0 : index
    %45 = vector.load %arg14[%c0_27, %c0_28] : memref<1x128xf32, #tpu.memory_space<vmem>>, vector<1x128xf32>
    %cst_29 = arith.constant dense<0.000000e+00> : vector<64xf32>
    %46 = vector.multi_reduction <add>, %43, %cst_29 [1] : vector<64x128xf32> to vector<64xf32>
    %47 = vector.shape_cast %46 : vector<64xf32> to vector<64x1xf32>
    %cst_30 = arith.constant 1.280000e+02 : f32
    %48 = vector.broadcast %cst_30 : f32 to vector<64x1xf32>
    %49 = arith.divf %47, %48 : vector<64x1xf32>
    %50 = arith.mulf %43, %43 : vector<64x128xf32>
    %cst_31 = arith.constant dense<0.000000e+00> : vector<64xf32>
    %51 = vector.multi_reduction <add>, %50, %cst_31 [1] : vector<64x128xf32> to vector<64xf32>
    %52 = vector.shape_cast %51 : vector<64xf32> to vector<64x1xf32>
    %cst_32 = arith.constant 1.280000e+02 : f32
    %53 = vector.broadcast %cst_32 : f32 to vector<64x1xf32>
    %54 = arith.divf %52, %53 : vector<64x1xf32>
    %55 = arith.mulf %49, %49 : vector<64x1xf32>
    %56 = arith.subf %54, %55 : vector<64x1xf32>
    %57 = vector.broadcast %49 : vector<64x1xf32> to vector<64x128xf32>
    %58 = arith.subf %43, %57 : vector<64x128xf32>
    %cst_33 = arith.constant 9.99999974E-6 : f32
    %59 = vector.broadcast %cst_33 : f32 to vector<64x1xf32>
    %60 = arith.addf %56, %59 : vector<64x1xf32>
    %61 = math.rsqrt %60 : vector<64x1xf32>
    %62 = vector.broadcast %61 : vector<64x1xf32> to vector<64x128xf32>
    %63 = arith.mulf %58, %62 : vector<64x128xf32>
    %64 = vector.broadcast %44 : vector<1x128xf32> to vector<64x128xf32>
    %65 = arith.mulf %63, %64 : vector<64x128xf32>
    %66 = vector.broadcast %45 : vector<1x128xf32> to vector<64x128xf32>
    %67 = arith.addf %65, %66 : vector<64x128xf32>
    %68 = arith.truncf %67 : vector<64x128xf32> to vector<64x128xbf16>
    %c0_34 = arith.constant 0 : index
    %c0_35 = arith.constant 0 : index
    %69 = vector.load %arg15[%c0_34, %c0_35] : memref<128x256xbf16, #tpu.memory_space<vmem>>, vector<128x256xbf16>
    %cst_36 = arith.constant dense<0.000000e+00> : vector<64x256xf32>
    %70 = tpu.matmul %68, %69, %cst_36 {dimension_numbers = #tpu.dot_dimension_numbers<[1], [0], [0], [1], [0, 0, 1, 1], [], []>} : vector<64x128xbf16>, vector<128x256xbf16>, vector<64x256xf32> -> vector<64x256xf32>
    %c0_37 = arith.constant 0 : index
    %c0_38 = arith.constant 0 : index
    %71 = vector.load %arg16[%c0_37, %c0_38] : memref<1x256xf32, #tpu.memory_space<vmem>>, vector<1x256xf32>
    %72 = vector.broadcast %71 : vector<1x256xf32> to vector<64x256xf32>
    %73 = arith.addf %70, %72 : vector<64x256xf32>
    %cst_39 = arith.constant 0.000000e+00 : f32
    %74 = vector.broadcast %cst_39 : f32 to vector<64x256xf32>
    %75 = arith.maximumf %73, %74 : vector<64x256xf32>
    %76 = arith.truncf %75 : vector<64x256xf32> to vector<64x256xbf16>
    %c0_40 = arith.constant 0 : index
    %c0_41 = arith.constant 0 : index
    %77 = vector.load %arg17[%c0_40, %c0_41] : memref<256x128xbf16, #tpu.memory_space<vmem>>, vector<256x128xbf16>
    %cst_42 = arith.constant dense<0.000000e+00> : vector<64x128xf32>
    %78 = tpu.matmul %76, %77, %cst_42 {dimension_numbers = #tpu.dot_dimension_numbers<[1], [0], [0], [1], [0, 0, 1, 1], [], []>} : vector<64x256xbf16>, vector<256x128xbf16>, vector<64x128xf32> -> vector<64x128xf32>
    %c0_43 = arith.constant 0 : index
    %c0_44 = arith.constant 0 : index
    %79 = vector.load %arg18[%c0_43, %c0_44] : memref<1x128xf32, #tpu.memory_space<vmem>>, vector<1x128xf32>
    %80 = vector.broadcast %79 : vector<1x128xf32> to vector<64x128xf32>
    %81 = arith.addf %78, %80 : vector<64x128xf32>
    %82 = arith.addf %67, %81 : vector<64x128xf32>
    %c0_45 = arith.constant 0 : index
    %c0_46 = arith.constant 0 : index
    %83 = vector.load %arg19[%c0_45, %c0_46] : memref<1x128xf32, #tpu.memory_space<vmem>>, vector<1x128xf32>
    %c0_47 = arith.constant 0 : index
    %c0_48 = arith.constant 0 : index
    %84 = vector.load %arg20[%c0_47, %c0_48] : memref<1x128xf32, #tpu.memory_space<vmem>>, vector<1x128xf32>
    %cst_49 = arith.constant dense<0.000000e+00> : vector<64xf32>
    %85 = vector.multi_reduction <add>, %82, %cst_49 [1] : vector<64x128xf32> to vector<64xf32>
    %86 = vector.shape_cast %85 : vector<64xf32> to vector<64x1xf32>
    %cst_50 = arith.constant 1.280000e+02 : f32
    %87 = vector.broadcast %cst_50 : f32 to vector<64x1xf32>
    %88 = arith.divf %86, %87 : vector<64x1xf32>
    %89 = arith.mulf %82, %82 : vector<64x128xf32>
    %cst_51 = arith.constant dense<0.000000e+00> : vector<64xf32>
    %90 = vector.multi_reduction <add>, %89, %cst_51 [1] : vector<64x128xf32> to vector<64xf32>
    %91 = vector.shape_cast %90 : vector<64xf32> to vector<64x1xf32>
    %cst_52 = arith.constant 1.280000e+02 : f32
    %92 = vector.broadcast %cst_52 : f32 to vector<64x1xf32>
    %93 = arith.divf %91, %92 : vector<64x1xf32>
    %94 = arith.mulf %88, %88 : vector<64x1xf32>
    %95 = arith.subf %93, %94 : vector<64x1xf32>
    %96 = vector.broadcast %88 : vector<64x1xf32> to vector<64x128xf32>
    %97 = arith.subf %82, %96 : vector<64x128xf32>
    %cst_53 = arith.constant 9.99999974E-6 : f32
    %98 = vector.broadcast %cst_53 : f32 to vector<64x1xf32>
    %99 = arith.addf %95, %98 : vector<64x1xf32>
    %100 = math.rsqrt %99 : vector<64x1xf32>
    %101 = vector.broadcast %100 : vector<64x1xf32> to vector<64x128xf32>
    %102 = arith.mulf %97, %101 : vector<64x128xf32>
    %103 = vector.broadcast %83 : vector<1x128xf32> to vector<64x128xf32>
    %104 = arith.mulf %102, %103 : vector<64x128xf32>
    %105 = vector.broadcast %84 : vector<1x128xf32> to vector<64x128xf32>
    %106 = arith.addf %104, %105 : vector<64x128xf32>
    %c0_54 = arith.constant 0 : index
    %c0_55 = arith.constant 0 : index
    %c0_56 = arith.constant 0 : index
    %107 = vector.load %arg21[%c0_54, %c0_55, %c0_56] : memref<1x64x128xf32, #tpu.memory_space<vmem>>, vector<1x64x128xf32>
    %108 = vector.shape_cast %107 : vector<1x64x128xf32> to vector<64x128xf32>
    %109 = vector.shape_cast %106 : vector<64x128xf32> to vector<1x64x128xf32>
    tpu.vector_store %arg21[%c0_54, %c0_55, %c0_56], %109 {strides = array<i32>} : memref<1x64x128xf32, #tpu.memory_space<vmem>>, vector<1x64x128xf32>,
    return
  }
  func.func @transform_0(%arg0: i32, %arg1: i32) -> (i32, i32, i32) {
    %c0_i32 = arith.constant 0 : i32
    %c0_i32_0 = arith.constant 0 : i32
    return %arg0, %arg1, %c0_i32 : i32, i32, i32
  }
  func.func @transform_1(%arg0: i32, %arg1: i32) -> (i32, i32, i32) {
    %c0_i32 = arith.constant 0 : i32
    %c0_i32_0 = arith.constant 0 : i32
    %c0_i32_1 = arith.constant 0 : i32
    return %arg0, %c0_i32, %c0_i32_0 : i32, i32, i32
  }
  func.func @transform_2(%arg0: i32, %arg1: i32) -> (i32, i32, i32) {
    %c0_i32 = arith.constant 0 : i32
    %c0_i32_0 = arith.constant 0 : i32
    return %arg0, %arg1, %c0_i32 : i32, i32, i32
  }
  func.func @transform_3(%arg0: i32, %arg1: i32) -> (i32, i32) {
    %c0_i32 = arith.constant 0 : i32
    %c0_i32_0 = arith.constant 0 : i32
    %c0_i32_1 = arith.constant 0 : i32
    return %c0_i32, %c0_i32_0 : i32, i32
  }
  func.func @transform_4(%arg0: i32, %arg1: i32) -> (i32, i32) {
    %c0_i32 = arith.constant 0 : i32
    %c0_i32_0 = arith.constant 0 : i32
    %c0_i32_1 = arith.constant 0 : i32
    return %c0_i32, %c0_i32_0 : i32, i32
  }
  func.func @transform_5(%arg0: i32, %arg1: i32) -> (i32, i32) {
    %c0_i32 = arith.constant 0 : i32
    %c0_i32_0 = arith.constant 0 : i32
    %c0_i32_1 = arith.constant 0 : i32
    return %c0_i32, %c0_i32_0 : i32, i32
  }
  func.func @transform_6(%arg0: i32, %arg1: i32) -> (i32, i32) {
    %c0_i32 = arith.constant 0 : i32
    %c0_i32_0 = arith.constant 0 : i32
    %c0_i32_1 = arith.constant 0 : i32
    return %c0_i32, %c0_i32_0 : i32, i32
  }
  func.func @transform_7(%arg0: i32, %arg1: i32) -> (i32, i32) {
    %c0_i32 = arith.constant 0 : i32
    %c0_i32_0 = arith.constant 0 : i32
    %c0_i32_1 = arith.constant 0 : i32
    return %c0_i32, %c0_i32_0 : i32, i32
  }
  func.func @transform_8(%arg0: i32, %arg1: i32) -> (i32, i32) {
    %c0_i32 = arith.constant 0 : i32
    %c0_i32_0 = arith.constant 0 : i32
    %c0_i32_1 = arith.constant 0 : i32
    return %c0_i32, %c0_i32_0 : i32, i32
  }
  func.func @transform_9(%arg0: i32, %arg1: i32) -> (i32, i32) {
    %c0_i32 = arith.constant 0 : i32
    %c0_i32_0 = arith.constant 0 : i32
    %c0_i32_1 = arith.constant 0 : i32
    return %c0_i32, %c0_i32_0 : i32, i32
  }
  func.func @transform_10(%arg0: i32, %arg1: i32) -> (i32, i32) {
    %c0_i32 = arith.constant 0 : i32
    %c0_i32_0 = arith.constant 0 : i32
    %c0_i32_1 = arith.constant 0 : i32
    return %c0_i32, %c0_i32_0 : i32, i32
  }
  func.func @transform_11(%arg0: i32, %arg1: i32) -> (i32, i32) {
    %c0_i32 = arith.constant 0 : i32
    %c0_i32_0 = arith.constant 0 : i32
    %c0_i32_1 = arith.constant 0 : i32
    return %c0_i32, %c0_i32_0 : i32, i32
  }
  func.func @transform_12(%arg0: i32, %arg1: i32) -> (i32, i32) {
    %c0_i32 = arith.constant 0 : i32
    %c0_i32_0 = arith.constant 0 : i32
    %c0_i32_1 = arith.constant 0 : i32
    return %c0_i32, %c0_i32_0 : i32, i32
  }
  func.func @transform_13(%arg0: i32, %arg1: i32) -> (i32, i32) {
    %c0_i32 = arith.constant 0 : i32
    %c0_i32_0 = arith.constant 0 : i32
    %c0_i32_1 = arith.constant 0 : i32
    return %c0_i32, %c0_i32_0 : i32, i32
  }
  func.func @transform_14(%arg0: i32, %arg1: i32) -> (i32, i32) {
    %c0_i32 = arith.constant 0 : i32
    %c0_i32_0 = arith.constant 0 : i32
    %c0_i32_1 = arith.constant 0 : i32
    return %c0_i32, %c0_i32_0 : i32, i32
  }
  func.func @transform_15(%arg0: i32, %arg1: i32) -> (i32, i32) {
    %c0_i32 = arith.constant 0 : i32
    %c0_i32_0 = arith.constant 0 : i32
    %c0_i32_1 = arith.constant 0 : i32
    return %c0_i32, %c0_i32_0 : i32, i32
  }
  func.func @transform_16(%arg0: i32, %arg1: i32) -> (i32, i32) {
    %c0_i32 = arith.constant 0 : i32
    %c0_i32_0 = arith.constant 0 : i32
    %c0_i32_1 = arith.constant 0 : i32
    return %c0_i32, %c0_i32_0 : i32, i32
  }
  func.func @transform_17(%arg0: i32, %arg1: i32) -> (i32, i32) {
    %c0_i32 = arith.constant 0 : i32
    %c0_i32_0 = arith.constant 0 : i32
    %c0_i32_1 = arith.constant 0 : i32
    return %c0_i32, %c0_i32_0 : i32, i32
  }
  func.func @transform_18(%arg0: i32, %arg1: i32) -> (i32, i32) {
    %c0_i32 = arith.constant 0 : i32
    %c0_i32_0 = arith.constant 0 : i32
    %c0_i32_1 = arith.constant 0 : i32
    return %c0_i32, %c0_i32_0 : i32, i32
  }
  func.func @transform_19(%arg0: i32, %arg1: i32) -> (i32, i32, i32) {
    %c0_i32 = arith.constant 0 : i32
    %c0_i32_0 = arith.constant 0 : i32
    return %arg0, %arg1, %c0_i32 : i32, i32, i32
  }
}

</mosaic_0001>

<bundles_post_ra>
// kernel: tpu_custom_call.1
= control target key start
LH: loop header
LB: loop body
LE: loop exit
PB: predicated region body
PF: predicated region fallthrough
CT: control target
= control target key end

     0   :  { %s14782_s0 = inlined_call_operand.hbm [shape: f32[2,128,128], index: 0, kind: input, shape index: {}]   ;;  %s14783_s1 = inlined_call_operand.hbm [shape: f32[2,128,128], index: 1, kind: input, shape index: {}]   ;;  %s14784_s2 = inlined_call_operand.hbm [shape: bf16[2,128,128], index: 2, kind: input, shape index: {}]   ;;  %s14785_s3 = inlined_call_operand.hbm [shape: bf16[128,128], index: 3, kind: input, shape index: {}]   ;;  %s14786_s4 = inlined_call_operand.vmem [shape: f32[1,128], index: 4, kind: input, shape index: {}]   ;;  %s14787_s5 = inlined_call_operand.hbm [shape: bf16[128,128], index: 5, kind: input, shape index: {}]   ;;  %s14788_s6 = inlined_call_operand.vmem [shape: f32[1,128], index: 6, kind: input, shape index: {}]   ;;  %s14789_s7 = inlined_call_operand.hbm [shape: bf16[128,128], index: 7, kind: input, shape index: {}]   ;;  %s14790_s8 = inlined_call_operand.vmem [shape: f32[1,128], index: 8, kind: input, shape index: {}]   ;;  %s14791_s9 = inlined_call_operand.hbm [shape: bf16[128,128], index: 9, kind: input, shape index: {}]   ;;  %s14792_s10 = inlined_call_operand.vmem [shape: f32[1,128], index: 10, kind: input, shape index: {}]   ;;  %s14793_s11 = inlined_call_operand.vmem [shape: f32[1,128], index: 11, kind: input, shape index: {}]   ;;  %s14794_s12 = inlined_call_operand.vmem [shape: f32[1,128], index: 12, kind: input, shape index: {}]   ;;  %s14795_s13 = inlined_call_operand.hbm [shape: bf16[128,256], index: 13, kind: input, shape index: {}]   ;;  %s14796_s14 = inlined_call_operand.vmem [shape: f32[1,256], index: 14, kind: input, shape index: {}]   ;;  %s14797_s15 = inlined_call_operand.hbm [shape: bf16[256,128], index: 15, kind: input, shape index: {}]   ;;  %s14798_s16 = inlined_call_operand.vmem [shape: f32[1,128], index: 16, kind: input, shape index: {}]   ;;  %s14799_s17 = inlined_call_operand.vmem [shape: f32[1,128], index: 17, kind: input, shape index: {}]   ;;  %s14800_s18 = inlined_call_operand.vmem [shape: f32[1,128], index: 18, kind: input, shape index: {}]   ;;  %s14801_s19 = inlined_call_operand.hbm [shape: f32[2,128,128], index: 19, kind: output, shape index: {}]  }
   0x1   :  { %14835 = sst [smem:[#allocation36_spill]] %s14782_s0 }
   0x2   :  { %14836 = sst [smem:[#allocation37_spill]] %s14783_s1 }
   0x3   :  { %14837 = sst [smem:[#allocation38_spill]] %s14784_s2 }
   0x4   :  { %14838 = sst [smem:[#allocation39_spill]] %s14785_s3 }
   0x5   :  { %14839 = sst [smem:[#allocation40_spill]] %s14786_s4 }
   0x6   :  { %14840 = sst [smem:[#allocation41_spill]] %s14787_s5 }
   0x7   :  { %14841 = sst [smem:[#allocation42_spill]] %s14788_s6 }
   0x8   :  { %14842 = sst [smem:[#allocation43_spill]] %s14789_s7 }
   0x9   :  { %14843 = sst [smem:[#allocation44_spill]] %s14790_s8 }
   0xa   :  { %14844 = sst [smem:[#allocation45_spill]] %s14791_s9 }
   0xb   :  { %14845 = sst [smem:[#allocation46_spill]] %s14792_s10 }
   0xc   :  { %14846 = sst [smem:[#allocation47_spill]] %s14793_s11 }
   0xd   :  { %14847 = sst [smem:[#allocation48_spill]] %s14794_s12 }
   0xe   :  { %14848 = sst [smem:[#allocation49_spill]] %s14795_s13 }
   0xf   :  { %14849 = sst [smem:[#allocation50_spill]] %s14796_s14 }
  0x10   :  { %14850 = sst [smem:[#allocation51_spill]] %s14797_s15 }
  0x11   :  { %14851 = sst [smem:[#allocation52_spill]] %s14798_s16 }
  0x12   :  { %14852 = sst [smem:[#allocation53_spill]] %s14799_s17 }
  0x13   :  { %14853 = sst [smem:[#allocation54_spill]] %s14800_s18 }
  0x14   :  { %14854 = sst [smem:[#allocation55_spill]] %s14801_s19 }
  0x15   :  { %24 = vsyncpa [#allocation5], 0 }
  0x16   :  { %26 = vsyncpa [#allocation5 + $0x1], 0 }
  0x17   :  { %27 = vsyncpa [#allocation8], 0 }
  0x18   :  { %29 = vsyncpa [#allocation8 + $0x1], 0 }
  0x19   :  { %30 = vsyncpa [#allocation11], 0 }
  0x1a   :  { %31 = vsyncpa [#allocation14], 0 }
  0x1b   :  { %32 = vsyncpa [#allocation17], 0 }
  0x1c   :  { %33 = vsyncpa [#allocation6], 0 }
  0x1d   :  { %35 = vsyncpa [#allocation6 + $0x1], 0  ;;  %s11767_s0 = smov 0   ;;  %s11769_s30 = smov 0  }
  0x1e   :  { %s11771_s20 = smov 0   ;;  %s11773_s21 = smov 0  }
  0x1f   :  { %s11775_s1 = smov 0   ;;  %s11777_s22 = smov 0  }
  0x20   :  { %s11779_s2 = smov 0   ;;  %s11781_s23 = smov 0  }
  0x21   :  { %s11783_s24 = smov 0   ;;  %s11785_s25 = smov 0  }
  0x22   :  { %s11787_s3 = smov 0  }
  0x23 LB: > { %14855 = sst [smem:[#allocation27_spill]] %s11609_s21  ;;  %s11823_s26 = sadd.s32 4294967295, %s11637_s3   ;;  %s11637_s3 = sphi %s11787_s3, %s41_s3   ;;  %s11633_s25 = sphi %s11785_s25, %s14928_s25   ;;  %s11629_s24 = sphi %s11783_s24, %s14936_s24   ;;  %s11625_s23 = sphi %s11781_s23, %s14926_s23   ;;  %s11621_s2 = sphi %s11779_s2, %s14935_s2   ;;  %s11617_s22 = sphi %s11777_s22, %s14934_s22   ;;  %s11613_s1 = sphi %s11775_s1, %s14933_s1   ;;  %s11609_s21 = sphi %s11773_s21, %s14932_s21   ;;  %s11605_s20 = sphi %s11771_s20, %s14931_s20   ;;  %s11601_s30 = sphi %s11769_s30, %s14930_s30   ;;  %s11597_s0 = sphi %s11767_s0, %s14929_s0  }
  0x24   : > { %14856 = sst [smem:[#allocation28_spill]] %s11621_s2  ;;  %p10036_p0 = scmp.ge.s32.totalorder %s11637_s3, 1 }
  0x25   : > { %14857 = sst [smem:[#allocation29_spill]] %s11625_s23  ;;  %p14808_p1 = scmp.eq.s32.totalorder %s11823_s26, 0 }
  0x26   : > { %14858 = sst [smem:[#allocation30_spill]] %s11633_s25  ;;  %p504_p2 = scmp.lt.s32.totalorder %s11637_s3, 5 }
  0x27   : > { %s11639_s28 = smov [#allocation10]   ;;  %s11640_s23 = smov [#allocation13]  }
  0x28   : > { %p11828_p3 = pnand %p10036_p0, %p504_p2  ;;  %s516_s29 = sshll.u32 %s11639_s28, 4  ;;  %s11832_s29 = int_to_ptr.vmem [resolvable:$true] %s516_s29 }
  0x29   : > { %s548_s18 = sshll.u32 %s11640_s23, 4  ;;  %s11641_s17 = smov [#allocation16]   ;;  %s11842_s18 = int_to_ptr.vmem [resolvable:$true] %s548_s18 }
  0x2a   : > { %s14859_s27 = scalar_select %p11828_p3, 1, 0 }
  0x2b   : > { %p10838_p4 = pneg %p11828_p3  ;;  %s11844_s16 = sshll.u32 %s11641_s17, 4  ;;  %s587_s16 = int_to_ptr.vmem [resolvable:$true] %s11844_s16 }
  0x2c   : > { %14860 = sst [smem:[#allocation31_spill]] %s14859_s27  ;;  %s14862_s28 = sld [smem:[#allocation39_spill]] }
  0x2d   : > { %p11838_p5 = pnand %p10838_p4, %p14808_p1 }
  0x2f   : > { %s14861_s19 = scalar_select %p11838_p5, 1, 0 }
  0x30   : > { %p11854_p7 = pneg %p11838_p5 }
  0x32   : > { %s11237_s11 = scalar_lea.hbm %s14862_s28, 1024 }
  0x33   : > { %p11238_p6 = scmp.ne.s32.totalorder %s14862_s28, %s11237_s11  ;;  %p11244_p10 = scmp.lt.u32.totalorder %s11237_s11, %s14862_s28 }
  0x35   : > { %p11240_p8 = pnand %p11854_p7, %p11238_p6 }
  0x37   : > { %p11241_p9 = pneg %p11240_p8 }
  0x39   : > { %p11246_p11 = pnand %p11244_p10, %p11241_p9 }
  0x3b   : > { %11249 = shalt.err (!%p11246_p11)
}
  0x3c   : > { %s11250_s4 = scalar_lea.vmem %s11832_s29, 1024  ;;  %p11258_p2 = scmp.lt.s32.totalorder %s11832_s29, %s11832_s29 }
  0x3d   : > { %p11251_p12 = scmp.ne.s32.totalorder %s11832_s29, %s11250_s4  ;;  %p11259_p4 = scmp.lt.s32.totalorder %s11250_s4, %s11250_s4 }
  0x3f   : > { %p11253_p13 = pnand %p11251_p12, %p11854_p7  ;;  %p11260_p6 = por %p11259_p4, %p11258_p2 }
  0x41   : > { %p11254_p0 = pneg %p11253_p13 }
  0x43   : > { %p11261_p8 = pnand %p11260_p6, %p11254_p0 }
  0x45   : > { %11264 = shalt.err (!%p11261_p8)
}
  0x46   : > { %s14810_s10 = smov 64   ;;  %s14812_s11 = smov 4  }
  0x47   : > { %10841 = dma.hbm_to_vmem [thread:$0]  (!%p11838_p5), %s14862_s28, 1024, %s11832_s29, [#allocation11], %s14810_s10, %s14810_s10, %s14812_s11  }
  0x48   : > { %s14864_s7 = sld [smem:[#allocation43_spill]] }
  0x4e   : > { %s11265_s4 = scalar_lea.hbm %s14864_s7, 1024 }
  0x4f   : > { %p11266_p9 = scmp.ne.s32.totalorder %s14864_s7, %s11265_s4  ;;  %p11272_p12 = scmp.lt.u32.totalorder %s11265_s4, %s14864_s7 }
  0x51   : > { %p11268_p10 = pnand %p11266_p9, %p11854_p7 }
  0x53   : > { %p11269_p11 = pneg %p11268_p10 }
  0x55   : > { %p11274_p13 = pnand %p11272_p12, %p11269_p11 }
  0x57   : > { %11277 = shalt.err (!%p11274_p13)
}
  0x58   : > { %s11278_s29 = scalar_lea.vmem %s11842_s18, 1024  ;;  %p11286_p6 = scmp.lt.s32.totalorder %s11842_s18, %s11842_s18 }
  0x59   : > { %p11279_p0 = scmp.ne.s32.totalorder %s11842_s18, %s11278_s29  ;;  %p11287_p8 = scmp.lt.s32.totalorder %s11278_s29, %s11278_s29 }
  0x5b   : > { %p11281_p2 = pnand %p11279_p0, %p11854_p7  ;;  %p11288_p9 = por %p11287_p8, %p11286_p6 }
  0x5d   : > { %p11282_p4 = pneg %p11281_p2 }
  0x5f   : > { %p11289_p10 = pnand %p11288_p9, %p11282_p4 }
  0x61   : > { %11292 = shalt.err (!%p11289_p10)
}
  0x62   : > { %10847 = dma.hbm_to_vmem [thread:$0]  (!%p11838_p5), %s14864_s7, 1024, %s11842_s18, [#allocation14], %s14810_s10, %s14810_s10, %s14812_s11  }
  0x63   : > { %s14865_s13 = sld [smem:[#allocation49_spill]] }
  0x69   : > { %s11293_s12 = scalar_lea.hbm %s14865_s13, 2048 }
  0x6a   : > { %p11294_p11 = scmp.ne.s32.totalorder %s14865_s13, %s11293_s12  ;;  %p11300_p0 = scmp.lt.u32.totalorder %s11293_s12, %s14865_s13 }
  0x6c   : > { %p11296_p12 = pnand %p11294_p11, %p11854_p7 }
  0x6e   : > { %p11297_p13 = pneg %p11296_p12 }
  0x70   : > { %p11302_p2 = pnand %p11300_p0, %p11297_p13 }
  0x72   : > { %11305 = shalt.err (!%p11302_p2)
}
  0x73   : > { %s11306_s29 = scalar_lea.vmem %s587_s16, 2048  ;;  %p11314_p9 = scmp.lt.s32.totalorder %s587_s16, %s587_s16 }
  0x74   : > { %p11307_p4 = scmp.ne.s32.totalorder %s587_s16, %s11306_s29  ;;  %p11315_p10 = scmp.lt.s32.totalorder %s11306_s29, %s11306_s29 }
  0x76   : > { %p11309_p6 = pnand %p11307_p4, %p11854_p7  ;;  %p11316_p1 = por %p11315_p10, %p11314_p9 }
  0x78   : > { %p11310_p8 = pneg %p11309_p6 }
  0x7a   : > { %p11317_p3 = pnand %p11316_p1, %p11310_p8 }
  0x7c   : > { %11320 = shalt.err (!%p11317_p3)
}
  0x7d   : > { %s14814_s18 = smov 128   ;;  %s14816_s6 = smov 8  }
  0x7e   : > { %10853 = dma.hbm_to_vmem [thread:$0]  (!%p11838_p5), %s14865_s13, 2048, %s587_s16, [#allocation17], %s14814_s18, %s14814_s18, %s14816_s6  }
  0x7f   : > { %p14819_p1 = scmp.eq.s32.totalorder %s11637_s3, 0  ;;  %p95_p3 = scmp.ne.s32.totalorder %s11605_s20, %s11601_s30 }
  0x80   : > { %p101_p11 = scmp.ne.s32.totalorder %s11601_s30, %s11597_s0  ;;  %p14818_p12 = scmp.lt.s32.totalorder %s11637_s3, 4 }
  0x81   : > { %s648_s14 = sand.u32 1, %s11637_s3   ;;  %p97_p13 = por %p95_p3, %p14819_p1 }
  0x82   : > { %p14866_p0 = scmp.eq.s32.totalorder %s11823_s26, 0  ;;  %s650_s17 = sand.u32 1, %s11605_s20  }
  0x83   : > { %s10048_s4 = sshll.u32 %s650_s17, 7  ;;  %s10258_s29 = sshll.u32 %s11633_s25, 11 }
  0x84   : > { %p11939_p2 = por %p101_p11, %p14866_p0  ;;  %s14869_s2 = sld [smem:[#allocation37_spill]] }
  0x85   : > { %s652_s0 = scalar_lea.vmem [#allocation7], %s10048_s4  ;;  %p11952_p4 = pnand %p14818_p12, %p97_p13 }
  0x86   : > { %s14867_s23 = scalar_select %p11939_p2, 1, 0 }
  0x87   : > { %s659_s12 = sshll.u32 %s652_s0, 4  ;;  %s11646_s17 = smov [#allocation12]   ;;  %s11956_s12 = int_to_ptr.vmem [resolvable:$true] %s659_s12 }
  0x88   : > { %14868 = sst [smem:[#allocation32_spill]] %s14867_s23  ;;  %s11958_s18 = sshll.u32 %s11646_s17, 4  ;;  %s533_s18 = int_to_ptr.vmem [resolvable:$true] %s11958_s18 }
  0x89   : > { %p11323_p8 = pneg %p11952_p4 }
  0x8a   : > { %s14870_s10 = smov %s14869_s2  ;;  %s11948_s27 = scalar_lea.hbm %s14869_s2, %s10258_s29 }
  0x8b   : > { %s11960_s29 = scalar_lea.sflag [#allocation8], %s648_s14  ;;  %s11321_s21 = scalar_lea.hbm %s11948_s27, 2048 }
  0x8c   : > { %p11322_p6 = scmp.ne.s32.totalorder %s11948_s27, %s11321_s21  ;;  %s11326_s2 = scalar_lea.hbm %s14870_s10, 4096 }
  0x8d   : > { %p11327_p3 = scmp.lt.u32.totalorder %s11948_s27, %s14870_s10  ;;  %p11328_p11 = scmp.lt.u32.totalorder %s11326_s2, %s11321_s21 }
  0x8e   : > { %p11324_p9 = pnand %p11323_p8, %p11322_p6  ;;  %p11330_p0 = scmp.lt.u32.totalorder %s11321_s21, %s11948_s27 }
  0x8f   : > { %p11329_p13 = por %p11328_p11, %p11327_p3 }
  0x90   : > { %p11325_p10 = pneg %p11324_p9 }
  0x91   : > { %p11331_p12 = por %p11330_p0, %p11329_p13 }
  0x93   : > { %p11332_p1 = pnand %p11331_p12, %p11325_p10 }
  0x95   : > { %11335 = shalt.err (!%p11332_p1)
}
  0x96   : > { %s11336_s14 = scalar_lea.vmem %s11956_s12, 2048  ;;  %s11647_s17 = smov [#allocation7]  }
  0x97   : > { %p11337_p6 = scmp.ne.s32.totalorder %s11956_s12, %s11336_s14  ;;  %s11341_s4 = sshll.u32 %s11647_s17, 4  ;;  %s11342_s4 = int_to_ptr.vmem [resolvable:$false] %s11341_s4 }
  0x98   : > { %s11343_s6 = scalar_lea.vmem %s11342_s4, 4096  ;;  %p11344_p5 = scmp.lt.s32.totalorder %s11956_s12, %s11342_s4 }
  0x99   : > { %p11339_p9 = pnand %p11337_p6, %p11323_p8  ;;  %p11345_p3 = scmp.lt.s32.totalorder %s11343_s6, %s11336_s14 }
  0x9b   : > { %p11340_p2 = pneg %p11339_p9  ;;  %p11346_p11 = por %p11345_p3, %p11344_p5 }
  0x9d   : > { %p11347_p13 = pnand %p11346_p11, %p11340_p2 }
  0x9f   : > { %11350 = shalt.err (!%p11347_p13)
}
  0xa0   : > { %s14872_s21 = smov 8   ;;  %s14873_s16 = smov 128  }
  0xa1   : > { %10863 = dma.hbm_to_vmem [thread:$0]  (!%p11952_p4), %s11948_s27, 2048, %s11956_s12, %s11960_s29, %s14873_s16, %s14873_s16, %s14872_s21  }
  0xa2   : > { %s14874_s5 = sld [smem:[#allocation41_spill]] }
  0xa8   : > { %s11351_s17 = scalar_lea.hbm %s14874_s5, 1024 }
  0xa9   : > { %p11352_p5 = scmp.ne.s32.totalorder %s14874_s5, %s11351_s17  ;;  %p11358_p2 = scmp.lt.u32.totalorder %s11351_s17, %s14874_s5 }
  0xab   : > { %p11354_p1 = pnand %p11352_p5, %p11854_p7 }
  0xad   : > { %p11355_p12 = pneg %p11354_p1 }
  0xaf   : > { %p11360_p8 = pnand %p11358_p2, %p11355_p12 }
  0xb1   : > { %11363 = shalt.err (!%p11360_p8)
}
  0xb2   : > { %s11364_s7 = scalar_lea.vmem %s533_s18, 1024  ;;  %p11372_p6 = scmp.lt.s32.totalorder %s533_s18, %s533_s18 }
  0xb3   : > { %p11365_p4 = scmp.ne.s32.totalorder %s533_s18, %s11364_s7  ;;  %p11373_p9 = scmp.lt.s32.totalorder %s11364_s7, %s11364_s7 }
  0xb5   : > { %p11367_p10 = pnand %p11365_p4, %p11854_p7  ;;  %p11374_p3 = por %p11373_p9, %p11372_p6 }
  0xb7   : > { %p11368_p0 = pneg %p11367_p10 }
  0xb9   : > { %p11375_p11 = pnand %p11374_p3, %p11368_p0 }
  0xbb   : > { %11378 = shalt.err (!%p11375_p11)
}
  0xbc   : > { %p14875_p13 = scmp.ne.s32.totalorder %s14861_s19, 0  ;;  %s14876_s27 = smov 4  }
  0xbd   : > { %s14877_s12 = smov 64   ;;  %s11648_s17 = smov [#allocation15]  }
  0xbe   : > { %10844 = dma.hbm_to_vmem [thread:$0]  (!%p14875_p13), %s14874_s5, 1024, %s533_s18, [#allocation11], %s14877_s12, %s14877_s12, %s14876_s27  }
  0xbf   : > { %s564_s14 = sshll.u32 %s11648_s17, 4  ;;  %s11649_s4 = smov [#allocation18]   ;;  %s565_s14 = int_to_ptr.vmem [resolvable:$true] %s564_s14 }
  0xc0   : > { %s602_s11 = sshll.u32 %s11649_s4, 4  ;;  %s14878_s9 = sld [smem:[#allocation45_spill]]  ;;  %s603_s11 = int_to_ptr.vmem [resolvable:$true] %s602_s11 }
  0xc6   : > { %s11379_s10 = scalar_lea.hbm %s14878_s9, 1024 }
  0xc7   : > { %p11380_p5 = scmp.ne.s32.totalorder %s14878_s9, %s11379_s10  ;;  %p11386_p2 = scmp.lt.u32.totalorder %s11379_s10, %s14878_s9 }
  0xc9   : > { %p11382_p1 = pnand %p11380_p5, %p11854_p7 }
  0xcb   : > { %p11383_p12 = pneg %p11382_p1 }
  0xcd   : > { %p11388_p8 = pnand %p11386_p2, %p11383_p12 }
  0xcf   : > { %11391 = shalt.err (!%p11388_p8)
}
  0xd0   : > { %s11392_s18 = scalar_lea.vmem %s565_s14, 1024  ;;  %p11400_p6 = scmp.lt.s32.totalorder %s565_s14, %s565_s14 }
  0xd1   : > { %p11393_p4 = scmp.ne.s32.totalorder %s565_s14, %s11392_s18  ;;  %p11401_p9 = scmp.lt.s32.totalorder %s11392_s18, %s11392_s18 }
  0xd3   : > { %p11395_p10 = pnand %p11393_p4, %p11854_p7  ;;  %p11402_p3 = por %p11401_p9, %p11400_p6 }
  0xd5   : > { %p11396_p0 = pneg %p11395_p10 }
  0xd7   : > { %p11403_p11 = pnand %p11402_p3, %p11396_p0 }
  0xd9   : > { %11406 = shalt.err (!%p11403_p11)
}
  0xda   : > { %10850 = dma.hbm_to_vmem [thread:$0]  (!%p14875_p13), %s14878_s9, 1024, %s565_s14, [#allocation14], %s14877_s12, %s14877_s12, %s14876_s27  }
  0xdb   : > { %s14879_s15 = sld [smem:[#allocation51_spill]] }
  0xe1   : > { %s11407_s0 = scalar_lea.hbm %s14879_s15, 2048 }
  0xe2   : > { %p11408_p5 = scmp.ne.s32.totalorder %s14879_s15, %s11407_s0  ;;  %p11414_p2 = scmp.lt.u32.totalorder %s11407_s0, %s14879_s15 }
  0xe4   : > { %p11410_p1 = pnand %p11408_p5, %p11854_p7 }
  0xe6   : > { %p11411_p12 = pneg %p11410_p1 }
  0xe8   : > { %p11416_p8 = pnand %p11414_p2, %p11411_p12 }
  0xea   : > { %11419 = shalt.err (!%p11416_p8)
}
  0xeb   : > { %s11420_s2 = scalar_lea.vmem %s603_s11, 2048  ;;  %p11428_p6 = scmp.lt.s32.totalorder %s603_s11, %s603_s11 }
  0xec   : > { %p11421_p4 = scmp.ne.s32.totalorder %s603_s11, %s11420_s2  ;;  %p11429_p9 = scmp.lt.s32.totalorder %s11420_s2, %s11420_s2 }
  0xee   : > { %p11423_p10 = pnand %p11421_p4, %p11854_p7  ;;  %p11430_p3 = por %p11429_p9, %p11428_p6 }
  0xf0   : > { %p11424_p0 = pneg %p11423_p10 }
  0xf2   : > { %p11431_p11 = pnand %p11430_p3, %p11424_p0 }
  0xf4   : > { %11434 = shalt.err (!%p11431_p11)
}
  0xf5   : > { %s14880_s8 = sld [smem:[#allocation27_spill]]  ;;  %s10035_s19 = sadd.s32 4294967294, %s11637_s3  }
  0xf6   : > { %10856 = dma.hbm_to_vmem [thread:$0]  (!%p14875_p13), %s14879_s15, 2048, %s603_s11, [#allocation17], %s14877_s12, %s14877_s12, %s14876_s27  }
  0xf7   : > { %s50_s13 = sadd.s32 1, %s11629_s24  ;;  %s62_s28 = sadd.s32 1, %s11617_s22 }
  0xf8   : > { %p51_p7 = scmp.ge.s32.totalorder %s50_s13, 2  ;;  %p69_p5 = scmp.ne.s32.totalorder %s11617_s22, %s11613_s1 }
  0xf9   : > { %p491_p12 = scmp.eq.s32.totalorder %s11823_s26, 3  ;;  %s14882_s10 = sadd.s32 1, %s11633_s25 }
  0xfa   : > { %s14938_s13 = smov (%p51_p7, %s50_s13), 0  ;;  %s14940_s10 = smov (!%p51_p7, %s14882_s10), %s11633_s25 }
  0xfb   : > { %p75_p1 = scmp.ne.s32.totalorder %s11613_s1, %s14880_s8  ;;  %14881 = sst [smem:[#allocation33_spill]] %s14938_s13 }
  0xfc   : > { %s58_s23 = ssub.s32 %s11629_s24, %s14938_s13  ;;  %p14883_p2 = scmp.eq.s32.totalorder %s11637_s3, 0 }
  0xfd   : > { %p55_p8 = scmp.ge.s32.totalorder %s14940_s10, 2  ;;  %p14885_p4 = scmp.eq.s32.totalorder %s11823_s26, 0 }
  0xfe   : > { %p12072_p13 = por %p14883_p2, %p69_p5  ;;  %p12082_p0 = por %p491_p12, %p69_p5 }
  0xff   : > { %p12078_p10 = por %p14885_p4, %p75_p1  ;;  %p497_p6 = scmp.eq.s32.totalorder %s10035_s19, 3 }
 0x100   : > { %s14887_s17 = scalar_select %p12082_p0, 1, 0 }
 0x101   : > { %s14942_s10 = smov (%p55_p8, %s14940_s10), 0  ;;  %p12088_p9 = por %p497_p6, %p75_p1 }
 0x102   : > { %14888 = sst [smem:[#allocation34_spill]] %s14942_s10  ;;  %s12093_s6 = sand.u32 1, %s11617_s22  }
 0x103   : > { %s14889_s4 = scalar_select %p12088_p9, 1, 0 }
 0x104   : > { %s57_s7 = ssub.s32 %s11633_s25, %s14942_s10  ;;  %s10044_s14 = sshll.u32 %s12093_s6, 6 }
 0x105   : > { %14890 = sst [smem:[#allocation35_spill]] %s14889_s4  ;;  %s59_s2 = sor.u32 %s58_s23, %s57_s7 }
 0x106   : > { %p86_p3 = scmp.eq.s32.totalorder %s57_s7, 0  ;;  %p60_p11 = scmp.eq.s32.totalorder %s59_s2, 0 }
 0x107   : > { %s14891_s18 = sadd.s32 1, %s11605_s20  ;;  %s10045_s5 = sshll.u32 %s11629_s24, 3 }
 0x108   : > { %s12101_s8 = scalar_select %p86_p3, %s11605_s20, %s14891_s18  }
 0x109   : > { %s12104_s19 = scalar_select %p60_p11, %s11617_s22, %s62_s28  }
 0x10a   : > { %s10046_s9 = sshll.u32 %s11633_s25, 4  ;;  %s629_s15 = scalar_lea.vmem [#allocation4], %s10044_s14 }
 0x10b   : > { %s638_s13 = sshll.u32 %s629_s15, 4  ;;  %s12108_s4 = sadd.s32 %s10046_s9, %s10045_s5  ;;  %s12110_s13 = int_to_ptr.vmem [resolvable:$true] %s638_s13 }
 0x10c   : > { %s10047_s23 = sshll.u32 %s12108_s4, 7  ;;  %p14892_p7 = scmp.lt.s32.totalorder %s11637_s3, 4 }
 0x10d   : > { %s14894_s18 = sld [smem:[#allocation36_spill]]  ;;  %s626_s9 = scalar_lea.sflag [#allocation5], %s12093_s6 }
 0x10e   : > { %p12117_p5 = pnand %p14892_p7, %p12072_p13 }
 0x110   : > { %p11437_p12 = pneg %p12117_p5 }
 0x113   : > { %s12124_s14 = scalar_lea.hbm %s14894_s18, %s10047_s23  ;;  %s11440_s28 = scalar_lea.hbm %s14894_s18, 4096 }
 0x114   : > { %s11435_s15 = scalar_lea.hbm %s12124_s14, 1024  ;;  %p11441_p8 = scmp.lt.u32.totalorder %s12124_s14, %s14894_s18 }
 0x115   : > { %p11436_p1 = scmp.ne.s32.totalorder %s12124_s14, %s11435_s15  ;;  %p11442_p4 = scmp.lt.u32.totalorder %s11440_s28, %s11435_s15 }
 0x116   : > { %p11444_p3 = scmp.lt.u32.totalorder %s11435_s15, %s12124_s14 }
 0x117   : > { %p11438_p2 = pnand %p11437_p12, %p11436_p1  ;;  %p11443_p6 = por %p11442_p4, %p11441_p8 }
 0x119   : > { %p11439_p13 = pneg %p11438_p2  ;;  %p11445_p11 = por %p11444_p3, %p11443_p6 }
 0x11b   : > { %p11446_p7 = pnand %p11445_p11, %p11439_p13 }
 0x11d   : > { %11449 = shalt.err (!%p11446_p7)
}
 0x11e   : > { %s11450_s5 = scalar_lea.vmem %s12110_s13, 1024  ;;  %s11650_s11 = smov [#allocation4]  }
 0x11f   : > { %p11451_p1 = scmp.ne.s32.totalorder %s12110_s13, %s11450_s5  ;;  %s11455_s2 = sshll.u32 %s11650_s11, 4  ;;  %s11456_s2 = int_to_ptr.vmem [resolvable:$false] %s11455_s2 }
 0x120   : > { %s11457_s10 = scalar_lea.vmem %s11456_s2, 2048  ;;  %p11458_p0 = scmp.lt.s32.totalorder %s12110_s13, %s11456_s2 }
 0x121   : > { %p11453_p2 = pnand %p11451_p1, %p11437_p12  ;;  %p11459_p8 = scmp.lt.s32.totalorder %s11457_s10, %s11450_s5 }
 0x123   : > { %p11454_p9 = pneg %p11453_p2  ;;  %p11460_p4 = por %p11459_p8, %p11458_p0 }
 0x125   : > { %p11461_p6 = pnand %p11460_p4, %p11454_p9 }
 0x127   : > { %11464 = shalt.err (!%p11461_p6)
}
 0x128   : > { %10860 = dma.hbm_to_vmem [thread:$0]  (!%p12117_p5), %s12124_s14, 1024, %s12110_s13, %s626_s9, %s14873_s16, %s14873_s16, %s14872_s21  }
 0x129   : > { %s10051_s15 = sshll.u32 %s12093_s6, 5  ;;  %s14895_s28 = sshll.u32 %s12108_s4, 6 }
 0x12a   : > { %s14896_s11 = sld [smem:[#allocation38_spill]]  ;;  %s673_s10 = scalar_lea.vmem [#allocation9], %s10051_s15 }
 0x12b   : > { %s682_s18 = sshll.u32 %s673_s10, 4  ;;  %s12166_s18 = int_to_ptr.vmem [resolvable:$true] %s682_s18 }
 0x130   : > { %s12164_s2 = scalar_lea.hbm %s14896_s11, %s14895_s28  ;;  %s11470_s13 = scalar_lea.hbm %s14896_s11, 2048 }
 0x131   : > { %s11465_s25 = scalar_lea.hbm %s12164_s2, 512  ;;  %p11471_p3 = scmp.lt.u32.totalorder %s12164_s2, %s14896_s11 }
 0x132   : > { %p11466_p0 = scmp.ne.s32.totalorder %s12164_s2, %s11465_s25  ;;  %p11472_p11 = scmp.lt.u32.totalorder %s11470_s13, %s11465_s25 }
 0x133   : > { %p11474_p1 = scmp.lt.u32.totalorder %s11465_s25, %s12164_s2 }
 0x134   : > { %p11468_p9 = pnand %p11466_p0, %p11437_p12  ;;  %p11473_p7 = por %p11472_p11, %p11471_p3 }
 0x136   : > { %p11469_p13 = pneg %p11468_p9  ;;  %p11475_p2 = por %p11474_p1, %p11473_p7 }
 0x138   : > { %p11476_p8 = pnand %p11475_p2, %p11469_p13 }
 0x13a   : > { %11479 = shalt.err (!%p11476_p8)
}
 0x13b   : > { %s11480_s14 = scalar_lea.vmem %s12166_s18, 512  ;;  %s11651_s9 = smov [#allocation9]  }
 0x13c   : > { %p11481_p4 = scmp.ne.s32.totalorder %s12166_s18, %s11480_s14  ;;  %s11485_s15 = sshll.u32 %s11651_s9, 4  ;;  %s11486_s15 = int_to_ptr.vmem [resolvable:$false] %s11485_s15 }
 0x13d   : > { %s11487_s28 = scalar_lea.vmem %s11486_s15, 1024  ;;  %p11488_p9 = scmp.lt.s32.totalorder %s12166_s18, %s11486_s15 }
 0x13e   : > { %p11483_p6 = pnand %p11481_p4, %p11437_p12  ;;  %p11489_p3 = scmp.lt.s32.totalorder %s11487_s28, %s11480_s14 }
 0x140   : > { %p11484_p0 = pneg %p11483_p6  ;;  %p11490_p11 = por %p11489_p3, %p11488_p9 }
 0x142   : > { %p11491_p7 = pnand %p11490_p11, %p11484_p0 }
 0x144   : > { %11494 = shalt.err (!%p11491_p7)
}
 0x145   : > { %10866 = dma.hbm_to_vmem [thread:$0]  (!%p12117_p5), %s12164_s2, 512, %s12166_s18, %s11960_s29, %s14877_s12, %s14877_s12, %s14876_s27  }
 0x146   : > { %s14897_s25 = sld [smem:[#allocation31_spill]] }
 0x14c   : > { %p14898_p12 = scmp.ne.s32.totalorder %s14897_s25, 0 }
 0x14d   : > { %s12198_s23 = sand.u32 (!%p14898_p12), 1, %s11613_s1  }
 0x14e   : > { %694 = sbr.rel (%p14898_p12) target bundleno = 3507 (0xdb3), region = 96  ;;  %s10056_s5 = sshll.u32 (!%p14898_p12), %s12198_s23, 6 }
 0x14f   : > { %s697_s10 = scalar_lea.sflag (!%p14898_p12), [#allocation5], %s12198_s23  ;;  %s12202_s21 = scalar_lea.vmem (!%p14898_p12), [#allocation4], %s10056_s5 }
 0x155   : > { %11568 = dma.done.wait (%p12078_p10), %s697_s10, 1024  }
 0x156   : > { %11570 = vsyncadd (%p12078_p10), %s697_s10, 4294966272  ;;  %s14899_s29 = sld [smem:[#allocation32_spill]]  ;;  %s705_s27 = sand.u32 1, %s11823_s26  }
 0x157   : > { %s707_s12 = sand.u32 1, %s11601_s30   ;;  %s706_s18 = scalar_lea.sflag [#allocation8], %s705_s27 }
 0x158   : > { %s10057_s7 = sshll.u32 %s707_s12, 7 }
 0x159   : > { %s12210_s2 = scalar_lea.vmem [#allocation7], %s10057_s7 }
 0x15c   : > { %p14900_p5 = scmp.ne.s32.totalorder %s14899_s29, 0 }
 0x15e   : > { %11572 = dma.done.wait (%p14900_p5), %s706_s18, 2048  }
 0x15f   : > { %11574 = vsyncadd (%p14900_p5), %s706_s18, 4294965248  ;;  %s10058_s16 = sshll.u32 %s12198_s23, 5 }
 0x160   : > { %s12217_s13 = scalar_lea.vmem [#allocation9], %s10058_s16 }
 0x161   : > { %11576 = dma.done.wait (%p12078_p10), %s706_s18, 512  }
 0x162   : > { %11578 = vsyncadd (%p12078_p10), %s706_s18, 4294966784  ;;  %p14901_p13 = scmp.eq.s32.totalorder %s11823_s26, 0 }
 0x164   : > { %11580 = dma.done.wait (%p14901_p13), [#allocation11], 2048   ;;  %p14902_p1 = pmov %p14901_p13 }
 0x166   : > { %11582 = vsyncadd (%p14902_p1), [#allocation11], 4294965248  ;;  %p14903_p2 = pmov %p14902_p1 }
 0x167   : > { %p14904_p8 = pmov %p14902_p1 }
 0x168   : > { %11584 = dma.done.wait (%p14903_p2), [#allocation14], 2048  }
 0x169   : > { %11586 = vsyncadd (%p14904_p8), [#allocation14], 4294965248  ;;  %p14905_p4 = pmov %p14902_p1 }
 0x16a   : > { %p14906_p6 = pmov %p14902_p1 }
 0x16b   : > { %11588 = dma.done.wait (%p14905_p4), [#allocation17], 4096  }
 0x16c   : > { %11590 = vsyncadd (%p14906_p6), [#allocation17], 4294963200  ;;  %s12235_s0 = scalar_lea.vmem [#allocation19], %s10056_s5  ;;  %s14907_s4 = sld [smem:[#allocation28_spill]] }
 0x172   : > { %p10066_p10 = scmp.ne.s32.totalorder %s14907_s4, 0 }
 0x173   : > { %v10997_v0 = vld [vmem:[#allocation12] sm:$0xff] (!%p10066_p10)   ;;  %v10998_v1 = vld [vmem:[#allocation12 + $0x8] sm:$0xff] (!%p10066_p10)   ;;  %v11000_v3 = vld [vmem:[#allocation12 + $0x10] sm:$0xff] (!%p10066_p10)   ;;  %s14908_s14 = sld [smem:[#allocation42_spill]] (!%p10066_p10)  ;;  %s14909_s28 = sld [smem:[#allocation44_spill]] (!%p10066_p10)  ;;  %vm3357_vm0 = vcmask (!%p10066_p10), 261120  }
 0x174   : > { %814 = sbr.rel (%p10066_p10) target bundleno = 1036 (0x40c), region = 136  ;;  %10470 = vmatprep.subr.bf16.mxu0 (!%p10066_p10), %v10997_v0  ;;  %v10999_v2 = vld [vmem:[#allocation13] sm:$0xff] (!%p10066_p10)   ;;  %v11001_v4 = vld [vmem:[#allocation13 + $0x8] sm:$0xff] (!%p10066_p10)   ;;  %v11003_v5 = vld [vmem:[#allocation13 + $0x10] sm:$0xff] (!%p10066_p10)   ;;  %s11652_s25 = smov (!%p10066_p10), 64  }
 0x175   : > { %10471 = vmatpush3.bf16.msra.mxu0 (!%p10066_p10), %v10997_v0  ;;  %10502 = vmatprep.subr.bf16.mxu1 (!%p10066_p10), %v10999_v2  ;;  %v11002_v6 = vld [vmem:[#allocation12 + $0x18] sm:$0xff] (!%p10066_p10)   ;;  %v11004_v8 = vld [vmem:[#allocation12 + $0x20] sm:$0xff] (!%p10066_p10)   ;;  %v816_v11 = vld [vmem:[%s12210_s2 + $0x8] sm:$0xff] (!%p10066_p10)  ;;  %s11653_s5 = smov (!%p10066_p10), 96   ;;  %s11654_s10 = smov (!%p10066_p10), 32  }
 0x176   : > { %10472 = vmatprep.subr.bf16.mxu0 (!%p10066_p10), %v10998_v1  ;;  %10503 = vmatpush3.bf16.msra.mxu1 (!%p10066_p10), %v10999_v2  ;;  %v11005_v7 = vld [vmem:[#allocation13 + $0x18] sm:$0xff] (!%p10066_p10)   ;;  %v11007_v9 = vld [vmem:[#allocation13 + $0x20] sm:$0xff] (!%p10066_p10)   ;;  %v11006_v12 = vld [vmem:[#allocation12 + $0x28] sm:$0xff] (!%p10066_p10)  }
 0x177   : > { %10504 = vmatprep.subr.bf16.mxu1 (!%p10066_p10), %v11001_v4  ;;  %v815_v10 = vld [vmem:[%s12210_s2] sm:$0xff] (!%p10066_p10)  ;;  %v11009_v14 = vld [vmem:[#allocation13 + $0x28] sm:$0xff] (!%p10066_p10)   ;;  %v11008_v15 = vld [vmem:[#allocation12 + $0x30] sm:$0xff] (!%p10066_p10)  }
 0x178   : > { %v831_v13 = vpack.c.bf16 (!%p10066_p10), %v816_v11, %v815_v10  ;;  %v11011_v16 = vld [vmem:[#allocation13 + $0x30] sm:$0xff] (!%p10066_p10)   ;;  %v11010_v17 = vld [vmem:[#allocation12 + $0x38] sm:$0xff] (!%p10066_p10)   ;;  %v819_v21 = vld [vmem:[%s12210_s2 + $0x20] sm:$0xff] (!%p10066_p10) }
 0x179   : > { %10473 = vmatpush3.bf16.msra.mxu0 (!%p10066_p10), %v10998_v1  ;;  %v11012_v18 = vld [vmem:[#allocation13 + $0x38] sm:$0xff] (!%p10066_p10)   ;;  %v817_v19 = vld [vmem:[%s12210_s2 + $0x10] sm:$0xff] (!%p10066_p10)  ;;  %v820_v22 = vld [vmem:[%s12210_s2 + $0x28] sm:$0xff] (!%p10066_p10) }
 0x17a   : > { %10474 = vmatprep.subr.bf16.mxu0 (!%p10066_p10), %v11000_v3  ;;  %10505 = vmatpush3.bf16.msra.mxu1 (!%p10066_p10), %v11001_v4  ;;  %v818_v20 = vld [vmem:[%s12210_s2 + $0x18] sm:$0xff] (!%p10066_p10)  ;;  %v833_v24 = vpack.c.bf16 (!%p10066_p10), %v820_v22, %v819_v21  ;;  %v821_v25 = vld [vmem:[%s12210_s2 + $0x30] sm:$0xff] (!%p10066_p10)  ;;  %v823_v27 = vld [vmem:[%s12210_s2 + $0x40] sm:$0xff] (!%p10066_p10) }
 0x17b   : > { %10506 = vmatprep.subr.bf16.mxu1 %v11003_v5  ;;  %10486 = vmatprep.mubr.bf16.mxu0 %v831_v13  ;;  %v832_v23 = vpack.c.bf16 %v818_v20, %v817_v19  ;;  %v822_v26 = vld [vmem:[%s12210_s2 + $0x38] sm:$0xff]  ;;  %v824_v28 = vld [vmem:[%s12210_s2 + $0x48] sm:$0xff]  ;;  %v825_v31 = vld [vmem:[%s12210_s2 + $0x50] sm:$0xff] }
 0x17c   : > { %10518 = vmatprep.mubr.bf16.mxu1 %v831_v13  ;;  %v834_v29 = vpack.c.bf16 %v822_v26, %v821_v25  ;;  %v835_v30 = vpack.c.bf16 %v824_v28, %v823_v27  ;;  %v826_v32 = vld [vmem:[%s12210_s2 + $0x58] sm:$0xff]  ;;  %v827_v33 = vld [vmem:[%s12210_s2 + $0x60] sm:$0xff]  ;;  %v828_v34 = vld [vmem:[%s12210_s2 + $0x68] sm:$0xff] }
 0x17d   : > { %10475 = vmatpush3.bf16.msra.mxu0 %v11000_v3  ;;  %v836_v35 = vpack.c.bf16 %v826_v32, %v825_v31  ;;  %v837_v36 = vpack.c.bf16 %v828_v34, %v827_v33  ;;  %v829_v37 = vld [vmem:[%s12210_s2 + $0x70] sm:$0xff]  ;;  %v830_v38 = vld [vmem:[%s12210_s2 + $0x78] sm:$0xff]  ;;  %v12257_v41 = vld [vmem:[%s14908_s14] ss:$0 sm:$0xff] }
 0x17e   : > { %10476 = vmatprep.subr.bf16.mxu0 %v11002_v6  ;;  %10507 = vmatpush3.bf16.msra.mxu1 %v11003_v5  ;;  %v838_v39 = vpack.c.bf16 %v830_v38, %v829_v37  ;;  %v12262_v42 = vld [vmem:[%s14909_s28] ss:$0 sm:$0xff] }
 0x17f   : > { %10508 = vmatprep.subr.bf16.mxu1 %v11005_v7 }
 0x181   : > { %10477 = vmatpush3.bf16.msra.mxu0 %v11002_v6 }
 0x182   : > { %10478 = vmatprep.subr.bf16.mxu0 %v11004_v8  ;;  %10509 = vmatpush3.bf16.msra.mxu1 %v11005_v7 }
 0x183   : > { %10510 = vmatprep.subr.bf16.mxu1 %v11007_v9 }
 0x185   : > { %10479 = vmatpush3.bf16.msra.mxu0 %v11004_v8 }
 0x186   : > { %10480 = vmatprep.subr.bf16.mxu0 %v11006_v12  ;;  %10511 = vmatpush3.bf16.msra.mxu1 %v11007_v9 }
 0x187   : > { %10512 = vmatprep.subr.bf16.mxu1 %v11009_v14 }
 0x189   : > { %10481 = vmatpush3.bf16.msra.mxu0 %v11006_v12 }
 0x18a   : > { %10482 = vmatprep.subr.bf16.mxu0 %v11008_v15  ;;  %10513 = vmatpush3.bf16.msra.mxu1 %v11009_v14 }
 0x18b   : > { %10514 = vmatprep.subr.bf16.mxu1 %v11011_v16 }
 0x18d   : > { %10483 = vmatpush3.bf16.msra.mxu0 %v11008_v15 }
 0x18e   : > { %10484 = vmatprep.subr.bf16.mxu0 %v11010_v17  ;;  %10515 = vmatpush3.bf16.msra.mxu1 %v11011_v16 }
 0x18f   : > { %10516 = vmatprep.subr.bf16.mxu1 %v11012_v18 }
 0x191   : > { %10485 = vmatpush3.bf16.msra.mxu0 %v11010_v17 }
 0x192   : > { %10517 = vmatpush3.bf16.msra.mxu1 %v11012_v18 }
 0x194   : > { %10487 = vmatmul.mubr.bf16.vlgmr.msra.gmra.mrb[0].mxu0 %v832_v23 }
 0x195   : > { %10490 = vmatprep.mubr.bf16.mxu0 %v833_v24  ;;  %10519 = vmatmul.mubr.bf16.vlgmr.msra.gmra.mrb[0].mxu1 %v832_v23 }
 0x196   : > { %10522 = vmatprep.mubr.bf16.mxu1 %v833_v24 }
 0x19c   : > { %10491 = vmatmul.mubr.bf16.gmra.mrb[4].mxu0 %v834_v29 }
 0x19d   : > { %10494 = vmatprep.mubr.bf16.mxu0 %v835_v30  ;;  %10523 = vmatmul.mubr.bf16.gmra.mrb[4].mxu1 %v834_v29 }
 0x19e   : > { %10526 = vmatprep.mubr.bf16.mxu1 %v835_v30 }
 0x1a4   : > { %10495 = vmatmul.mubr.bf16.gmra.mrb[8].mxu0 %v836_v35 }
 0x1a5   : > { %10498 = vmatprep.mubr.bf16.mxu0 %v837_v36  ;;  %10527 = vmatmul.mubr.bf16.gmra.mrb[8].mxu1 %v836_v35 }
 0x1a6   : > { %10530 = vmatprep.mubr.bf16.mxu1 %v837_v36 }
 0x1ac   : > { %10499 = vmatmul.mubr.bf16.gmra.mrb[12].mxu0 %v838_v39 }
 0x1ad   : > { %10531 = vmatmul.mubr.bf16.gmra.mrb[12].mxu1 %v838_v39 }
 0x267   : > { %v10488_v40 = vpop.f32.mrb[0].mxu0 }
 0x268   : > { %v944_v43 = vpop.f32.mrb[1].mxu0  ;;  %v10520_v45 = vpop.f32.mrb[0].mxu1  ;;  %v953_v46 = vadd.f32 %v10488_v40, %v12257_v41 }
 0x269   : > { %v10489_v44 = vpop.f32.mrb[2].mxu0  ;;  %v1121_v49 = vadd.f32 %v10520_v45, %v12262_v42  ;;  %v1112_v50 = vpop.f32.mrb[1].mxu1  ;;  %v945_v51 = vadd.f32 %v12257_v41, %v944_v43 }
 0x26a   : > { %v956_v47 = vadd.f32 %v10489_v44, %v12257_v41  ;;  %v947_v48 = vpop.f32.mrb[3].mxu0  ;;  %v1113_v53 = vadd.f32 %v12262_v42, %v1112_v50  ;;  %v10521_v54 = vpop.f32.mrb[2].mxu1 }
 0x26b   : > { %v948_v52 = vadd.f32 %v12257_v41, %v947_v48  ;;  %v1124_v56 = vadd.f32 %v10521_v54, %v12262_v42  ;;  %v1115_v57 = vpop.f32.mrb[3].mxu1 }
 0x26c   : > { %v12270_v55 = vpack.c.bf16 %v956_v47, %v953_v46  ;;  %v1116_v59 = vadd.f32 %v12262_v42, %v1115_v57 }
 0x26d   : > { %v12273_v58 = vpack.c.bf16 %v948_v52, %v945_v51  ;;  %v12276_v60 = vpack.c.bf16 %v1124_v56, %v1121_v49 }
 0x26e   : > { %1209 = vrot.lane.b32.xlu1 %v12270_v55, %s11652_s25  ;;  %1193 = vrot.lane.b32.xlu0 %v12270_v55, %s11653_s5  ;;  %v12282_v61 = vpack.c.bf16 %v1116_v59, %v1113_v53 }
 0x26f   : > { %v10492_v62 = vpop.f32.mrb[4].mxu0 }
 0x270   : > { %v969_v63 = vadd.f32 %v10492_v62, %v12257_v41  ;;  %v960_v0 = vpop.f32.mrb[5].mxu0  ;;  %v10524_v3 = vpop.f32.mrb[4].mxu1 }
 0x271   : > { %v961_v1 = vadd.f32 %v12257_v41, %v960_v0  ;;  %v10493_v2 = vpop.f32.mrb[6].mxu0  ;;  %v1137_v6 = vadd.f32 %v10524_v3, %v12262_v42  ;;  %v1128_v7 = vpop.f32.mrb[5].mxu1  ;;  %v1377_v0 = vlaneseq }
 0x272   : > { %1225 = vrot.lane.b32.xlu1 %v12270_v55, %s11654_s10  ;;  %1191 = vrot.lane.b32.xlu0 %v12273_v58, %s11653_s5  ;;  %v972_v4 = vadd.f32 %v10493_v2, %v12257_v41  ;;  %v963_v5 = vpop.f32.mrb[7].mxu0  ;;  %v1129_v9 = vadd.f32 %v12262_v42, %v1128_v7  ;;  %v10525_v10 = vpop.f32.mrb[6].mxu1 }
 0x273   : > { %v964_v8 = vadd.f32 %v12257_v41, %v963_v5  ;;  %v1140_v12 = vadd.f32 %v10525_v10, %v12262_v42  ;;  %v1131_v13 = vpop.f32.mrb[7].mxu1 }
 0x274   : > { %v12294_v11 = vpack.c.bf16 %v972_v4, %v969_v63  ;;  %v1132_v15 = vadd.f32 %v12262_v42, %v1131_v13  ;;  %v1378_v4 = vshrl.u32 %v1377_v0, 7 }
 0x275   : > { %v12297_v14 = vpack.c.bf16 %v964_v8, %v961_v1  ;;  %v12304_v16 = vpack.c.bf16 %v1140_v12, %v1137_v6  ;;  %v11656_v1 = vmov 1934713408   ;;  %v11657_v6 = vmov 0  }
 0x276   : > { %3408 = vrot.lane.b32.xlu1 %v12276_v60, %s11653_s5  ;;  %1207 = vrot.lane.b32.xlu0 %v12273_v58, %s11652_s25  ;;  %v12306_v17 = vpack.c.bf16 %v1132_v15, %v1129_v9  ;;  %v1406_v2 = vunpack.c.l.s4 %v11656_v1  ;;  %v12424_v7 = vpack.i.b16 %v11657_v6, %v11657_v6  ;;  %v1265_v12 = vshrl.u32 %v12270_v55, 16 }
 0x277   : > { %v10496_v18 = vpop.f32.mrb[8].mxu0  ;;  %v1243_v15 = vshrl.u32 %v12273_v58, 16 }
 0x278   : > { %v985_v19 = vadd.f32 %v10496_v18, %v12257_v41  ;;  %v976_v20 = vpop.f32.mrb[9].mxu0  ;;  %v10528_v23 = vpop.f32.mrb[8].mxu1  ;;  %v1407_v5 = vunpack.c.0.s8 %v1406_v2  ;;  %v3474_v18 = vshrl.u32 %v12276_v60, 16 }
 0x279   : > { %v977_v21 = vadd.f32 %v12257_v41, %v976_v20  ;;  %v10497_v22 = vpop.f32.mrb[10].mxu0  ;;  %v1153_v26 = vadd.f32 %v10528_v23, %v12262_v42  ;;  %v1144_v27 = vpop.f32.mrb[9].mxu1  ;;  %v3506_v23 = vshrl.u32 %v12304_v16, 16 }
 0x27a   : > { %3424 = vrot.lane.b32.xlu1 %v12276_v60, %s11652_s25  ;;  %1223 = vrot.lane.b32.xlu0 %v12273_v58, %s11654_s10  ;;  %v988_v24 = vadd.f32 %v10497_v22, %v12257_v41  ;;  %v979_v25 = vpop.f32.mrb[11].mxu0  ;;  %v1145_v29 = vadd.f32 %v12262_v42, %v1144_v27  ;;  %v10529_v30 = vpop.f32.mrb[10].mxu1  ;;  %v12429_v13 = vsub.s32 %v1407_v5, %v1378_v4  ;;  %v1297_v22 = vshrl.u32 %v12294_v11, 16 }
 0x27b   : > { %v980_v28 = vadd.f32 %v12257_v41, %v979_v25  ;;  %v1156_v32 = vadd.f32 %v10529_v30, %v12262_v42  ;;  %v1147_v33 = vpop.f32.mrb[11].mxu1  ;;  %v1281_v25 = vshrl.u32 %v12297_v14, 16 }
 0x27c   : > { %v12318_v31 = vpack.c.bf16 %v988_v24, %v985_v19  ;;  %v1148_v35 = vadd.f32 %v12262_v42, %v1147_v33  ;;  %v3490_v24 = vshrl.u32 %v12306_v17, 16 }
 0x27d   : > { %v12321_v34 = vpack.c.bf16 %v980_v28, %v977_v21  ;;  %v12328_v36 = vpack.c.bf16 %v1156_v32, %v1153_v26  ;;  %v3458_v21 = vshrl.u32 %v12282_v61, 16 }
 0x27e   : > { %3440 = vrot.lane.b32.xlu1 %v12276_v60, %s11654_s10  ;;  %3406 = vrot.lane.b32.xlu0 %v12282_v61, %s11653_s5  ;;  %v12330_v37 = vpack.c.bf16 %v1148_v35, %v1145_v29  ;;  %v1329_v26 = vshrl.u32 %v12318_v31, 16 }
 0x27f   : > { %v10500_v38 = vpop.f32.mrb[12].mxu0  ;;  %v1313_v29 = vshrl.u32 %v12321_v34, 16 }
 0x280   : > { %v1001_v39 = vadd.f32 %v10500_v38, %v12257_v41  ;;  %v992_v40 = vpop.f32.mrb[13].mxu0  ;;  %v10532_v45 = vpop.f32.mrb[12].mxu1  ;;  %v3522_v33 = vshrl.u32 %v12330_v37, 16 }
 0x281   : > { %v993_v43 = vadd.f32 %v12257_v41, %v992_v40  ;;  %v10501_v44 = vpop.f32.mrb[14].mxu0  ;;  %v1169_v48 = vadd.f32 %v10532_v45, %v12262_v42  ;;  %v1160_v49 = vpop.f32.mrb[13].mxu1 }
 0x282   : > { %1197 = vrot.lane.b32.xlu1 %v12294_v11, %s11653_s5  ;;  %3422 = vrot.lane.b32.xlu0 %v12282_v61, %s11652_s25  ;;  %v1004_v46 = vadd.f32 %v10501_v44, %v12257_v41  ;;  %v995_v47 = vpop.f32.mrb[15].mxu0  ;;  %v1161_v51 = vadd.f32 %v12262_v42, %v1160_v49  ;;  %v10533_v52 = vpop.f32.mrb[14].mxu1 }
 0x283   : > { %v996_v50 = vadd.f32 %v12257_v41, %v995_v47  ;;  %v1172_v54 = vadd.f32 %v10533_v52, %v12262_v42  ;;  %v1163_v56 = vpop.f32.mrb[15].mxu1 }
 0x284   : > { %v12342_v53 = vpack.c.bf16 %v1004_v46, %v1001_v39  ;;  %v1164_v59 = vadd.f32 %v12262_v42, %v1163_v56  ;;  %v11655_v42 = vmov 1983009808  }
 0x285   : > { %v12345_v57 = vpack.c.bf16 %v996_v50, %v993_v43  ;;  %v12352_v62 = vpack.c.bf16 %v1172_v54, %v1169_v48  ;;  %v1375_v63 = vunpack.c.l.s4 %v11655_v42 }
 0x286   : > { %1213 = vrot.lane.b32.xlu1 %v12294_v11, %s11652_s25  ;;  %3438 = vrot.lane.b32.xlu0 %v12282_v61, %s11654_s10  ;;  %v12354_v41 = vpack.c.bf16 %v1164_v59, %v1161_v51  ;;  %v1361_v35 = vshrl.u32 %v12342_v53, 16 }
 0x287   : > { %v1376_v3 = vunpack.c.0.s8 %v1375_v63  ;;  %v1345_v38 = vshrl.u32 %v12345_v57, 16  ;;  %v3570_v39 = vshrl.u32 %v12352_v62, 16 }
 0x289   : > { %v12426_v8 = vsub.s32 %v1376_v3, %v1378_v4 }
 0x28a   : > { %1229 = vrot.lane.b32.xlu1 %v12294_v11, %s11654_s10  ;;  %1211 = vrot.lane.b32.xlu0 %v12297_v14, %s11652_s25 }
 0x28e   : > { %3412 = vrot.lane.b32.xlu1 %v12304_v16, %s11653_s5  ;;  %1227 = vrot.lane.b32.xlu0 %v12297_v14, %s11654_s10 }
 0x292   : > { %3428 = vrot.lane.b32.xlu1 %v12304_v16, %s11652_s25  ;;  %3410 = vrot.lane.b32.xlu0 %v12306_v17, %s11653_s5 }
 0x296   : > { %3444 = vrot.lane.b32.xlu1 %v12304_v16, %s11654_s10  ;;  %3426 = vrot.lane.b32.xlu0 %v12306_v17, %s11652_s25 }
 0x29a   : > { %1195 = vrot.lane.b32.xlu1 %v12297_v14, %s11653_s5  ;;  %3442 = vrot.lane.b32.xlu0 %v12306_v17, %s11654_s10 }
 0x29e   : > { %1201 = vrot.lane.b32.xlu1 %v12318_v31, %s11653_s5  ;;  %1199 = vrot.lane.b32.xlu0 %v12321_v34, %s11653_s5 }
 0x2a2   : > { %1217 = vrot.lane.b32.xlu1 %v12318_v31, %s11652_s25  ;;  %1215 = vrot.lane.b32.xlu0 %v12321_v34, %s11652_s25 }
 0x2a6   : > { %1233 = vrot.lane.b32.xlu1 %v12318_v31, %s11654_s10  ;;  %1231 = vrot.lane.b32.xlu0 %v12321_v34, %s11654_s10 }
 0x2aa   : > { %3416 = vrot.lane.b32.xlu1 %v12328_v36, %s11653_s5  ;;  %3414 = vrot.lane.b32.xlu0 %v12330_v37, %s11653_s5 }
 0x2ae   : > { %3432 = vrot.lane.b32.xlu1 %v12328_v36, %s11652_s25  ;;  %3430 = vrot.lane.b32.xlu0 %v12330_v37, %s11652_s25 }
 0x2b2   : > { %3448 = vrot.lane.b32.xlu1 %v12328_v36, %s11654_s10  ;;  %3446 = vrot.lane.b32.xlu0 %v12330_v37, %s11654_s10 }
 0x2b6   : > { %1205 = vrot.lane.b32.xlu1 %v12342_v53, %s11653_s5  ;;  %1203 = vrot.lane.b32.xlu0 %v12345_v57, %s11653_s5 }
 0x2ba   : > { %1221 = vrot.lane.b32.xlu1 %v12342_v53, %s11652_s25  ;;  %1219 = vrot.lane.b32.xlu0 %v12345_v57, %s11652_s25 }
 0x2be   : > { %1237 = vrot.lane.b32.xlu1 %v12342_v53, %s11654_s10  ;;  %1235 = vrot.lane.b32.xlu0 %v12345_v57, %s11654_s10 }
 0x2c2   : > { %3420 = vrot.lane.b32.xlu1 %v12352_v62, %s11653_s5  ;;  %3418 = vrot.lane.b32.xlu0 %v12354_v41, %s11653_s5 }
 0x2c6   : > { %3436 = vrot.lane.b32.xlu1 %v12352_v62, %s11652_s25  ;;  %3434 = vrot.lane.b32.xlu0 %v12354_v41, %s11652_s25 }
 0x2ca   : > { %3452 = vrot.lane.b32.xlu1 %v12352_v62, %s11654_s10  ;;  %3450 = vrot.lane.b32.xlu0 %v12354_v41, %s11654_s10 }
 0x2e0   : > { %v1210_v9 = vpop.permute.xlu1 %1209  ;;  %v1194_v10 = vpop.permute.xlu0 %1193 }
 0x2e1   : > { %v1263_v19 = vpack.i.b16 %v1194_v10, %v12270_v55  ;;  %v1266_v20 = vshrl.u32 %v1194_v10, 16  ;;  %v3538_v55 = vshrl.u32 %v12328_v36, 16  ;;  %v1273_v40 = vshrl.u32 %v1210_v9, 16 }
 0x2e3   : > { %v1267_v27 = vpack.i.b16 %v1266_v20, %v1265_v12  ;;  %v1505_v28 = vcombine.high %v1263_v19, %v12424_v7  ;;  %v1512_v43 = vrot.slane %v1263_v19, %v12426_v8 }
 0x2e4   : > { %v1226_v30 = vpop.permute.xlu1 %1225  ;;  %v1192_v32 = vpop.permute.xlu0 %1191 }
 0x2e5   : > { %v1571_v44 = vcombine.high %v1267_v27, %v12424_v7  ;;  %v1271_v45 = vpack.i.b16 %v1226_v30, %v1210_v9  ;;  %v1519_v46 = vrot.slane %v1505_v28, %v12426_v8  ;;  %v1274_v47 = vshrl.u32 %v1226_v30, 16 }
 0x2e6   : > { %v1241_v48 = vpack.i.b16 %v1192_v32, %v12273_v58  ;;  %v1244_v49 = vshrl.u32 %v1192_v32, 16  ;;  %v1578_v50 = vrot.slane %v1267_v27, %v12426_v8 }
 0x2e7   : > { %v1585_v51 = vrot.slane %v1571_v44, %v12426_v8  ;;  %v1520_v52 = vcombine.high %v1271_v45, %v12424_v7  ;;  %v1527_v54 = vrot.slane %v1271_v45, %v12426_v8  ;;  %v1275_v56 = vpack.i.b16 %v1274_v47, %v1273_v40 }
 0x2e8   : > { %v1245_v59 = vpack.i.b16 %v1244_v49, %v1243_v15  ;;  %v1373_v42 = vcombine.high %v1241_v48, %v12424_v7  ;;  %v12457_v63 = vrot.slane %v1241_v48, %v12426_v8  ;;  %v3409_v0 = vpop.permute.xlu1 %3408  ;;  %v1208_v45 = vpop.permute.xlu0 %1207 }
 0x2e9   : > { %v1534_v1 = vrot.slane %v1520_v52, %v12426_v8  ;;  %v1535_v58 = vcombine.low %v1512_v43, %v1527_v54  ;;  %v1536_v2 = vcombine.high %v1512_v43, %v1527_v54  ;;  %v3472_v3 = vpack.i.b16 %v3409_v0, %v12276_v60 }
 0x2ea   : > { %v1586_v4 = vcombine.high %v1275_v56, %v12424_v7  ;;  %v1593_v5 = vrot.slane %v1275_v56, %v12426_v8  ;;  %v12464_v6 = vrot.slane %v1373_v42, %v12426_v8  ;;  %v1439_v9 = vcombine.high %v1245_v59, %v12424_v7 }
 0x2eb   : > { %v1543_v10 = vrot.slane %v1535_v58, %v12429_v13  ;;  %v1550_v12 = vrot.slane %v1536_v2, %v12429_v13  ;;  %v1551_v15 = vcombine.low %v1519_v46, %v1534_v1  ;;  %v1552_v19 = vcombine.high %v1519_v46, %v1534_v1 }
 0x2ec   : > { %v1600_v20 = vrot.slane %v1586_v4, %v12426_v8  ;;  %v1601_v27 = vcombine.low %v1578_v50, %v1593_v5  ;;  %v1602_v28 = vcombine.high %v1578_v50, %v1593_v5  ;;  %v12471_v30 = vrot.slane %v1245_v59, %v12426_v8  ;;  %v12481_v2 = vpop.permute.xlu1 %3424 }
 0x2ed   : > { %v1559_v32 = vrot.slane %v1551_v15, %v12429_v13  ;;  %v1566_v40 = vrot.slane %v1552_v19, %v12429_v13  ;;  %v2529_v43 = vcombine.low %v1543_v10, %v1550_v12  ;;  %v10089_v44 = vcombine.high %v1543_v10, %v1550_v12 }
 0x2ee   : > { %v1609_v47 = vrot.slane %v1601_v27, %v12429_v13  ;;  %v1616_v48 = vrot.slane %v1602_v28, %v12429_v13  ;;  %v1617_v49 = vcombine.low %v1585_v51, %v1600_v20  ;;  %v1618_v46 = vcombine.high %v1585_v51, %v1600_v20 }
 0x2ef   : > { %v2536_v52 = vrot.slane %v2529_v43, %v12426_v8  ;;  %v2544_v50 = vrot.slane %v10089_v44, %v12426_v8  ;;  %v2545_v54 = vcombine.low %v1559_v32, %v1566_v40  ;;  %v10090_v56 = vcombine.high %v1559_v32, %v1566_v40  ;;  %v1224_v43 = vpop.permute.xlu0 %1223 }
 0x2f0   : > { %v1625_v59 = vrot.slane %v1617_v49, %v12429_v13  ;;  %v1632_v42 = vrot.slane %v1618_v46, %v12429_v13  ;;  %v2579_v1 = vcombine.low %v1609_v47, %v1616_v48  ;;  %v10091_v58 = vcombine.high %v1609_v47, %v1616_v48 }
 0x2f1   : > { %v2552_v4 = vrot.slane %v2545_v54, %v12426_v8  ;;  %v2560_v5 = vrot.slane %v10090_v56, %v12426_v8  ;;  %v2561_v10 = vcombine.low %v2536_v52, %v2544_v50  ;;  %v12486_v51 = vrot.slane %v1439_v9, %v12426_v8 }
 0x2f2   : > { %v2586_v12 = vrot.slane %v2579_v1, %v12426_v8  ;;  %v2594_v15 = vrot.slane %v10091_v58, %v12426_v8  ;;  %v2595_v19 = vcombine.low %v1625_v59, %v1632_v42  ;;  %v10092_v20 = vcombine.high %v1625_v59, %v1632_v42  ;;  %v3441_v42 = vpop.permute.xlu1 %3440 }
 0x2f3   : > { %v2568_v27 = vrot.slane %v2561_v10, %v12429_v13  ;;  %v2569_v28 = vcombine.low %v2552_v4, %v2560_v5  ;;  %v3475_v32 = vshrl.u32 %v3409_v0, 16  ;;  %v3714_v40 = vcombine.high %v3472_v3, %v12424_v7 }
 0x2f4   : > { %v2602_v44 = vrot.slane %v2595_v19, %v12426_v8  ;;  %v2610_v47 = vrot.slane %v10092_v20, %v12426_v8  ;;  %v2611_v9 = vcombine.low %v2586_v12, %v2594_v15  ;;  %v12495_v48 = vrot.slane %v3472_v3, %v12426_v8 }
 0x2f5   : > { %v2576_v49 = vrot.slane %v2569_v28, %v12429_v13  ;;  %v3476_v46 = vpack.i.b16 %v3475_v32, %v3474_v18  ;;  %v12501_v52 = vrot.slane %v3714_v40, %v12426_v8  ;;  %v1251_v0 = vshrl.u32 %v1208_v45, 16 }
 0x2f6   : > { %v2618_v50 = vrot.slane %v2611_v9, %v12429_v13  ;;  %v2619_v54 = vcombine.low %v2602_v44, %v2610_v47  ;;  %v3482_v56 = vshrl.u32 %v12481_v2, 16  ;;  %v1249_v59 = vpack.i.b16 %v1224_v43, %v1208_v45 }
 0x2f7   : > { %v2577_v1 = vcombine.low %v2568_v27, %v2576_v49  ;;  %v2578_v58 = vcombine.high %v2568_v27, %v2576_v49  ;;  %v3780_v3 = vcombine.high %v3476_v46, %v12424_v7  ;;  %v12507_v4 = vrot.slane %v3476_v46, %v12426_v8 }
 0x2f8   : > { %v2626_v60 = vrot.slane %v2619_v54, %v12429_v13  ;;  %v1252_v18 = vshrl.u32 %v1224_v43, 16  ;;  %v1388_v5 = vcombine.high %v1249_v59, %v12424_v7  ;;  %v1395_v10 = vrot.slane %v1249_v59, %v12426_v8 }
 0x2f9   : > { %v3249_v12 = vshrl.u32 %v2577_v1, 16  ;;  %v3257_v15 = vshrl.u32 %v2578_v58, 16  ;;  %v12513_v19 = vrot.slane %v3780_v3, %v12426_v8  ;;  %v3480_v45 = vpack.i.b16 %v3441_v42, %v12481_v2 }
 0x2fa   : > { %v2627_v20 = vcombine.low %v2618_v50, %v2626_v60  ;;  %v2628_v27 = vcombine.high %v2618_v50, %v2626_v60  ;;  %v1253_v28 = vpack.i.b16 %v1252_v18, %v1251_v0  ;;  %v1402_v32 = vrot.slane %v1388_v5, %v12426_v8 }
 0x2fb   : > { %v1403_v40 = vcombine.low %v12457_v63, %v1395_v10  ;;  %v1404_v43 = vcombine.high %v12457_v63, %v1395_v10  ;;  %v3483_v44 = vshrl.u32 %v3441_v42, 16  ;;  %v3729_v47 = vcombine.high %v3480_v45, %v12424_v7 }
 0x2fc   : > { %v3247_v9 = vpack.i.b16 %v2627_v20, %v2577_v1  ;;  %v3250_v49 = vshrl.u32 %v2627_v20, 16  ;;  %v3255_v46 = vpack.i.b16 %v2628_v27, %v2578_v58  ;;  %v3258_v54 = vshrl.u32 %v2628_v27, 16 }
 0x2fd   : > { %v1411_v59 = vrot.slane %v1403_v40, %v12429_v13  ;;  %v1418_v2 = vrot.slane %v1404_v43, %v12429_v13  ;;  %v1419_v50 = vcombine.low %v12464_v6, %v1402_v32  ;;  %v1420_v0 = vcombine.high %v12464_v6, %v1402_v32 }
 0x2fe   : > { %v3251_v3 = vpack.i.b16 %v3250_v49, %v3249_v12  ;;  %v3259_v60 = vpack.i.b16 %v3258_v54, %v3257_v15  ;;  %3359 = vst.msk [vmem:[#allocation2 + $0x8] sm:$0xff] %vm3357_vm0, %v3247_v9  ;;  %3375 = vst.msk [vmem:[#allocation2 + $0x88] sm:$0xff] %vm3357_vm0, %v3255_v46  ;;  %v1454_v63 = vcombine.high %v1253_v28, %v12424_v7 }
 0x2ff   : > { %v1461_v42 = vrot.slane %v1253_v28, %v12426_v8  ;;  %v1427_v1 = vrot.slane %v1419_v50, %v12429_v13  ;;  %v1434_v58 = vrot.slane %v1420_v0, %v12429_v13  ;;  %v2429_v18 = vcombine.low %v1411_v59, %v1418_v2 }
 0x300   : > { %v10085_v5 = vcombine.high %v1411_v59, %v1418_v2  ;;  %3367 = vst.msk [vmem:[#allocation2 + $0x48] sm:$0xff] %vm3357_vm0, %v3251_v3  ;;  %3383 = vst.msk [vmem:[#allocation2 + $0xc8] sm:$0xff] %vm3357_vm0, %v3259_v60  ;;  %v1468_v6 = vrot.slane %v1454_v63, %v12426_v8  ;;  %v3484_v15 = vpack.i.b16 %v3483_v44, %v3482_v56 }
 0x301   : > { %v1469_v10 = vcombine.low %v12471_v30, %v1461_v42  ;;  %v1470_v12 = vcombine.high %v12471_v30, %v1461_v42  ;;  %v2436_v20 = vrot.slane %v2429_v18, %v12426_v8  ;;  %v2445_v28 = vcombine.low %v1427_v1, %v1434_v58 }
 0x302   : > { %v2444_v27 = vrot.slane %v10085_v5, %v12426_v8  ;;  %v10086_v32 = vcombine.high %v1427_v1, %v1434_v58  ;;  %v1485_v9 = vcombine.low %v12486_v51, %v1468_v6  ;;  %v1486_v49 = vcombine.high %v12486_v51, %v1468_v6 }
 0x303   : > { %v1477_v40 = vrot.slane %v1469_v10, %v12429_v13  ;;  %v1484_v43 = vrot.slane %v1470_v12, %v12429_v13  ;;  %v2452_v46 = vrot.slane %v2445_v28, %v12426_v8  ;;  %v3736_v56 = vrot.slane %v3480_v45, %v12426_v8 }
 0x304   : > { %v2460_v54 = vrot.slane %v10086_v32, %v12426_v8  ;;  %v2461_v30 = vcombine.low %v2436_v20, %v2444_v27  ;;  %v1493_v44 = vrot.slane %v1485_v9, %v12429_v13  ;;  %v1500_v59 = vrot.slane %v1486_v49, %v12429_v13 }
 0x305   : > { %v2479_v2 = vcombine.low %v1477_v40, %v1484_v43  ;;  %v10087_v50 = vcombine.high %v1477_v40, %v1484_v43  ;;  %v3743_v60 = vrot.slane %v3729_v47, %v12426_v8  ;;  %v3744_v51 = vcombine.low %v12495_v48, %v3736_v56 }
 0x306   : > { %v2468_v0 = vrot.slane %v2461_v30, %v12429_v13  ;;  %v2469_v3 = vcombine.low %v2452_v46, %v2460_v54  ;;  %v2495_v1 = vcombine.low %v1493_v44, %v1500_v59  ;;  %v10088_v58 = vcombine.high %v1493_v44, %v1500_v59 }
 0x307   : > { %v2486_v63 = vrot.slane %v2479_v2, %v12426_v8  ;;  %v2494_v42 = vrot.slane %v10087_v50, %v12426_v8  ;;  %v3745_v18 = vcombine.high %v12495_v48, %v3736_v56  ;;  %v3752_v5 = vrot.slane %v3744_v51, %v12429_v13  ;;  %v3407_v51 = vpop.permute.xlu0 %3406 }
 0x308   : > { %v2476_v45 = vrot.slane %v2469_v3, %v12429_v13  ;;  %v3760_v6 = vcombine.low %v12501_v52, %v3743_v60  ;;  %v2502_v10 = vrot.slane %v2495_v1, %v12426_v8  ;;  %v2510_v47 = vrot.slane %v10088_v58, %v12426_v8 }
 0x309   : > { %v2511_v12 = vcombine.low %v2486_v63, %v2494_v42  ;;  %v3761_v20 = vcombine.high %v12501_v52, %v3743_v60  ;;  %v3759_v32 = vrot.slane %v3745_v18, %v12429_v13  ;;  %v3795_v49 = vcombine.high %v3484_v15, %v12424_v7 }
 0x30a   : > { %v2477_v27 = vcombine.low %v2468_v0, %v2476_v45  ;;  %v2478_v28 = vcombine.high %v2468_v0, %v2476_v45  ;;  %v3768_v40 = vrot.slane %v3760_v6, %v12429_v13  ;;  %v2519_v48 = vcombine.low %v2502_v10, %v2510_v47 }
 0x30b   : > { %v2518_v43 = vrot.slane %v2511_v12, %v12429_v13  ;;  %v3775_v9 = vrot.slane %v3761_v20, %v12429_v13  ;;  %v3802_v30 = vrot.slane %v3484_v15, %v12426_v8  ;;  %v4738_v56 = vcombine.low %v3752_v5, %v3759_v32  ;;  %v1198_v12 = vpop.permute.xlu1 %1197 }
 0x30c   : > { %v3233_v46 = vshrl.u32 %v2477_v27, 16  ;;  %v3241_v54 = vshrl.u32 %v2478_v28, 16  ;;  %v2526_v52 = vrot.slane %v2519_v48, %v12429_v13  ;;  %v3809_v44 = vrot.slane %v3795_v49, %v12426_v8 }
 0x30d   : > { %v10121_v59 = vcombine.high %v3752_v5, %v3759_v32  ;;  %v4754_v2 = vcombine.low %v3768_v40, %v3775_v9  ;;  %v3810_v50 = vcombine.low %v12507_v4, %v3802_v30  ;;  %v3811_v0 = vcombine.high %v12507_v4, %v3802_v30 }
 0x30e   : > { %v4745_v3 = vrot.slane %v4738_v56, %v12426_v8  ;;  %v10122_v60 = vcombine.high %v3768_v40, %v3775_v9  ;;  %v2527_v63 = vcombine.low %v2518_v43, %v2526_v52  ;;  %v2528_v42 = vcombine.high %v2518_v43, %v2526_v52  ;;  %v3423_v52 = vpop.permute.xlu0 %3422 }
 0x30f   : > { %v3826_v1 = vcombine.low %v12513_v19, %v3809_v44  ;;  %v3827_v15 = vcombine.high %v12513_v19, %v3809_v44  ;;  %v3818_v58 = vrot.slane %v3810_v50, %v12429_v13  ;;  %v3825_v45 = vrot.slane %v3811_v0, %v12429_v13 }
 0x310   : > { %v4753_v18 = vrot.slane %v10121_v59, %v12426_v8  ;;  %v4761_v5 = vrot.slane %v4754_v2, %v12426_v8  ;;  %v3231_v6 = vpack.i.b16 %v2527_v63, %v2477_v27  ;;  %v3234_v4 = vshrl.u32 %v2527_v63, 16 }
 0x311   : > { %v3239_v10 = vpack.i.b16 %v2528_v42, %v2478_v28  ;;  %v3242_v47 = vshrl.u32 %v2528_v42, 16  ;;  %v3834_v20 = vrot.slane %v3826_v1, %v12429_v13  ;;  %v3841_v32 = vrot.slane %v3827_v15, %v12429_v13  ;;  %v1214_v15 = vpop.permute.xlu1 %1213 }
 0x312   : > { %v4769_v40 = vrot.slane %v10122_v60, %v12426_v8  ;;  %v4770_v19 = vcombine.low %v4745_v3, %v4753_v18  ;;  %v3235_v43 = vpack.i.b16 %v3234_v4, %v3233_v46  ;;  %3358 = vst.msk [vmem:[#allocation2] sm:$0xff] %vm3357_vm0, %v3231_v6  ;;  %v4788_v9 = vcombine.low %v3818_v58, %v3825_v45 }
 0x313   : > { %v3243_v48 = vpack.i.b16 %v3242_v47, %v3241_v54  ;;  %3374 = vst.msk [vmem:[#allocation2 + $0x80] sm:$0xff] %vm3357_vm0, %v3239_v10  ;;  %v10123_v49 = vcombine.high %v3818_v58, %v3825_v45  ;;  %v4804_v30 = vcombine.low %v3834_v20, %v3841_v32  ;;  %v10124_v56 = vcombine.high %v3834_v20, %v3841_v32  ;;  %v3439_v32 = vpop.permute.xlu0 %3438 }
 0x314   : > { %v4777_v27 = vrot.slane %v4770_v19, %v12429_v13  ;;  %v4778_v28 = vcombine.low %v4761_v5, %v4769_v40  ;;  %3366 = vst.msk [vmem:[#allocation2 + $0x40] sm:$0xff] %vm3357_vm0, %v3235_v43  ;;  %v4795_v44 = vrot.slane %v4788_v9, %v12426_v8  ;;  %v3456_v54 = vpack.i.b16 %v3407_v51, %v12282_v61 }
 0x315   : > { %3382 = vst.msk [vmem:[#allocation2 + $0xc0] sm:$0xff] %vm3357_vm0, %v3243_v48  ;;  %v4803_v46 = vrot.slane %v10123_v49, %v12426_v8  ;;  %v3459_v59 = vshrl.u32 %v3407_v51, 16  ;;  %v4811_v50 = vrot.slane %v4804_v30, %v12426_v8  ;;  %v4819_v0 = vrot.slane %v10124_v56, %v12426_v8  ;;  %v1230_v56 = vpop.permute.xlu1 %1229 }
 0x316   : > { %v4785_v2 = vrot.slane %v4778_v28, %v12429_v13  ;;  %v1295_v3 = vpack.i.b16 %v1198_v12, %v12294_v11  ;;  %v3582_v42 = vcombine.high %v3456_v54, %v12424_v7  ;;  %v3589_v1 = vrot.slane %v3456_v54, %v12426_v8 }
 0x317   : > { %v4820_v60 = vcombine.low %v4795_v44, %v4803_v46  ;;  %v3460_v63 = vpack.i.b16 %v3459_v59, %v3458_v21  ;;  %v4828_v51 = vcombine.low %v4811_v50, %v4819_v0  ;;  %v1298_v18 = vshrl.u32 %v1198_v12, 16 }
 0x318   : > { %v4786_v58 = vcombine.low %v4777_v27, %v4785_v2  ;;  %v4787_v45 = vcombine.high %v4777_v27, %v4785_v2  ;;  %v3596_v6 = vrot.slane %v3582_v42, %v12426_v8  ;;  %v1769_v12 = vcombine.high %v1295_v3, %v12424_v7 }
 0x319   : > { %v4827_v5 = vrot.slane %v4820_v60, %v12429_v13  ;;  %v3648_v4 = vcombine.high %v3460_v63, %v12424_v7  ;;  %v3655_v10 = vrot.slane %v3460_v63, %v12426_v8  ;;  %v4835_v61 = vrot.slane %v4828_v51, %v12429_v13 }
 0x31a   : > { %v5458_v21 = vshrl.u32 %v4786_v58, 16  ;;  %v5466_v47 = vshrl.u32 %v4787_v45, 16  ;;  %v1299_v20 = vpack.i.b16 %v1298_v18, %v1297_v22  ;;  %v12604_v19 = vrot.slane %v1295_v3, %v12426_v8 }
 0x31b   : > { %v3662_v40 = vrot.slane %v3648_v4, %v12426_v8  ;;  %v3466_v43 = vshrl.u32 %v3423_v52, 16  ;;  %v4836_v48 = vcombine.low %v4827_v5, %v4835_v61  ;;  %v4837_v9 = vcombine.high %v4827_v5, %v4835_v61 }
 0x31c   : > { %v1835_v49 = vcombine.high %v1299_v20, %v12424_v7  ;;  %v12608_v27 = vrot.slane %v1299_v20, %v12426_v8  ;;  %v12611_v28 = vrot.slane %v1769_v12, %v12426_v8  ;;  %v1305_v11 = vshrl.u32 %v1214_v15, 16 }
 0x31d   : > { %v3464_v22 = vpack.i.b16 %v3439_v32, %v3423_v52  ;;  %v3467_v30 = vshrl.u32 %v3439_v32, 16  ;;  %v5456_v44 = vpack.i.b16 %v4836_v48, %v4786_v58  ;;  %v5459_v46 = vshrl.u32 %v4836_v48, 16 }
 0x31e   : > { %v5464_v54 = vpack.i.b16 %v4837_v9, %v4787_v45  ;;  %v5467_v59 = vshrl.u32 %v4837_v9, 16  ;;  %v12614_v2 = vrot.slane %v1835_v49, %v12426_v8  ;;  %v1303_v52 = vpack.i.b16 %v1230_v56, %v1214_v15 }
 0x31f   : > { %v3468_v50 = vpack.i.b16 %v3467_v30, %v3466_v43  ;;  %v3597_v0 = vcombine.high %v3464_v22, %v12424_v7  ;;  %v3604_v3 = vrot.slane %v3464_v22, %v12426_v8  ;;  %v5460_v60 = vpack.i.b16 %v5459_v46, %v5458_v21  ;;  %5567 = vst.msk [vmem:[#allocation3 + $0x8] sm:$0xff] %vm3357_vm0, %v5456_v44 }
 0x320   : > { %v5468_v63 = vpack.i.b16 %v5467_v59, %v5466_v47  ;;  %5583 = vst.msk [vmem:[#allocation3 + $0x88] sm:$0xff] %vm3357_vm0, %v5464_v54  ;;  %v1306_v42 = vshrl.u32 %v1230_v56, 16  ;;  %v1784_v61 = vcombine.high %v1303_v52, %v12424_v7  ;;  %v1791_v21 = vrot.slane %v1303_v52, %v12426_v8 }
 0x321   : > { %v3611_v58 = vrot.slane %v3597_v0, %v12426_v8  ;;  %v3612_v45 = vcombine.low %v3589_v1, %v3604_v3  ;;  %v3613_v51 = vcombine.high %v3589_v1, %v3604_v3  ;;  %v3663_v18 = vcombine.high %v3468_v50, %v12424_v7  ;;  %5575 = vst.msk [vmem:[#allocation3 + $0x48] sm:$0xff] %vm3357_vm0, %v5460_v60 }
 0x322   : > { %5591 = vst.msk [vmem:[#allocation3 + $0xc8] sm:$0xff] %vm3357_vm0, %v5468_v63  ;;  %v3670_v5 = vrot.slane %v3468_v50, %v12426_v8  ;;  %v1307_v4 = vpack.i.b16 %v1306_v42, %v1305_v11  ;;  %v1798_v48 = vrot.slane %v1784_v61, %v12426_v8 }
 0x323   : > { %v3620_v15 = vrot.slane %v3612_v45, %v12429_v13  ;;  %v3627_v47 = vrot.slane %v3613_v51, %v12429_v13  ;;  %v3628_v20 = vcombine.low %v3596_v6, %v3611_v58  ;;  %v3629_v32 = vcombine.high %v3596_v6, %v3611_v58 }
 0x324   : > { %v3677_v1 = vrot.slane %v3663_v18, %v12426_v8  ;;  %v3678_v12 = vcombine.low %v3655_v10, %v3670_v5  ;;  %v3679_v43 = vcombine.high %v3655_v10, %v3670_v5  ;;  %v1799_v58 = vcombine.low %v12604_v19, %v1791_v21 }
 0x325   : > { %v3636_v9 = vrot.slane %v3628_v20, %v12429_v13  ;;  %v3643_v49 = vrot.slane %v3629_v32, %v12429_v13  ;;  %v4638_v11 = vcombine.low %v3620_v15, %v3627_v47  ;;  %v10117_v22 = vcombine.high %v3620_v15, %v3627_v47 }
 0x326   : > { %v3686_v30 = vrot.slane %v3678_v12, %v12429_v13  ;;  %v3693_v56 = vrot.slane %v3679_v43, %v12429_v13  ;;  %v3694_v44 = vcombine.low %v3662_v40, %v3677_v1  ;;  %v3695_v46 = vcombine.high %v3662_v40, %v3677_v1 }
 0x327   : > { %v4645_v6 = vrot.slane %v4638_v11, %v12426_v8  ;;  %v4653_v54 = vrot.slane %v10117_v22, %v12426_v8  ;;  %v4654_v59 = vcombine.low %v3636_v9, %v3643_v49  ;;  %v10118_v10 = vcombine.high %v3636_v9, %v3643_v49 }
 0x328   : > { %v3702_v50 = vrot.slane %v3694_v44, %v12429_v13  ;;  %v3709_v0 = vrot.slane %v3695_v46, %v12429_v13  ;;  %v4688_v3 = vcombine.low %v3686_v30, %v3693_v56  ;;  %v10119_v60 = vcombine.high %v3686_v30, %v3693_v56 }
 0x329   : > { %v4661_v63 = vrot.slane %v4654_v59, %v12426_v8  ;;  %v4669_v52 = vrot.slane %v10118_v10, %v12426_v8  ;;  %v4670_v42 = vcombine.low %v4645_v6, %v4653_v54  ;;  %v1800_v15 = vcombine.high %v12604_v19, %v1791_v21 }
 0x32a   : > { %v4695_v40 = vrot.slane %v4688_v3, %v12426_v8  ;;  %v4703_v45 = vrot.slane %v10119_v60, %v12426_v8  ;;  %v4704_v51 = vcombine.low %v3702_v50, %v3709_v0  ;;  %v10120_v18 = vcombine.high %v3702_v50, %v3709_v0 }
 0x32b   : > { %v4677_v5 = vrot.slane %v4670_v42, %v12429_v13  ;;  %v4678_v61 = vcombine.low %v4661_v63, %v4669_v52  ;;  %v1807_v47 = vrot.slane %v1799_v58, %v12429_v13  ;;  %v1815_v12 = vcombine.low %v12611_v28, %v1798_v48  ;;  %v3413_v58 = vpop.permute.xlu1 %3412 }
 0x32c   : > { %v4711_v20 = vrot.slane %v4704_v51, %v12426_v8  ;;  %v4719_v32 = vrot.slane %v10120_v18, %v12426_v8  ;;  %v4720_v1 = vcombine.low %v4695_v40, %v4703_v45  ;;  %v1814_v9 = vrot.slane %v1800_v15, %v12429_v13 }
 0x32d   : > { %v4685_v43 = vrot.slane %v4678_v61, %v12429_v13  ;;  %v1816_v49 = vcombine.high %v12611_v28, %v1798_v48  ;;  %v1850_v11 = vcombine.high %v1307_v4, %v12424_v7  ;;  %v1823_v21 = vrot.slane %v1815_v12, %v12429_v13 }
 0x32e   : > { %v4727_v22 = vrot.slane %v4720_v1, %v12429_v13  ;;  %v4728_v19 = vcombine.low %v4711_v20, %v4719_v32  ;;  %v1857_v30 = vrot.slane %v1307_v4, %v12426_v8  ;;  %v2729_v48 = vcombine.low %v1807_v47, %v1814_v9  ;;  %v1212_v4 = vpop.permute.xlu0 %1211 }
 0x32f   : > { %v4686_v56 = vcombine.low %v4677_v5, %v4685_v43  ;;  %v4687_v44 = vcombine.high %v4677_v5, %v4685_v43  ;;  %v1830_v46 = vrot.slane %v1816_v49, %v12429_v13  ;;  %v1864_v6 = vrot.slane %v1850_v11, %v12426_v8 }
 0x330   : > { %v4735_v54 = vrot.slane %v4728_v19, %v12429_v13  ;;  %v1865_v59 = vcombine.low %v12608_v27, %v1857_v30  ;;  %v1866_v28 = vcombine.high %v12608_v27, %v1857_v30  ;;  %v2736_v27 = vrot.slane %v2729_v48, %v12426_v8 }
 0x331   : > { %v5442_v10 = vshrl.u32 %v4686_v56, 16  ;;  %v5450_v50 = vshrl.u32 %v4687_v44, 16  ;;  %v1881_v0 = vcombine.low %v12614_v2, %v1864_v6  ;;  %v1882_v3 = vcombine.high %v12614_v2, %v1864_v6  ;;  %v3429_v6 = vpop.permute.xlu1 %3428 }
 0x332   : > { %v4736_v60 = vcombine.low %v4727_v22, %v4735_v54  ;;  %v4737_v63 = vcombine.high %v4727_v22, %v4735_v54  ;;  %v1873_v52 = vrot.slane %v1865_v59, %v12429_v13  ;;  %v1880_v42 = vrot.slane %v1866_v28, %v12429_v13  ;;  %v1228_v30 = vpop.permute.xlu0 %1227 }
 0x333   : > { %v1889_v40 = vrot.slane %v1881_v0, %v12429_v13  ;;  %v1896_v45 = vrot.slane %v1882_v3, %v12429_v13  ;;  %v10097_v51 = vcombine.high %v1807_v47, %v1814_v9  ;;  %v2745_v20 = vcombine.low %v1823_v21, %v1830_v46 }
 0x334   : > { %v5440_v18 = vpack.i.b16 %v4736_v60, %v4686_v56  ;;  %v5443_v5 = vshrl.u32 %v4736_v60, 16  ;;  %v5448_v61 = vpack.i.b16 %v4737_v63, %v4687_v44  ;;  %v5451_v15 = vshrl.u32 %v4737_v63, 16 }
 0x335   : > { %v2744_v2 = vrot.slane %v10097_v51, %v12426_v8  ;;  %v10098_v32 = vcombine.high %v1823_v21, %v1830_v46  ;;  %v2779_v1 = vcombine.low %v1873_v52, %v1880_v42  ;;  %v10099_v49 = vcombine.high %v1873_v52, %v1880_v42 }
 0x336   : > { %v5444_v12 = vpack.i.b16 %v5443_v5, %v5442_v10  ;;  %v5452_v43 = vpack.i.b16 %v5451_v15, %v5450_v50  ;;  %5566 = vst.msk [vmem:[#allocation3] sm:$0xff] %vm3357_vm0, %v5440_v18  ;;  %5582 = vst.msk [vmem:[#allocation3 + $0x80] sm:$0xff] %vm3357_vm0, %v5448_v61  ;;  %v2795_v11 = vcombine.low %v1889_v40, %v1896_v45  ;;  %v1289_v46 = vshrl.u32 %v1212_v4, 16  ;;  %v3411_v61 = vpop.permute.xlu0 %3410 }
 0x337   : > { %v2752_v22 = vrot.slane %v2745_v20, %v12426_v8  ;;  %v2760_v47 = vrot.slane %v10098_v32, %v12426_v8  ;;  %v2761_v9 = vcombine.low %v2736_v27, %v2744_v2  ;;  %v2786_v19 = vrot.slane %v2779_v1, %v12426_v8  ;;  %v3445_v20 = vpop.permute.xlu1 %3444 }
 0x338   : > { %5574 = vst.msk [vmem:[#allocation3 + $0x40] sm:$0xff] %vm3357_vm0, %v5444_v12  ;;  %5590 = vst.msk [vmem:[#allocation3 + $0xc0] sm:$0xff] %vm3357_vm0, %v5452_v43  ;;  %v2794_v21 = vrot.slane %v10099_v49, %v12426_v8  ;;  %v2802_v56 = vrot.slane %v2795_v11, %v12426_v8  ;;  %v10100_v44 = vcombine.high %v1889_v40, %v1896_v45  ;;  %v3507_v48 = vshrl.u32 %v3413_v58, 16 }
 0x339   : > { %v2768_v54 = vrot.slane %v2761_v9, %v12429_v13  ;;  %v2769_v59 = vcombine.low %v2752_v22, %v2760_v47  ;;  %v3504_v28 = vpack.i.b16 %v3413_v58, %v12304_v16  ;;  %v1287_v0 = vpack.i.b16 %v1228_v30, %v1212_v4 }
 0x33a   : > { %v2810_v10 = vrot.slane %v10100_v44, %v12426_v8  ;;  %v2811_v50 = vcombine.low %v2786_v19, %v2794_v21  ;;  %v1290_v3 = vshrl.u32 %v1228_v30, 16  ;;  %v3508_v63 = vpack.i.b16 %v3507_v48, %v3506_v23 }
 0x33b   : > { %v2776_v60 = vrot.slane %v2769_v59, %v12429_v13  ;;  %v3978_v52 = vcombine.high %v3504_v28, %v12424_v7  ;;  %v3985_v42 = vrot.slane %v3504_v28, %v12426_v8  ;;  %v1652_v58 = vcombine.high %v1287_v0, %v12424_v7 }
 0x33c   : > { %v2818_v40 = vrot.slane %v2811_v50, %v12429_v13  ;;  %v2819_v45 = vcombine.low %v2802_v56, %v2810_v10  ;;  %v1291_v27 = vpack.i.b16 %v1290_v3, %v1289_v46  ;;  %v4044_v5 = vcombine.high %v3508_v63, %v12424_v7  ;;  %v12714_v50 = vpop.permute.xlu0 %3426 }
 0x33d   : > { %v2777_v51 = vcombine.low %v2768_v54, %v2776_v60  ;;  %v2778_v18 = vcombine.high %v2768_v54, %v2776_v60  ;;  %v3992_v4 = vrot.slane %v3978_v52, %v12426_v8  ;;  %v4051_v23 = vrot.slane %v3508_v63, %v12426_v8 }
 0x33e   : > { %v2826_v16 = vrot.slane %v2819_v45, %v12429_v13  ;;  %v12694_v15 = vrot.slane %v1287_v0, %v12426_v8  ;;  %v12697_v2 = vrot.slane %v1652_v58, %v12426_v8  ;;  %v4058_v12 = vrot.slane %v4044_v5, %v12426_v8 }
 0x33f   : > { %v3281_v32 = vshrl.u32 %v2777_v51, 16  ;;  %v3289_v1 = vshrl.u32 %v2778_v18, 16  ;;  %v1718_v43 = vcombine.high %v1291_v27, %v12424_v7  ;;  %v12702_v22 = vrot.slane %v1291_v27, %v12426_v8 }
 0x340   : > { %v2827_v49 = vcombine.low %v2818_v40, %v2826_v16  ;;  %v2828_v11 = vcombine.high %v2818_v40, %v2826_v16  ;;  %v3514_v47 = vshrl.u32 %v3429_v6, 16  ;;  %v3488_v19 = vpack.i.b16 %v3411_v61, %v12306_v17  ;;  %v1196_v17 = vpop.permute.xlu1 %1195 }
 0x341   : > { %v12705_v9 = vrot.slane %v1718_v43, %v12426_v8  ;;  %v3491_v30 = vshrl.u32 %v3411_v61, 16  ;;  %v3512_v21 = vpack.i.b16 %v3445_v20, %v3429_v6  ;;  %v3515_v10 = vshrl.u32 %v3445_v20, 16 }
 0x342   : > { %v3279_v56 = vpack.i.b16 %v2827_v49, %v2777_v51  ;;  %v3282_v44 = vshrl.u32 %v2827_v49, 16  ;;  %v3287_v46 = vpack.i.b16 %v2828_v11, %v2778_v18  ;;  %v3290_v54 = vshrl.u32 %v2828_v11, 16 }
 0x343   : > { %v3492_v59 = vpack.i.b16 %v3491_v30, %v3490_v24  ;;  %v3846_v28 = vcombine.high %v3488_v19, %v12424_v7  ;;  %v12712_v48 = vrot.slane %v3488_v19, %v12426_v8  ;;  %v3993_v6 = vcombine.high %v3512_v21, %v12424_v7 }
 0x344   : > { %v3283_v0 = vpack.i.b16 %v3282_v44, %v3281_v32  ;;  %v3291_v3 = vpack.i.b16 %v3290_v54, %v3289_v1  ;;  %3361 = vst.msk [vmem:[#allocation2 + $0x18] sm:$0xff] %vm3357_vm0, %v3279_v56  ;;  %3377 = vst.msk [vmem:[#allocation2 + $0x98] sm:$0xff] %vm3357_vm0, %v3287_v46  ;;  %v4000_v60 = vrot.slane %v3512_v21, %v12426_v8  ;;  %v3498_v51 = vshrl.u32 %v12714_v50, 16 }
 0x345   : > { %v12721_v24 = vrot.slane %v3846_v28, %v12426_v8  ;;  %v3912_v63 = vcombine.high %v3492_v59, %v12424_v7  ;;  %v12725_v52 = vrot.slane %v3492_v59, %v12426_v8  ;;  %v3516_v40 = vpack.i.b16 %v3515_v10, %v3514_v47 }
 0x346   : > { %3369 = vst.msk [vmem:[#allocation2 + $0x58] sm:$0xff] %vm3357_vm0, %v3283_v0  ;;  %3385 = vst.msk [vmem:[#allocation2 + $0xd8] sm:$0xff] %vm3357_vm0, %v3291_v3  ;;  %v4007_v45 = vrot.slane %v3993_v6, %v12426_v8  ;;  %v4008_v27 = vcombine.low %v3985_v42, %v4000_v60  ;;  %v4009_v58 = vcombine.high %v3985_v42, %v4000_v60  ;;  %v1282_v47 = vshrl.u32 %v1196_v17, 16 }
 0x347   : > { %v12732_v18 = vrot.slane %v3912_v63, %v12426_v8  ;;  %v4059_v5 = vcombine.high %v3516_v40, %v12424_v7  ;;  %v4066_v61 = vrot.slane %v3516_v40, %v12426_v8  ;;  %v1279_v16 = vpack.i.b16 %v1196_v17, %v12297_v14 }
 0x348   : > { %v4016_v20 = vrot.slane %v4008_v27, %v12429_v13  ;;  %v4023_v32 = vrot.slane %v4009_v58, %v12429_v13  ;;  %v4024_v1 = vcombine.low %v3992_v4, %v4007_v45  ;;  %v4025_v43 = vcombine.high %v3992_v4, %v4007_v45 }
 0x349   : > { %v4073_v49 = vrot.slane %v4059_v5, %v12426_v8  ;;  %v4074_v42 = vcombine.low %v4051_v23, %v4066_v61  ;;  %v4075_v11 = vcombine.high %v4051_v23, %v4066_v61 }
 0x34a   : > { %v4032_v19 = vrot.slane %v4024_v1, %v12429_v13  ;;  %v4039_v30 = vrot.slane %v4025_v43, %v12429_v13  ;;  %v4938_v21 = vcombine.low %v4016_v20, %v4023_v32  ;;  %v10129_v56 = vcombine.high %v4016_v20, %v4023_v32 }
 0x34b   : > { %v4082_v44 = vrot.slane %v4074_v42, %v12429_v13  ;;  %v4089_v46 = vrot.slane %v4075_v11, %v12429_v13  ;;  %v4090_v54 = vcombine.low %v4058_v12, %v4073_v49  ;;  %v4091_v59 = vcombine.high %v4058_v12, %v4073_v49 }
 0x34c   : > { %v4945_v28 = vrot.slane %v4938_v21, %v12426_v8  ;;  %v4953_v4 = vrot.slane %v10129_v56, %v12426_v8  ;;  %v4954_v10 = vcombine.low %v4032_v19, %v4039_v30  ;;  %v10130_v0 = vcombine.high %v4032_v19, %v4039_v30 }
 0x34d   : > { %v4098_v23 = vrot.slane %v4090_v54, %v12429_v13  ;;  %v4105_v3 = vrot.slane %v4091_v59, %v12429_v13  ;;  %v4988_v6 = vcombine.low %v4082_v44, %v4089_v46  ;;  %v10131_v60 = vcombine.high %v4082_v44, %v4089_v46 }
 0x34e   : > { %v4961_v17 = vrot.slane %v4954_v10, %v12426_v8  ;;  %v4969_v63 = vrot.slane %v10130_v0, %v12426_v8  ;;  %v4970_v40 = vcombine.low %v4945_v28, %v4953_v4  ;;  %v1283_v12 = vpack.i.b16 %v1282_v47, %v1281_v25 }
 0x34f   : > { %v4995_v45 = vrot.slane %v4988_v6, %v12426_v8  ;;  %v5003_v27 = vrot.slane %v10131_v60, %v12426_v8  ;;  %v5004_v58 = vcombine.low %v4098_v23, %v4105_v3  ;;  %v10132_v5 = vcombine.high %v4098_v23, %v4105_v3 }
 0x350   : > { %v4977_v61 = vrot.slane %v4970_v40, %v12429_v13  ;;  %v4978_v20 = vcombine.low %v4961_v17, %v4969_v63  ;;  %v1637_v32 = vcombine.high %v1279_v16, %v12424_v7  ;;  %v1644_v1 = vrot.slane %v1279_v16, %v12426_v8 }
 0x351   : > { %v5011_v43 = vrot.slane %v5004_v58, %v12426_v8  ;;  %v5019_v49 = vrot.slane %v10132_v5, %v12426_v8  ;;  %v5020_v42 = vcombine.low %v4995_v45, %v5003_v27  ;;  %v1703_v14 = vcombine.high %v1283_v12, %v12424_v7 }
 0x352   : > { %v4985_v25 = vrot.slane %v4978_v20, %v12429_v13  ;;  %v1651_v11 = vrot.slane %v1637_v32, %v12426_v8  ;;  %v1667_v47 = vcombine.low %v1644_v1, %v12694_v15  ;;  %v1668_v19 = vcombine.high %v1644_v1, %v12694_v15 }
 0x353   : > { %v5027_v30 = vrot.slane %v5020_v42, %v12429_v13  ;;  %v5028_v21 = vcombine.low %v5011_v43, %v5019_v49  ;;  %v1710_v16 = vrot.slane %v1283_v12, %v12426_v8  ;;  %v1717_v56 = vrot.slane %v1703_v14, %v12426_v8 }
 0x354   : > { %v4986_v44 = vcombine.low %v4977_v61, %v4985_v25  ;;  %v4987_v46 = vcombine.high %v4977_v61, %v4985_v25  ;;  %v1675_v54 = vrot.slane %v1667_v47, %v12429_v13  ;;  %v1682_v59 = vrot.slane %v1668_v19, %v12429_v13 }
 0x355   : > { %v5035_v28 = vrot.slane %v5028_v21, %v12429_v13  ;;  %v1683_v4 = vcombine.low %v1651_v11, %v12697_v2  ;;  %v1684_v10 = vcombine.high %v1651_v11, %v12697_v2  ;;  %v1733_v15 = vcombine.low %v1710_v16, %v12702_v22  ;;  %v12787_v21 = vpop.permute.xlu1 %1201 }
 0x356   : > { %v5490_v0 = vshrl.u32 %v4986_v44, 16  ;;  %v5498_v23 = vshrl.u32 %v4987_v46, 16  ;;  %v1734_v3 = vcombine.high %v1710_v16, %v12702_v22  ;;  %v1749_v6 = vcombine.low %v1717_v56, %v12705_v9 }
 0x357   : > { %v5036_v60 = vcombine.low %v5027_v30, %v5035_v28  ;;  %v5037_v17 = vcombine.high %v5027_v30, %v5035_v28  ;;  %v1691_v63 = vrot.slane %v1683_v4, %v12429_v13  ;;  %v1698_v40 = vrot.slane %v1684_v10, %v12429_v13 }
 0x358   : > { %v1741_v12 = vrot.slane %v1733_v15, %v12429_v13  ;;  %v1748_v45 = vrot.slane %v1734_v3, %v12429_v13  ;;  %v1750_v2 = vcombine.high %v1717_v56, %v12705_v9  ;;  %v1757_v27 = vrot.slane %v1749_v6, %v12429_v13  ;;  %v3443_v9 = vpop.permute.xlu0 %3442 }
 0x359   : > { %v5488_v58 = vpack.i.b16 %v5036_v60, %v4986_v44  ;;  %v5491_v5 = vshrl.u32 %v5036_v60, 16  ;;  %v5496_v61 = vpack.i.b16 %v5037_v17, %v4987_v46  ;;  %v5499_v22 = vshrl.u32 %v5037_v17, 16 }
 0x35a   : > { %v1764_v20 = vrot.slane %v1750_v2, %v12429_v13  ;;  %v2629_v32 = vcombine.low %v1675_v54, %v1682_v59  ;;  %v10093_v1 = vcombine.high %v1675_v54, %v1682_v59  ;;  %v2645_v43 = vcombine.low %v1691_v63, %v1698_v40 }
 0x35b   : > { %v5492_v49 = vpack.i.b16 %v5491_v5, %v5490_v0  ;;  %v5500_v42 = vpack.i.b16 %v5499_v22, %v5498_v23  ;;  %5569 = vst.msk [vmem:[#allocation3 + $0x18] sm:$0xff] %vm3357_vm0, %v5488_v58  ;;  %5585 = vst.msk [vmem:[#allocation3 + $0x98] sm:$0xff] %vm3357_vm0, %v5496_v61  ;;  %v10094_v14 = vcombine.high %v1691_v63, %v1698_v40  ;;  %v3499_v4 = vshrl.u32 %v3443_v9, 16 }
 0x35c   : > { %v2679_v25 = vcombine.low %v1741_v12, %v1748_v45  ;;  %v2636_v11 = vrot.slane %v2629_v32, %v12426_v8  ;;  %v2644_v47 = vrot.slane %v10093_v1, %v12426_v8  ;;  %v2652_v19 = vrot.slane %v2645_v43, %v12426_v8 }
 0x35d   : > { %v10095_v30 = vcombine.high %v1741_v12, %v1748_v45  ;;  %5577 = vst.msk [vmem:[#allocation3 + $0x58] sm:$0xff] %vm3357_vm0, %v5492_v49  ;;  %5593 = vst.msk [vmem:[#allocation3 + $0xd8] sm:$0xff] %vm3357_vm0, %v5500_v42  ;;  %v2660_v16 = vrot.slane %v10094_v14, %v12426_v8  ;;  %v2695_v44 = vcombine.low %v1757_v27, %v1764_v20  ;;  %v1330_v45 = vshrl.u32 %v12787_v21, 16 }
 0x35e   : > { %v2686_v56 = vrot.slane %v2679_v25, %v12426_v8  ;;  %v10096_v46 = vcombine.high %v1757_v27, %v1764_v20  ;;  %v2661_v54 = vcombine.low %v2636_v11, %v2644_v47  ;;  %v3496_v28 = vpack.i.b16 %v3443_v9, %v12714_v50 }
 0x35f   : > { %v2694_v59 = vrot.slane %v10095_v30, %v12426_v8  ;;  %v2669_v10 = vcombine.low %v2652_v19, %v2660_v16  ;;  %v2702_v15 = vrot.slane %v2695_v44, %v12426_v8  ;;  %v12799_v23 = vpack.i.b16 %v12787_v21, %v12318_v31 }
 0x360   : > { %v2710_v0 = vrot.slane %v10096_v46, %v12426_v8  ;;  %v2668_v3 = vrot.slane %v2661_v54, %v12429_v13  ;;  %v3500_v60 = vpack.i.b16 %v3499_v4, %v3498_v51  ;;  %v3861_v17 = vcombine.high %v3496_v28, %v12424_v7 }
 0x361   : > { %v2711_v6 = vcombine.low %v2686_v56, %v2694_v59  ;;  %v2676_v63 = vrot.slane %v2669_v10, %v12429_v13  ;;  %v3868_v12 = vrot.slane %v3496_v28, %v12426_v8  ;;  %v1200_v10 = vpop.permute.xlu0 %1199 }
 0x362   : > { %v2719_v40 = vcombine.low %v2702_v15, %v2710_v0  ;;  %v3875_v27 = vrot.slane %v3861_v17, %v12426_v8  ;;  %v3927_v58 = vcombine.high %v3500_v60, %v12424_v7  ;;  %v3934_v5 = vrot.slane %v3500_v60, %v12426_v8 }
 0x363   : > { %v2718_v2 = vrot.slane %v2711_v6, %v12429_v13  ;;  %v2677_v61 = vcombine.low %v2668_v3, %v2676_v63  ;;  %v2678_v50 = vcombine.high %v2668_v3, %v2676_v63  ;;  %v3876_v22 = vcombine.low %v12712_v48, %v3868_v12  ;;  %v12832_v6 = vpop.permute.xlu1 %1217 }
 0x364   : > { %v2726_v51 = vrot.slane %v2719_v40, %v12429_v13  ;;  %v3877_v20 = vcombine.high %v12712_v48, %v3868_v12  ;;  %v3892_v32 = vcombine.low %v12721_v24, %v3875_v27  ;;  %v3893_v1 = vcombine.high %v12721_v24, %v3875_v27 }
 0x365   : > { %v3941_v43 = vrot.slane %v3927_v58, %v12426_v8  ;;  %v3265_v14 = vshrl.u32 %v2677_v61, 16  ;;  %v3273_v25 = vshrl.u32 %v2678_v50, 16  ;;  %v3884_v9 = vrot.slane %v3876_v22, %v12429_v13  ;;  %v1216_v31 = vpop.permute.xlu0 %1215 }
 0x366   : > { %v2727_v49 = vcombine.low %v2718_v2, %v2726_v51  ;;  %v2728_v42 = vcombine.high %v2718_v2, %v2726_v51  ;;  %v3891_v11 = vrot.slane %v3877_v20, %v12429_v13  ;;  %v3900_v47 = vrot.slane %v3892_v32, %v12429_v13 }
 0x367   : > { %v3907_v19 = vrot.slane %v3893_v1, %v12429_v13  ;;  %v3942_v24 = vcombine.low %v12725_v52, %v3934_v5  ;;  %v3943_v56 = vcombine.high %v12725_v52, %v3934_v5  ;;  %v3958_v44 = vcombine.low %v12732_v18, %v3941_v43 }
 0x368   : > { %v3263_v30 = vpack.i.b16 %v2727_v49, %v2677_v61  ;;  %v3266_v48 = vshrl.u32 %v2727_v49, 16  ;;  %v3271_v21 = vpack.i.b16 %v2728_v42, %v2678_v50  ;;  %v3274_v16 = vshrl.u32 %v2728_v42, 16 }
 0x369   : > { %v3959_v46 = vcombine.high %v12732_v18, %v3941_v43  ;;  %v4838_v28 = vcombine.low %v3884_v9, %v3891_v11  ;;  %v10125_v4 = vcombine.high %v3884_v9, %v3891_v11  ;;  %v3950_v15 = vrot.slane %v3942_v24, %v12429_v13  ;;  %v1234_v9 = vpop.permute.xlu1 %1233 }
 0x36a   : > { %v3267_v54 = vpack.i.b16 %v3266_v48, %v3265_v14  ;;  %v3275_v59 = vpack.i.b16 %v3274_v16, %v3273_v25  ;;  %3360 = vst.msk [vmem:[#allocation2 + $0x10] sm:$0xff] %vm3357_vm0, %v3263_v30  ;;  %3376 = vst.msk [vmem:[#allocation2 + $0x90] sm:$0xff] %vm3357_vm0, %v3271_v21  ;;  %v3957_v0 = vrot.slane %v3943_v56, %v12429_v13  ;;  %v1314_v30 = vshrl.u32 %v1200_v10, 16 }
 0x36b   : > { %v3966_v3 = vrot.slane %v3958_v44, %v12429_v13  ;;  %v3973_v52 = vrot.slane %v3959_v46, %v12429_v13  ;;  %v4845_v18 = vrot.slane %v4838_v28, %v12426_v8  ;;  %v4853_v60 = vrot.slane %v10125_v4, %v12426_v8 }
 0x36c   : > { %3368 = vst.msk [vmem:[#allocation2 + $0x50] sm:$0xff] %vm3357_vm0, %v3267_v54  ;;  %3384 = vst.msk [vmem:[#allocation2 + $0xd0] sm:$0xff] %vm3357_vm0, %v3275_v59  ;;  %v4854_v17 = vcombine.low %v3900_v47, %v3907_v19  ;;  %v10126_v63 = vcombine.high %v3900_v47, %v3907_v19  ;;  %v4888_v40 = vcombine.low %v3950_v15, %v3957_v0  ;;  %v1337_v16 = vshrl.u32 %v12832_v6, 16 }
 0x36d   : > { %v10127_v12 = vcombine.high %v3950_v15, %v3957_v0  ;;  %v4904_v2 = vcombine.low %v3966_v3, %v3973_v52  ;;  %v10128_v27 = vcombine.high %v3966_v3, %v3973_v52  ;;  %v4870_v61 = vcombine.low %v4845_v18, %v4853_v60  ;;  %v1232_v52 = vpop.permute.xlu0 %1231 }
 0x36e   : > { %v4861_v58 = vrot.slane %v4854_v17, %v12426_v8  ;;  %v4869_v5 = vrot.slane %v10126_v63, %v12426_v8  ;;  %v1331_v50 = vpack.i.b16 %v1330_v45, %v1329_v26  ;;  %v4895_v51 = vrot.slane %v4888_v40, %v12426_v8  ;;  %v12878_v17 = vpop.permute.xlu1 %3416 }
 0x36f   : > { %v4903_v22 = vrot.slane %v10127_v12, %v12426_v8  ;;  %v4911_v20 = vrot.slane %v4904_v2, %v12426_v8  ;;  %v4919_v32 = vrot.slane %v10128_v27, %v12426_v8  ;;  %v4877_v1 = vrot.slane %v4870_v61, %v12429_v13 }
 0x370   : > { %v4878_v43 = vcombine.low %v4861_v58, %v4869_v5  ;;  %v2033_v49 = vcombine.high %v12799_v23, %v12424_v7  ;;  %v12851_v42 = vrot.slane %v12799_v23, %v12426_v8  ;;  %v2099_v14 = vcombine.high %v1331_v50, %v12424_v7 }
 0x371   : > { %v4920_v26 = vcombine.low %v4895_v51, %v4903_v22  ;;  %v4928_v45 = vcombine.low %v4911_v20, %v4919_v32  ;;  %v12855_v25 = vrot.slane %v1331_v50, %v12426_v8  ;;  %v1311_v19 = vpack.i.b16 %v1200_v10, %v12321_v34 }
 0x372   : > { %v4885_v11 = vrot.slane %v4878_v43, %v12429_v13  ;;  %v12859_v47 = vrot.slane %v2033_v49, %v12426_v8  ;;  %v12865_v21 = vrot.slane %v2099_v14, %v12426_v8  ;;  %v1315_v44 = vpack.i.b16 %v1314_v30, %v1313_v29 }
 0x373   : > { %v4927_v23 = vrot.slane %v4920_v26, %v12429_v13  ;;  %v4935_v48 = vrot.slane %v4928_v45, %v12429_v13  ;;  %v1901_v46 = vcombine.high %v1311_v19, %v12424_v7  ;;  %v12872_v28 = vrot.slane %v1311_v19, %v12426_v8 }
 0x374   : > { %v4886_v24 = vcombine.low %v4877_v1, %v4885_v11  ;;  %v4887_v56 = vcombine.high %v4877_v1, %v4885_v11  ;;  %v1321_v4 = vshrl.u32 %v1216_v31, 16  ;;  %v1967_v3 = vcombine.high %v1315_v44, %v12424_v7 }
 0x375   : > { %v4936_v54 = vcombine.low %v4927_v23, %v4935_v48  ;;  %v4937_v59 = vcombine.high %v4927_v23, %v4935_v48  ;;  %v12875_v0 = vrot.slane %v1901_v46, %v12426_v8  ;;  %v12881_v63 = vrot.slane %v1315_v44, %v12426_v8 }
 0x376   : > { %v5474_v10 = vshrl.u32 %v4886_v24, 16  ;;  %v5482_v15 = vshrl.u32 %v4887_v56, 16  ;;  %v12884_v40 = vrot.slane %v1967_v3, %v12426_v8  ;;  %v1335_v12 = vpack.i.b16 %v1234_v9, %v12832_v6 }
 0x377   : > { %v5472_v18 = vpack.i.b16 %v4936_v54, %v4886_v24  ;;  %v5475_v60 = vshrl.u32 %v4936_v54, 16  ;;  %v5480_v34 = vpack.i.b16 %v4937_v59, %v4887_v56  ;;  %v5483_v29 = vshrl.u32 %v4937_v59, 16 }
 0x378   : > { %v1338_v2 = vshrl.u32 %v1234_v9, 16  ;;  %v1319_v5 = vpack.i.b16 %v1232_v52, %v1216_v31  ;;  %v1322_v61 = vshrl.u32 %v1232_v52, 16  ;;  %v2048_v51 = vcombine.high %v1335_v12, %v12424_v7 }
 0x379   : > { %v5476_v27 = vpack.i.b16 %v5475_v60, %v5474_v10  ;;  %v5484_v58 = vpack.i.b16 %v5483_v29, %v5482_v15  ;;  %5568 = vst.msk [vmem:[#allocation3 + $0x10] sm:$0xff] %vm3357_vm0, %v5472_v18  ;;  %5584 = vst.msk [vmem:[#allocation3 + $0x90] sm:$0xff] %vm3357_vm0, %v5480_v34  ;;  %v2055_v22 = vrot.slane %v1335_v12, %v12426_v8  ;;  %v3539_v43 = vshrl.u32 %v12878_v17, 16 }
 0x37a   : > { %v1339_v50 = vpack.i.b16 %v1338_v2, %v1337_v16  ;;  %v12893_v20 = vpack.i.b16 %v12878_v17, %v12328_v36  ;;  %v1323_v6 = vpack.i.b16 %v1322_v61, %v1321_v4  ;;  %v1916_v32 = vcombine.high %v1319_v5, %v12424_v7 }
 0x37b   : > { %5576 = vst.msk [vmem:[#allocation3 + $0x50] sm:$0xff] %vm3357_vm0, %v5476_v27  ;;  %5592 = vst.msk [vmem:[#allocation3 + $0xd0] sm:$0xff] %vm3357_vm0, %v5484_v58  ;;  %v1923_v1 = vrot.slane %v1319_v5, %v12426_v8  ;;  %v2062_v49 = vrot.slane %v2048_v51, %v12426_v8  ;;  %v2063_v31 = vcombine.low %v12851_v42, %v2055_v22 }
 0x37c   : > { %v2064_v26 = vcombine.high %v12851_v42, %v2055_v22  ;;  %v2114_v45 = vcombine.high %v1339_v50, %v12424_v7  ;;  %v2121_v14 = vrot.slane %v1339_v50, %v12426_v8  ;;  %v1930_v9 = vrot.slane %v1916_v32, %v12426_v8 }
 0x37d   : > { %v1931_v11 = vcombine.low %v12872_v28, %v1923_v1  ;;  %v1932_v19 = vcombine.high %v12872_v28, %v1923_v1  ;;  %v2071_v30 = vrot.slane %v2063_v31, %v12429_v13  ;;  %v2079_v48 = vcombine.low %v12859_v47, %v2062_v49 }
 0x37e   : > { %v2078_v23 = vrot.slane %v2064_v26, %v12429_v13  ;;  %v2080_v16 = vcombine.high %v12859_v47, %v2062_v49  ;;  %v2128_v42 = vrot.slane %v2114_v45, %v12426_v8  ;;  %v2129_v24 = vcombine.low %v12855_v25, %v2121_v14 }
 0x37f   : > { %v2130_v56 = vcombine.high %v12855_v25, %v2121_v14  ;;  %v12916_v44 = vrot.slane %v1931_v11, %v12429_v13  ;;  %v2087_v46 = vrot.slane %v2079_v48, %v12429_v13  ;;  %v1946_v5 = vrot.slane %v1932_v19, %v12429_v13 }
 0x380   : > { %v2094_v54 = vrot.slane %v2080_v16, %v12429_v13  ;;  %v2929_v59 = vcombine.low %v2071_v30, %v2078_v23  ;;  %v10105_v28 = vcombine.high %v2071_v30, %v2078_v23  ;;  %v2137_v4 = vrot.slane %v2129_v24, %v12429_v13 }
 0x381   : > { %v2144_v10 = vrot.slane %v2130_v56, %v12429_v13  ;;  %v2145_v47 = vcombine.low %v12865_v21, %v2128_v42  ;;  %v2146_v15 = vcombine.high %v12865_v21, %v2128_v42  ;;  %v1947_v1 = vcombine.low %v12875_v0, %v1930_v9 }
 0x382   : > { %v2936_v3 = vrot.slane %v2929_v59, %v12426_v8  ;;  %v2944_v25 = vrot.slane %v10105_v28, %v12426_v8  ;;  %v2945_v52 = vcombine.low %v2087_v46, %v2094_v54  ;;  %v10106_v18 = vcombine.high %v2087_v46, %v2094_v54 }
 0x383   : > { %v2153_v60 = vrot.slane %v2145_v47, %v12429_v13  ;;  %v2160_v34 = vrot.slane %v2146_v15, %v12429_v13  ;;  %v2979_v29 = vcombine.low %v2137_v4, %v2144_v10  ;;  %v10107_v12 = vcombine.high %v2137_v4, %v2144_v10  ;;  %v3415_v4 = vpop.permute.xlu0 %3414 }
 0x384   : > { %v2952_v2 = vrot.slane %v2945_v52, %v12426_v8  ;;  %v2960_v27 = vrot.slane %v10106_v18, %v12426_v8  ;;  %v2961_v58 = vcombine.low %v2936_v3, %v2944_v25  ;;  %v1948_v49 = vcombine.high %v12875_v0, %v1930_v9 }
 0x385   : > { %v2986_v21 = vrot.slane %v2979_v29, %v12426_v8  ;;  %v2994_v61 = vrot.slane %v10107_v12, %v12426_v8  ;;  %v2995_v50 = vcombine.low %v2153_v60, %v2160_v34  ;;  %v10108_v51 = vcombine.high %v2153_v60, %v2160_v34 }
 0x386   : > { %v2968_v22 = vrot.slane %v2961_v58, %v12429_v13  ;;  %v2969_v32 = vcombine.low %v2952_v2, %v2960_v27  ;;  %v1982_v14 = vcombine.high %v1323_v6, %v12424_v7  ;;  %v1955_v19 = vrot.slane %v1947_v1, %v12429_v13 }
 0x387   : > { %v3002_v31 = vrot.slane %v2995_v50, %v12426_v8  ;;  %v3010_v26 = vrot.slane %v10108_v51, %v12426_v8  ;;  %v3011_v45 = vcombine.low %v2986_v21, %v2994_v61  ;;  %v1962_v30 = vrot.slane %v1948_v49, %v12429_v13  ;;  %v12963_v49 = vpop.permute.xlu0 %3430 }
 0x388   : > { %v2976_v11 = vrot.slane %v2969_v32, %v12429_v13  ;;  %v1989_v23 = vrot.slane %v1323_v6, %v12426_v8  ;;  %v1996_v0 = vrot.slane %v1982_v14, %v12426_v8  ;;  %v2829_v9 = vcombine.low %v12916_v44, %v1946_v5 }
 0x389   : > { %v3018_v48 = vrot.slane %v3011_v45, %v12429_v13  ;;  %v3019_v16 = vcombine.low %v3002_v31, %v3010_v26  ;;  %v10101_v60 = vcombine.high %v12916_v44, %v1946_v5  ;;  %v2845_v34 = vcombine.low %v1955_v19, %v1962_v30 }
 0x38a   : > { %v2977_v42 = vcombine.low %v2968_v22, %v2976_v11  ;;  %v2978_v24 = vcombine.high %v2968_v22, %v2976_v11  ;;  %v1997_v56 = vcombine.low %v12881_v63, %v1989_v23  ;;  %v1998_v46 = vcombine.high %v12881_v63, %v1989_v23  ;;  %v3433_v22 = vpop.permute.xlu1 %3432 }
 0x38b   : > { %v3026_v54 = vrot.slane %v3019_v16, %v12429_v13  ;;  %v2013_v59 = vcombine.low %v12884_v40, %v1996_v0  ;;  %v2014_v28 = vcombine.high %v12884_v40, %v1996_v0  ;;  %v2836_v6 = vrot.slane %v2829_v9, %v12426_v8 }
 0x38c   : > { %v3313_v10 = vshrl.u32 %v2977_v42, 16  ;;  %v3321_v47 = vshrl.u32 %v2978_v24, 16  ;;  %v2005_v15 = vrot.slane %v1997_v56, %v12429_v13  ;;  %v2012_v3 = vrot.slane %v1998_v46, %v12429_v13 }
 0x38d   : > { %v3027_v25 = vcombine.low %v3018_v48, %v3026_v54  ;;  %v3028_v52 = vcombine.high %v3018_v48, %v3026_v54  ;;  %v2021_v18 = vrot.slane %v2013_v59, %v12429_v13  ;;  %v2028_v63 = vrot.slane %v2014_v28, %v12429_v13 }
 0x38e   : > { %v10102_v29 = vcombine.high %v1955_v19, %v1962_v30  ;;  %v2879_v40 = vcombine.low %v2005_v15, %v2012_v3  ;;  %v2844_v21 = vrot.slane %v10101_v60, %v12426_v8  ;;  %v2852_v61 = vrot.slane %v2845_v34, %v12426_v8  ;;  %v3449_v46 = vpop.permute.xlu1 %3448 }
 0x38f   : > { %v3311_v12 = vpack.i.b16 %v3027_v25, %v2977_v42  ;;  %v3314_v2 = vshrl.u32 %v3027_v25, 16  ;;  %v3319_v27 = vpack.i.b16 %v3028_v52, %v2978_v24  ;;  %v3322_v58 = vshrl.u32 %v3028_v52, 16 }
 0x390   : > { %v2860_v50 = vrot.slane %v10102_v29, %v12426_v8  ;;  %v2886_v51 = vrot.slane %v2879_v40, %v12426_v8  ;;  %v10103_v44 = vcombine.high %v2005_v15, %v2012_v3  ;;  %v2895_v5 = vcombine.low %v2021_v18, %v2028_v63 }
 0x391   : > { %v3315_v32 = vpack.i.b16 %v3314_v2, %v3313_v10  ;;  %v3323_v1 = vpack.i.b16 %v3322_v58, %v3321_v47  ;;  %3363 = vst.msk [vmem:[#allocation2 + $0x28] sm:$0xff] %vm3357_vm0, %v3311_v12  ;;  %3379 = vst.msk [vmem:[#allocation2 + $0xa8] sm:$0xff] %vm3357_vm0, %v3319_v27  ;;  %v2861_v31 = vcombine.low %v2836_v6, %v2844_v21  ;;  %v3523_v59 = vshrl.u32 %v3415_v4, 16  ;;  %v3447_v10 = vpop.permute.xlu0 %3446 }
 0x392   : > { %v2869_v26 = vcombine.low %v2852_v61, %v2860_v50  ;;  %v10104_v45 = vcombine.high %v2021_v18, %v2028_v63  ;;  %v3540_v14 = vpack.i.b16 %v3539_v43, %v3538_v55  ;;  %v2894_v11 = vrot.slane %v10103_v44, %v12426_v8 }
 0x393   : > { %3371 = vst.msk [vmem:[#allocation2 + $0x68] sm:$0xff] %vm3357_vm0, %v3315_v32  ;;  %3387 = vst.msk [vmem:[#allocation2 + $0xe8] sm:$0xff] %vm3357_vm0, %v3323_v1  ;;  %v2902_v19 = vrot.slane %v2895_v5, %v12426_v8  ;;  %v4242_v30 = vcombine.high %v12893_v20, %v12424_v7  ;;  %v4249_v23 = vrot.slane %v12893_v20, %v12426_v8  ;;  %v3546_v25 = vshrl.u32 %v3433_v22, 16 }
 0x394   : > { %v2868_v48 = vrot.slane %v2861_v31, %v12429_v13  ;;  %v2876_v36 = vrot.slane %v2869_v26, %v12429_v13  ;;  %v2910_v55 = vrot.slane %v10104_v45, %v12426_v8  ;;  %v4308_v17 = vcombine.high %v3540_v14, %v12424_v7 }
 0x395   : > { %v2911_v43 = vcombine.low %v2886_v51, %v2894_v11  ;;  %v4256_v16 = vrot.slane %v4242_v30, %v12426_v8  ;;  %v12983_v0 = vrot.slane %v3540_v14, %v12426_v8  ;;  %v3520_v9 = vpack.i.b16 %v3415_v4, %v12330_v37 }
 0x396   : > { %v2877_v42 = vcombine.low %v2868_v48, %v2876_v36  ;;  %v2878_v24 = vcombine.high %v2868_v48, %v2876_v36  ;;  %v2919_v56 = vcombine.low %v2902_v19, %v2910_v55  ;;  %v12987_v20 = vrot.slane %v4308_v17, %v12426_v8 }
 0x397   : > { %v2918_v54 = vrot.slane %v2911_v43, %v12429_v13  ;;  %v4110_v28 = vcombine.high %v3520_v9, %v12424_v7  ;;  %v12992_v6 = vrot.slane %v3520_v9, %v12426_v8  ;;  %v3524_v52 = vpack.i.b16 %v3523_v59, %v3522_v33 }
 0x398   : > { %v2926_v47 = vrot.slane %v2919_v56, %v12429_v13  ;;  %v3297_v15 = vshrl.u32 %v2877_v42, 16  ;;  %v3305_v3 = vshrl.u32 %v2878_v24, 16  ;;  %v3530_v63 = vshrl.u32 %v12963_v49, 16 }
 0x399   : > { %v12998_v18 = vrot.slane %v4110_v28, %v12426_v8  ;;  %v3544_v4 = vpack.i.b16 %v3449_v46, %v3433_v22  ;;  %v3547_v29 = vshrl.u32 %v3449_v46, 16  ;;  %v3528_v40 = vpack.i.b16 %v3447_v10, %v12963_v49 }
 0x39a   : > { %v2927_v60 = vcombine.low %v2918_v54, %v2926_v47  ;;  %v2928_v34 = vcombine.high %v2918_v54, %v2926_v47  ;;  %v4176_v12 = vcombine.high %v3524_v52, %v12424_v7  ;;  %v13004_v2 = vrot.slane %v3524_v52, %v12426_v8 }
 0x39b   : > { %v4257_v27 = vcombine.high %v3544_v4, %v12424_v7  ;;  %v4264_v37 = vrot.slane %v3544_v4, %v12426_v8  ;;  %v3548_v51 = vpack.i.b16 %v3547_v29, %v3546_v25  ;;  %v3531_v49 = vshrl.u32 %v3447_v10, 16 }
 0x39c   : > { %v3295_v33 = vpack.i.b16 %v2927_v60, %v2877_v42  ;;  %v3298_v58 = vshrl.u32 %v2927_v60, 16  ;;  %v3303_v21 = vpack.i.b16 %v2928_v34, %v2878_v24  ;;  %v3306_v61 = vshrl.u32 %v2928_v34, 16 }
 0x39d   : > { %v13009_v50 = vrot.slane %v4176_v12, %v12426_v8  ;;  %v4271_v22 = vrot.slane %v4257_v27, %v12426_v8  ;;  %v4272_v32 = vcombine.low %v4249_v23, %v4264_v37  ;;  %v4273_v5 = vcombine.high %v4249_v23, %v4264_v37 }
 0x39e   : > { %v3299_v1 = vpack.i.b16 %v3298_v58, %v3297_v15  ;;  %v3307_v44 = vpack.i.b16 %v3306_v61, %v3305_v3  ;;  %3362 = vst.msk [vmem:[#allocation2 + $0x20] sm:$0xff] %vm3357_vm0, %v3295_v33  ;;  %3378 = vst.msk [vmem:[#allocation2 + $0xa0] sm:$0xff] %vm3357_vm0, %v3303_v21  ;;  %v4323_v14 = vcombine.high %v3548_v51, %v12424_v7 }
 0x39f   : > { %v4280_v31 = vrot.slane %v4272_v32, %v12429_v13  ;;  %v4288_v26 = vcombine.low %v4256_v16, %v4271_v22  ;;  %v4289_v45 = vcombine.high %v4256_v16, %v4271_v22  ;;  %v4287_v11 = vrot.slane %v4273_v5, %v12429_v13 }
 0x3a0   : > { %3370 = vst.msk [vmem:[#allocation2 + $0x60] sm:$0xff] %vm3357_vm0, %v3299_v1  ;;  %3386 = vst.msk [vmem:[#allocation2 + $0xe0] sm:$0xff] %vm3357_vm0, %v3307_v44  ;;  %v4330_v19 = vrot.slane %v3548_v51, %v12426_v8  ;;  %v3532_v30 = vpack.i.b16 %v3531_v49, %v3530_v63  ;;  %v4125_v48 = vcombine.high %v3528_v40, %v12424_v7 }
 0x3a1   : > { %v4296_v23 = vrot.slane %v4288_v26, %v12429_v13  ;;  %v4303_v36 = vrot.slane %v4289_v45, %v12429_v13  ;;  %v4337_v55 = vrot.slane %v4323_v14, %v12426_v8  ;;  %v4132_v17 = vrot.slane %v3528_v40, %v12426_v8 }
 0x3a2   : > { %v4338_v43 = vcombine.low %v12983_v0, %v4330_v19  ;;  %v4339_v16 = vcombine.high %v12983_v0, %v4330_v19  ;;  %v5138_v9 = vcombine.low %v4280_v31, %v4287_v11  ;;  %v10137_v42 = vcombine.high %v4280_v31, %v4287_v11 }
 0x3a3   : > { %v4354_v24 = vcombine.low %v12987_v20, %v4337_v55  ;;  %v4355_v56 = vcombine.high %v12987_v20, %v4337_v55  ;;  %v5154_v46 = vcombine.low %v4296_v23, %v4303_v36  ;;  %v10138_v54 = vcombine.high %v4296_v23, %v4303_v36 }
 0x3a4   : > { %v4346_v59 = vrot.slane %v4338_v43, %v12429_v13  ;;  %v4353_v28 = vrot.slane %v4339_v16, %v12429_v13  ;;  %v5145_v10 = vrot.slane %v5138_v9, %v12426_v8  ;;  %v5153_v47 = vrot.slane %v10137_v42, %v12426_v8 }
 0x3a5   : > { %v4362_v15 = vrot.slane %v4354_v24, %v12429_v13  ;;  %v4369_v0 = vrot.slane %v4355_v56, %v12429_v13  ;;  %v5161_v3 = vrot.slane %v5154_v46, %v12426_v8  ;;  %v5169_v25 = vrot.slane %v10138_v54, %v12426_v8  ;;  %v1206_v56 = vpop.permute.xlu1 %1205 }
 0x3a6   : > { %v5170_v52 = vcombine.low %v5145_v10, %v5153_v47  ;;  %v5188_v20 = vcombine.low %v4346_v59, %v4353_v28  ;;  %v10139_v63 = vcombine.high %v4346_v59, %v4353_v28  ;;  %v4139_v4 = vrot.slane %v4125_v48, %v12426_v8 }
 0x3a7   : > { %v5178_v60 = vcombine.low %v5161_v3, %v5169_v25  ;;  %v5204_v34 = vcombine.low %v4362_v15, %v4369_v0  ;;  %v10140_v29 = vcombine.high %v4362_v15, %v4369_v0  ;;  %v4140_v40 = vcombine.low %v12992_v6, %v4132_v17 }
 0x3a8   : > { %v5177_v12 = vrot.slane %v5170_v52, %v12429_v13  ;;  %v5195_v27 = vrot.slane %v5188_v20, %v12426_v8  ;;  %v5203_v37 = vrot.slane %v10139_v63, %v12426_v8  ;;  %v4141_v33 = vcombine.high %v12992_v6, %v4132_v17 }
 0x3a9   : > { %v5185_v58 = vrot.slane %v5178_v60, %v12429_v13  ;;  %v5211_v21 = vrot.slane %v5204_v34, %v12426_v8  ;;  %v5219_v61 = vrot.slane %v10140_v29, %v12426_v8  ;;  %v4148_v51 = vrot.slane %v4140_v40, %v12429_v13 }
 0x3aa   : > { %v5220_v22 = vcombine.low %v5195_v27, %v5203_v37  ;;  %v4155_v32 = vrot.slane %v4141_v33, %v12429_v13  ;;  %v4156_v1 = vcombine.low %v12998_v18, %v4139_v4  ;;  %v4157_v44 = vcombine.high %v12998_v18, %v4139_v4 }
 0x3ab   : > { %v5186_v5 = vcombine.low %v5177_v12, %v5185_v58  ;;  %v5187_v49 = vcombine.high %v5177_v12, %v5185_v58  ;;  %v5228_v31 = vcombine.low %v5211_v21, %v5219_v61  ;;  %v4191_v6 = vcombine.high %v3532_v30, %v12424_v7  ;;  %v1222_v58 = vpop.permute.xlu1 %1221 }
 0x3ac   : > { %v5227_v26 = vrot.slane %v5220_v22, %v12429_v13  ;;  %v4164_v45 = vrot.slane %v4156_v1, %v12429_v13  ;;  %v4171_v14 = vrot.slane %v4157_v44, %v12429_v13  ;;  %v4198_v11 = vrot.slane %v3532_v30, %v12426_v8  ;;  %v1204_v30 = vpop.permute.xlu0 %1203 }
 0x3ad   : > { %v5235_v19 = vrot.slane %v5228_v31, %v12429_v13  ;;  %v5522_v48 = vshrl.u32 %v5186_v5, 16  ;;  %v5530_v23 = vshrl.u32 %v5187_v49, 16  ;;  %v4205_v36 = vrot.slane %v4191_v6, %v12426_v8 }
 0x3ae   : > { %v4206_v18 = vcombine.low %v13004_v2, %v4198_v11  ;;  %v4207_v55 = vcombine.high %v13004_v2, %v4198_v11  ;;  %v5038_v17 = vcombine.low %v4148_v51, %v4155_v32  ;;  %v10133_v43 = vcombine.high %v4148_v51, %v4155_v32 }
 0x3af   : > { %v5236_v16 = vcombine.low %v5227_v26, %v5235_v19  ;;  %v5237_v9 = vcombine.high %v5227_v26, %v5235_v19  ;;  %v4222_v42 = vcombine.low %v13009_v50, %v4205_v36  ;;  %v4223_v24 = vcombine.high %v13009_v50, %v4205_v36 }
 0x3b0   : > { %v4214_v46 = vrot.slane %v4206_v18, %v12429_v13  ;;  %v4221_v54 = vrot.slane %v4207_v55, %v12429_v13  ;;  %v5045_v59 = vrot.slane %v5038_v17, %v12426_v8  ;;  %v5053_v28 = vrot.slane %v10133_v43, %v12426_v8  ;;  %v1220_v21 = vpop.permute.xlu0 %1219 }
 0x3b1   : > { %v5520_v10 = vpack.i.b16 %v5236_v16, %v5186_v5  ;;  %v5523_v2 = vshrl.u32 %v5236_v16, 16  ;;  %v5528_v47 = vpack.i.b16 %v5237_v9, %v5187_v49  ;;  %v5531_v15 = vshrl.u32 %v5237_v9, 16  ;;  %v1238_v16 = vpop.permute.xlu1 %1237 }
 0x3b2   : > { %v4230_v0 = vrot.slane %v4222_v42, %v12429_v13  ;;  %v4237_v3 = vrot.slane %v4223_v24, %v12429_v13  ;;  %v5054_v25 = vcombine.low %v4164_v45, %v4171_v14  ;;  %v10134_v50 = vcombine.high %v4164_v45, %v4171_v14 }
 0x3b3   : > { %v5524_v52 = vpack.i.b16 %v5523_v2, %v5522_v48  ;;  %v5532_v20 = vpack.i.b16 %v5531_v15, %v5530_v23  ;;  %5571 = vst.msk [vmem:[#allocation3 + $0x28] sm:$0xff] %vm3357_vm0, %v5520_v10  ;;  %5587 = vst.msk [vmem:[#allocation3 + $0xa8] sm:$0xff] %vm3357_vm0, %v5528_v47  ;;  %v5070_v63 = vcombine.low %v5045_v59, %v5053_v28  ;;  %v1362_v32 = vshrl.u32 %v1206_v56, 16 }
 0x3b4   : > { %v5088_v4 = vcombine.low %v4214_v46, %v4221_v54  ;;  %v5061_v60 = vrot.slane %v5054_v25, %v12426_v8  ;;  %v5069_v34 = vrot.slane %v10134_v50, %v12426_v8  ;;  %v10135_v29 = vcombine.high %v4214_v46, %v4221_v54  ;;  %v1236_v9 = vpop.permute.xlu0 %1235 }
 0x3b5   : > { %v5104_v40 = vcombine.low %v4230_v0, %v4237_v3  ;;  %5579 = vst.msk [vmem:[#allocation3 + $0x68] sm:$0xff] %vm3357_vm0, %v5524_v52  ;;  %5595 = vst.msk [vmem:[#allocation3 + $0xe8] sm:$0xff] %vm3357_vm0, %v5532_v20  ;;  %v5077_v12 = vrot.slane %v5070_v63, %v12429_v13  ;;  %v10136_v37 = vcombine.high %v4230_v0, %v4237_v3  ;;  %v1346_v45 = vshrl.u32 %v1204_v30, 16 }
 0x3b6   : > { %v5095_v27 = vrot.slane %v5088_v4, %v12426_v8  ;;  %v1359_v33 = vpack.i.b16 %v1206_v56, %v12342_v53  ;;  %v5078_v61 = vcombine.low %v5061_v60, %v5069_v34  ;;  %v5103_v51 = vrot.slane %v10135_v29, %v12426_v8 }
 0x3b7   : > { %v5111_v22 = vrot.slane %v5104_v40, %v12426_v8  ;;  %v5119_v1 = vrot.slane %v10136_v37, %v12426_v8  ;;  %v1343_v49 = vpack.i.b16 %v1204_v30, %v12345_v57  ;;  %v1363_v26 = vpack.i.b16 %v1362_v32, %v1361_v35 }
 0x3b8   : > { %v2297_v44 = vcombine.high %v1359_v33, %v12424_v7  ;;  %v2304_v5 = vrot.slane %v1359_v33, %v12426_v8  ;;  %v5085_v31 = vrot.slane %v5078_v61, %v12429_v13  ;;  %v5120_v6 = vcombine.low %v5095_v27, %v5103_v51 }
 0x3b9   : > { %v5128_v14 = vcombine.low %v5111_v22, %v5119_v1  ;;  %v2165_v19 = vcombine.high %v1343_v49, %v12424_v7  ;;  %v13088_v48 = vrot.slane %v1343_v49, %v12426_v8  ;;  %v2363_v55 = vcombine.high %v1363_v26, %v12424_v7 }
 0x3ba   : > { %v2311_v11 = vrot.slane %v2297_v44, %v12426_v8  ;;  %v5086_v23 = vcombine.low %v5077_v12, %v5085_v31  ;;  %v5087_v36 = vcombine.high %v5077_v12, %v5085_v31  ;;  %v5127_v18 = vrot.slane %v5120_v6, %v12429_v13 }
 0x3bb   : > { %v5135_v17 = vrot.slane %v5128_v14, %v12429_v13  ;;  %v2370_v53 = vrot.slane %v1363_v26, %v12426_v8  ;;  %v1347_v35 = vpack.i.b16 %v1346_v45, %v1345_v38  ;;  %v13097_v43 = vrot.slane %v2165_v19, %v12426_v8 }
 0x3bc   : > { %v5506_v42 = vshrl.u32 %v5086_v23, 16  ;;  %v5514_v24 = vshrl.u32 %v5087_v36, 16  ;;  %v2377_v56 = vrot.slane %v2363_v55, %v12426_v8  ;;  %v1369_v30 = vshrl.u32 %v1222_v58, 16 }
 0x3bd   : > { %v5136_v46 = vcombine.low %v5127_v18, %v5135_v17  ;;  %v5137_v54 = vcombine.high %v5127_v18, %v5135_v17  ;;  %v2231_v59 = vcombine.high %v1347_v35, %v12424_v7  ;;  %v13102_v28 = vrot.slane %v1347_v35, %v12426_v8 }
 0x3be   : > { %v1353_v10 = vshrl.u32 %v1220_v21, 16  ;;  %v1367_v57 = vpack.i.b16 %v1238_v16, %v1222_v58  ;;  %v1370_v38 = vshrl.u32 %v1238_v16, 16  ;;  %v1351_v2 = vpack.i.b16 %v1236_v9, %v1220_v21 }
 0x3bf   : > { %v5504_v47 = vpack.i.b16 %v5136_v46, %v5086_v23  ;;  %v5507_v15 = vshrl.u32 %v5136_v46, 16  ;;  %v5512_v0 = vpack.i.b16 %v5137_v54, %v5087_v36  ;;  %v5515_v3 = vshrl.u32 %v5137_v54, 16 }
 0x3c0   : > { %v13105_v25 = vrot.slane %v2231_v59, %v12426_v8  ;;  %v1371_v50 = vpack.i.b16 %v1370_v38, %v1369_v30  ;;  %v2312_v52 = vcombine.high %v1367_v57, %v12424_v7  ;;  %v2319_v20 = vrot.slane %v1367_v57, %v12426_v8 }
 0x3c1   : > { %v5508_v63 = vpack.i.b16 %v5507_v15, %v5506_v42  ;;  %v5516_v4 = vpack.i.b16 %v5515_v3, %v5514_v24  ;;  %5570 = vst.msk [vmem:[#allocation3 + $0x20] sm:$0xff] %vm3357_vm0, %v5504_v47  ;;  %5586 = vst.msk [vmem:[#allocation3 + $0xa0] sm:$0xff] %vm3357_vm0, %v5512_v0  ;;  %v1354_v60 = vshrl.u32 %v1236_v9, 16  ;;  %v2180_v34 = vcombine.high %v1351_v2, %v12424_v7 }
 0x3c2   : > { %v2326_v29 = vrot.slane %v2312_v52, %v12426_v8  ;;  %v2327_v40 = vcombine.low %v2304_v5, %v2319_v20  ;;  %v2328_v12 = vcombine.high %v2304_v5, %v2319_v20  ;;  %v2378_v27 = vcombine.high %v1371_v50, %v12424_v7 }
 0x3c3   : > { %5578 = vst.msk [vmem:[#allocation3 + $0x60] sm:$0xff] %vm3357_vm0, %v5508_v63  ;;  %5594 = vst.msk [vmem:[#allocation3 + $0xe0] sm:$0xff] %vm3357_vm0, %v5516_v4  ;;  %v2385_v37 = vrot.slane %v1371_v50, %v12426_v8  ;;  %v1355_v33 = vpack.i.b16 %v1354_v60, %v1353_v10  ;;  %v2187_v58 = vrot.slane %v1351_v2, %v12426_v8 }
 0x3c4   : > { %v2194_v21 = vrot.slane %v2180_v34, %v12426_v8  ;;  %v2335_v61 = vrot.slane %v2327_v40, %v12429_v13  ;;  %v2342_v51 = vrot.slane %v2328_v12, %v12429_v13  ;;  %v2343_v22 = vcombine.low %v2311_v11, %v2326_v29 }
 0x3c5   : > { %v2344_v32 = vcombine.high %v2311_v11, %v2326_v29  ;;  %v2392_v1 = vrot.slane %v2378_v27, %v12426_v8  ;;  %v2393_v44 = vcombine.low %v2370_v53, %v2385_v37  ;;  %v2394_v5 = vcombine.high %v2370_v53, %v2385_v37 }
 0x3c6   : > { %v2195_v49 = vcombine.low %v13088_v48, %v2187_v58  ;;  %v2351_v31 = vrot.slane %v2343_v22, %v12429_v13  ;;  %v3129_v26 = vcombine.low %v2335_v61, %v2342_v51  ;;  %v10113_v45 = vcombine.high %v2335_v61, %v2342_v51 }
 0x3c7   : > { %v2358_v6 = vrot.slane %v2344_v32, %v12429_v13  ;;  %v2401_v14 = vrot.slane %v2393_v44, %v12429_v13  ;;  %v2408_v19 = vrot.slane %v2394_v5, %v12429_v13  ;;  %v2409_v23 = vcombine.low %v2377_v56, %v2392_v1 }
 0x3c8   : > { %v2410_v36 = vcombine.high %v2377_v56, %v2392_v1  ;;  %v3136_v11 = vrot.slane %v3129_v26, %v12426_v8  ;;  %v3144_v18 = vrot.slane %v10113_v45, %v12426_v8  ;;  %v2196_v46 = vcombine.high %v13088_v48, %v2187_v58  ;;  %v3421_v1 = vpop.permute.xlu1 %3420 }
 0x3c9   : > { %v3145_v55 = vcombine.low %v2351_v31, %v2358_v6  ;;  %v10114_v17 = vcombine.high %v2351_v31, %v2358_v6  ;;  %v2417_v53 = vrot.slane %v2409_v23, %v12429_v13  ;;  %v3179_v16 = vcombine.low %v2401_v14, %v2408_v19 }
 0x3ca   : > { %v2424_v35 = vrot.slane %v2410_v36, %v12429_v13  ;;  %v10115_v9 = vcombine.high %v2401_v14, %v2408_v19  ;;  %v3161_v30 = vcombine.low %v3136_v11, %v3144_v18  ;;  %v2203_v2 = vrot.slane %v2195_v49, %v12429_v13  ;;  %v3419_v11 = vpop.permute.xlu0 %3418 }
 0x3cb   : > { %v3152_v42 = vrot.slane %v3145_v55, %v12426_v8  ;;  %v3160_v24 = vrot.slane %v10114_v17, %v12426_v8  ;;  %v3186_v56 = vrot.slane %v3179_v16, %v12426_v8  ;;  %v2210_v47 = vrot.slane %v2196_v46, %v12429_v13 }
 0x3cc   : > { %v3194_v54 = vrot.slane %v10115_v9, %v12426_v8  ;;  %v3195_v59 = vcombine.low %v2417_v53, %v2424_v35  ;;  %v10116_v10 = vcombine.high %v2417_v53, %v2424_v35  ;;  %v3168_v57 = vrot.slane %v3161_v30, %v12429_v13 }
 0x3cd   : > { %v3169_v38 = vcombine.low %v3152_v42, %v3160_v24  ;;  %v2211_v48 = vcombine.low %v13097_v43, %v2194_v21  ;;  %v2212_v52 = vcombine.high %v13097_v43, %v2194_v21  ;;  %v2246_v20 = vcombine.high %v1355_v33, %v12424_v7 }
 0x3ce   : > { %v3202_v15 = vrot.slane %v3195_v59, %v12426_v8  ;;  %v3210_v0 = vrot.slane %v10116_v10, %v12426_v8  ;;  %v3211_v3 = vcombine.low %v3186_v56, %v3194_v54  ;;  %v2253_v63 = vrot.slane %v1355_v33, %v12426_v8  ;;  %v3437_v56 = vpop.permute.xlu1 %3436 }
 0x3cf   : > { %v3176_v50 = vrot.slane %v3169_v38, %v12429_v13  ;;  %v2219_v34 = vrot.slane %v2211_v48, %v12429_v13  ;;  %v3029_v29 = vcombine.low %v2203_v2, %v2210_v47  ;;  %v2226_v27 = vrot.slane %v2212_v52, %v12429_v13  ;;  %v3435_v52 = vpop.permute.xlu0 %3434 }
 0x3d0   : > { %v3218_v4 = vrot.slane %v3211_v3, %v12429_v13  ;;  %v3219_v60 = vcombine.low %v3202_v15, %v3210_v0  ;;  %v2260_v37 = vrot.slane %v2246_v20, %v12426_v8  ;;  %v2261_v43 = vcombine.low %v13102_v28, %v2253_v63 }
 0x3d1   : > { %v3177_v40 = vcombine.low %v3168_v57, %v3176_v50  ;;  %v3178_v12 = vcombine.high %v3168_v57, %v3176_v50  ;;  %v2262_v21 = vcombine.high %v13102_v28, %v2253_v63  ;;  %v3036_v33 = vrot.slane %v3029_v29, %v12426_v8 }
 0x3d2   : > { %v3226_v58 = vrot.slane %v3219_v60, %v12429_v13  ;;  %v2277_v22 = vcombine.low %v13105_v25, %v2260_v37  ;;  %v2278_v32 = vcombine.high %v13105_v25, %v2260_v37  ;;  %v2269_v49 = vrot.slane %v2261_v43, %v12429_v13  ;;  %v3453_v37 = vpop.permute.xlu1 %3452 }
 0x3d3   : > { %v3345_v61 = vshrl.u32 %v3177_v40, 16  ;;  %v3353_v51 = vshrl.u32 %v3178_v12, 16  ;;  %v2276_v31 = vrot.slane %v2262_v21, %v12429_v13  ;;  %v10109_v28 = vcombine.high %v2203_v2, %v2210_v47 }
 0x3d4   : > { %v3227_v44 = vcombine.low %v3218_v4, %v3226_v58  ;;  %v3228_v5 = vcombine.high %v3218_v4, %v3226_v58  ;;  %v2285_v6 = vrot.slane %v2277_v22, %v12429_v13  ;;  %v2292_v26 = vrot.slane %v2278_v32, %v12429_v13 }
 0x3d5   : > { %v3045_v45 = vcombine.low %v2219_v34, %v2226_v27  ;;  %v3044_v25 = vrot.slane %v10109_v28, %v12426_v8  ;;  %v10110_v55 = vcombine.high %v2219_v34, %v2226_v27  ;;  %v3079_v17 = vcombine.low %v2269_v49, %v2276_v31 }
 0x3d6   : > { %v3343_v14 = vpack.i.b16 %v3227_v44, %v3177_v40  ;;  %v3346_v19 = vshrl.u32 %v3227_v44, 16  ;;  %v3351_v23 = vpack.i.b16 %v3228_v5, %v3178_v12  ;;  %v3354_v36 = vshrl.u32 %v3228_v5, 16 }
 0x3d7   : > { %v3052_v18 = vrot.slane %v3045_v45, %v12426_v8  ;;  %v10111_v16 = vcombine.high %v2269_v49, %v2276_v31  ;;  %v3095_v9 = vcombine.low %v2285_v6, %v2292_v26  ;;  %v3060_v42 = vrot.slane %v10110_v55, %v12426_v8  ;;  %v3451_v31 = vpop.permute.xlu0 %3450 }
 0x3d8   : > { %v3347_v53 = vpack.i.b16 %v3346_v19, %v3345_v61  ;;  %v3355_v35 = vpack.i.b16 %v3354_v36, %v3353_v51  ;;  %3365 = vst.msk [vmem:[#allocation2 + $0x38] sm:$0xff] %vm3357_vm0, %v3343_v14  ;;  %3381 = vst.msk [vmem:[#allocation2 + $0xb8] sm:$0xff] %vm3357_vm0, %v3351_v23  ;;  %v3061_v24 = vcombine.low %v3036_v33, %v3044_v25  ;;  %v3571_v57 = vshrl.u32 %v3421_v1, 16 }
 0x3d9   : > { %v3086_v30 = vrot.slane %v3079_v17, %v12426_v8  ;;  %v10112_v46 = vcombine.high %v2285_v6, %v2292_v26  ;;  %v3094_v54 = vrot.slane %v10111_v16, %v12426_v8  ;;  %v3102_v59 = vrot.slane %v3095_v9, %v12426_v8 }
 0x3da   : > { %3373 = vst.msk [vmem:[#allocation2 + $0x78] sm:$0xff] %vm3357_vm0, %v3347_v53  ;;  %3389 = vst.msk [vmem:[#allocation2 + $0xf8] sm:$0xff] %vm3357_vm0, %v3355_v35  ;;  %v3568_v10 = vpack.i.b16 %v3421_v1, %v12352_v62  ;;  %v3069_v38 = vcombine.low %v3052_v18, %v3060_v42  ;;  %v3554_v47 = vshrl.u32 %v12354_v41, 16  ;;  %v3552_v15 = vpack.i.b16 %v3419_v11, %v12354_v41 }
 0x3db   : > { %v3110_v2 = vrot.slane %v10112_v46, %v12426_v8  ;;  %v3068_v0 = vrot.slane %v3061_v24, %v12429_v13  ;;  %v3111_v3 = vcombine.low %v3086_v30, %v3094_v54  ;;  %v3572_v48 = vpack.i.b16 %v3571_v57, %v3570_v39 }
 0x3dc   : > { %v4506_v50 = vcombine.high %v3568_v10, %v12424_v7  ;;  %v3076_v20 = vrot.slane %v3069_v38, %v12429_v13  ;;  %v3555_v4 = vshrl.u32 %v3419_v11, 16  ;;  %v4374_v60 = vcombine.high %v3552_v15, %v12424_v7 }
 0x3dd   : > { %v3119_v63 = vcombine.low %v3102_v59, %v3110_v2  ;;  %v3118_v34 = vrot.slane %v3111_v3, %v12429_v13  ;;  %v4513_v29 = vrot.slane %v3568_v10, %v12426_v8  ;;  %v4572_v40 = vcombine.high %v3572_v48, %v12424_v7 }
 0x3de   : > { %v4520_v41 = vrot.slane %v4506_v50, %v12426_v8  ;;  %v3077_v12 = vcombine.low %v3068_v0, %v3076_v20  ;;  %v3078_v62 = vcombine.high %v3068_v0, %v3076_v20  ;;  %v3556_v27 = vpack.i.b16 %v3555_v4, %v3554_v47 }
 0x3df   : > { %v3126_v39 = vrot.slane %v3119_v63, %v12429_v13  ;;  %v4579_v58 = vrot.slane %v3572_v48, %v12426_v8  ;;  %v13187_v43 = vrot.slane %v4572_v40, %v12426_v8  ;;  %v13190_v21 = vrot.slane %v3552_v15, %v12426_v8 }
 0x3e0   : > { %v13193_v33 = vrot.slane %v4374_v60, %v12426_v8  ;;  %v3329_v22 = vshrl.u32 %v3077_v12, 16  ;;  %v3578_v32 = vshrl.u32 %v3437_v56, 16  ;;  %v3337_v1 = vshrl.u32 %v3078_v62, 16 }
 0x3e1   : > { %v3127_v61 = vcombine.low %v3118_v34, %v3126_v39  ;;  %v3128_v51 = vcombine.high %v3118_v34, %v3126_v39  ;;  %v4440_v44 = vcombine.high %v3556_v27, %v12424_v7  ;;  %v13197_v5 = vrot.slane %v3556_v27, %v12426_v8 }
 0x3e2   : > { %v3576_v49 = vpack.i.b16 %v3453_v37, %v3437_v56  ;;  %v3562_v14 = vshrl.u32 %v3435_v52, 16  ;;  %v3579_v19 = vshrl.u32 %v3453_v37, 16  ;;  %v3560_v18 = vpack.i.b16 %v3451_v31, %v3435_v52 }
 0x3e3   : > { %v3327_v6 = vpack.i.b16 %v3127_v61, %v3077_v12  ;;  %v3330_v26 = vshrl.u32 %v3127_v61, 16  ;;  %v3335_v28 = vpack.i.b16 %v3128_v51, %v3078_v62  ;;  %v3338_v45 = vshrl.u32 %v3128_v51, 16 }
 0x3e4   : > { %v4521_v23 = vcombine.high %v3576_v49, %v12424_v7  ;;  %v4528_v36 = vrot.slane %v3576_v49, %v12426_v8  ;;  %v3563_v55 = vshrl.u32 %v3451_v31, 16  ;;  %v3580_v17 = vpack.i.b16 %v3579_v19, %v3578_v32 }
 0x3e5   : > { %v3331_v11 = vpack.i.b16 %v3330_v26, %v3329_v22  ;;  %v3339_v25 = vpack.i.b16 %v3338_v45, %v3337_v1  ;;  %3364 = vst.msk [vmem:[#allocation2 + $0x30] sm:$0xff] %vm3357_vm0, %v3327_v6  ;;  %3380 = vst.msk [vmem:[#allocation2 + $0xb0] sm:$0xff] %vm3357_vm0, %v3335_v28  ;;  %v13207_v9 = vrot.slane %v4440_v44, %v12426_v8 }
 0x3e6   : > { %v4535_v53 = vrot.slane %v4521_v23, %v12426_v8  ;;  %v4536_v35 = vcombine.low %v4513_v29, %v4528_v36  ;;  %v4537_v16 = vcombine.high %v4513_v29, %v4528_v36  ;;  %v3564_v42 = vpack.i.b16 %v3563_v55, %v3562_v14 }
 0x3e7   : > { %3372 = vst.msk [vmem:[#allocation2 + $0x70] sm:$0xff] %vm3357_vm0, %v3331_v11  ;;  %3388 = vst.msk [vmem:[#allocation2 + $0xf0] sm:$0xff] %vm3357_vm0, %v3339_v25  ;;  %v4389_v24 = vcombine.high %v3560_v18, %v12424_v7  ;;  %v4396_v30 = vrot.slane %v3560_v18, %v12426_v8  ;;  %v4587_v10 = vcombine.high %v3580_v17, %v12424_v7 }
 0x3e8   : > { %v4544_v46 = vrot.slane %v4536_v35, %v12429_v13  ;;  %v4551_v56 = vrot.slane %v4537_v16, %v12429_v13  ;;  %v4552_v54 = vcombine.low %v4520_v41, %v4535_v53  ;;  %v4553_v59 = vcombine.high %v4520_v41, %v4535_v53 }
 0x3e9   : > { %v4594_v57 = vrot.slane %v3580_v17, %v12426_v8  ;;  %v4403_v38 = vrot.slane %v4389_v24, %v12426_v8  ;;  %v4404_v2 = vcombine.low %v13190_v21, %v4396_v30  ;;  %v4601_v48 = vrot.slane %v4587_v10, %v12426_v8 }
 0x3ea   : > { %v4560_v47 = vrot.slane %v4552_v54, %v12429_v13  ;;  %v4567_v15 = vrot.slane %v4553_v59, %v12429_v13  ;;  %v5338_v0 = vcombine.low %v4544_v46, %v4551_v56  ;;  %v10145_v3 = vcombine.high %v4544_v46, %v4551_v56 }
 0x3eb   : > { %v4602_v50 = vcombine.low %v4579_v58, %v4594_v57  ;;  %v4603_v52 = vcombine.high %v4579_v58, %v4594_v57  ;;  %v4405_v20 = vcombine.high %v13190_v21, %v4396_v30  ;;  %v4618_v40 = vcombine.low %v13187_v43, %v4601_v48 }
 0x3ec   : > { %v5345_v63 = vrot.slane %v5338_v0, %v12426_v8  ;;  %v5353_v4 = vrot.slane %v10145_v3, %v12426_v8  ;;  %v5354_v60 = vcombine.low %v4560_v47, %v4567_v15  ;;  %v10146_v34 = vcombine.high %v4560_v47, %v4567_v15 }
 0x3ed   : > { %v4610_v29 = vrot.slane %v4602_v50, %v12429_v13  ;;  %v4617_v41 = vrot.slane %v4603_v52, %v12429_v13  ;;  %v4619_v12 = vcombine.high %v13187_v43, %v4601_v48  ;;  %v4412_v37 = vrot.slane %v4404_v2, %v12429_v13 }
 0x3ee   : > { %v5361_v62 = vrot.slane %v5354_v60, %v12426_v8  ;;  %v5369_v39 = vrot.slane %v10146_v34, %v12426_v8  ;;  %v5370_v27 = vcombine.low %v5345_v63, %v5353_v4  ;;  %v4626_v58 = vrot.slane %v4618_v40, %v12429_v13 }
 0x3ef   : > { %v4633_v21 = vrot.slane %v4619_v12, %v12429_v13  ;;  %v5388_v61 = vcombine.low %v4610_v29, %v4617_v41  ;;  %v10147_v51 = vcombine.high %v4610_v29, %v4617_v41  ;;  %v4419_v1 = vrot.slane %v4405_v20, %v12429_v13 }
 0x3f0   : > { %v5377_v22 = vrot.slane %v5370_v27, %v12429_v13  ;;  %v5378_v32 = vcombine.low %v5361_v62, %v5369_v39  ;;  %v4420_v43 = vcombine.low %v13193_v33, %v4403_v38  ;;  %v4421_v28 = vcombine.high %v13193_v33, %v4403_v38 }
 0x3f1   : > { %v5395_v44 = vrot.slane %v5388_v61, %v12426_v8  ;;  %v5403_v49 = vrot.slane %v10147_v51, %v12426_v8  ;;  %v5404_v31 = vcombine.low %v4626_v58, %v4633_v21  ;;  %v10148_v6 = vcombine.high %v4626_v58, %v4633_v21 }
 0x3f2   : > { %v5385_v26 = vrot.slane %v5378_v32, %v12429_v13  ;;  %v4428_v45 = vrot.slane %v4420_v43, %v12429_v13  ;;  %v4455_v14 = vcombine.high %v3564_v42, %v12424_v7  ;;  %v4462_v11 = vrot.slane %v3564_v42, %v12426_v8 }
 0x3f3   : > { %v5411_v19 = vrot.slane %v5404_v31, %v12426_v8  ;;  %v5419_v23 = vrot.slane %v10148_v6, %v12426_v8  ;;  %v5420_v36 = vcombine.low %v5395_v44, %v5403_v49  ;;  %v4435_v55 = vrot.slane %v4421_v28, %v12429_v13 }
 0x3f4   : > { %v5386_v25 = vcombine.low %v5377_v22, %v5385_v26  ;;  %v5387_v18 = vcombine.high %v5377_v22, %v5385_v26  ;;  %v4469_v17 = vrot.slane %v4455_v14, %v12426_v8  ;;  %v4470_v35 = vcombine.low %v13197_v5, %v4462_v11 }
 0x3f5   : > { %v5427_v53 = vrot.slane %v5420_v36, %v12429_v13  ;;  %v5428_v33 = vcombine.low %v5411_v19, %v5419_v23  ;;  %v4471_v7 = vcombine.high %v13197_v5, %v4462_v11  ;;  %v5238_v59 = vcombine.low %v4412_v37, %v4419_v1 }
 0x3f6   : > { %v5554_v16 = vshrl.u32 %v5386_v25, 16  ;;  %v5562_v24 = vshrl.u32 %v5387_v18, 16  ;;  %v4486_v30 = vcombine.low %v13207_v9, %v4469_v17  ;;  %v4487_v46 = vcombine.high %v13207_v9, %v4469_v17 }
 0x3f7   : > { %v5435_v42 = vrot.slane %v5428_v33, %v12429_v13  ;;  %v4478_v56 = vrot.slane %v4470_v35, %v12429_v13  ;;  %v4485_v54 = vrot.slane %v4471_v7, %v12429_v13  ;;  %v10141_v38 = vcombine.high %v4412_v37, %v4419_v1 }
 0x3f8   : > { %v4494_v10 = vrot.slane %v4486_v30, %v12429_v13  ;;  %v4501_v57 = vrot.slane %v4487_v46, %v12429_v13  ;;  %v5254_v2 = vcombine.low %v4428_v45, %v4435_v55  ;;  %v5245_v15 = vrot.slane %v5238_v59, %v12426_v8 }
 0x3f9   : > { %v5436_v5 = vcombine.low %v5427_v53, %v5435_v42  ;;  %v5437_v47 = vcombine.high %v5427_v53, %v5435_v42  ;;  %v10142_v0 = vcombine.high %v4428_v45, %v4435_v55  ;;  %v5253_v9 = vrot.slane %v10141_v38, %v12426_v8 }
 0x3fa   : > { %v5261_v3 = vrot.slane %v5254_v2, %v12426_v8  ;;  %v5288_v48 = vcombine.low %v4478_v56, %v4485_v54  ;;  %v10143_v50 = vcombine.high %v4478_v56, %v4485_v54  ;;  %v5304_v62 = vcombine.low %v4494_v10, %v4501_v57 }
 0x3fb   : > { %v5552_v52 = vpack.i.b16 %v5436_v5, %v5386_v25  ;;  %v5555_v20 = vshrl.u32 %v5436_v5, 16  ;;  %v5560_v63 = vpack.i.b16 %v5437_v47, %v5387_v18  ;;  %v5563_v4 = vshrl.u32 %v5437_v47, 16 }
 0x3fc   : > { %v5269_v60 = vrot.slane %v10142_v0, %v12426_v8  ;;  %v5270_v34 = vcombine.low %v5245_v15, %v5253_v9  ;;  %v5295_v29 = vrot.slane %v5288_v48, %v12426_v8  ;;  %v5303_v41 = vrot.slane %v10143_v50, %v12426_v8 }
 0x3fd   : > { %v5556_v40 = vpack.i.b16 %v5555_v20, %v5554_v16  ;;  %v5564_v12 = vpack.i.b16 %v5563_v4, %v5562_v24  ;;  %5573 = vst.msk [vmem:[#allocation3 + $0x38] sm:$0xff] %vm3357_vm0, %v5552_v52  ;;  %5589 = vst.msk [vmem:[#allocation3 + $0xb8] sm:$0xff] %vm3357_vm0, %v5560_v63  ;;  %v10144_v39 = vcombine.high %v4494_v10, %v4501_v57 }
 0x3fe   : > { %v5278_v27 = vcombine.low %v5261_v3, %v5269_v60  ;;  %v5311_v37 = vrot.slane %v5304_v62, %v12426_v8  ;;  %v5320_v21 = vcombine.low %v5295_v29, %v5303_v41  ;;  %v5277_v61 = vrot.slane %v5270_v34, %v12429_v13 }
 0x3ff   : > { %5581 = vst.msk [vmem:[#allocation3 + $0x78] sm:$0xff] %vm3357_vm0, %v5556_v40  ;;  %5597 = vst.msk [vmem:[#allocation3 + $0xf8] sm:$0xff] %vm3357_vm0, %v5564_v12  ;;  %v5319_v58 = vrot.slane %v10144_v39, %v12426_v8 }
 0x400   : > { %v5285_v51 = vrot.slane %v5278_v27, %v12429_v13  ;;  %v5327_v43 = vrot.slane %v5320_v21, %v12429_v13 }
 0x401   : > { %v5328_v22 = vcombine.low %v5311_v37, %v5319_v58 }
 0x402   : > { %v5286_v32 = vcombine.low %v5277_v61, %v5285_v51  ;;  %v5287_v1 = vcombine.high %v5277_v61, %v5285_v51 }
 0x403   : > { %v5335_v44 = vrot.slane %v5328_v22, %v12429_v13 }
 0x404   : > { %v5538_v6 = vshrl.u32 %v5286_v32, 16  ;;  %v5546_v26 = vshrl.u32 %v5287_v1, 16 }
 0x405   : > { %v5336_v49 = vcombine.low %v5327_v43, %v5335_v44  ;;  %v5337_v31 = vcombine.high %v5327_v43, %v5335_v44 }
 0x407   : > { %v5536_v28 = vpack.i.b16 %v5336_v49, %v5286_v32  ;;  %v5539_v45 = vshrl.u32 %v5336_v49, 16  ;;  %v5544_v14 = vpack.i.b16 %v5337_v31, %v5287_v1  ;;  %v5547_v8 = vshrl.u32 %v5337_v31, 16 }
 0x409   : > { %v5540_v19 = vpack.i.b16 %v5539_v45, %v5538_v6  ;;  %v5548_v23 = vpack.i.b16 %v5547_v8, %v5546_v26  ;;  %5572 = vst.msk [vmem:[#allocation3 + $0x30] sm:$0xff] %vm3357_vm0, %v5536_v28  ;;  %5588 = vst.msk [vmem:[#allocation3 + $0xb0] sm:$0xff] %vm3357_vm0, %v5544_v14 }
 0x40b   : > { %5580 = vst.msk [vmem:[#allocation3 + $0x70] sm:$0xff] %vm3357_vm0, %v5540_v19  ;;  %5596 = vst.msk [vmem:[#allocation3 + $0xf0] sm:$0xff] %vm3357_vm0, %v5548_v23 }
 0x40c PF: > { %v11013_v13 = vld [vmem:[#allocation10] sm:$0xff]   ;;  %v11014_v36 = vld [vmem:[#allocation10 + $0x8] sm:$0xff]   ;;  %v11015_v11 = vld [vmem:[#allocation10 + $0x10] sm:$0xff]   ;;  %vm6872_vm1 = vcmask 261120   ;;  %s14910_s12 = sld [smem:[#allocation40_spill]]  ;;  %s11658_s7 = smov 96  }
 0x40d   : > { %10534 = vmatprep.subr.bf16.mxu0 %v11013_v13  ;;  %v11016_v25 = vld [vmem:[#allocation10 + $0x18] sm:$0xff]   ;;  %v5598_v18 = vld [vmem:[%s12202_s21] sm:$0xff]  ;;  %v5599_v55 = vld [vmem:[%s12202_s21 + $0x8] sm:$0xff]  ;;  %s11659_s18 = smov 32   ;;  %s11660_s2 = smov 64   ;;  %vm8974_vm2 = vcmask 785408  }
 0x40e   : > { %10535 = vmatpush3.bf16.msra.mxu0 %v11013_v13  ;;  %v5606_v17 = vpack.c.bf16 %v5599_v55, %v5598_v18  ;;  %v11017_v53 = vld [vmem:[#allocation10 + $0x20] sm:$0xff]   ;;  %v11018_v33 = vld [vmem:[#allocation10 + $0x28] sm:$0xff]   ;;  %v11019_v35 = vld [vmem:[#allocation10 + $0x30] sm:$0xff]   ;;  %vm8965_vm3 = vcmask 523264   ;;  %s14912_s4 = sld [smem:[#allocation46_spill]]  ;;  %s14913_s6 = sld [smem:[#allocation47_spill]] }
 0x40f   : > { %10536 = vmatprep.subr.bf16.mxu0 %v11014_v36  ;;  %v11020_v7 = vld [vmem:[#allocation10 + $0x38] sm:$0xff]   ;;  %v5600_v16 = vld [vmem:[%s12202_s21 + $0x10] sm:$0xff]  ;;  %v5602_v30 = vld [vmem:[%s12202_s21 + $0x20] sm:$0xff]  ;;  %s14914_s15 = sld [smem:[#allocation48_spill]]  ;;  %s14915_s5 = sld [smem:[#allocation50_spill]] }
 0x410   : > { %10550 = vmatprep.mubr.bf16.mxu0 %v5606_v17  ;;  %v5601_v24 = vld [vmem:[%s12202_s21 + $0x18] sm:$0xff]  ;;  %v5603_v46 = vld [vmem:[%s12202_s21 + $0x28] sm:$0xff]  ;;  %v5604_v54 = vld [vmem:[%s12202_s21 + $0x30] sm:$0xff]  ;;  %s14916_s27 = sld [smem:[#allocation52_spill]]  ;;  %s9841_s9 = sshll.u32 %s12235_s0, 4  ;;  %s14711_s9 = int_to_ptr.vmem [resolvable:$true] %s9841_s9 }
 0x411   : > { %v5607_v42 = vpack.c.bf16 %v5601_v24, %v5600_v16  ;;  %v5608_v56 = vpack.c.bf16 %v5603_v46, %v5602_v30  ;;  %v5605_v59 = vld [vmem:[%s12202_s21 + $0x38] sm:$0xff]  ;;  %v6824_v57 = vld [vmem:[#allocation2] sm:$0xff]  ;;  %v6825_v2 = vld [vmem:[#allocation2 + $0x8] sm:$0xff]  ;;  %v11661_v16 = vmov 1983009808   ;;  %v5852_v30 = vlaneseq  ;;  %s9826_s29 = scalar_lea.sflag [#allocation6], %s12198_s23 }
 0x412   : > { %10537 = vmatpush3.bf16.msra.mxu0 %v11014_v36  ;;  %v5609_v10 = vpack.c.bf16 %v5605_v59, %v5604_v54  ;;  %v6832_v38 = vld [vmem:[#allocation2 + $0x40] sm:$0xff]  ;;  %10774 = vmatprep.subr.msk.bf16.mxu1 %vm6872_vm1, %v6824_v57  ;;  %v6886_v5 = vsel %vm6872_vm1, %v6824_v57, 0  ;;  %v6833_v15 = vld [vmem:[#allocation2 + $0x48] sm:$0xff]  ;;  %v6889_v0 = vsel %vm6872_vm1, %v6825_v2, 0  ;;  %v6826_v3 = vld [vmem:[#allocation2 + $0x10] sm:$0xff]  ;;  %v5850_v24 = vunpack.c.l.s4 %v11661_v16  ;;  %p14922_p9 = scmp.ne.s32.totalorder %s14887_s17, 0 }
 0x413   : > { %10538 = vmatprep.subr.bf16.mxu0 %v11015_v11  ;;  %v6987_v47 = vsel %vm6872_vm1, %v6832_v38, 0  ;;  %10559 = vmatpush3.bf16.xpose.msra.mxu1 %v6886_v5  ;;  %v6990_v9 = vsel %vm6872_vm1, %v6833_v15, 0  ;;  %v6834_v48 = vld [vmem:[#allocation2 + $0x50] sm:$0xff]  ;;  %v6892_v50 = vsel %vm6872_vm1, %v6826_v3, 0  ;;  %v6827_v20 = vld [vmem:[#allocation2 + $0x18] sm:$0xff]  ;;  %v6828_v34 = vld [vmem:[#allocation2 + $0x20] sm:$0xff] }
 0x414   : > { %10775 = vmatprep.subr.msk.bf16.mxu1 %vm6872_vm1, %v6825_v2  ;;  %v6993_v52 = vsel %vm6872_vm1, %v6834_v48, 0  ;;  %v6835_v63 = vld [vmem:[#allocation2 + $0x58] sm:$0xff]  ;;  %v6895_v4 = vsel %vm6872_vm1, %v6827_v20, 0  ;;  %v6898_v29 = vsel %vm6872_vm1, %v6828_v34, 0  ;;  %v6836_v41 = vld [vmem:[#allocation2 + $0x60] sm:$0xff]  ;;  %v6829_v37 = vld [vmem:[#allocation2 + $0x28] sm:$0xff] }
 0x415   : > { %v6996_v60 = vsel %vm6872_vm1, %v6835_v63, 0  ;;  %v6999_v40 = vsel %vm6872_vm1, %v6836_v41, 0  ;;  %v10149_v62 = vld [vmem:[%s14910_s12] ss:$0 sm:$0xff]  ;;  %v6901_v1 = vsel %vm6872_vm1, %v6829_v37, 0  ;;  %v6837_v44 = vld [vmem:[#allocation2 + $0x68] sm:$0xff] }
 0x416   : > { %10539 = vmatpush3.bf16.msra.mxu0 %v11015_v11  ;;  %v7002_v49 = vsel %vm6872_vm1, %v6837_v44, 0  ;;  %v6830_v36 = vld [vmem:[#allocation2 + $0x30] sm:$0xff]  ;;  %v6831_v55 = vld [vmem:[#allocation2 + $0x38] sm:$0xff]  ;;  %v11662_v46 = vmov 1934713408   ;;  %v13353_v54 = vshrl.u32 %v5852_v30, 7 }
 0x417   : > { %10540 = vmatprep.subr.bf16.mxu0 %v11016_v25  ;;  %v6904_v11 = vsel %vm6872_vm1, %v6830_v36, 0  ;;  %v6907_v17 = vsel %vm6872_vm1, %v6831_v55, 0  ;;  %s11664_s12 = smov [#allocation19]  }
 0x41a   : > { %10541 = vmatpush3.bf16.msra.mxu0 %v11016_v25  ;;  %v6838_v25 = vld [vmem:[#allocation2 + $0x70] sm:$0xff] }
 0x41b   : > { %10542 = vmatprep.subr.bf16.mxu0 %v11017_v53  ;;  %10561 = vmatpush3.bf16.xpose.msra.mxu1 %v6889_v0  ;;  %v7005_v18 = vsel %vm6872_vm1, %v6838_v25, 0 }
 0x41c   : > { %10776 = vmatprep.subr.msk.bf16.mxu1 %vm6872_vm1, %v6826_v3 }
 0x41e   : > { %10543 = vmatpush3.bf16.msra.mxu0 %v11017_v53  ;;  %v6839_v53 = vld [vmem:[#allocation2 + $0x78] sm:$0xff] }
 0x41f   : > { %10544 = vmatprep.subr.bf16.mxu0 %v11018_v33 }
 0x422   : > { %10545 = vmatpush3.bf16.msra.mxu0 %v11018_v33  ;;  %v7008_v33 = vsel %vm6872_vm1, %v6839_v53, 0 }
 0x423   : > { %10546 = vmatprep.subr.bf16.mxu0 %v11019_v35  ;;  %10563 = vmatpush3.bf16.xpose.msra.mxu1 %v6892_v50 }
 0x424   : > { %10777 = vmatprep.subr.msk.bf16.mxu1 %vm6872_vm1, %v6827_v20 }
 0x426   : > { %10547 = vmatpush3.bf16.msra.mxu0 %v11019_v35  ;;  %v6840_v35 = vld [vmem:[#allocation2 + $0x80] sm:$0xff] }
 0x427   : > { %10548 = vmatprep.subr.bf16.mxu0 %v11020_v7 }
 0x42a   : > { %10549 = vmatpush3.bf16.msra.mxu0 %v11020_v7  ;;  %v6848_v7 = vld [vmem:[#allocation2 + $0xc0] sm:$0xff] }
 0x42b   : > { %10782 = vmatprep.subr.msk.bf16.mxu0 %vm6872_vm1, %v6832_v38  ;;  %10565 = vmatpush3.bf16.xpose.msra.mxu1 %v6895_v4 }
 0x42c   : > { %10778 = vmatprep.subr.msk.bf16.mxu1 %vm6872_vm1, %v6828_v34 }
 0x42d   : > { %10551 = vmatmul.mubr.bf16.vlgmr.msra.gmra.mrb[0].mxu0 %v5607_v42  ;;  %v5881_v42 = vunpack.c.l.s4 %v11662_v46 }
 0x42e   : > { %10554 = vmatprep.mubr.bf16.mxu0 %v5608_v56  ;;  %v5851_v56 = vunpack.c.0.s8 %v5850_v24 }
 0x42f   : > { %v5882_v0 = vunpack.c.0.s8 %v5881_v42 }
 0x431   : > { %v13368_v34 = vsub.s32 %v5882_v0, %v13353_v54 }
 0x433   : > { %10583 = vmatpush3.bf16.xpose.msra.mxu0 %v6987_v47  ;;  %10567 = vmatpush3.bf16.xpose.msra.mxu1 %v6898_v29 }
 0x434   : > { %10783 = vmatprep.subr.msk.bf16.mxu0 %vm6872_vm1, %v6833_v15  ;;  %10779 = vmatprep.subr.msk.bf16.mxu1 %vm6872_vm1, %v6829_v37 }
 0x435   : > { %10555 = vmatmul.mubr.bf16.gmra.mrb[4].mxu0 %v5609_v10  ;;  %v14833_v10 = vmov 0  }
 0x436   : > { %v13357_v57 = vpack.i.b16 %v14833_v10, %v14833_v10 }
 0x43b   : > { %10585 = vmatpush3.bf16.xpose.msra.mxu0 %v6990_v9  ;;  %10569 = vmatpush3.bf16.xpose.msra.mxu1 %v6901_v1 }
 0x43c   : > { %10784 = vmatprep.subr.msk.bf16.mxu0 %vm6872_vm1, %v6834_v48  ;;  %10780 = vmatprep.subr.msk.bf16.mxu1 %vm6872_vm1, %v6830_v36  ;;  %v13364_v48 = vsub.s32 %v5851_v56, %v13353_v54 }
 0x443   : > { %10587 = vmatpush3.bf16.xpose.msra.mxu0 %v6993_v52  ;;  %10571 = vmatpush3.bf16.xpose.msra.mxu1 %v6904_v11 }
 0x444   : > { %10785 = vmatprep.subr.msk.bf16.mxu0 %vm6872_vm1, %v6835_v63  ;;  %10781 = vmatprep.subr.msk.bf16.mxu1 %vm6872_vm1, %v6831_v55 }
 0x44b   : > { %10589 = vmatpush3.bf16.xpose.msra.mxu0 %v6996_v60  ;;  %10573 = vmatpush3.bf16.xpose.msra.mxu1 %v6907_v17 }
 0x44c   : > { %10786 = vmatprep.subr.msk.bf16.mxu0 %vm6872_vm1, %v6836_v41  ;;  %10790 = vmatprep.subr.msk.bf16.mxu1 %vm6872_vm1, %v6840_v35 }
 0x453   : > { %10591 = vmatpush3.bf16.xpose.msra.mxu0 %v6999_v40 }
 0x454   : > { %10787 = vmatprep.subr.msk.bf16.mxu0 %vm6872_vm1, %v6837_v44 }
 0x45b   : > { %10593 = vmatpush3.bf16.xpose.msra.mxu0 %v7002_v49 }
 0x45c   : > { %10788 = vmatprep.subr.msk.bf16.mxu0 %vm6872_vm1, %v6838_v25 }
 0x463   : > { %10595 = vmatpush3.bf16.xpose.msra.mxu0 %v7005_v18 }
 0x464   : > { %10789 = vmatprep.subr.msk.bf16.mxu0 %vm6872_vm1, %v6839_v53 }
 0x46b   : > { %10597 = vmatpush3.bf16.xpose.msra.mxu0 %v7008_v33 }
 0x46c   : > { %10798 = vmatprep.subr.msk.bf16.mxu0 %vm6872_vm1, %v6848_v7 }
 0x500   : > { %v10552_v12 = vpop.f32.mrb[0].mxu0 }
 0x501   : > { %v5715_v39 = vpop.f32.mrb[1].mxu0  ;;  %v5724_v58 = vadd.f32 %v10552_v12, %v10149_v62 }
 0x502   : > { %v10553_v27 = vpop.f32.mrb[2].mxu0  ;;  %v5716_v51 = vadd.f32 %v10149_v62, %v5715_v39  ;;  %v13374_v39 = vsel %vm6872_vm1, %v6840_v35, 0 }
 0x503   : > { %v5727_v21 = vadd.f32 %v10553_v27, %v10149_v62  ;;  %v5718_v61 = vpop.f32.mrb[3].mxu0  ;;  %v13377_v27 = vsel %vm6872_vm1, %v6848_v7, 0 }
 0x504   : > { %v5719_v22 = vadd.f32 %v10149_v62, %v5718_v61 }
 0x505   : > { %v13308_v32 = vpack.c.bf16 %v5727_v21, %v5724_v58 }
 0x506   : > { %v13311_v43 = vpack.c.bf16 %v5719_v22, %v5716_v51 }
 0x507   : > { %5756 = vrot.lane.b32.xlu1 %v13308_v32, %s11658_s7  ;;  %v5804_v5 = vshrl.u32 %v13308_v32, 16 }
 0x508   : > { %5754 = vrot.lane.b32.xlu0 %v13311_v43, %s11658_s7  ;;  %v10556_v31 = vpop.f32.mrb[4].mxu0  ;;  %v5782_v3 = vshrl.u32 %v13311_v43, 16 }
 0x509   : > { %v5740_v6 = vadd.f32 %v10556_v31, %v10149_v62  ;;  %v5731_v26 = vpop.f32.mrb[5].mxu0 }
 0x50a   : > { %v5732_v28 = vadd.f32 %v10149_v62, %v5731_v26  ;;  %v10557_v45 = vpop.f32.mrb[6].mxu0 }
 0x50b   : > { %5770 = vrot.lane.b32.xlu1 %v13311_v43, %s11659_s18  ;;  %v5743_v14 = vadd.f32 %v10557_v45, %v10149_v62  ;;  %v5734_v8 = vpop.f32.mrb[7].mxu0 }
 0x50c   : > { %5762 = vrot.lane.b32.xlu0 %v13311_v43, %s11660_s2  ;;  %v5735_v19 = vadd.f32 %v10149_v62, %v5734_v8 }
 0x50d   : > { %v13323_v23 = vpack.c.bf16 %v5743_v14, %v5740_v6 }
 0x50e   : > { %v13325_v13 = vpack.c.bf16 %v5735_v19, %v5732_v28 }
 0x50f   : > { %5772 = vrot.lane.b32.xlu1 %v13308_v32, %s11659_s18  ;;  %v5836_v41 = vshrl.u32 %v13323_v23, 16 }
 0x510   : > { %5764 = vrot.lane.b32.xlu0 %v13308_v32, %s11660_s2  ;;  %v5820_v40 = vshrl.u32 %v13325_v13, 16 }
 0x513   : > { %5760 = vrot.lane.b32.xlu1 %v13323_v23, %s11658_s7 }
 0x514   : > { %5758 = vrot.lane.b32.xlu0 %v13325_v13, %s11658_s7 }
 0x517   : > { %5766 = vrot.lane.b32.xlu1 %v13325_v13, %s11660_s2 }
 0x518   : > { %5774 = vrot.lane.b32.xlu0 %v13325_v13, %s11659_s18 }
 0x51b   : > { %5776 = vrot.lane.b32.xlu1 %v13323_v23, %s11659_s18 }
 0x51c   : > { %5768 = vrot.lane.b32.xlu0 %v13323_v23, %s11660_s2 }
 0x579   : > { %v5757_v59 = vpop.permute.xlu1 %5756 }
 0x57a   : > { %v5805_v38 = vshrl.u32 %v5757_v59, 16  ;;  %v5755_v2 = vpop.permute.xlu0 %5754  ;;  %v5802_v9 = vpack.i.b16 %v5757_v59, %v13308_v32 }
 0x57b   : > { %v5780_v47 = vpack.i.b16 %v5755_v2, %v13311_v43  ;;  %v5783_v15 = vshrl.u32 %v5755_v2, 16 }
 0x57c   : > { %v5806_v50 = vpack.i.b16 %v5805_v38, %v5804_v5  ;;  %v5980_v12 = vcombine.high %v5802_v9, %v13357_v57  ;;  %v5987_v28 = vrot.slane %v5802_v9, %v13364_v48 }
 0x57d   : > { %v5771_v52 = vpop.permute.xlu1 %5770  ;;  %v5784_v20 = vpack.i.b16 %v5783_v15, %v5782_v3  ;;  %v5848_v63 = vcombine.high %v5780_v47, %v13357_v57  ;;  %v5855_v58 = vrot.slane %v5780_v47, %v13364_v48 }
 0x57e   : > { %v5791_v4 = vshrl.u32 %v5771_v52, 16  ;;  %v5763_v60 = vpop.permute.xlu0 %5762  ;;  %v6046_v37 = vcombine.high %v5806_v50, %v13357_v57  ;;  %v5994_v19 = vrot.slane %v5980_v12, %v13364_v48  ;;  %v6053_v36 = vrot.slane %v5806_v50, %v13364_v48 }
 0x57f   : > { %v5788_v29 = vpack.i.b16 %v5771_v52, %v5763_v60  ;;  %v5790_v62 = vshrl.u32 %v5763_v60, 16  ;;  %v5862_v22 = vrot.slane %v5848_v63, %v13364_v48  ;;  %v5914_v32 = vcombine.high %v5784_v20, %v13357_v57 }
 0x580   : > { %v5921_v11 = vrot.slane %v5784_v20, %v13364_v48  ;;  %v6060_v18 = vrot.slane %v6046_v37, %v13364_v48 }
 0x581   : > { %v5863_v21 = vcombine.high %v5788_v29, %v13357_v57  ;;  %v5870_v61 = vrot.slane %v5788_v29, %v13364_v48  ;;  %v5773_v51 = vpop.permute.xlu1 %5772  ;;  %v5792_v1 = vpack.i.b16 %v5791_v4, %v5790_v62  ;;  %v13394_v55 = vrot.slane %v5914_v32, %v13364_v48 }
 0x582   : > { %v5813_v43 = vshrl.u32 %v5773_v51, 16  ;;  %v5765_v44 = vpop.permute.xlu0 %5764 }
 0x583   : > { %v5877_v49 = vrot.slane %v5863_v21, %v13364_v48  ;;  %v5878_v31 = vcombine.low %v5855_v58, %v5870_v61  ;;  %v5879_v6 = vcombine.high %v5855_v58, %v5870_v61  ;;  %v5810_v26 = vpack.i.b16 %v5773_v51, %v5765_v44 }
 0x584   : > { %v5929_v45 = vcombine.high %v5792_v1, %v13357_v57  ;;  %v5936_v14 = vrot.slane %v5792_v1, %v13364_v48  ;;  %v5812_v8 = vshrl.u32 %v5765_v44, 16 }
 0x585   : > { %v5894_v25 = vcombine.low %v5862_v22, %v5877_v49  ;;  %v5895_v17 = vcombine.high %v5862_v22, %v5877_v49  ;;  %v5761_v33 = vpop.permute.xlu1 %5760  ;;  %v13397_v7 = vrot.slane %v5878_v31, %v13368_v34  ;;  %v13400_v16 = vrot.slane %v5879_v6, %v13368_v34 }
 0x586   : > { %v5814_v53 = vpack.i.b16 %v5813_v43, %v5812_v8  ;;  %v5759_v35 = vpop.permute.xlu0 %5758  ;;  %v5995_v24 = vcombine.high %v5810_v26, %v13357_v57  ;;  %v6002_v30 = vrot.slane %v5810_v26, %v13364_v48  ;;  %v13408_v42 = vrot.slane %v5929_v45, %v13364_v48 }
 0x587   : > { %v13405_v46 = vrot.slane %v5894_v25, %v13368_v34  ;;  %v5944_v56 = vcombine.low %v5921_v11, %v5936_v14  ;;  %v5945_v59 = vcombine.high %v5921_v11, %v5936_v14  ;;  %v13413_v15 = vrot.slane %v5895_v17, %v13368_v34 }
 0x588   : > { %v6009_v38 = vrot.slane %v5995_v24, %v13364_v48  ;;  %v6010_v2 = vcombine.low %v5987_v28, %v6002_v30  ;;  %v6011_v5 = vcombine.high %v5987_v28, %v6002_v30  ;;  %v6061_v47 = vcombine.high %v5814_v53, %v13357_v57 }
 0x589   : > { %v6068_v0 = vrot.slane %v5814_v53, %v13364_v48  ;;  %v13417_v9 = vpack.i.b16 %v5761_v33, %v13323_v23  ;;  %v5837_v3 = vshrl.u32 %v5761_v33, 16  ;;  %v5818_v12 = vpack.i.b16 %v5759_v35, %v13325_v13  ;;  %v5767_v62 = vpop.permute.xlu1 %5766 }
 0x58a   : > { %v6018_v50 = vrot.slane %v6010_v2, %v13368_v34  ;;  %v6025_v52 = vrot.slane %v6011_v5, %v13368_v34  ;;  %v6026_v20 = vcombine.low %v5994_v19, %v6009_v38  ;;  %v6027_v63 = vcombine.high %v5994_v19, %v6009_v38  ;;  %v5775_v37 = vpop.permute.xlu0 %5774 }
 0x58b   : > { %v6075_v4 = vrot.slane %v6061_v47, %v13364_v48  ;;  %v6076_v60 = vcombine.low %v6053_v36, %v6068_v0  ;;  %v6077_v29 = vcombine.high %v6053_v36, %v6068_v0  ;;  %v13436_v44 = vrot.slane %v5944_v56, %v13368_v34 }
 0x58c   : > { %v13424_v58 = vrot.slane %v6026_v20, %v13368_v34  ;;  %v13427_v21 = vrot.slane %v6027_v63, %v13368_v34  ;;  %v6476_v61 = vcombine.low %v6018_v50, %v6025_v52  ;;  %v10162_v51 = vcombine.high %v6018_v50, %v6025_v52 }
 0x58d   : > { %v13430_v22 = vrot.slane %v6076_v60, %v13368_v34  ;;  %v13433_v32 = vrot.slane %v6077_v29, %v13368_v34  ;;  %v6092_v1 = vcombine.low %v6060_v18, %v6075_v4  ;;  %v6093_v43 = vcombine.high %v6060_v18, %v6075_v4  ;;  %v5777_v17 = vpop.permute.xlu1 %5776 }
 0x58e   : > { %v13439_v49 = vrot.slane %v5945_v59, %v13368_v34  ;;  %v5960_v31 = vcombine.low %v13394_v55, %v13408_v42  ;;  %v5838_v6 = vpack.i.b16 %v5837_v3, %v5836_v41  ;;  %v5961_v26 = vcombine.high %v13394_v55, %v13408_v42  ;;  %v5769_v53 = vpop.permute.xlu0 %5768 }
 0x58f   : > { %v13448_v28 = vrot.slane %v6092_v1, %v13368_v34  ;;  %v13451_v45 = vrot.slane %v6093_v43, %v13368_v34  ;;  %v13454_v14 = vrot.slane %v6476_v61, %v13364_v48  ;;  %v13457_v8 = vrot.slane %v10162_v51, %v13364_v48 }
 0x590   : > { %v6492_v19 = vcombine.low %v13424_v58, %v13427_v21  ;;  %v10163_v23 = vcombine.high %v13424_v58, %v13427_v21  ;;  %v6526_v41 = vcombine.low %v13430_v22, %v13433_v32  ;;  %v10164_v36 = vcombine.high %v13430_v22, %v13433_v32 }
 0x591   : > { %v6244_v11 = vcombine.high %v13417_v9, %v13357_v57  ;;  %v5821_v25 = vshrl.u32 %v5759_v35, 16  ;;  %v6112_v18 = vcombine.high %v5818_v12, %v13357_v57  ;;  %v6251_v33 = vrot.slane %v13417_v9, %v13364_v48 }
 0x592   : > { %v6310_v24 = vcombine.high %v5838_v6, %v13357_v57  ;;  %v13474_v30 = vrot.slane %v5838_v6, %v13364_v48  ;;  %v5828_v56 = vshrl.u32 %v5767_v62, 16  ;;  %v6542_v59 = vcombine.low %v13448_v28, %v13451_v45 }
 0x593   : > { %v5822_v38 = vpack.i.b16 %v5821_v25, %v5820_v40  ;;  %v5826_v35 = vpack.i.b16 %v5775_v37, %v5767_v62  ;;  %v5829_v2 = vshrl.u32 %v5775_v37, 16  ;;  %v10165_v5 = vcombine.high %v13448_v28, %v13451_v45 }
 0x594   : > { %v6119_v47 = vrot.slane %v5818_v12, %v13364_v48  ;;  %v6126_v0 = vrot.slane %v6112_v18, %v13364_v48  ;;  %v5842_v9 = vpack.i.b16 %v5777_v17, %v5769_v53  ;;  %v5845_v20 = vshrl.u32 %v5777_v17, 16 }
 0x595   : > { %v6178_v3 = vcombine.high %v5822_v38, %v13357_v57  ;;  %v5830_v50 = vpack.i.b16 %v5829_v2, %v5828_v56  ;;  %v6127_v52 = vcombine.high %v5826_v35, %v13357_v57  ;;  %v6134_v63 = vrot.slane %v5826_v35, %v13364_v48 }
 0x596   : > { %v5844_v13 = vshrl.u32 %v5769_v53, 16  ;;  %v6259_v40 = vcombine.high %v5842_v9, %v13357_v57  ;;  %v6266_v4 = vrot.slane %v5842_v9, %v13364_v48  ;;  %v6185_v60 = vrot.slane %v5822_v38, %v13364_v48 }
 0x597   : > { %v6141_v29 = vrot.slane %v6127_v52, %v13364_v48  ;;  %v6193_v12 = vcombine.high %v5830_v50, %v13357_v57  ;;  %v6200_v62 = vrot.slane %v5830_v50, %v13364_v48  ;;  %v6192_v37 = vrot.slane %v6178_v3, %v13364_v48 }
 0x598   : > { %v6142_v61 = vcombine.low %v6119_v47, %v6134_v63  ;;  %v6143_v51 = vcombine.high %v6119_v47, %v6134_v63  ;;  %v6273_v1 = vrot.slane %v6259_v40, %v13364_v48  ;;  %v6274_v18 = vcombine.low %v6251_v33, %v6266_v4 }
 0x599   : > { %v6158_v43 = vcombine.low %v6126_v0, %v6141_v29  ;;  %v6159_v6 = vcombine.high %v6126_v0, %v6141_v29  ;;  %v6207_v25 = vrot.slane %v6193_v12, %v13364_v48  ;;  %v6208_v56 = vcombine.low %v6185_v60, %v6200_v62 }
 0x59a   : > { %v6150_v17 = vrot.slane %v6142_v61, %v13368_v34  ;;  %v6157_v53 = vrot.slane %v6143_v51, %v13368_v34  ;;  %v6209_v38 = vcombine.high %v6185_v60, %v6200_v62  ;;  %v6275_v9 = vcombine.high %v6251_v33, %v6266_v4 }
 0x59b   : > { %v13499_v35 = vrot.slane %v6158_v43, %v13368_v34  ;;  %v13502_v2 = vrot.slane %v6159_v6, %v13368_v34  ;;  %v6224_v47 = vcombine.low %v6192_v37, %v6207_v25  ;;  %v6258_v3 = vrot.slane %v6244_v11, %v13364_v48 }
 0x59c   : > { %v6225_v0 = vcombine.high %v6192_v37, %v6207_v25  ;;  %v6576_v50 = vcombine.low %v6150_v17, %v6157_v53  ;;  %v5846_v52 = vpack.i.b16 %v5845_v20, %v5844_v13  ;;  %v13506_v63 = vrot.slane %v6310_v24, %v13364_v48 }
 0x59d   : > { %v10166_v40 = vcombine.high %v6150_v17, %v6157_v53  ;;  %v6282_v29 = vrot.slane %v6274_v18, %v13368_v34  ;;  %v5968_v60 = vrot.slane %v5960_v31, %v13368_v34  ;;  %v13514_v12 = vrot.slane %v6208_v56, %v13368_v34 }
 0x59e   : > { %v13517_v33 = vrot.slane %v6209_v38, %v13368_v34  ;;  %v13520_v11 = vrot.slane %v6224_v47, %v13368_v34  ;;  %v6592_v24 = vcombine.low %v13499_v35, %v13502_v2  ;;  %v13525_v20 = vrot.slane %v6225_v0, %v13368_v34 }
 0x59f   : > { %v6289_v13 = vrot.slane %v6275_v9, %v13368_v34  ;;  %v6290_v4 = vcombine.low %v6258_v3, %v6273_v1  ;;  %v6291_v62 = vcombine.high %v6258_v3, %v6273_v1  ;;  %v13529_v31 = vrot.slane %v6576_v50, %v13364_v48 }
 0x5a0   : > { %v10167_v37 = vcombine.high %v13499_v35, %v13502_v2  ;;  %v6325_v61 = vcombine.high %v5846_v52, %v13357_v57  ;;  %v6332_v51 = vrot.slane %v5846_v52, %v13364_v48  ;;  %v13536_v43 = vrot.slane %v10166_v40, %v13364_v48 }
 0x5a1   : > { %v13539_v6 = vrot.slane %v6290_v4, %v13368_v34  ;;  %v6676_v25 = vcombine.low %v6282_v29, %v6289_v13  ;;  %v10170_v18 = vcombine.high %v6282_v29, %v6289_v13  ;;  %v13542_v1 = vrot.slane %v6291_v62, %v13368_v34 }
 0x5a2   : > { %v6339_v17 = vrot.slane %v6325_v61, %v13364_v48  ;;  %v6340_v53 = vcombine.low %v13474_v30, %v6332_v51  ;;  %v6341_v56 = vcombine.high %v13474_v30, %v6332_v51  ;;  %v6626_v38 = vcombine.low %v13514_v12, %v13517_v33 }
 0x5a3   : > { %v10168_v47 = vcombine.high %v13514_v12, %v13517_v33  ;;  %v6642_v9 = vcombine.low %v13520_v11, %v13525_v20  ;;  %v10169_v3 = vcombine.high %v13520_v11, %v13525_v20  ;;  %v13557_v50 = vrot.slane %v6676_v25, %v13364_v48 }
 0x5a4   : > { %v6356_v0 = vcombine.low %v13506_v63, %v6339_v17  ;;  %v13560_v52 = vrot.slane %v10170_v18, %v13364_v48  ;;  %v5975_v30 = vrot.slane %v5961_v26, %v13368_v34  ;;  %v6376_v40 = vcombine.low %v13397_v7, %v13400_v16 }
 0x5a5   : > { %v10158_v29 = vcombine.high %v13397_v7, %v13400_v16  ;;  %v6392_v13 = vcombine.low %v13405_v46, %v13413_v15  ;;  %v10159_v4 = vcombine.high %v13405_v46, %v13413_v15  ;;  %v13575_v62 = vrot.slane %v6340_v53, %v13368_v34 }
 0x5a6   : > { %v13578_v61 = vrot.slane %v6341_v56, %v13368_v34  ;;  %v6692_v55 = vcombine.low %v13539_v6, %v13542_v1  ;;  %v10171_v42 = vcombine.high %v13539_v6, %v13542_v1  ;;  %v6383_v7 = vrot.slane %v6376_v40, %v13364_v48 }
 0x5a7   : > { %v6391_v16 = vrot.slane %v10158_v29, %v13364_v48  ;;  %v6399_v26 = vrot.slane %v6392_v13, %v13364_v48  ;;  %v6407_v46 = vrot.slane %v10159_v4, %v13364_v48  ;;  %v6357_v15 = vcombine.high %v13506_v63, %v6339_v17 }
 0x5a8   : > { %v13590_v51 = vrot.slane %v6356_v0, %v13368_v34  ;;  %v6426_v25 = vcombine.low %v13436_v44, %v13439_v49  ;;  %v10160_v18 = vcombine.high %v13436_v44, %v13439_v49  ;;  %v6442_v40 = vcombine.low %v5968_v60, %v5975_v30 }
 0x5a9   : > { %v6408_v53 = vcombine.low %v6383_v7, %v6391_v16  ;;  %v6416_v56 = vcombine.low %v6399_v26, %v6407_v46  ;;  %v10161_v10 = vcombine.high %v5968_v60, %v5975_v30  ;;  %v6499_v63 = vrot.slane %v6492_v19, %v13364_v48 }
 0x5aa   : > { %v6433_v29 = vrot.slane %v6426_v25, %v13364_v48  ;;  %v6441_v13 = vrot.slane %v10160_v18, %v13364_v48  ;;  %v6507_v17 = vrot.slane %v10163_v23, %v13364_v48  ;;  %v6449_v60 = vrot.slane %v6442_v40, %v13364_v48 }
 0x5ab   : > { %v13607_v44 = vrot.slane %v6408_v53, %v13368_v34  ;;  %v13610_v49 = vrot.slane %v6416_v56, %v13368_v34  ;;  %v6457_v0 = vrot.slane %v10161_v10, %v13364_v48  ;;  %v6508_v4 = vcombine.low %v13454_v14, %v13457_v8 }
 0x5ac   : > { %v6458_v30 = vcombine.low %v6433_v29, %v6441_v13  ;;  %v6516_v19 = vcombine.low %v6499_v63, %v6507_v17  ;;  %v6533_v58 = vrot.slane %v6526_v41, %v13364_v48  ;;  %v6371_v21 = vrot.slane %v6357_v15, %v13368_v34 }
 0x5ad   : > { %v6424_v23 = vcombine.low %v13607_v44, %v13610_v49  ;;  %v6466_v7 = vcombine.low %v6449_v60, %v6457_v0  ;;  %v6541_v10 = vrot.slane %v10164_v36, %v13364_v48  ;;  %v6726_v14 = vcombine.low %v13575_v62, %v13578_v61  ;;  %v6841_v0 = vld [vmem:[#allocation2 + $0x88] sm:$0xff] }
 0x5ae   : > { %v6515_v8 = vrot.slane %v6508_v4, %v13368_v34  ;;  %v6523_v16 = vrot.slane %v6516_v19, %v13368_v34  ;;  %v6549_v41 = vrot.slane %v6542_v59, %v13364_v48  ;;  %v13636_v26 = vrot.slane %v6458_v30, %v13368_v34 }
 0x5af   : > { %v6473_v46 = vrot.slane %v6466_v7, %v13368_v34  ;;  %v6557_v22 = vrot.slane %v10165_v5, %v13364_v48  ;;  %v6558_v32 = vcombine.low %v6533_v58, %v6541_v10  ;;  %v10172_v36 = vcombine.high %v13575_v62, %v13578_v61 }
 0x5b0   : > { %v13645_v15 = vcombine.high %v6515_v8, %v6523_v16  ;;  %v6599_v59 = vrot.slane %v6592_v24, %v13364_v48  ;;  %v6607_v25 = vrot.slane %v10167_v37, %v13364_v48  ;;  %v6742_v18 = vcombine.low %v13590_v51, %v6371_v21 }
 0x5b1   : > { %v6474_v28 = vcombine.low %v13636_v26, %v6473_v46  ;;  %v6779_v45 = vshrl.u32 %v6424_v23, 16  ;;  %v6566_v5 = vcombine.low %v6549_v41, %v6557_v22  ;;  %v6524_v53 = vcombine.low %v6515_v8, %v6523_v16 }
 0x5b2   : > { %v6565_v62 = vrot.slane %v6558_v32, %v13368_v34  ;;  %v6608_v61 = vcombine.low %v13529_v31, %v13536_v43  ;;  %v6616_v56 = vcombine.low %v6599_v59, %v6607_v25  ;;  %v6633_v35 = vrot.slane %v6626_v38, %v13364_v48 }
 0x5b3   : > { %v6778_v40 = vpack.i.b16 %v6474_v28, %v6424_v23  ;;  %v6780_v24 = vshrl.u32 %v6474_v28, 16  ;;  %v6573_v29 = vrot.slane %v6566_v5, %v13368_v34  ;;  %v10173_v2 = vcombine.high %v13590_v51, %v6371_v21  ;;  %v6849_v23 = vld [vmem:[#allocation2 + $0xc8] sm:$0xff]  ;;  %v6842_v5 = vld [vmem:[#allocation2 + $0x90] sm:$0xff] }
 0x5b4   : > { %v13667_v37 = vrot.slane %v6616_v56, %v13368_v34  ;;  %v6641_v31 = vrot.slane %v10168_v47, %v13364_v48  ;;  %v6649_v43 = vrot.slane %v6642_v9, %v13364_v48  ;;  %v6657_v51 = vrot.slane %v10169_v3, %v13364_v48 }
 0x5b5   : > { %10574 = vmatprep.mubr.msk.bf16.mxu1 %vm6872_vm1, %v6778_v40  ;;  %v6781_v13 = vpack.i.b16 %v6780_v24, %v6779_v45  ;;  %v6574_v63 = vcombine.low %v6565_v62, %v6573_v29  ;;  %v13678_v38 = vcombine.high %v6565_v62, %v6573_v29  ;;  %v13685_v17 = vrot.slane %v6608_v61, %v13368_v34  ;;  %v6850_v24 = vld [vmem:[#allocation2 + $0xd0] sm:$0xff] }
 0x5b6   : > { %v6658_v12 = vcombine.low %v6633_v35, %v6641_v31  ;;  %v6699_v33 = vrot.slane %v6692_v55, %v13364_v48  ;;  %v6707_v47 = vrot.slane %v10171_v42, %v13364_v48  ;;  %v6791_v60 = vshrl.u32 %v6524_v53, 16  ;;  %v6843_v31 = vld [vmem:[#allocation2 + $0x98] sm:$0xff] }
 0x5b7   : > { %10598 = vmatprep.mubr.msk.bf16.mxu0 %vm6872_vm1, %v6781_v13  ;;  %v6790_v9 = vpack.i.b16 %v6574_v63, %v6524_v53  ;;  %v6792_v11 = vshrl.u32 %v6574_v63, 16  ;;  %v6796_v20 = vpack.i.b16 %v13678_v38, %v13645_v15  ;;  %v6798_v3 = vshrl.u32 %v13678_v38, 16  ;;  %v6851_v13 = vld [vmem:[#allocation2 + $0xd8] sm:$0xff]  ;;  %v10275_v38 = vld [vmem:[%s12217_s13 + $0x8] sm:$0xff]  }
 0x5b8   : > { %v6624_v30 = vcombine.low %v13685_v17, %v13667_v37  ;;  %v6666_v55 = vcombine.low %v6649_v43, %v6657_v51  ;;  %v6708_v4 = vcombine.low %v13557_v50, %v13560_v52  ;;  %v6716_v1 = vcombine.low %v6699_v33, %v6707_v47  ;;  %v6844_v51 = vld [vmem:[#allocation2 + $0xa0] sm:$0xff] }
 0x5b9   : > { %v6793_v6 = vpack.i.b16 %v6792_v11, %v6791_v60  ;;  %10575 = vmatmul.mubr.msk.bf16.vlgmr.msra.gmra.mrb[0].mxu1 %vm6872_vm1, %v6790_v9  ;;  %v6733_v42 = vrot.slane %v6726_v14, %v13364_v48  ;;  %v6741_v19 = vrot.slane %v10172_v36, %v13364_v48  ;;  %v13708_v58 = vrot.slane %v6658_v12, %v13368_v34  ;;  %v6852_v33 = vld [vmem:[#allocation2 + $0xe0] sm:$0xff]  ;;  %v6845_v9 = vld [vmem:[#allocation2 + $0xa8] sm:$0xff] }
 0x5ba   : > { %10607 = vmatpush3.bf16.xpose.msra.mxu1 %v13374_v39  ;;  %v13711_v21 = vrot.slane %v6666_v55, %v13368_v34  ;;  %v6749_v7 = vrot.slane %v6742_v18, %v13364_v48  ;;  %v6757_v50 = vrot.slane %v10173_v2, %v13364_v48  ;;  %v6797_v52 = vshrl.u32 %v13645_v15, 16  ;;  %v6853_v11 = vld [vmem:[#allocation2 + $0xe8] sm:$0xff]  ;;  %v6854_v55 = vld [vmem:[#allocation2 + $0xf0] sm:$0xff] }
 0x5bb   : > { %10599 = vmatmul.mubr.msk.bf16.vlgmr.msra.gmra.mrb[8].mxu0 %vm6872_vm1, %v6793_v6  ;;  %10791 = vmatprep.subr.msk.bf16.mxu1 %vm6872_vm1, %v6841_v0  ;;  %v13719_v10 = vrot.slane %v6708_v4, %v13368_v34  ;;  %v13722_v39 = vrot.slane %v6716_v1, %v13368_v34  ;;  %v6758_v14 = vcombine.low %v6733_v42, %v6741_v19  ;;  %v6803_v22 = vshrl.u32 %v6624_v30, 16  ;;  %v6847_v6 = vld [vmem:[#allocation2 + $0xb8] sm:$0xff] }
 0x5bc   : > { %10631 = vmatpush3.bf16.xpose.msra.mxu0 %v13377_v27  ;;  %v6674_v8 = vcombine.low %v13708_v58, %v13711_v21  ;;  %v6766_v16 = vcombine.low %v6749_v7, %v6757_v50  ;;  %v6475_v41 = vcombine.high %v13636_v26, %v6473_v46  ;;  %v13731_v36 = vpack.i.b16 %v6798_v3, %v6797_v52  ;;  %v6855_v42 = vld [vmem:[#allocation2 + $0xf8] sm:$0xff] }
 0x5bd   : > { %10799 = vmatprep.subr.msk.bf16.mxu0 %vm6872_vm1, %v6849_v23  ;;  %v6724_v32 = vcombine.low %v13719_v10, %v13722_v39  ;;  %v13734_v18 = vrot.slane %v6758_v14, %v13368_v34  ;;  %v6425_v28 = vcombine.high %v13607_v44, %v13610_v49  ;;  %v7091_v26 = vsel %vm6872_vm1, %v6841_v0, 0  ;;  %v6846_v0 = vld [vmem:[#allocation2 + $0xb0] sm:$0xff] }
 0x5be   : > { %v6802_v59 = vpack.i.b16 %v6674_v8, %v6624_v30  ;;  %v6804_v25 = vshrl.u32 %v6674_v8, 16  ;;  %v13737_v27 = vrot.slane %v6766_v16, %v13368_v34  ;;  %v7192_v53 = vsel %vm6872_vm1, %v6849_v23, 0 }
 0x5bf   : > { %v6786_v62 = vshrl.u32 %v6475_v41, 16  ;;  %v6815_v56 = vshrl.u32 %v6724_v32, 16  ;;  %v6784_v44 = vpack.i.b16 %v6475_v41, %v6425_v28  ;;  %v6785_v49 = vshrl.u32 %v6425_v28, 16 }
 0x5c0   : > { %10578 = vmatprep.mubr.msk.bf16.mxu1 %vm6872_vm1, %v6802_v59  ;;  %v6805_v46 = vpack.i.b16 %v6804_v25, %v6803_v22  ;;  %v6774_v45 = vcombine.low %v13734_v18, %v13737_v27  ;;  %v7094_v2 = vsel %vm6872_vm1, %v6842_v5, 0  ;;  %v7195_v43 = vsel %vm6872_vm1, %v6850_v24, 0 }
 0x5c1   : > { %v6787_v35 = vpack.i.b16 %v6786_v62, %v6785_v49  ;;  %v7097_v63 = vsel %vm6872_vm1, %v6843_v31, 0  ;;  %v7198_v12 = vsel %vm6872_vm1, %v6851_v13, 0  ;;  %v7100_v47 = vsel %vm6872_vm1, %v6844_v51, 0  ;;  %v10277_v62 = vld [vmem:[%s12217_s13 + $0x18] sm:$0xff]  }
 0x5c2   : > { %10609 = vmatpush3.bf16.xpose.msra.mxu1 %v7091_v26  ;;  %10602 = vmatprep.mubr.msk.bf16.mxu0 %vm6872_vm1, %v6805_v46  ;;  %v6814_v61 = vpack.i.b16 %v6774_v45, %v6724_v32  ;;  %v6816_v40 = vshrl.u32 %v6774_v45, 16  ;;  %v7201_v60 = vsel %vm6872_vm1, %v6852_v33, 0  ;;  %v7103_v3 = vsel %vm6872_vm1, %v6845_v9, 0 }
 0x5c3   : > { %10792 = vmatprep.subr.msk.bf16.mxu1 %vm6872_vm1, %v6842_v5  ;;  %v7204_v30 = vsel %vm6872_vm1, %v6853_v11, 0  ;;  %v7106_v4 = vsel %vm6872_vm1, %v6846_v0, 0  ;;  %v7207_v1 = vsel %vm6872_vm1, %v6854_v55, 0  ;;  %v7109_v19 = vsel %vm6872_vm1, %v6847_v6, 0 }
 0x5c4   : > { %10633 = vmatpush3.bf16.xpose.msra.mxu0 %v7192_v53  ;;  %10579 = vmatmul.mubr.msk.bf16.gmra.mrb[4].mxu1 %vm6872_vm1, %v6814_v61  ;;  %v6817_v29 = vpack.i.b16 %v6816_v40, %v6815_v56  ;;  %v7210_v23 = vsel %vm6872_vm1, %v6855_v42, 0  ;;  %v6675_v7 = vcombine.high %v13708_v58, %v13711_v21  ;;  %v6625_v50 = vcombine.high %v13685_v17, %v13667_v37 }
 0x5c5   : > { %10622 = vmatprep.mubr.msk.bf16.mxu1 %vm6872_vm1, %v6784_v44  ;;  %10800 = vmatprep.subr.msk.bf16.mxu0 %vm6872_vm1, %v6850_v24  ;;  %v6775_v16 = vcombine.high %v13734_v18, %v13737_v27  ;;  %v6725_v37 = vcombine.high %v13719_v10, %v13722_v39  ;;  %v13795_v22 = vunpack.c.l.bf16 %v10275_v38  ;;  %v13805_v25 = vunpack.c.h.bf16 %v10275_v38  ;;  %v10276_v44 = vld [vmem:[%s12217_s13 + $0x10] sm:$0xff]  }
 0x5c6   : > { %10603 = vmatmul.mubr.msk.bf16.gmra.mrb[12].mxu0 %vm6872_vm1, %v6817_v29  ;;  %v6810_v52 = vshrl.u32 %v6675_v7, 16  ;;  %v6808_v14 = vpack.i.b16 %v6675_v7, %v6625_v50  ;;  %v6809_v8 = vshrl.u32 %v6625_v50, 16  ;;  %v10273_v56 = vunpack.c.l.bf16 %v10277_v62 }
 0x5c7   : > { %10646 = vmatprep.mubr.msk.bf16.mxu0 %vm6872_vm1, %v6787_v35  ;;  %v6822_v17 = vshrl.u32 %v6775_v16, 16  ;;  %v6820_v21 = vpack.i.b16 %v6775_v16, %v6725_v37  ;;  %v6821_v41 = vshrl.u32 %v6725_v37, 16 }
 0x5c8   : > { %v6811_v58 = vpack.i.b16 %v6810_v52, %v6809_v8 }
 0x5c9   : > { %v6823_v15 = vpack.i.b16 %v6822_v17, %v6821_v41 }
 0x5ca   : > { %10611 = vmatpush3.bf16.xpose.msra.mxu1 %v7094_v2  ;;  %v10269_v2 = vunpack.c.l.bf16 %v10276_v44 }
 0x5cb   : > { %10793 = vmatprep.subr.msk.bf16.mxu1 %vm6872_vm1, %v6843_v31 }
 0x5cc   : > { %10635 = vmatpush3.bf16.xpose.msra.mxu0 %v7195_v43 }
 0x5cd   : > { %10801 = vmatprep.subr.msk.bf16.mxu0 %vm6872_vm1, %v6851_v13 }
 0x5d2   : > { %10613 = vmatpush3.bf16.xpose.msra.mxu1 %v7097_v63 }
 0x5d3   : > { %10794 = vmatprep.subr.msk.bf16.mxu1 %vm6872_vm1, %v6844_v51 }
 0x5d4   : > { %10637 = vmatpush3.bf16.xpose.msra.mxu0 %v7198_v12 }
 0x5d5   : > { %10802 = vmatprep.subr.msk.bf16.mxu0 %vm6872_vm1, %v6852_v33 }
 0x5da   : > { %10615 = vmatpush3.bf16.xpose.msra.mxu1 %v7100_v47 }
 0x5db   : > { %10795 = vmatprep.subr.msk.bf16.mxu1 %vm6872_vm1, %v6845_v9 }
 0x5dc   : > { %10639 = vmatpush3.bf16.xpose.msra.mxu0 %v7201_v60  ;;  %v10274_v60 = vunpack.c.h.bf16 %v10277_v62 }
 0x5dd   : > { %10803 = vmatprep.subr.msk.bf16.mxu0 %vm6872_vm1, %v6853_v11 }
 0x5e2   : > { %10617 = vmatpush3.bf16.xpose.msra.mxu1 %v7103_v3 }
 0x5e3   : > { %10796 = vmatprep.subr.msk.bf16.mxu1 %vm6872_vm1, %v6846_v0  ;;  %v10270_v0 = vunpack.c.h.bf16 %v10276_v44 }
 0x5e4   : > { %10641 = vmatpush3.bf16.xpose.msra.mxu0 %v7204_v30 }
 0x5e5   : > { %10804 = vmatprep.subr.msk.bf16.mxu0 %vm6872_vm1, %v6854_v55 }
 0x5ea   : > { %10619 = vmatpush3.bf16.xpose.msra.mxu1 %v7106_v4 }
 0x5eb   : > { %10797 = vmatprep.subr.msk.bf16.mxu1 %vm6872_vm1, %v6847_v6 }
 0x5ec   : > { %10643 = vmatpush3.bf16.xpose.msra.mxu0 %v7207_v1 }
 0x5ed   : > { %10805 = vmatprep.subr.msk.bf16.mxu0 %vm6872_vm1, %v6855_v42 }
 0x5f2   : > { %10621 = vmatpush3.bf16.xpose.msra.mxu1 %v7109_v19 }
 0x5f4   : > { %10645 = vmatpush3.bf16.xpose.msra.mxu0 %v7210_v23 }
 0x5f9   : > { %10623 = vmatmul.mubr.msk.bf16.vlgmr.msra.gmra.mrb[8].mxu1 %vm6872_vm1, %v6796_v20  ;;  %v10260_v20 = vld [vmem:[%s12217_s13] sm:$0xff]   ;;  %s14918_s13 = sld [smem:[#allocation54_spill]] }
 0x5fa   : > { %10626 = vmatprep.mubr.msk.bf16.mxu1 %vm6872_vm1, %v6808_v14  ;;  %v13797_v32 = vunpack.c.l.bf16 %v10260_v20  ;;  %v13812_v5 = vunpack.c.h.bf16 %v10260_v20 }
 0x5fb   : > { %10647 = vmatmul.mubr.msk.bf16.vlgmr.msra.gmra.mrb[16].mxu0 %vm6872_vm1, %v13731_v36 }
 0x5fc   : > { %10650 = vmatprep.mubr.msk.bf16.mxu0 %vm6872_vm1, %v6811_v58 }
 0x601   : > { %10627 = vmatmul.mubr.msk.bf16.gmra.mrb[12].mxu1 %vm6872_vm1, %v6820_v21 }
 0x603   : > { %10651 = vmatmul.mubr.msk.bf16.gmra.mrb[20].mxu0 %vm6872_vm1, %v6823_v15 }
 0x68c   : > { %v10576_v36 = vpop.f32.mrb[0].mxu1 }
 0x68d   : > { %v13800_v10 = vadd.f32 %v10576_v36, %v13795_v22  ;;  %v6943_v39 = vpop.f32.mrb[1].mxu1 }
 0x68e   : > { %v13803_v59 = vadd.f32 %v13797_v32, %v6943_v39  ;;  %v10577_v18 = vpop.f32.mrb[2].mxu1  ;;  %v10600_v27 = vpop.f32.mrb[8].mxu0 }
 0x68f   : > { %v7044_v28 = vpop.f32.mrb[9].mxu0  ;;  %7281 = vmax.xlane.f32.xlu1 %v13800_v10  ;;  %v6946_v26 = vpop.f32.mrb[3].mxu1  ;;  %v13810_v45 = vadd.f32 %v10600_v27, %v13795_v22  ;;  %v13816_v61 = vadd.f32 %v10577_v18, %v13805_v25 }
 0x690   : > { %v10601_v46 = vpop.f32.mrb[10].mxu0  ;;  %7277 = vmax.xlane.f32.xlu0 %v13803_v59  ;;  %v13821_v40 = vadd.f32 %v13812_v5, %v6946_v26  ;;  %v13824_v24 = vadd.f32 %v13797_v32, %v7044_v28 }
 0x691   : > { %v7047_v53 = vpop.f32.mrb[11].mxu0  ;;  %v13832_v13 = vadd.f32 %v10601_v46, %v13805_v25 }
 0x692   : > { %v13839_v9 = vadd.f32 %v13812_v5, %v7047_v53 }
 0x693   : > { %7297 = vmax.xlane.f32.xlu1 %v13810_v45 }
 0x694   : > { %7283 = vmax.xlane.f32.xlu0 %v13816_v61 }
 0x697   : > { %7279 = vmax.xlane.f32.xlu1 %v13821_v40  ;;  %v10580_v49 = vpop.f32.mrb[4].mxu1 }
 0x698   : > { %v13828_v29 = vadd.f32 %v10580_v49, %v10273_v56  ;;  %7293 = vmax.xlane.f32.xlu0 %v13824_v24  ;;  %v6959_v35 = vpop.f32.mrb[5].mxu1  ;;  %v7582_v49 = vld [vmem:[#allocation3 + $0x8] sm:$0xff] }
 0x699   : > { %v10581_v31 = vpop.f32.mrb[6].mxu1  ;;  %v10604_v43 = vpop.f32.mrb[12].mxu0  ;;  %v13836_v47 = vadd.f32 %v10269_v2, %v6959_v35 }
 0x69a   : > { %v6962_v63 = vpop.f32.mrb[7].mxu1  ;;  %v7060_v51 = vpop.f32.mrb[13].mxu0  ;;  %v13843_v11 = vadd.f32 %v10604_v43, %v10273_v56  ;;  %v13845_v3 = vadd.f32 %v10581_v31, %v10274_v60 }
 0x69b   : > { %7289 = vmax.xlane.f32.xlu1 %v13828_v29  ;;  %v10605_v12 = vpop.f32.mrb[14].mxu0  ;;  %v13849_v30 = vadd.f32 %v10269_v2, %v7060_v51  ;;  %v13851_v55 = vadd.f32 %v10270_v0, %v6962_v63 }
 0x69c   : > { %7299 = vmax.xlane.f32.xlu0 %v13832_v13  ;;  %v7063_v33 = vpop.f32.mrb[15].mxu0  ;;  %v13855_v4 = vadd.f32 %v10605_v12, %v10274_v60 }
 0x69d   : > { %v13858_v6 = vadd.f32 %v10270_v0, %v7063_v33 }
 0x69f   : > { %7285 = vmax.xlane.f32.xlu1 %v13836_v47 }
 0x6a0   : > { %7295 = vmax.xlane.f32.xlu0 %v13839_v9 }
 0x6a3   : > { %7305 = vmax.xlane.f32.xlu1 %v13843_v11 }
 0x6a4   : > { %7291 = vmax.xlane.f32.xlu0 %v13845_v3 }
 0x6a7   : > { %7301 = vmax.xlane.f32.xlu1 %v13849_v30 }
 0x6a8   : > { %7287 = vmax.xlane.f32.xlu0 %v13851_v55 }
 0x6ac   : > { %7307 = vmax.xlane.f32.xlu0 %v13855_v4 }
 0x6b0   : > { %7303 = vmax.xlane.f32.xlu0 %v13858_v6 }
 0x6cc   : > { %v10624_v1 = vpop.f32.mrb[8].mxu1 }
 0x6cd   : > { %v13862_v42 = vadd.f32 %v10624_v1, %v13795_v22  ;;  %v7145_v19 = vpop.f32.mrb[9].mxu1 }
 0x6ce   : > { %v10625_v23 = vpop.f32.mrb[10].mxu1  ;;  %v10648_v7 = vpop.f32.mrb[16].mxu0  ;;  %v13869_v16 = vadd.f32 %v13797_v32, %v7145_v19 }
 0x6cf   : > { %v13865_v50 = vadd.f32 %v10625_v23, %v13805_v25  ;;  %v7148_v52 = vpop.f32.mrb[11].mxu1  ;;  %v7246_v14 = vpop.f32.mrb[17].mxu0  ;;  %7313 = vmax.xlane.f32.xlu1 %v13862_v42  ;;  %v13893_v46 = vadd.f32 %v10648_v7, %v13795_v22 }
 0x6d0   : > { %v10649_v8 = vpop.f32.mrb[18].mxu0  ;;  %v13873_v37 = vadd.f32 %v13812_v5, %v7148_v52  ;;  %v13877_v21 = vadd.f32 %v13797_v32, %v7246_v14 }
 0x6d1   : > { %v7249_v58 = vpop.f32.mrb[19].mxu0  ;;  %7315 = vmax.xlane.f32.xlu0 %v13865_v50 }
 0x6d2   : > { %v13885_v39 = vadd.f32 %v13812_v5, %v7249_v58  ;;  %v13901_v5 = vadd.f32 %v10649_v8, %v13805_v25  ;;  %v7581_v25 = vld [vmem:[#allocation3] sm:$0xff] }
 0x6d3   : > { %7309 = vmax.xlane.f32.xlu1 %v13869_v16  ;;  %10654 = vmatprep.subr.bf16.mxu1 %v7581_v25 }
 0x6d4   : > { %v10628_v17 = vpop.f32.mrb[12].mxu1  ;;  %10655 = vmatpush3.bf16.msra.mxu1 %v7581_v25 }
 0x6d5   : > { %v13879_v41 = vadd.f32 %v10628_v17, %v10273_v56  ;;  %v7161_v15 = vpop.f32.mrb[13].mxu1  ;;  %7311 = vmax.xlane.f32.xlu0 %v13873_v37  ;;  %10656 = vmatprep.subr.bf16.mxu1 %v7582_v49 }
 0x6d6   : > { %v13882_v38 = vadd.f32 %v10269_v2, %v7161_v15  ;;  %v10629_v20 = vpop.f32.mrb[14].mxu1  ;;  %v10652_v36 = vpop.f32.mrb[20].mxu0 }
 0x6d7   : > { %v13887_v18 = vadd.f32 %v10652_v36, %v10273_v56  ;;  %v7164_v27 = vpop.f32.mrb[15].mxu1  ;;  %v7262_v28 = vpop.f32.mrb[21].mxu0  ;;  %7325 = vmax.xlane.f32.xlu1 %v13877_v21  ;;  %v13905_v56 = vadd.f32 %v10629_v20, %v10274_v60 }
 0x6d8   : > { %v13890_v32 = vadd.f32 %v10269_v2, %v7262_v28  ;;  %v10653_v26 = vpop.f32.mrb[22].mxu0  ;;  %v13909_v22 = vadd.f32 %v10270_v0, %v7164_v27  ;;  %10657 = vmatpush3.bf16.msra.mxu1 %v7582_v49 }
 0x6d9   : > { %v13895_v53 = vadd.f32 %v10653_v26, %v10274_v60  ;;  %v7265_v62 = vpop.f32.mrb[23].mxu0  ;;  %7327 = vmax.xlane.f32.xlu0 %v13885_v39 }
 0x6da   : > { %v13898_v44 = vadd.f32 %v10270_v0, %v7265_v62 }
 0x6db   : > { %7329 = vmax.xlane.f32.xlu1 %v13893_v46 }
 0x6dd   : > { %7331 = vmax.xlane.f32.xlu0 %v13901_v5 }
 0x6df   : > { %7321 = vmax.xlane.f32.xlu1 %v13879_v41 }
 0x6e1   : > { %7323 = vmax.xlane.f32.xlu0 %v13905_v56 }
 0x6e3   : > { %7317 = vmax.xlane.f32.xlu1 %v13882_v38 }
 0x6e5   : > { %7319 = vmax.xlane.f32.xlu0 %v13909_v22 }
 0x6e7   : > { %7333 = vmax.xlane.f32.xlu1 %v13890_v32 }
 0x6e9   : > { %7335 = vmax.xlane.f32.xlu0 %v13898_v44 }
 0x6eb   : > { %7337 = vmax.xlane.f32.xlu1 %v13887_v18 }
 0x6ed   : > { %7339 = vmax.xlane.f32.xlu0 %v13895_v53 }
 0x71c   : > { %v7282_v35 = vpop.xlane.xlu1 %7281 }
 0x71d   : > { %v7343_v2 = vsub.f32 %v13800_v10, %v7282_v35  ;;  %v7278_v31 = vpop.xlane.xlu0 %7277 }
 0x71e   : > { %v7341_v43 = vsub.f32 %v13803_v59, %v7278_v31 }
 0x71f   : > { %v7377_v63 = vmul.f32 1.442695, %v7343_v2 }
 0x720   : > { %v7298_v51 = vpop.xlane.xlu1 %7297  ;;  %v7373_v12 = vmul.f32 1.442695, %v7341_v43 }
 0x721   : > { %11069 = vpow2.f32 %v7377_v63  ;;  %v7351_v33 = vsub.f32 %v13810_v45, %v7298_v51  ;;  %v7284_v60 = vpop.xlane.xlu0 %7283 }
 0x722   : > { %v7344_v0 = vsub.f32 %v13816_v61, %v7284_v60  ;;  %11071 = vpow2.f32 %v7373_v12 }
 0x723   : > { %v7393_v1 = vmul.f32 1.442695, %v7351_v33 }
 0x724   : > { %v7379_v19 = vmul.f32 1.442695, %v7344_v0  ;;  %v7280_v23 = vpop.xlane.xlu1 %7279 }
 0x725   : > { %v7342_v7 = vsub.f32 %v13821_v40, %v7280_v23  ;;  %v7294_v52 = vpop.xlane.xlu0 %7293 }
 0x726   : > { %11073 = vpow2.f32 %v7379_v19  ;;  %v7349_v10 = vsub.f32 %v13824_v24, %v7294_v52 }
 0x727   : > { %v7375_v59 = vmul.f32 1.442695, %v7342_v7  ;;  %11075 = vpow2.f32 %v7393_v1 }
 0x728   : > { %v7290_v14 = vpop.xlane.xlu1 %7289  ;;  %v7389_v8 = vmul.f32 1.442695, %v7349_v10 }
 0x729   : > { %11077 = vpow2.f32 %v7375_v59  ;;  %v7347_v45 = vsub.f32 %v13828_v29, %v7290_v14  ;;  %v7300_v58 = vpop.xlane.xlu0 %7299 }
 0x72a   : > { %v7352_v61 = vsub.f32 %v13832_v13, %v7300_v58  ;;  %11079 = vpow2.f32 %v7389_v8  ;;  %v7583_v8 = vld [vmem:[#allocation3 + $0x10] sm:$0xff] }
 0x72b   : > { %v13925_v17 = vpop.eup %11069  ;;  %v7385_v20 = vmul.f32 1.442695, %v7347_v45  ;;  %v7589_v45 = vld [vmem:[#allocation3 + $0x40] sm:$0xff]  ;;  %10658 = vmatprep.subr.bf16.mxu1 %v7583_v8 }
 0x72c   : > { %v7395_v15 = vmul.f32 1.442695, %v7352_v61  ;;  %7441 = vadd.xlane.f32.xlu1 %v13925_v17  ;;  %v7286_v40 = vpop.xlane.xlu1 %7285  ;;  %v13930_v28 = vpop.eup %11071  ;;  %10678 = vmatprep.subr.bf16.mxu0 %v7589_v45  ;;  %v7584_v61 = vld [vmem:[#allocation3 + $0x18] sm:$0xff] }
 0x72d   : > { %v7345_v24 = vsub.f32 %v13836_v47, %v7286_v40  ;;  %v7296_v36 = vpop.xlane.xlu0 %7295  ;;  %10659 = vmatpush3.bf16.msra.mxu1 %v7583_v8  ;;  %10679 = vmatpush3.bf16.msra.mxu0 %v7589_v45 }
 0x72e   : > { %11081 = vpow2.f32 %v7395_v15  ;;  %v7350_v27 = vsub.f32 %v13839_v9, %v7296_v36  ;;  %v7590_v15 = vld [vmem:[#allocation3 + $0x48] sm:$0xff]  ;;  %10660 = vmatprep.subr.bf16.mxu1 %v7584_v61 }
 0x72f   : > { %11083 = vpow2.f32 %v7385_v20  ;;  %v7381_v62 = vmul.f32 1.442695, %v7345_v24  ;;  %10680 = vmatprep.subr.bf16.mxu0 %v7590_v15  ;;  %v7585_v20 = vld [vmem:[#allocation3 + $0x20] sm:$0xff]  ;;  %v7591_v24 = vld [vmem:[#allocation3 + $0x50] sm:$0xff]  ;;  %v7586_v36 = vld [vmem:[#allocation3 + $0x28] sm:$0xff] }
 0x730   : > { %v13932_v29 = vpop.eup %11073  ;;  %v7391_v26 = vmul.f32 1.442695, %v7350_v27  ;;  %v7306_v13 = vpop.xlane.xlu1 %7305  ;;  %7437 = vadd.xlane.f32.xlu1 %v13930_v28  ;;  %v7592_v27 = vld [vmem:[#allocation3 + $0x58] sm:$0xff] }
 0x731   : > { %v7355_v25 = vsub.f32 %v13843_v11, %v7306_v13  ;;  %7443 = vadd.xlane.f32.xlu0 %v13932_v29  ;;  %v7292_v49 = vpop.xlane.xlu0 %7291  ;;  %v13937_v47 = vpop.eup %11075  ;;  %10661 = vmatpush3.bf16.msra.mxu1 %v7584_v61  ;;  %v7593_v13 = vld [vmem:[#allocation3 + $0x60] sm:$0xff] }
 0x732   : > { %11085 = vpow2.f32 %v7391_v26  ;;  %v7348_v9 = vsub.f32 %v13845_v3, %v7292_v49  ;;  %10681 = vmatpush3.bf16.msra.mxu0 %v7590_v15  ;;  %10662 = vmatprep.subr.bf16.mxu1 %v7585_v20  ;;  %v7587_v26 = vld [vmem:[#allocation3 + $0x30] sm:$0xff] }
 0x733   : > { %v13940_v35 = vpop.eup %11077  ;;  %11087 = vpow2.f32 %v7381_v62  ;;  %v7401_v43 = vmul.f32 1.442695, %v7355_v25  ;;  %10682 = vmatprep.subr.bf16.mxu0 %v7591_v24  ;;  %v7588_v62 = vld [vmem:[#allocation3 + $0x38] sm:$0xff]  ;;  %v7594_v25 = vld [vmem:[#allocation3 + $0x68] sm:$0xff]  ;;  %v7595_v49 = vld [vmem:[#allocation3 + $0x70] sm:$0xff] }
 0x734   : > { %v7387_v2 = vmul.f32 1.442695, %v7348_v9  ;;  %v7302_v31 = vpop.xlane.xlu1 %7301  ;;  %7457 = vadd.xlane.f32.xlu1 %v13937_v47  ;;  %v13946_v12 = vpop.eup %11079 }
 0x735   : > { %v7353_v63 = vsub.f32 %v13849_v30, %v7302_v31  ;;  %7439 = vadd.xlane.f32.xlu0 %v13940_v35  ;;  %v7288_v11 = vpop.xlane.xlu0 %7287  ;;  %10663 = vmatpush3.bf16.msra.mxu1 %v7585_v20  ;;  %v7596_v31 = vld [vmem:[#allocation3 + $0x78] sm:$0xff] }
 0x736   : > { %11089 = vpow2.f32 %v7387_v2  ;;  %v7346_v51 = vsub.f32 %v13851_v55, %v7288_v11  ;;  %10683 = vmatpush3.bf16.msra.mxu0 %v7591_v24  ;;  %10664 = vmatprep.subr.bf16.mxu1 %v7586_v36 }
 0x737   : > { %11091 = vpow2.f32 %v7401_v43  ;;  %v7397_v60 = vmul.f32 1.442695, %v7353_v63  ;;  %10684 = vmatprep.subr.bf16.mxu0 %v7592_v27 }
 0x738   : > { %v13948_v33 = vpop.eup %11081  ;;  %v7383_v3 = vmul.f32 1.442695, %v7346_v51  ;;  %7453 = vadd.xlane.f32.xlu1 %v13946_v12 }
 0x739   : > { %7459 = vadd.xlane.f32.xlu0 %v13948_v33  ;;  %v7308_v0 = vpop.xlane.xlu0 %7307  ;;  %v13953_v1 = vpop.eup %11083  ;;  %10665 = vmatpush3.bf16.msra.mxu1 %v7586_v36  ;;  %v13991_v36 = vld [vmem:[#allocation3 + $0x80] sm:$0xff] }
 0x73a   : > { %11093 = vpow2.f32 %v7383_v3  ;;  %v7356_v30 = vsub.f32 %v13855_v4, %v7308_v0  ;;  %10685 = vmatpush3.bf16.msra.mxu0 %v7592_v27  ;;  %10666 = vmatprep.subr.bf16.mxu1 %v7587_v26 }
 0x73b   : > { %11095 = vpow2.f32 %v7397_v60  ;;  %10686 = vmatprep.subr.bf16.mxu0 %v7593_v13 }
 0x73c   : > { %v13955_v19 = vpop.eup %11085  ;;  %v7403_v55 = vmul.f32 1.442695, %v7356_v30  ;;  %7449 = vadd.xlane.f32.xlu1 %v13953_v1 }
 0x73d   : > { %7455 = vadd.xlane.f32.xlu0 %v13955_v19  ;;  %v7304_v23 = vpop.xlane.xlu0 %7303  ;;  %v13960_v52 = vpop.eup %11087  ;;  %10667 = vmatpush3.bf16.msra.mxu1 %v7587_v26 }
 0x73e   : > { %11097 = vpow2.f32 %v7403_v55  ;;  %v7354_v7 = vsub.f32 %v13858_v6, %v7304_v23  ;;  %10687 = vmatpush3.bf16.msra.mxu0 %v7593_v13  ;;  %10668 = vmatprep.subr.bf16.mxu1 %v7588_v62 }
 0x73f   : > { %10688 = vmatprep.subr.bf16.mxu0 %v7594_v25 }
 0x740   : > { %v13962_v10 = vpop.eup %11089  ;;  %v7399_v59 = vmul.f32 1.442695, %v7354_v7  ;;  %7445 = vadd.xlane.f32.xlu1 %v13960_v52 }
 0x741   : > { %7451 = vadd.xlane.f32.xlu0 %v13962_v10  ;;  %v13966_v4 = vpop.eup %11091  ;;  %10669 = vmatpush3.bf16.msra.mxu1 %v7588_v62 }
 0x742   : > { %11099 = vpow2.f32 %v7399_v59  ;;  %10689 = vmatpush3.bf16.msra.mxu0 %v7594_v25  ;;  %10702 = vmatprep.subr.bf16.mxu1 %v13991_v36 }
 0x743   : > { %10690 = vmatprep.subr.bf16.mxu0 %v7595_v49 }
 0x744   : > { %v13968_v14 = vpop.eup %11093  ;;  %7465 = vadd.xlane.f32.xlu1 %v13966_v4 }
 0x745   : > { %7447 = vadd.xlane.f32.xlu0 %v13968_v14  ;;  %v13972_v6 = vpop.eup %11095 }
 0x746   : > { %10691 = vmatpush3.bf16.msra.mxu0 %v7595_v49 }
 0x747   : > { %10692 = vmatprep.subr.bf16.mxu0 %v7596_v31 }
 0x748   : > { %v13974_v58 = vpop.eup %11097  ;;  %7461 = vadd.xlane.f32.xlu1 %v13972_v6 }
 0x749   : > { %7467 = vadd.xlane.f32.xlu0 %v13974_v58 }
 0x74a   : > { %10693 = vmatpush3.bf16.msra.mxu0 %v7596_v31 }
 0x74c   : > { %v13978_v40 = vpop.eup %11099 }
 0x74d   : > { %7463 = vadd.xlane.f32.xlu0 %v13978_v40 }
 0x75c   : > { %v7314_v9 = vpop.xlane.xlu1 %7313 }
 0x75d   : > { %v7359_v2 = vsub.f32 %v13862_v42, %v7314_v9 }
 0x75e   : > { %v7316_v43 = vpop.xlane.xlu0 %7315 }
 0x75f   : > { %v7409_v63 = vmul.f32 1.442695, %v7359_v2  ;;  %v7360_v11 = vsub.f32 %v13865_v50, %v7316_v43 }
 0x760   : > { %v7310_v51 = vpop.xlane.xlu1 %7309 }
 0x761   : > { %11101 = vpow2.f32 %v7409_v63  ;;  %v7411_v3 = vmul.f32 1.442695, %v7360_v11  ;;  %v7357_v60 = vsub.f32 %v13869_v16, %v7310_v51 }
 0x762   : > { %v7312_v0 = vpop.xlane.xlu0 %7311 }
 0x763   : > { %11103 = vpow2.f32 %v7411_v3  ;;  %v7405_v30 = vmul.f32 1.442695, %v7357_v60  ;;  %v7358_v55 = vsub.f32 %v13873_v37, %v7312_v0 }
 0x764   : > { %v7326_v23 = vpop.xlane.xlu1 %7325 }
 0x765   : > { %11105 = vpow2.f32 %v7405_v30  ;;  %v7407_v42 = vmul.f32 1.442695, %v7358_v55  ;;  %v7365_v7 = vsub.f32 %v13877_v21, %v7326_v23  ;;  %v13993_v21 = vld [vmem:[#allocation3 + $0xc0] sm:$0xff] }
 0x766   : > { %v7328_v59 = vpop.xlane.xlu0 %7327  ;;  %10726 = vmatprep.subr.bf16.mxu0 %v13993_v21 }
 0x767   : > { %11107 = vpow2.f32 %v7407_v42  ;;  %v7421_v50 = vmul.f32 1.442695, %v7365_v7  ;;  %v7366_v8 = vsub.f32 %v13885_v39, %v7328_v59 }
 0x768   : > { %v7330_v45 = vpop.xlane.xlu1 %7329 }
 0x769   : > { %11109 = vpow2.f32 %v7421_v50  ;;  %v7423_v61 = vmul.f32 1.442695, %v7366_v8  ;;  %v7367_v16 = vsub.f32 %v13893_v46, %v7330_v45 }
 0x76a   : > { %v7332_v15 = vpop.xlane.xlu0 %7331 }
 0x76b   : > { %v13988_v20 = vpop.eup %11101  ;;  %11111 = vpow2.f32 %v7423_v61  ;;  %v7425_v37 = vmul.f32 1.442695, %v7367_v16  ;;  %v7368_v24 = vsub.f32 %v13901_v5, %v7332_v15 }
 0x76c   : > { %v7322_v27 = vpop.xlane.xlu1 %7321  ;;  %7473 = vadd.xlane.f32.xlu1 %v13988_v20 }
 0x76d   : > { %v13997_v39 = vpop.eup %11103  ;;  %11113 = vpow2.f32 %v7425_v37  ;;  %v7427_v46 = vmul.f32 1.442695, %v7368_v24  ;;  %v7363_v26 = vsub.f32 %v13879_v41, %v7322_v27 }
 0x76e   : > { %7475 = vadd.xlane.f32.xlu0 %v13997_v39  ;;  %v7324_v5 = vpop.xlane.xlu0 %7323 }
 0x76f   : > { %v14002_v13 = vpop.eup %11105  ;;  %11115 = vpow2.f32 %v7427_v46  ;;  %v7417_v62 = vmul.f32 1.442695, %v7363_v26  ;;  %v7364_v25 = vsub.f32 %v13905_v56, %v7324_v5 }
 0x770   : > { %v7318_v49 = vpop.xlane.xlu1 %7317  ;;  %7469 = vadd.xlane.f32.xlu1 %v14002_v13 }
 0x771   : > { %v14006_v9 = vpop.eup %11107  ;;  %11117 = vpow2.f32 %v7417_v62  ;;  %v7419_v2 = vmul.f32 1.442695, %v7364_v25  ;;  %v7361_v41 = vsub.f32 %v13882_v38, %v7318_v49 }
 0x772   : > { %7471 = vadd.xlane.f32.xlu0 %v14006_v9  ;;  %v7320_v31 = vpop.xlane.xlu0 %7319 }
 0x773   : > { %v14010_v43 = vpop.eup %11109  ;;  %11119 = vpow2.f32 %v7419_v2  ;;  %v7413_v63 = vmul.f32 1.442695, %v7361_v41  ;;  %v7362_v11 = vsub.f32 %v13909_v22, %v7320_v31 }
 0x774   : > { %v7334_v51 = vpop.xlane.xlu1 %7333  ;;  %7485 = vadd.xlane.f32.xlu1 %v14010_v43 }
 0x775   : > { %v14014_v56 = vpop.eup %11111  ;;  %11121 = vpow2.f32 %v7413_v63  ;;  %v7415_v3 = vmul.f32 1.442695, %v7362_v11  ;;  %v7369_v60 = vsub.f32 %v13890_v32, %v7334_v51 }
 0x776   : > { %7487 = vadd.xlane.f32.xlu0 %v14014_v56  ;;  %v7336_v38 = vpop.xlane.xlu0 %7335 }
 0x777   : > { %v14018_v0 = vpop.eup %11113  ;;  %11123 = vpow2.f32 %v7415_v3  ;;  %v7429_v30 = vmul.f32 1.442695, %v7369_v60  ;;  %v7370_v55 = vsub.f32 %v13898_v44, %v7336_v38 }
 0x778   : > { %v7338_v23 = vpop.xlane.xlu1 %7337  ;;  %7489 = vadd.xlane.f32.xlu1 %v14018_v0 }
 0x779   : > { %v14022_v22 = vpop.eup %11115  ;;  %11125 = vpow2.f32 %v7429_v30  ;;  %v7431_v42 = vmul.f32 1.442695, %v7370_v55  ;;  %v7371_v7 = vsub.f32 %v13887_v18, %v7338_v23 }
 0x77a   : > { %7491 = vadd.xlane.f32.xlu0 %v14022_v22  ;;  %v7340_v32 = vpop.xlane.xlu0 %7339 }
 0x77b   : > { %v14026_v59 = vpop.eup %11117  ;;  %11127 = vpow2.f32 %v7431_v42  ;;  %v7433_v50 = vmul.f32 1.442695, %v7371_v7  ;;  %v7372_v8 = vsub.f32 %v13895_v53, %v7340_v32 }
 0x77c   : > { %7481 = vadd.xlane.f32.xlu1 %v14026_v59 }
 0x77d   : > { %v14030_v44 = vpop.eup %11119  ;;  %11129 = vpow2.f32 %v7433_v50  ;;  %v7435_v45 = vmul.f32 1.442695, %v7372_v8  ;;  %v7598_v8 = vld [vmem:[#allocation3 + $0x88] sm:$0xff] }
 0x77e   : > { %7483 = vadd.xlane.f32.xlu0 %v14030_v44 }
 0x77f   : > { %v14033_v61 = vpop.eup %11121  ;;  %11131 = vpow2.f32 %v7435_v45 }
 0x780   : > { %7477 = vadd.xlane.f32.xlu1 %v14033_v61 }
 0x781   : > { %v14036_v18 = vpop.eup %11123 }
 0x782   : > { %7479 = vadd.xlane.f32.xlu0 %v14036_v18 }
 0x783   : > { %v14039_v16 = vpop.eup %11125 }
 0x784   : > { %7493 = vadd.xlane.f32.xlu1 %v14039_v16 }
 0x785   : > { %v14042_v53 = vpop.eup %11127 }
 0x786   : > { %7495 = vadd.xlane.f32.xlu0 %v14042_v53 }
 0x787   : > { %v14045_v15 = vpop.eup %11129 }
 0x788   : > { %7497 = vadd.xlane.f32.xlu1 %v14045_v15 }
 0x789   : > { %v14048_v37 = vpop.eup %11131 }
 0x78a   : > { %7499 = vadd.xlane.f32.xlu0 %v14048_v37 }
 0x7b9   : > { %v7442_v24 = vpop.xlane.xlu1 %7441 }
 0x7bd   : > { %v7438_v27 = vpop.xlane.xlu1 %7437 }
 0x7be   : > { %v7444_v46 = vpop.xlane.xlu0 %7443 }
 0x7bf   : > { %11133 = vrcp.f32 %v7444_v46 }
 0x7c0   : > { %11135 = vrcp.f32 %v7438_v27 }
 0x7c1   : > { %v7458_v26 = vpop.xlane.xlu1 %7457  ;;  %11137 = vrcp.f32 %v7442_v24 }
 0x7c2   : > { %v7440_v5 = vpop.xlane.xlu0 %7439 }
 0x7c3   : > { %11139 = vrcp.f32 %v7440_v5 }
 0x7c5   : > { %v7454_v62 = vpop.xlane.xlu1 %7453 }
 0x7c6   : > { %v7460_v25 = vpop.xlane.xlu0 %7459 }
 0x7c7   : > { %11141 = vrcp.f32 %v7460_v25 }
 0x7c8   : > { %11143 = vrcp.f32 %v7454_v62 }
 0x7c9   : > { %v7450_v49 = vpop.xlane.xlu1 %7449  ;;  %v11134_v2 = vpop.eup %11133  ;;  %11145 = vrcp.f32 %v7458_v26  ;;  %v7599_v26 = vld [vmem:[#allocation3 + $0x90] sm:$0xff] }
 0x7ca   : > { %v7456_v41 = vpop.xlane.xlu0 %7455  ;;  %v11136_v31 = vpop.eup %11135  ;;  %v7536_v51 = vmul.f32 %v11134_v2, %v13932_v29  ;;  %v7600_v2 = vld [vmem:[#allocation3 + $0x98] sm:$0xff] }
 0x7cb   : > { %11147 = vrcp.f32 %v7456_v41  ;;  %v11138_v63 = vpop.eup %11137  ;;  %v7533_v38 = vmul.f32 %v11136_v31, %v13930_v28 }
 0x7cc   : > { %v7535_v55 = vmul.f32 %v11138_v63, %v13925_v17 }
 0x7cd   : > { %v11140_v11 = vpop.eup %11139  ;;  %v7446_v3 = vpop.xlane.xlu1 %7445 }
 0x7ce   : > { %v7452_v60 = vpop.xlane.xlu0 %7451  ;;  %v7534_v30 = vmul.f32 %v11140_v11, %v13940_v35  ;;  %v7566_v7 = vpack.c.bf16 %v7536_v51, %v7535_v55  ;;  %v7607_v11 = vld [vmem:[#allocation3 + $0xd0] sm:$0xff]  ;;  %v7601_v51 = vld [vmem:[#allocation3 + $0xa0] sm:$0xff] }
 0x7cf   : > { %11149 = vrcp.f32 %v7452_v60 }
 0x7d0   : > { %v7565_v23 = vpack.c.bf16 %v7534_v30, %v7533_v38  ;;  %11151 = vrcp.f32 %v7446_v3  ;;  %v7608_v30 = vld [vmem:[#allocation3 + $0xd8] sm:$0xff] }
 0x7d1   : > { %v7466_v42 = vpop.xlane.xlu1 %7465  ;;  %v11142_v32 = vpop.eup %11141  ;;  %11153 = vrcp.f32 %v7450_v49  ;;  %v7606_v49 = vld [vmem:[#allocation3 + $0xc8] sm:$0xff] }
 0x7d2   : > { %10670 = vmatprep.mubr.bf16.mxu1 %v7565_v23  ;;  %v7448_v50 = vpop.xlane.xlu0 %7447  ;;  %v11144_v45 = vpop.eup %11143  ;;  %v7544_v35 = vmul.f32 %v11142_v32, %v13948_v33  ;;  %v7603_v32 = vld [vmem:[#allocation3 + $0xb0] sm:$0xff] }
 0x7d3   : > { %11155 = vrcp.f32 %v7448_v50  ;;  %10671 = vmatmul.mubr.bf16.vlgmr.msra.gmra.mrb[16].mxu1 %v7566_v7  ;;  %v11146_v29 = vpop.eup %11145  ;;  %v7541_v27 = vmul.f32 %v11144_v45, %v13946_v12  ;;  %v7609_v7 = vld [vmem:[#allocation3 + $0xe0] sm:$0xff] }
 0x7d4   : > { %10703 = vmatpush3.bf16.msra.mxu1 %v13991_v36  ;;  %v7543_v5 = vmul.f32 %v11146_v29, %v13937_v47  ;;  %v7610_v29 = vld [vmem:[#allocation3 + $0xe8] sm:$0xff] }
 0x7d5   : > { %v11148_v28 = vpop.eup %11147  ;;  %10704 = vmatprep.subr.bf16.mxu1 %v7598_v8  ;;  %v7462_v17 = vpop.xlane.xlu1 %7461 }
 0x7d6   : > { %v7468_v24 = vpop.xlane.xlu0 %7467  ;;  %v7542_v46 = vmul.f32 %v11148_v28, %v13955_v19  ;;  %v7570_v25 = vpack.c.bf16 %v7544_v35, %v7543_v5  ;;  %v7604_v28 = vld [vmem:[#allocation3 + $0xb8] sm:$0xff] }
 0x7d7   : > { %11157 = vrcp.f32 %v7468_v24 }
 0x7d8   : > { %v7569_v62 = vpack.c.bf16 %v7542_v46, %v7541_v27  ;;  %10705 = vmatpush3.bf16.msra.mxu1 %v7598_v8  ;;  %11159 = vrcp.f32 %v7462_v17 }
 0x7d9   : > { %10706 = vmatprep.subr.bf16.mxu1 %v7599_v26  ;;  %v11150_v36 = vpop.eup %11149  ;;  %11161 = vrcp.f32 %v7466_v42 }
 0x7da   : > { %10694 = vmatprep.mubr.bf16.mxu0 %v7569_v62  ;;  %v7464_v33 = vpop.xlane.xlu0 %7463  ;;  %v11152_v41 = vpop.eup %11151  ;;  %v7540_v19 = vmul.f32 %v11150_v36, %v13962_v10  ;;  %v7602_v10 = vld [vmem:[#allocation3 + $0xa8] sm:$0xff] }
 0x7db   : > { %11163 = vrcp.f32 %v7464_v33  ;;  %10695 = vmatmul.mubr.bf16.vlgmr.msra.gmra.mrb[24].mxu0 %v7570_v25  ;;  %v11154_v12 = vpop.eup %11153  ;;  %v7537_v31 = vmul.f32 %v11152_v41, %v13960_v52 }
 0x7dc   : > { %10727 = vmatpush3.bf16.msra.mxu0 %v13993_v21  ;;  %10707 = vmatpush3.bf16.msra.mxu1 %v7599_v26  ;;  %v7539_v3 = vmul.f32 %v11154_v12, %v13953_v1 }
 0x7dd   : > { %v11156_v47 = vpop.eup %11155  ;;  %10728 = vmatprep.subr.bf16.mxu0 %v7606_v49  ;;  %10708 = vmatprep.subr.bf16.mxu1 %v7600_v2 }
 0x7de   : > { %v7538_v63 = vmul.f32 %v11156_v47, %v13968_v14  ;;  %v7568_v38 = vpack.c.bf16 %v7540_v19, %v7539_v3 }
 0x7e0   : > { %v7567_v60 = vpack.c.bf16 %v7538_v63, %v7537_v31  ;;  %10729 = vmatpush3.bf16.msra.mxu0 %v7606_v49  ;;  %10709 = vmatpush3.bf16.msra.mxu1 %v7600_v2 }
 0x7e1   : > { %10730 = vmatprep.subr.bf16.mxu0 %v7607_v11  ;;  %10710 = vmatprep.subr.bf16.mxu1 %v7601_v51  ;;  %v11158_v21 = vpop.eup %11157 }
 0x7e2   : > { %10674 = vmatprep.mubr.bf16.mxu1 %v7567_v60  ;;  %v11160_v55 = vpop.eup %11159  ;;  %v7548_v14 = vmul.f32 %v11158_v21, %v13974_v58  ;;  %v7612_v58 = vld [vmem:[#allocation3 + $0xf8] sm:$0xff] }
 0x7e3   : > { %10675 = vmatmul.mubr.bf16.gmra.mrb[20].mxu1 %v7568_v38  ;;  %v11162_v23 = vpop.eup %11161  ;;  %v7545_v1 = vmul.f32 %v11160_v55, %v13972_v6  ;;  %v7611_v6 = vld [vmem:[#allocation3 + $0xf0] sm:$0xff] }
 0x7e4   : > { %10731 = vmatpush3.bf16.msra.mxu0 %v7607_v11  ;;  %10711 = vmatpush3.bf16.msra.mxu1 %v7601_v51  ;;  %v7547_v50 = vmul.f32 %v11162_v23, %v13966_v4 }
 0x7e5   : > { %v11164_v52 = vpop.eup %11163  ;;  %10732 = vmatprep.subr.bf16.mxu0 %v7608_v30  ;;  %10712 = vmatprep.subr.bf16.mxu1 %v7602_v10 }
 0x7e6   : > { %v7546_v42 = vmul.f32 %v11164_v52, %v13978_v40  ;;  %v7572_v45 = vpack.c.bf16 %v7548_v14, %v7547_v50 }
 0x7e8   : > { %v7571_v8 = vpack.c.bf16 %v7546_v42, %v7545_v1  ;;  %10733 = vmatpush3.bf16.msra.mxu0 %v7608_v30  ;;  %10713 = vmatpush3.bf16.msra.mxu1 %v7602_v10 }
 0x7e9   : > { %10734 = vmatprep.subr.bf16.mxu0 %v7609_v7  ;;  %10714 = vmatprep.subr.bf16.mxu1 %v7603_v32 }
 0x7ea   : > { %10698 = vmatprep.mubr.bf16.mxu0 %v7571_v8 }
 0x7eb   : > { %10699 = vmatmul.mubr.bf16.gmra.mrb[28].mxu0 %v7572_v45 }
 0x7ec   : > { %10735 = vmatpush3.bf16.msra.mxu0 %v7609_v7  ;;  %10715 = vmatpush3.bf16.msra.mxu1 %v7603_v32 }
 0x7ed   : > { %10736 = vmatprep.subr.bf16.mxu0 %v7610_v29  ;;  %10716 = vmatprep.subr.bf16.mxu1 %v7604_v28 }
 0x7f0   : > { %10737 = vmatpush3.bf16.msra.mxu0 %v7610_v29  ;;  %10717 = vmatpush3.bf16.msra.mxu1 %v7604_v28 }
 0x7f1   : > { %10738 = vmatprep.subr.bf16.mxu0 %v7611_v6 }
 0x7f4   : > { %10739 = vmatpush3.bf16.msra.mxu0 %v7611_v6 }
 0x7f5   : > { %10740 = vmatprep.subr.bf16.mxu0 %v7612_v58 }
 0x7f8   : > { %10741 = vmatpush3.bf16.msra.mxu0 %v7612_v58 }
 0x7f9   : > { %v7474_v4 = vpop.xlane.xlu1 %7473 }
 0x7fb   : > { %v7476_v40 = vpop.xlane.xlu0 %7475 }
 0x7fc   : > { %11165 = vrcp.f32 %v7476_v40 }
 0x7fd   : > { %v7470_v35 = vpop.xlane.xlu1 %7469 }
 0x7fe   : > { %11167 = vrcp.f32 %v7470_v35 }
 0x7ff   : > { %11169 = vrcp.f32 %v7474_v4  ;;  %v7472_v17 = vpop.xlane.xlu0 %7471 }
 0x800   : > { %11171 = vrcp.f32 %v7472_v17 }
 0x801   : > { %v7486_v24 = vpop.xlane.xlu1 %7485 }
 0x802   : > { %11173 = vrcp.f32 %v7486_v24 }
 0x803   : > { %v7488_v27 = vpop.xlane.xlu0 %7487 }
 0x804   : > { %11175 = vrcp.f32 %v7488_v27 }
 0x805   : > { %v7490_v46 = vpop.xlane.xlu1 %7489 }
 0x806   : > { %11177 = vrcp.f32 %v7490_v46  ;;  %v11166_v26 = vpop.eup %11165 }
 0x807   : > { %v7492_v5 = vpop.xlane.xlu0 %7491  ;;  %v7552_v49 = vmul.f32 %v11166_v26, %v13997_v39 }
 0x808   : > { %v11168_v62 = vpop.eup %11167  ;;  %11179 = vrcp.f32 %v7492_v5 }
 0x809   : > { %v11170_v25 = vpop.eup %11169  ;;  %v7482_v36 = vpop.xlane.xlu1 %7481  ;;  %v7549_v41 = vmul.f32 %v11168_v62, %v14002_v13 }
 0x80a   : > { %v11172_v33 = vpop.eup %11171  ;;  %v7551_v19 = vmul.f32 %v11170_v25, %v13988_v20 }
 0x80b   : > { %v7484_v2 = vpop.xlane.xlu0 %7483  ;;  %v7550_v12 = vmul.f32 %v11172_v33, %v14006_v9 }
 0x80c   : > { %v11174_v47 = vpop.eup %11173  ;;  %11181 = vrcp.f32 %v7484_v2  ;;  %v7574_v51 = vpack.c.bf16 %v7552_v49, %v7551_v19 }
 0x80d   : > { %v7478_v31 = vpop.xlane.xlu1 %7477  ;;  %v7573_v63 = vpack.c.bf16 %v7550_v12, %v7549_v41  ;;  %v7557_v60 = vmul.f32 %v11174_v47, %v14010_v43 }
 0x80e   : > { %v11176_v11 = vpop.eup %11175  ;;  %11183 = vrcp.f32 %v7478_v31 }
 0x80f   : > { %11185 = vrcp.f32 %v7482_v36  ;;  %10718 = vmatprep.mubr.bf16.mxu1 %v7573_v63  ;;  %v7480_v3 = vpop.xlane.xlu0 %7479  ;;  %v7558_v39 = vmul.f32 %v11176_v11, %v14014_v56 }
 0x810   : > { %v11178_v38 = vpop.eup %11177  ;;  %11187 = vrcp.f32 %v7480_v3  ;;  %10719 = vmatmul.mubr.bf16.vlgmr.msra.gmra.mrb[24].mxu1 %v7574_v51  ;;  %v11021_v3 = vld [vmem:[#allocation15] sm:$0xff]  }
 0x811   : > { %v7494_v13 = vpop.xlane.xlu1 %7493  ;;  %v7577_v9 = vpack.c.bf16 %v7558_v39, %v7557_v60  ;;  %v7559_v20 = vmul.f32 %v11178_v38, %v14018_v0  ;;  %v11022_v60 = vld [vmem:[#allocation15 + $0x8] sm:$0xff]   ;;  %10750 = vmatprep.subr.bf16.mxu1 %v11021_v3  ;;  %v11023_v38 = vld [vmem:[#allocation15 + $0x10] sm:$0xff]  }
 0x812   : > { %v11180_v21 = vpop.eup %11179  ;;  %11189 = vrcp.f32 %v7494_v13  ;;  %10751 = vmatpush3.bf16.msra.mxu1 %v11021_v3 }
 0x813   : > { %v7560_v30 = vmul.f32 %v11180_v21, %v14022_v22  ;;  %10742 = vmatprep.mubr.bf16.mxu0 %v7577_v9  ;;  %v7496_v10 = vpop.xlane.xlu0 %7495  ;;  %10752 = vmatprep.subr.bf16.mxu1 %v11022_v60 }
 0x814   : > { %11191 = vrcp.f32 %v7496_v10  ;;  %v11024_v10 = vld [vmem:[#allocation15 + $0x18] sm:$0xff]  }
 0x815   : > { %v7498_v55 = vpop.xlane.xlu1 %7497  ;;  %v7578_v23 = vpack.c.bf16 %v7560_v30, %v7559_v20 }
 0x816   : > { %11193 = vrcp.f32 %v7498_v55  ;;  %v11182_v43 = vpop.eup %11181  ;;  %10753 = vmatpush3.bf16.msra.mxu1 %v11022_v60 }
 0x817   : > { %10743 = vmatmul.mubr.bf16.vlgmr.msra.gmra.mrb[32].mxu0 %v7578_v23  ;;  %v7500_v56 = vpop.xlane.xlu0 %7499  ;;  %v7556_v42 = vmul.f32 %v11182_v43, %v14030_v44  ;;  %10754 = vmatprep.subr.bf16.mxu1 %v11023_v38 }
 0x818   : > { %v11184_v52 = vpop.eup %11183  ;;  %11195 = vrcp.f32 %v7500_v56 }
 0x819   : > { %v11186_v14 = vpop.eup %11185  ;;  %v7553_v7 = vmul.f32 %v11184_v52, %v14033_v61 }
 0x81a   : > { %v11188_v1 = vpop.eup %11187  ;;  %v7555_v32 = vmul.f32 %v11186_v14, %v14026_v59  ;;  %v14911_v59 = vmov 0   ;;  %10755 = vmatpush3.bf16.msra.mxu1 %v11023_v38 }
 0x81b   : > { %v7554_v0 = vmul.f32 %v11188_v1, %v14036_v18  ;;  %10756 = vmatprep.subr.bf16.mxu1 %v11024_v10 }
 0x81c   : > { %v11190_v22 = vpop.eup %11189  ;;  %v7576_v45 = vpack.c.bf16 %v7556_v42, %v7555_v32 }
 0x81d   : > { %v7575_v50 = vpack.c.bf16 %v7554_v0, %v7553_v7  ;;  %v7561_v29 = vmul.f32 %v11190_v22, %v14039_v16  ;;  %v11025_v7 = vld [vmem:[#allocation15 + $0x20] sm:$0xff]  }
 0x81e   : > { %v11192_v8 = vpop.eup %11191  ;;  %10757 = vmatpush3.bf16.msra.mxu1 %v11024_v10 }
 0x81f   : > { %10722 = vmatprep.mubr.bf16.mxu1 %v7575_v50  ;;  %v7562_v28 = vmul.f32 %v11192_v8, %v14042_v53  ;;  %10758 = vmatprep.subr.bf16.mxu1 %v11025_v7 }
 0x820   : > { %v11194_v6 = vpop.eup %11193  ;;  %10723 = vmatmul.mubr.bf16.gmra.mrb[28].mxu1 %v7576_v45 }
 0x821   : > { %v7579_v58 = vpack.c.bf16 %v7562_v28, %v7561_v29  ;;  %v7563_v44 = vmul.f32 %v11194_v6, %v14045_v15 }
 0x822   : > { %v11196_v4 = vpop.eup %11195  ;;  %10759 = vmatpush3.bf16.msra.mxu1 %v11025_v7 }
 0x823   : > { %10746 = vmatprep.mubr.bf16.mxu0 %v7579_v58  ;;  %v7564_v61 = vmul.f32 %v11196_v4, %v14048_v37 }
 0x825   : > { %v7580_v18 = vpack.c.bf16 %v7564_v61, %v7563_v44 }
 0x827   : > { %10747 = vmatmul.mubr.bf16.gmra.mrb[36].mxu0 %v7580_v18 }
 0x828   : > { %9410 = vmatprep.mubr.bf16.mxu0 %v14911_v59 }
 0x8a6   : > { %v10672_v40 = vpop.f32.mrb[16].mxu1 }
 0x8a7   : > { %v7647_v35 = vpop.f32.mrb[17].mxu1 }
 0x8a8   : > { %v10673_v17 = vpop.f32.mrb[18].mxu1 }
 0x8a9   : > { %v7874_v24 = vpack.c.bf16 %v10673_v17, %v10672_v40  ;;  %v7650_v16 = vpop.f32.mrb[19].mxu1 }
 0x8aa   : > { %v7873_v27 = vpack.c.bf16 %v7650_v16, %v7647_v35 }
 0x8ab   : > { %v7909_v36 = vshrl.u32 %v7874_v24, 16 }
 0x8ac   : > { %v7893_v37 = vshrl.u32 %v7873_v27, 16 }
 0x8ae   : > { %v10696_v53 = vpop.f32.mrb[24].mxu0 }
 0x8af   : > { %v7712_v46 = vpop.f32.mrb[25].mxu0 }
 0x8b0   : > { %v10697_v26 = vpop.f32.mrb[26].mxu0 }
 0x8b1   : > { %v7878_v5 = vpack.c.bf16 %v10697_v26, %v10696_v53  ;;  %v7715_v62 = vpop.f32.mrb[27].mxu0 }
 0x8b2   : > { %v7877_v25 = vpack.c.bf16 %v7715_v62, %v7712_v46 }
 0x8b3   : > { %v7907_v15 = vpack.i.b16 %v7878_v5, %v7874_v24  ;;  %v7910_v33 = vshrl.u32 %v7878_v5, 16 }
 0x8b4   : > { %v7891_v49 = vpack.i.b16 %v7877_v25, %v7873_v27  ;;  %v7894_v2 = vshrl.u32 %v7877_v25, 16 }
 0x8b5   : > { %v7911_v41 = vpack.i.b16 %v7910_v33, %v7909_v36  ;;  %v8085_v45 = vcombine.high %v7907_v15, %v13357_v57  ;;  %v8092_v4 = vrot.slane %v7907_v15, %v13364_v48 }
 0x8b6   : > { %v7895_v12 = vpack.i.b16 %v7894_v2, %v7893_v37  ;;  %v10676_v47 = vpop.f32.mrb[20].mxu1  ;;  %v7953_v6 = vcombine.high %v7891_v49, %v13357_v57  ;;  %v14095_v35 = vrot.slane %v7891_v49, %v13364_v48 }
 0x8b7   : > { %v7663_v19 = vpop.f32.mrb[21].mxu1  ;;  %v8151_v28 = vcombine.high %v7911_v41, %v13357_v57  ;;  %v8099_v18 = vrot.slane %v8085_v45, %v13364_v48  ;;  %v8158_v40 = vrot.slane %v7911_v41, %v13364_v48 }
 0x8b8   : > { %v10677_v31 = vpop.f32.mrb[22].mxu1  ;;  %v8019_v58 = vcombine.high %v7895_v12, %v13357_v57  ;;  %v14102_v27 = vrot.slane %v7953_v6, %v13364_v48  ;;  %v14105_v53 = vrot.slane %v7895_v12, %v13364_v48 }
 0x8b9   : > { %v7876_v63 = vpack.c.bf16 %v10677_v31, %v10676_v47  ;;  %v7666_v11 = vpop.f32.mrb[23].mxu1  ;;  %v14099_v16 = vrot.slane %v8151_v28, %v13364_v48 }
 0x8ba   : > { %v7875_v51 = vpack.c.bf16 %v7666_v11, %v7663_v19  ;;  %v14108_v46 = vrot.slane %v8019_v58, %v13364_v48 }
 0x8bb   : > { %v7941_v55 = vshrl.u32 %v7876_v63, 16 }
 0x8bc   : > { %v7925_v56 = vshrl.u32 %v7875_v51, 16 }
 0x8be   : > { %v10700_v39 = vpop.f32.mrb[28].mxu0 }
 0x8bf   : > { %v7728_v13 = vpop.f32.mrb[29].mxu0 }
 0x8c0   : > { %v10701_v9 = vpop.f32.mrb[30].mxu0 }
 0x8c1   : > { %v7880_v21 = vpack.c.bf16 %v10701_v9, %v10700_v39  ;;  %v7731_v20 = vpop.f32.mrb[31].mxu0 }
 0x8c2   : > { %v7879_v30 = vpack.c.bf16 %v7731_v20, %v7728_v13 }
 0x8c3   : > { %v7939_v23 = vpack.i.b16 %v7880_v21, %v7876_v63  ;;  %v7942_v43 = vshrl.u32 %v7880_v21, 16 }
 0x8c4   : > { %v7923_v52 = vpack.i.b16 %v7879_v30, %v7875_v51  ;;  %v7926_v14 = vshrl.u32 %v7879_v30, 16 }
 0x8c5   : > { %v7943_v1 = vpack.i.b16 %v7942_v43, %v7941_v55  ;;  %v8349_v44 = vcombine.high %v7939_v23, %v13357_v57  ;;  %v14111_v5 = vrot.slane %v7939_v23, %v13364_v48 }
 0x8c6   : > { %v7927_v42 = vpack.i.b16 %v7926_v14, %v7925_v56  ;;  %v8217_v17 = vcombine.high %v7923_v52, %v13357_v57  ;;  %v14115_v25 = vrot.slane %v7923_v52, %v13364_v48 }
 0x8c7   : > { %v8415_v62 = vcombine.high %v7943_v1, %v13357_v57  ;;  %v14118_v33 = vrot.slane %v8349_v44, %v13364_v48  ;;  %v14121_v37 = vrot.slane %v7943_v1, %v13364_v48 }
 0x8c8   : > { %v8283_v49 = vcombine.high %v7927_v42, %v13357_v57  ;;  %v14125_v41 = vrot.slane %v8217_v17, %v13364_v48  ;;  %v14128_v31 = vrot.slane %v7927_v42, %v13364_v48 }
 0x8c9   : > { %v14131_v3 = vrot.slane %v8415_v62, %v13364_v48 }
 0x8ca   : > { %v14136_v13 = vrot.slane %v8283_v49, %v13364_v48 }
 0x8e3   : > { %v10720_v0 = vpop.f32.mrb[24].mxu1 }
 0x8e4   : > { %v7777_v22 = vpop.f32.mrb[25].mxu1 }
 0x8e5   : > { %v10721_v32 = vpop.f32.mrb[26].mxu1 }
 0x8e6   : > { %v7882_v50 = vpack.c.bf16 %v10721_v32, %v10720_v0  ;;  %v7780_v8 = vpop.f32.mrb[27].mxu1 }
 0x8e7   : > { %v7881_v29 = vpack.c.bf16 %v7780_v8, %v7777_v22 }
 0x8e8   : > { %v7917_v12 = vshrl.u32 %v7882_v50, 16 }
 0x8e9   : > { %v7901_v63 = vshrl.u32 %v7881_v29, 16 }
 0x8ea   : > { %v10744_v61 = vpop.f32.mrb[32].mxu0 }
 0x8eb   : > { %v7842_v24 = vpop.f32.mrb[33].mxu0 }
 0x8ec   : > { %v10745_v26 = vpop.f32.mrb[34].mxu0 }
 0x8ed   : > { %v7886_v36 = vpack.c.bf16 %v10745_v26, %v10744_v61  ;;  %v7845_v15 = vpop.f32.mrb[35].mxu0 }
 0x8ee   : > { %v7885_v2 = vpack.c.bf16 %v7845_v15, %v7842_v24 }
 0x8ef   : > { %v7915_v47 = vpack.i.b16 %v7886_v36, %v7882_v50  ;;  %v7918_v19 = vshrl.u32 %v7886_v36, 16 }
 0x8f0   : > { %v7899_v11 = vpack.i.b16 %v7885_v2, %v7881_v29  ;;  %v7902_v51 = vshrl.u32 %v7885_v2, 16 }
 0x8f1   : > { %v7919_v60 = vpack.i.b16 %v7918_v19, %v7917_v12  ;;  %v8100_v39 = vcombine.high %v7915_v47, %v13357_v57  ;;  %v8107_v38 = vrot.slane %v7915_v47, %v13364_v48 }
 0x8f2   : > { %v7903_v9 = vpack.i.b16 %v7902_v51, %v7901_v63  ;;  %v7968_v21 = vcombine.high %v7899_v11, %v13357_v57  ;;  %v7975_v20 = vrot.slane %v7899_v11, %v13364_v48 }
 0x8f3   : > { %v8114_v30 = vrot.slane %v8100_v39, %v13364_v48  ;;  %v8115_v10 = vcombine.low %v8092_v4, %v8107_v38  ;;  %v8116_v55 = vcombine.high %v8092_v4, %v8107_v38  ;;  %v8166_v23 = vcombine.high %v7919_v60, %v13357_v57  ;;  %v10724_v43 = vpop.f32.mrb[28].mxu1 }
 0x8f4   : > { %v8173_v56 = vrot.slane %v7919_v60, %v13364_v48  ;;  %v7982_v52 = vrot.slane %v7968_v21, %v13364_v48  ;;  %v7983_v14 = vcombine.low %v14095_v35, %v7975_v20  ;;  %v7984_v1 = vcombine.high %v14095_v35, %v7975_v20  ;;  %v7793_v42 = vpop.f32.mrb[29].mxu1 }
 0x8f5   : > { %v14147_v7 = vrot.slane %v8115_v10, %v13368_v34  ;;  %v14150_v0 = vrot.slane %v8116_v55, %v13368_v34  ;;  %v8131_v22 = vcombine.low %v8099_v18, %v8114_v30  ;;  %v8132_v32 = vcombine.high %v8099_v18, %v8114_v30  ;;  %v10725_v50 = vpop.f32.mrb[30].mxu1 }
 0x8f6   : > { %v8180_v8 = vrot.slane %v8166_v23, %v13364_v48  ;;  %v8181_v45 = vcombine.low %v8158_v40, %v8173_v56  ;;  %v8182_v29 = vcombine.high %v8158_v40, %v8173_v56  ;;  %v14154_v28 = vrot.slane %v7983_v14, %v13368_v34  ;;  %v7796_v6 = vpop.f32.mrb[31].mxu1 }
 0x8f7   : > { %v14157_v58 = vrot.slane %v8131_v22, %v13368_v34  ;;  %v14160_v4 = vrot.slane %v8132_v32, %v13368_v34  ;;  %v8581_v44 = vcombine.low %v14147_v7, %v14150_v0  ;;  %v10194_v61 = vcombine.high %v14147_v7, %v14150_v0 }
 0x8f8   : > { %v14167_v18 = vrot.slane %v8181_v45, %v13368_v34  ;;  %v14170_v40 = vrot.slane %v8182_v29, %v13368_v34  ;;  %v8197_v35 = vcombine.low %v14099_v16, %v8180_v8  ;;  %v8198_v17 = vcombine.high %v14099_v16, %v8180_v8 }
 0x8f9   : > { %v8597_v24 = vcombine.low %v14157_v58, %v14160_v4  ;;  %v10195_v26 = vcombine.high %v14157_v58, %v14160_v4  ;;  %v14179_v62 = vrot.slane %v7984_v1, %v13368_v34  ;;  %v7999_v36 = vcombine.low %v14102_v27, %v7982_v52 }
 0x8fa   : > { %v14183_v15 = vrot.slane %v8197_v35, %v13368_v34  ;;  %v14186_v49 = vrot.slane %v8198_v17, %v13368_v34  ;;  %v8631_v16 = vcombine.low %v14167_v18, %v14170_v40  ;;  %v10196_v2 = vcombine.high %v14167_v18, %v14170_v40  ;;  %v10748_v12 = vpop.f32.mrb[36].mxu0 }
 0x8fb   : > { %v8000_v47 = vcombine.high %v14102_v27, %v7982_v52  ;;  %v14194_v19 = vrot.slane %v7999_v36, %v13368_v34  ;;  %v8034_v63 = vcombine.high %v7903_v9, %v13357_v57  ;;  %v8041_v11 = vrot.slane %v7903_v9, %v13364_v48  ;;  %v7858_v51 = vpop.f32.mrb[37].mxu0 }
 0x8fc   : > { %v8481_v60 = vcombine.low %v14154_v28, %v14179_v62  ;;  %v10190_v39 = vcombine.high %v14154_v28, %v14179_v62  ;;  %v7884_v38 = vpack.c.bf16 %v10725_v50, %v10724_v43  ;;  %v7883_v21 = vpack.c.bf16 %v7796_v6, %v7793_v42  ;;  %v10749_v20 = vpop.f32.mrb[38].mxu0  ;;  %v11027_v28 = vld [vmem:[#allocation15 + $0x30] sm:$0xff]  }
 0x8fd   : > { %v14203_v30 = vrot.slane %v8000_v47, %v13368_v34  ;;  %v8048_v27 = vrot.slane %v8034_v63, %v13364_v48  ;;  %v8049_v10 = vcombine.low %v14105_v53, %v8041_v11  ;;  %v8050_v55 = vcombine.high %v14105_v53, %v8041_v11  ;;  %v7861_v9 = vpop.f32.mrb[39].mxu0 }
 0x8fe   : > { %v7949_v23 = vshrl.u32 %v7884_v38, 16  ;;  %v7933_v56 = vshrl.u32 %v7883_v21, 16  ;;  %v7888_v52 = vpack.c.bf16 %v10749_v20, %v10748_v12  ;;  %v7887_v14 = vpack.c.bf16 %v7861_v9, %v7858_v51 }
 0x8ff   : > { %v14209_v1 = vrot.slane %v8049_v10, %v13368_v34  ;;  %v14212_v43 = vrot.slane %v8050_v55, %v13368_v34  ;;  %v8065_v42 = vcombine.low %v14108_v46, %v8048_v27  ;;  %v8066_v7 = vcombine.high %v14108_v46, %v8048_v27 }
 0x900   : > { %v8497_v0 = vcombine.low %v14194_v19, %v14203_v30  ;;  %v10191_v53 = vcombine.high %v14194_v19, %v14203_v30  ;;  %v7947_v22 = vpack.i.b16 %v7888_v52, %v7884_v38  ;;  %v7950_v32 = vshrl.u32 %v7888_v52, 16 }
 0x901   : > { %v14221_v50 = vrot.slane %v8065_v42, %v13368_v34  ;;  %v14224_v8 = vrot.slane %v8066_v7, %v13368_v34  ;;  %v8531_v45 = vcombine.low %v14209_v1, %v14212_v43  ;;  %v10192_v46 = vcombine.high %v14209_v1, %v14212_v43 }
 0x902   : > { %v7951_v29 = vpack.i.b16 %v7950_v32, %v7949_v23  ;;  %v8364_v6 = vcombine.high %v7947_v22, %v13357_v57  ;;  %v8371_v35 = vrot.slane %v7947_v22, %v13364_v48  ;;  %v7931_v17 = vpack.i.b16 %v7887_v14, %v7883_v21 }
 0x903   : > { %v7934_v36 = vshrl.u32 %v7887_v14, 16  ;;  %v8588_v12 = vrot.slane %v8581_v44, %v13364_v48  ;;  %v8596_v47 = vrot.slane %v10194_v61, %v13364_v48  ;;  %v8604_v63 = vrot.slane %v8597_v24, %v13364_v48 }
 0x904   : > { %v8378_v11 = vrot.slane %v8364_v6, %v13364_v48  ;;  %v8379_v51 = vcombine.low %v14111_v5, %v8371_v35  ;;  %v8380_v38 = vcombine.high %v14111_v5, %v8371_v35  ;;  %v8430_v20 = vcombine.high %v7951_v29, %v13357_v57 }
 0x905   : > { %v8437_v27 = vrot.slane %v7951_v29, %v13364_v48  ;;  %v7935_v10 = vpack.i.b16 %v7934_v36, %v7933_v56  ;;  %v8232_v21 = vcombine.high %v7931_v17, %v13357_v57  ;;  %v8239_v55 = vrot.slane %v7931_v17, %v13364_v48 }
 0x906   : > { %v14243_v44 = vrot.slane %v8379_v51, %v13368_v34  ;;  %v14246_v61 = vrot.slane %v8380_v38, %v13368_v34  ;;  %v8395_v24 = vcombine.low %v14118_v33, %v8378_v11  ;;  %v8396_v9 = vcombine.high %v14118_v33, %v8378_v11 }
 0x907   : > { %v8444_v5 = vrot.slane %v8430_v20, %v13364_v48  ;;  %v8445_v23 = vcombine.low %v14121_v37, %v8437_v27  ;;  %v8446_v56 = vcombine.high %v14121_v37, %v8437_v27  ;;  %v8246_v52 = vrot.slane %v8232_v21, %v13364_v48 }
 0x908   : > { %v14255_v14 = vrot.slane %v8395_v24, %v13368_v34  ;;  %v14258_v42 = vrot.slane %v8396_v9, %v13368_v34  ;;  %v8781_v7 = vcombine.low %v14243_v44, %v14246_v61  ;;  %v10202_v33 = vcombine.high %v14243_v44, %v14246_v61 }
 0x909   : > { %v14265_v22 = vrot.slane %v8445_v23, %v13368_v34  ;;  %v14268_v32 = vrot.slane %v8446_v56, %v13368_v34  ;;  %v8461_v37 = vcombine.low %v14131_v3, %v8444_v5  ;;  %v8462_v29 = vcombine.high %v14131_v3, %v8444_v5 }
 0x90a   : > { %v8797_v6 = vcombine.low %v14255_v14, %v14258_v42  ;;  %v10203_v35 = vcombine.high %v14255_v14, %v14258_v42  ;;  %v8247_v17 = vcombine.low %v14115_v25, %v8239_v55  ;;  %v8248_v36 = vcombine.high %v14115_v25, %v8239_v55 }
 0x90b   : > { %v14279_v11 = vrot.slane %v8461_v37, %v13368_v34  ;;  %v14282_v51 = vrot.slane %v8462_v29, %v13368_v34  ;;  %v8831_v38 = vcombine.low %v14265_v22, %v14268_v32  ;;  %v10204_v3 = vcombine.high %v14265_v22, %v14268_v32  ;;  %v11026_v29 = vld [vmem:[#allocation15 + $0x28] sm:$0xff]  }
 0x90c   : > { %v14289_v20 = vrot.slane %v8247_v17, %v13368_v34  ;;  %v14292_v27 = vrot.slane %v8248_v36, %v13368_v34  ;;  %v8263_v25 = vcombine.low %v14125_v41, %v8246_v52  ;;  %v8264_v21 = vcombine.high %v14125_v41, %v8246_v52  ;;  %10760 = vmatprep.subr.bf16.mxu1 %v11026_v29 }
 0x90d   : > { %v8298_v55 = vcombine.high %v7935_v10, %v13357_v57  ;;  %v8305_v24 = vrot.slane %v7935_v10, %v13364_v48  ;;  %v8612_v9 = vrot.slane %v10195_v26, %v13364_v48  ;;  %v8613_v5 = vcombine.low %v8588_v12, %v8596_v47  ;;  %10761 = vmatpush3.bf16.msra.mxu1 %v11026_v29 }
 0x90e   : > { %v14303_v23 = vrot.slane %v8263_v25, %v13368_v34  ;;  %v14306_v56 = vrot.slane %v8264_v21, %v13368_v34  ;;  %v8681_v37 = vcombine.low %v14289_v20, %v14292_v27  ;;  %v10198_v57 = vcombine.high %v14289_v20, %v14292_v27  ;;  %10762 = vmatprep.subr.bf16.mxu1 %v11027_v28 }
 0x90f   : > { %v8312_v41 = vrot.slane %v8298_v55, %v13364_v48  ;;  %v8313_v10 = vcombine.low %v14128_v31, %v8305_v24  ;;  %v8314_v58 = vcombine.high %v14128_v31, %v8305_v24  ;;  %v8620_v4 = vrot.slane %v8613_v5, %v13368_v34 }
 0x910   : > { %v8697_v26 = vcombine.low %v14303_v23, %v14306_v56  ;;  %v10199_v12 = vcombine.high %v14303_v23, %v14306_v56  ;;  %v8621_v47 = vcombine.low %v8604_v63, %v8612_v9  ;;  %v8638_v52 = vrot.slane %v8631_v16, %v13364_v48 }
 0x911   : > { %v14325_v17 = vrot.slane %v8313_v10, %v13368_v34  ;;  %v14328_v31 = vrot.slane %v8314_v58, %v13368_v34  ;;  %v8329_v36 = vcombine.low %v14136_v13, %v8312_v41  ;;  %v8330_v25 = vcombine.high %v14136_v13, %v8312_v41  ;;  %10763 = vmatpush3.bf16.msra.mxu1 %v11027_v28 }
 0x912   : > { %v8628_v21 = vrot.slane %v8621_v47, %v13368_v34  ;;  %v8646_v63 = vrot.slane %v10196_v2, %v13364_v48  ;;  %v8647_v16 = vcombine.low %v14183_v15, %v14186_v49  ;;  %v10197_v55 = vcombine.high %v14183_v15, %v14186_v49 }
 0x913   : > { %v14342_v24 = vrot.slane %v8329_v36, %v13368_v34  ;;  %v14345_v9 = vrot.slane %v8330_v25, %v13368_v34  ;;  %v8731_v13 = vcombine.low %v14325_v17, %v14328_v31  ;;  %v10200_v18 = vcombine.high %v14325_v17, %v14328_v31 }
 0x914   : > { %v8630_v40 = vcombine.high %v8620_v4, %v8628_v21  ;;  %v8654_v2 = vrot.slane %v8647_v16, %v13364_v48  ;;  %v8662_v5 = vrot.slane %v10197_v55, %v13364_v48  ;;  %v8663_v15 = vcombine.low %v8638_v52, %v8646_v63 }
 0x915   : > { %v14353_v49 = vcombine.low %v8620_v4, %v8628_v21  ;;  %v8488_v41 = vrot.slane %v8481_v60, %v13364_v48  ;;  %v8496_v10 = vrot.slane %v10190_v39, %v13364_v48  ;;  %v8504_v58 = vrot.slane %v8497_v0, %v13364_v48 }
 0x916   : > { %v8670_v47 = vrot.slane %v8663_v15, %v13368_v34  ;;  %v8671_v52 = vcombine.low %v8654_v2, %v8662_v5  ;;  %v8512_v4 = vrot.slane %v10191_v53, %v13364_v48  ;;  %v8538_v60 = vrot.slane %v8531_v45, %v13364_v48  ;;  %v11028_v2 = vld [vmem:[#allocation15 + $0x38] sm:$0xff]  }
 0x917   : > { %v8896_v62 = vshrl.u32 %v14353_v49, 16  ;;  %v8513_v39 = vcombine.low %v8488_v41, %v8496_v10  ;;  %v8546_v0 = vrot.slane %v10192_v46, %v13364_v48  ;;  %v8547_v29 = vcombine.low %v14221_v50, %v14224_v8  ;;  %10764 = vmatprep.subr.bf16.mxu1 %v11028_v2 }
 0x918   : > { %v8678_v19 = vrot.slane %v8671_v52, %v13368_v34  ;;  %v8521_v30 = vcombine.low %v8504_v58, %v8512_v4  ;;  %v10193_v53 = vcombine.high %v14221_v50, %v14224_v8  ;;  %v8902_v36 = vshrl.u32 %v8630_v40, 16  ;;  %10765 = vmatpush3.bf16.msra.mxu1 %v11028_v2 }
 0x919   : > { %v8520_v45 = vrot.slane %v8513_v39, %v13368_v34  ;;  %v8554_v25 = vrot.slane %v8547_v29, %v13364_v48  ;;  %v8563_v21 = vcombine.low %v8538_v60, %v8546_v0  ;;  %v8788_v1 = vrot.slane %v8781_v7, %v13364_v48 }
 0x91a   : > { %v8680_v43 = vcombine.high %v8670_v47, %v8678_v19  ;;  %v14392_v46 = vcombine.low %v8670_v47, %v8678_v19  ;;  %v8528_v63 = vrot.slane %v8521_v30, %v13368_v34  ;;  %v8562_v50 = vrot.slane %v10193_v53, %v13364_v48 }
 0x91b   : > { %v8570_v8 = vrot.slane %v8563_v21, %v13368_v34  ;;  %v8796_v16 = vrot.slane %v10202_v33, %v13364_v48  ;;  %v8804_v7 = vrot.slane %v8797_v6, %v13364_v48  ;;  %v8812_v55 = vrot.slane %v10203_v35, %v13364_v48 }
 0x91c   : > { %v8901_v5 = vpack.i.b16 %v8680_v43, %v8630_v40  ;;  %v8897_v15 = vshrl.u32 %v14392_v46, 16  ;;  %v8530_v41 = vcombine.high %v8520_v45, %v8528_v63  ;;  %v8571_v10 = vcombine.low %v8554_v25, %v8562_v50 }
 0x91d   : > { %v14410_v58 = vcombine.low %v8520_v45, %v8528_v63  ;;  %v8903_v44 = vshrl.u32 %v8680_v43, 16  ;;  %v8813_v61 = vcombine.low %v8788_v1, %v8796_v16  ;;  %v8821_v33 = vcombine.low %v8804_v7, %v8812_v55 }
 0x91e   : > { %8939 = vrot.lane.b32.xlu1 %v8901_v5, %s11660_s2  ;;  %v8898_v6 = vpack.i.b16 %v8897_v15, %v8896_v62  ;;  %v8578_v47 = vrot.slane %v8571_v10, %v13368_v34  ;;  %v8890_v52 = vshrl.u32 %v8530_v41, 16  ;;  %v8838_v14 = vrot.slane %v8831_v38, %v13364_v48 }
 0x91f   : > { %v8884_v42 = vshrl.u32 %v14410_v58, 16  ;;  %v8904_v35 = vpack.i.b16 %v8903_v44, %v8902_v36  ;;  %v8820_v40 = vrot.slane %v8813_v61, %v13368_v34  ;;  %v8828_v4 = vrot.slane %v8821_v33, %v13368_v34 }
 0x920   : > { %8931 = vrot.lane.b32.xlu0 %v8898_v6, %s11659_s18  ;;  %v8580_v60 = vcombine.high %v8570_v8, %v8578_v47  ;;  %v14422_v28 = vcombine.low %v8570_v8, %v8578_v47  ;;  %v8846_v62 = vrot.slane %v10204_v3, %v13364_v48  ;;  %v8847_v38 = vcombine.low %v14279_v11, %v14282_v51 }
 0x921   : > { %v8830_v39 = vcombine.high %v8820_v40, %v8828_v4  ;;  %v10205_v0 = vcombine.high %v14279_v11, %v14282_v51  ;;  %v8688_v29 = vrot.slane %v8681_v37, %v13364_v48  ;;  %v8696_v19 = vrot.slane %v10198_v57, %v13364_v48 }
 0x922   : > { %v8889_v30 = vpack.i.b16 %v8580_v60, %v8530_v41  ;;  %v8891_v22 = vshrl.u32 %v8580_v60, 16  ;;  %v8885_v32 = vshrl.u32 %v14422_v28, 16  ;;  %v8854_v3 = vrot.slane %v8847_v38, %v13364_v48 }
 0x923   : > { %v8862_v53 = vrot.slane %v10205_v0, %v13364_v48  ;;  %v8863_v36 = vcombine.low %v8838_v14, %v8846_v62  ;;  %v8704_v11 = vrot.slane %v8697_v26, %v13364_v48  ;;  %v8712_v51 = vrot.slane %v10199_v12, %v13364_v48 }
 0x924   : > { %8937 = vrot.lane.b32.xlu1 %v8889_v30, %s11660_s2  ;;  %v8892_v20 = vpack.i.b16 %v8891_v22, %v8890_v52  ;;  %v8886_v27 = vpack.i.b16 %v8885_v32, %v8884_v42  ;;  %v8713_v37 = vcombine.low %v8688_v29, %v8696_v19  ;;  %v8738_v57 = vrot.slane %v8731_v13, %v13364_v48 }
 0x925   : > { %v8871_v45 = vcombine.low %v8854_v3, %v8862_v53  ;;  %v8721_v25 = vcombine.low %v8704_v11, %v8712_v51  ;;  %v8746_v26 = vrot.slane %v10200_v18, %v13364_v48  ;;  %v8870_v23 = vrot.slane %v8863_v36, %v13368_v34 }
 0x926   : > { %8945 = vrot.lane.b32.xlu0 %v8892_v20, %s11658_s7  ;;  %v8747_v56 = vcombine.low %v14342_v24, %v14345_v9  ;;  %v10201_v12 = vcombine.high %v14342_v24, %v14345_v9  ;;  %v14466_v21 = vcombine.low %v8820_v40, %v8828_v4  ;;  %v8720_v1 = vrot.slane %v8713_v37, %v13368_v34 }
 0x927   : > { %v8878_v13 = vrot.slane %v8871_v45, %v13368_v34  ;;  %v8728_v43 = vrot.slane %v8721_v25, %v13368_v34  ;;  %v8763_v17 = vcombine.low %v8738_v57, %v8746_v26  ;;  %v8895_v63 = vpack.i.b16 %v14392_v46, %v14353_v49  ;;  %v10206_v26 = vld [vmem:[%s14912_s4] ss:$0 sm:$0xff]  ;;  %s14919_s4 = sld [smem:[#allocation28_spill]] }
 0x928   : > { %8929 = vrot.lane.b32.xlu1 %v8886_v27, %s11659_s18  ;;  %v8754_v31 = vrot.slane %v8747_v56, %v13364_v48  ;;  %v8762_v18 = vrot.slane %v10201_v12, %v13364_v48  ;;  %v8926_v7 = vshrl.u32 %v8830_v39, 16  ;;  %v8883_v55 = vpack.i.b16 %v14422_v28, %v14410_v58 }
 0x929   : > { %v8880_v50 = vcombine.high %v8870_v23, %v8878_v13  ;;  %v8730_v24 = vcombine.high %v8720_v1, %v8728_v43  ;;  %v8879_v9 = vcombine.low %v8870_v23, %v8878_v13  ;;  %v8729_v16 = vcombine.low %v8720_v1, %v8728_v43  ;;  %v11229_v1 = vld [vmem:[%s12202_s21] sm:$0xff] }
 0x92a   : > { %v8771_v8 = vcombine.low %v8754_v31, %v8762_v18  ;;  %v8920_v5 = vshrl.u32 %v14466_v21, 16  ;;  %v8770_v48 = vrot.slane %v8763_v17, %v13368_v34  ;;  %v11230_v18 = vld [vmem:[%s12202_s21 + $0x8] sm:$0xff] }
 0x92b   : > { %v8925_v2 = vpack.i.b16 %v8880_v50, %v8830_v39  ;;  %v8921_v15 = vshrl.u32 %v8879_v9, 16  ;;  %v8927_v41 = vshrl.u32 %v8880_v50, 16  ;;  %v8919_v46 = vpack.i.b16 %v8879_v9, %v14466_v21 }
 0x92c   : > { %8947 = vrot.lane.b32.xlu1 %v8904_v35, %s11658_s7  ;;  %v8778_v49 = vrot.slane %v8771_v8, %v13368_v34  ;;  %v8908_v6 = vshrl.u32 %v8729_v16, 16  ;;  %v8914_v47 = vshrl.u32 %v8730_v24, 16 }
 0x92d   : > { %v8922_v10 = vpack.i.b16 %v8921_v15, %v8920_v5  ;;  %v8928_v44 = vpack.i.b16 %v8927_v41, %v8926_v7  ;;  %s10253_s26 = sshll.u32 %s14919_s4, 3 }
 0x92e   : > { %v8780_v61 = vcombine.high %v8770_v48, %v8778_v49  ;;  %v8779_v33 = vcombine.low %v8770_v48, %v8778_v49 }
 0x930   : > { %8943 = vrot.lane.b32.xlu1 %v8925_v2, %s11660_s2  ;;  %v8913_v58 = vpack.i.b16 %v8780_v61, %v8730_v24  ;;  %v8909_v52 = vshrl.u32 %v8779_v33, 16  ;;  %v8915_v14 = vshrl.u32 %v8780_v61, 16  ;;  %v8907_v42 = vpack.i.b16 %v8779_v33, %v8729_v16  ;;  %v11231_v24 = vld [vmem:[%s12202_s21 + $0x10] sm:$0xff]  ;;  %v11232_v2 = vld [vmem:[%s12202_s21 + $0x18] sm:$0xff]  ;;  %v11029_v33 = vld [vmem:[#allocation16] ss:$8 sps:$4 sm:$0xff]  }
 0x932   : > { %8941 = vrot.lane.b32.xlu0 %v8913_v58, %s11660_s2  ;;  %v8910_v35 = vpack.i.b16 %v8909_v52, %v8908_v6  ;;  %v8916_v40 = vpack.i.b16 %v8915_v14, %v8914_v47  ;;  %v11031_v6 = vld [vmem:[#allocation16 + $0x4] ss:$8 sps:$4 sm:$0xff]  }
 0x933   : > { %v11234_v52 = vld [vmem:[%s12202_s21 + $0x28] sm:$0xff]  ;;  %9378 = vmatprep.subr.bf16.mxu0 %v11031_v6 }
 0x934   : > { %8935 = vrot.lane.b32.xlu1 %v8922_v10, %s11659_s18  ;;  %9379 = vmatpush1.bf16.msra.mxu0 %v11029_v33 }
 0x936   : > { %8933 = vrot.lane.b32.xlu0 %v8910_v35, %s11659_s18  ;;  %s14917_s18 = sld [smem:[#allocation53_spill]] }
 0x938   : > { %8951 = vrot.lane.b32.xlu1 %v8928_v44, %s11658_s7 }
 0x93a   : > { %8949 = vrot.lane.b32.xlu0 %v8916_v40, %s11658_s7  ;;  %s11499_s7 = sshll.u32 %s11664_s12, 4  ;;  %s11500_s7 = int_to_ptr.vmem [resolvable:$false] %s11499_s7 }
 0x93b   : > { %p11502_p7 = scmp.lt.s32.totalorder %s14711_s9, %s11500_s7 }
 0x990   : > { %v8940_v34 = vpop.permute.xlu1 %8939 }
 0x992   : > { %v8932_v4 = vpop.permute.xlu0 %8931 }
 0x993   : > { %v8958_v62 = vsel %vm6872_vm1, %v8895_v63, %v8932_v4 }
 0x994   : > { %v8969_v30 = vsel %vm8965_vm3, %v8958_v62, %v8940_v34  ;;  %v11034_v62 = vld [vmem:[#allocation16 + $0x14] ss:$8 sps:$4 sm:$0xff]  }
 0x995   : > { %9380 = vmatprep.subr.bf16.mxu0 %v11034_v62 }
 0x996   : > { %v8938_v60 = vpop.permute.xlu1 %8937 }
 0x998   : > { %v8946_v39 = vpop.permute.xlu0 %8945 }
 0x99a   : > { %v8930_v28 = vpop.permute.xlu1 %8929 }
 0x99b   : > { %v8955_v38 = vsel %vm6872_vm1, %v8883_v55, %v8930_v28 }
 0x99c   : > { %v8967_v0 = vsel %vm8965_vm3, %v8955_v38, %v8938_v60  ;;  %v11236_v60 = vld [vmem:[%s12202_s21 + $0x38] sm:$0xff] }
 0x99d   : > { %v8976_v29 = vsel %vm8974_vm2, %v8967_v0, %v8946_v39  ;;  %v11032_v38 = vld [vmem:[#allocation16 + $0x10] ss:$8 sps:$4 sm:$0xff]   ;;  %v11037_v0 = vld [vmem:[#allocation16 + $0x24] ss:$8 sps:$4 sm:$0xff]  }
 0x99e   : > { %v8948_v19 = vpop.permute.xlu1 %8947  ;;  %10766 = vmatprep.mubr.bf16.mxu1 %v8976_v29  ;;  %9381 = vmatpush1.bf16.msra.mxu0 %v11032_v38  ;;  %v11035_v29 = vld [vmem:[#allocation16 + $0x20] ss:$8 sps:$4 sm:$0xff]  }
 0x99f   : > { %v8979_v22 = vsel %vm8974_vm2, %v8969_v30, %v8948_v19  ;;  %9382 = vmatprep.subr.bf16.mxu0 %v11037_v0  ;;  %v11040_v19 = vld [vmem:[#allocation16 + $0x34] ss:$8 sps:$4 sm:$0xff]   ;;  %v11038_v30 = vld [vmem:[#allocation16 + $0x30] ss:$8 sps:$4 sm:$0xff]  }
 0x9a0   : > { %10767 = vmatmul.mubr.bf16.vlgmr.msra.gmra.mrb[32].mxu1 %v8979_v22  ;;  %v11041_v22 = vld [vmem:[#allocation16 + $0x40] ss:$8 sps:$4 sm:$0xff]  }
 0x9a2   : > { %v8944_v32 = vpop.permute.xlu1 %8943  ;;  %9383 = vmatpush1.bf16.msra.mxu0 %v11035_v29 }
 0x9a3   : > { %9384 = vmatprep.subr.bf16.mxu0 %v11040_v19 }
 0x9a4   : > { %v8942_v3 = vpop.permute.xlu0 %8941 }
 0x9a6   : > { %v8936_v53 = vpop.permute.xlu1 %8935  ;;  %9385 = vmatpush1.bf16.msra.mxu0 %v11038_v30 }
 0x9a7   : > { %v8964_v51 = vsel %vm6872_vm1, %v8919_v46, %v8936_v53  ;;  %v11233_v46 = vld [vmem:[%s12202_s21 + $0x20] sm:$0xff]  ;;  %v11044_v53 = vld [vmem:[#allocation16 + $0x50] ss:$8 sps:$4 sm:$0xff]  }
 0x9a8   : > { %v8934_v36 = vpop.permute.xlu0 %8933  ;;  %v8973_v45 = vsel %vm8965_vm3, %v8964_v51, %v8944_v32  ;;  %v11043_v32 = vld [vmem:[#allocation16 + $0x44] ss:$8 sps:$4 sm:$0xff]   ;;  %v11052_v51 = vld [vmem:[#allocation16 + $0x74] ss:$8 sps:$4 sm:$0xff]  }
 0x9a9   : > { %v8961_v11 = vsel %vm6872_vm1, %v8907_v42, %v8934_v36  ;;  %v11235_v42 = vld [vmem:[%s12202_s21 + $0x30] sm:$0xff]  ;;  %9386 = vmatprep.subr.bf16.mxu0 %v11043_v32  ;;  %v11049_v36 = vld [vmem:[#allocation16 + $0x64] ss:$8 sps:$4 sm:$0xff]   ;;  %s14920_s21 = sld [smem:[#allocation29_spill]] }
 0x9aa   : > { %v8952_v20 = vpop.permute.xlu1 %8951  ;;  %v8971_v37 = vsel %vm8965_vm3, %v8961_v11, %v8942_v3  ;;  %v11046_v3 = vld [vmem:[#allocation16 + $0x54] ss:$8 sps:$4 sm:$0xff]   ;;  %9387 = vmatpush1.bf16.msra.mxu0 %v11041_v22  ;;  %v11047_v11 = vld [vmem:[#allocation16 + $0x60] ss:$8 sps:$4 sm:$0xff]  }
 0x9ab   : > { %v8985_v25 = vsel %vm8974_vm2, %v8973_v45, %v8952_v20  ;;  %9388 = vmatprep.subr.bf16.mxu0 %v11046_v3  ;;  %v11050_v20 = vld [vmem:[#allocation16 + $0x70] ss:$8 sps:$4 sm:$0xff]   ;;  %v11056_v45 = vld [vmem:[#allocation18 + $0x8] sm:$0xff]  }
 0x9ac   : > { %v8950_v27 = vpop.permute.xlu0 %8949 }
 0x9ad   : > { %v8982_v57 = vsel %vm8974_vm2, %v8971_v37, %v8950_v27  ;;  %v11053_v27 = vld [vmem:[#allocation18 + $0x40] sm:$0xff]  }
 0x9ae   : > { %10770 = vmatprep.mubr.bf16.mxu1 %v8982_v57  ;;  %9389 = vmatpush1.bf16.msra.mxu0 %v11044_v53  ;;  %v11054_v37 = vld [vmem:[#allocation18] sm:$0xff]   ;;  %v11055_v57 = vld [vmem:[#allocation18 + $0x48] sm:$0xff]  }
 0x9af   : > { %10771 = vmatmul.mubr.bf16.gmra.mrb[36].mxu1 %v8985_v25  ;;  %9390 = vmatprep.subr.bf16.mxu0 %v11049_v36  ;;  %v11057_v25 = vld [vmem:[#allocation18 + $0x50] sm:$0xff]  }
 0x9b0   : > { %10430 = vmatprep.subr.bf16.mxu1 %v11053_v27 }
 0x9b1   : > { %10431 = vmatpush3.bf16.msra.mxu1 %v11054_v37 }
 0x9b2   : > { %9391 = vmatpush1.bf16.msra.mxu0 %v11047_v11  ;;  %10432 = vmatprep.subr.bf16.mxu1 %v11055_v57  ;;  %v14560_v11 = vld [vmem:[%s14913_s6] ss:$0 sm:$0xff]  ;;  %s10254_s6 = sshll.u32 %s14920_s21, 4 }
 0x9b3   : > { %9392 = vmatprep.subr.bf16.mxu0 %v11052_v51  ;;  %s9838_s14 = sadd.s32 %s10254_s6, %s10253_s26 }
 0x9b5   : > { %10433 = vmatpush3.bf16.msra.mxu1 %v11056_v45 }
 0x9b6   : > { %9393 = vmatpush1.bf16.msra.mxu0 %v11050_v20  ;;  %10434 = vmatprep.subr.bf16.mxu1 %v11057_v25 }
 0xa73   : > { %v10768_v23 = vpop.f32.mrb[32].mxu1 }
 0xa74   : > { %v9092_v56 = vpop.f32.mrb[33].mxu1  ;;  %v9101_v31 = vadd.f32 %v10768_v23, %v10206_v26  ;;  %v11059_v23 = vld [vmem:[#allocation18 + $0x58] sm:$0xff]  }
 0xa75   : > { %v9093_v12 = vadd.f32 %v10206_v26, %v9092_v56  ;;  %v10769_v21 = vpop.f32.mrb[34].mxu1  ;;  %v11060_v56 = vld [vmem:[#allocation18 + $0x18] sm:$0xff]  }
 0xa76   : > { %v9095_v13 = vpop.f32.mrb[35].mxu1  ;;  %v14515_v9 = vadd.f32 %v11231_v24, %v9101_v31  ;;  %v9104_v8 = vadd.f32 %v10769_v21, %v10206_v26  ;;  %v11062_v21 = vld [vmem:[#allocation18 + $0x20] sm:$0xff]  }
 0xa77   : > { %v14505_v43 = vadd.f32 %v11229_v1, %v9093_v12  ;;  %v9096_v17 = vadd.f32 %v10206_v26, %v9095_v13  ;;  %v11061_v12 = vld [vmem:[#allocation18 + $0x60] sm:$0xff]   ;;  %v11063_v13 = vld [vmem:[#allocation18 + $0x68] sm:$0xff]  }
 0xa78   : > { %v9160_v7 = vmul.f32 %v14515_v9, %v14515_v9  ;;  %v14523_v5 = vadd.f32 %v11232_v2, %v9104_v8 }
 0xa79   : > { %v14508_v63 = vadd.f32 %v11230_v18, %v9096_v17  ;;  %9133 = vadd.xlane.f32.xlu0 %v14505_v43  ;;  %v9158_v50 = vmul.f32 %v14505_v43, %v14505_v43 }
 0xa7a   : > { %v9161_v61 = vmul.f32 %v14523_v5, %v14523_v5 }
 0xa7b   : > { %9135 = vadd.xlane.f32.xlu1 %v14508_v63  ;;  %v9159_v16 = vmul.f32 %v14508_v63, %v14508_v63 }
 0xa7d   : > { %9166 = vadd.xlane.f32.xlu0 %v9158_v50 }
 0xa7f   : > { %9137 = vadd.xlane.f32.xlu1 %v14515_v9 }
 0xa81   : > { %9168 = vadd.xlane.f32.xlu0 %v9159_v16 }
 0xa82   : > { %v10772_v55 = vpop.f32.mrb[36].mxu1 }
 0xa83   : > { %v9108_v15 = vpop.f32.mrb[37].mxu1  ;;  %9170 = vadd.xlane.f32.xlu1 %v9160_v7  ;;  %v9117_v47 = vadd.f32 %v10772_v55, %v10206_v26 }
 0xa84   : > { %v9109_v41 = vadd.f32 %v10206_v26, %v9108_v15  ;;  %v10773_v48 = vpop.f32.mrb[38].mxu1 }
 0xa85   : > { %v9111_v49 = vpop.f32.mrb[39].mxu1  ;;  %9139 = vadd.xlane.f32.xlu0 %v14523_v5  ;;  %v14539_v35 = vadd.f32 %v11235_v42, %v9117_v47  ;;  %v9120_v40 = vadd.f32 %v10773_v48, %v10206_v26 }
 0xa86   : > { %v14527_v10 = vadd.f32 %v11233_v46, %v9109_v41  ;;  %v9112_v44 = vadd.f32 %v10206_v26, %v9111_v49  ;;  %v11058_v26 = vld [vmem:[#allocation18 + $0x10] sm:$0xff]  }
 0xa87   : > { %v9164_v4 = vmul.f32 %v14539_v35, %v14539_v35  ;;  %v14547_v28 = vadd.f32 %v11236_v60, %v9120_v40  ;;  %10435 = vmatpush3.bf16.msra.mxu1 %v11058_v26 }
 0xa88   : > { %9141 = vadd.xlane.f32.xlu1 %v14527_v10  ;;  %v9162_v58 = vmul.f32 %v14527_v10, %v14527_v10  ;;  %v14535_v14 = vadd.f32 %v11234_v52, %v9112_v44  ;;  %10436 = vmatprep.subr.bf16.mxu1 %v11059_v23 }
 0xa89   : > { %9172 = vadd.xlane.f32.xlu0 %v9161_v61  ;;  %v9165_v39 = vmul.f32 %v14547_v28, %v14547_v28 }
 0xa8a   : > { %v9163_v34 = vmul.f32 %v14535_v14, %v14535_v14 }
 0xa8b   : > { %10437 = vmatpush3.bf16.msra.mxu1 %v11060_v56 }
 0xa8c   : > { %9174 = vadd.xlane.f32.xlu1 %v9162_v58  ;;  %10438 = vmatprep.subr.bf16.mxu1 %v11061_v12 }
 0xa8d   : > { %9143 = vadd.xlane.f32.xlu0 %v14535_v14 }
 0xa8f   : > { %10439 = vmatpush3.bf16.msra.mxu1 %v11062_v21  ;;  %v10216_v21 = vld [vmem:[%s14914_s15] ss:$0 sm:$0xff]  ;;  %s10255_s15 = sshll.u32 %s9838_s14, 7 }
 0xa90   : > { %9145 = vadd.xlane.f32.xlu1 %v14539_v35  ;;  %10440 = vmatprep.subr.bf16.mxu1 %v11063_v13 }
 0xa91   : > { %9176 = vadd.xlane.f32.xlu0 %v9163_v34 }
 0xa94   : > { %9178 = vadd.xlane.f32.xlu1 %v9164_v4 }
 0xa95   : > { %9147 = vadd.xlane.f32.xlu0 %v14547_v28 }
 0xa99   : > { %9180 = vadd.xlane.f32.xlu0 %v9165_v39 }
 0xb06   : > { %v9134_v1 = vpop.xlane.xlu0 %9133 }
 0xb07   : > { %v9150_v17 = vmul.f32 0.0078125, %v9134_v1 }
 0xb08   : > { %v9136_v31 = vpop.xlane.xlu1 %9135 }
 0xb09   : > { %v9190_v50 = vmul.f32 %v9150_v17, %v9150_v17  ;;  %v9151_v24 = vmul.f32 0.0078125, %v9136_v31  ;;  %v9206_v39 = vsub.f32 %v14505_v43, %v9150_v17 }
 0xb0a   : > { %v9167_v18 = vpop.xlane.xlu0 %9166 }
 0xb0b   : > { %v9182_v8 = vmul.f32 0.0078125, %v9167_v18  ;;  %v9191_v15 = vmul.f32 %v9151_v24, %v9151_v24  ;;  %v9207_v51 = vsub.f32 %v14508_v63, %v9151_v24 }
 0xb0c   : > { %v9138_v16 = vpop.xlane.xlu1 %9137 }
 0xb0d   : > { %v9198_v7 = vsub.f32 %v9182_v8, %v9190_v50  ;;  %v9152_v55 = vmul.f32 0.0078125, %v9138_v16 }
 0xb0e   : > { %v9169_v2 = vpop.xlane.xlu0 %9168 }
 0xb0f   : > { %v9214_v41 = vadd.f32 1e-05, %v9198_v7  ;;  %v9183_v48 = vmul.f32 0.0078125, %v9169_v2  ;;  %v9192_v46 = vmul.f32 %v9152_v55, %v9152_v55  ;;  %v9208_v13 = vsub.f32 %v14515_v9, %v9152_v55 }
 0xb10   : > { %v9171_v49 = vpop.xlane.xlu1 %9170 }
 0xb11   : > { %11197 = vrsqrt.f32 %v9214_v41  ;;  %v9199_v44 = vsub.f32 %v9183_v48, %v9191_v15  ;;  %v9184_v61 = vmul.f32 0.0078125, %v9171_v49 }
 0xb12   : > { %v9140_v33 = vpop.xlane.xlu0 %9139 }
 0xb13   : > { %v9215_v6 = vadd.f32 1e-05, %v9199_v44  ;;  %v9200_v47 = vsub.f32 %v9184_v61, %v9192_v46  ;;  %v9153_v58 = vmul.f32 0.0078125, %v9140_v33 }
 0xb15   : > { %11199 = vrsqrt.f32 %v9215_v6  ;;  %v9216_v52 = vadd.f32 1e-05, %v9200_v47  ;;  %v9142_v42 = vpop.xlane.xlu1 %9141  ;;  %v9193_v4 = vmul.f32 %v9153_v58, %v9153_v58  ;;  %v9209_v2 = vsub.f32 %v14523_v5, %v9153_v58 }
 0xb16   : > { %v14552_v40 = vmul.f32 0.0078125, %v9142_v42  ;;  %v9173_v34 = vpop.xlane.xlu0 %9172 }
 0xb17   : > { %11201 = vrsqrt.f32 %v9216_v52  ;;  %v9185_v60 = vmul.f32 0.0078125, %v9173_v34 }
 0xb18   : > { %v9194_v0 = vmul.f32 %v14552_v40, %v14552_v40  ;;  %v9210_v5 = vsub.f32 %v14527_v10, %v14552_v40 }
 0xb19   : > { %v9201_v62 = vsub.f32 %v9185_v60, %v9193_v4  ;;  %v9175_v38 = vpop.xlane.xlu1 %9174 }
 0xb1a   : > { %v9186_v29 = vmul.f32 0.0078125, %v9175_v38  ;;  %v9144_v19 = vpop.xlane.xlu0 %9143 }
 0xb1b   : > { %v11198_v30 = vpop.eup %11197  ;;  %v9217_v22 = vadd.f32 1e-05, %v9201_v62  ;;  %v9155_v32 = vmul.f32 0.0078125, %v9144_v19 }
 0xb1c   : > { %v9230_v3 = vmul.f32 %v11198_v30, %v9206_v39  ;;  %v9202_v53 = vsub.f32 %v9186_v29, %v9194_v0 }
 0xb1d   : > { %11203 = vrsqrt.f32 %v9217_v22  ;;  %v9146_v36 = vpop.xlane.xlu1 %9145  ;;  %v9195_v57 = vmul.f32 %v9155_v32, %v9155_v32  ;;  %v9211_v34 = vsub.f32 %v14535_v14, %v9155_v32 }
 0xb1e   : > { %v9218_v43 = vadd.f32 1e-05, %v9202_v53  ;;  %v9156_v20 = vmul.f32 0.0078125, %v9146_v36  ;;  %v9177_v27 = vpop.xlane.xlu0 %9176  ;;  %v9244_v26 = vmul.f32 %v14560_v11, %v9230_v3 }
 0xb1f   : > { %v11200_v37 = vpop.eup %11199  ;;  %v9187_v45 = vmul.f32 0.0078125, %v9177_v27  ;;  %v11067_v27 = vld [vmem:[#allocation18 + $0x78] sm:$0xff]  }
 0xb20   : > { %v9231_v25 = vmul.f32 %v11200_v37, %v9207_v51  ;;  %11205 = vrsqrt.f32 %v9218_v43  ;;  %v9196_v63 = vmul.f32 %v9156_v20, %v9156_v20  ;;  %v14569_v8 = vadd.f32 %v10216_v21, %v9244_v26  ;;  %v11065_v43 = vld [vmem:[#allocation18 + $0x70] sm:$0xff]   ;;  %v11068_v37 = vld [vmem:[#allocation18 + $0x38] sm:$0xff]  }
 0xb21   : > { %v11202_v23 = vpop.eup %11201  ;;  %v9203_v56 = vsub.f32 %v9187_v45, %v9195_v57  ;;  %v9179_v12 = vpop.xlane.xlu1 %9178  ;;  %v9212_v40 = vsub.f32 %v14539_v35, %v9156_v20  ;;  %v11066_v20 = vld [vmem:[#allocation18 + $0x30] sm:$0xff]   ;;  %v9294_v57 = vsub.s32 1, %v13353_v54 }
 0xb22   : > { %v9188_v1 = vmul.f32 0.0078125, %v9179_v12  ;;  %v9148_v17 = vpop.xlane.xlu0 %9147  ;;  %v9245_v31 = vmul.f32 %v14560_v11, %v9231_v25  ;;  %v9232_v7 = vmul.f32 %v11202_v23, %v9208_v13 }
 0xb23   : > { %v9219_v18 = vadd.f32 1e-05, %v9203_v56  ;;  %v9157_v50 = vmul.f32 0.0078125, %v9148_v17 }
 0xb24   : > { %v9204_v24 = vsub.f32 %v9188_v1, %v9196_v63  ;;  %v14571_v16 = vadd.f32 %v10216_v21, %v9245_v31  ;;  %v9246_v44 = vmul.f32 %v14560_v11, %v9232_v7 }
 0xb25   : > { %11207 = vrsqrt.f32 %v9219_v18  ;;  %v9197_v48 = vmul.f32 %v9157_v50, %v9157_v50  ;;  %v9213_v19 = vsub.f32 %v14547_v28, %v9157_v50  ;;  %v11064_v28 = vld [vmem:[#allocation18 + $0x28] sm:$0xff]  }
 0xb26   : > { %v9220_v15 = vadd.f32 1e-05, %v9204_v24  ;;  %v9181_v41 = vpop.xlane.xlu0 %9180  ;;  %v9266_v9 = vpack.c.bf16 %v14571_v16, %v14569_v8  ;;  %v14581_v58 = vadd.f32 %v10216_v21, %v9246_v44  ;;  %10441 = vmatpush3.bf16.msra.mxu1 %v11064_v28 }
 0xb27   : > { %v11204_v55 = vpop.eup %11203  ;;  %v9189_v49 = vmul.f32 0.0078125, %v9181_v41  ;;  %10442 = vmatprep.subr.bf16.mxu1 %v11065_v43 }
 0xb28   : > { %11209 = vrsqrt.f32 %v9220_v15  ;;  %9411 = vmatmul.mubr.bf16.vlgmr.msra.gmra.mrb[40].mxu0 %v9266_v9  ;;  %v9233_v46 = vmul.f32 %v11204_v55, %v9209_v2 }
 0xb29   : > { %v9205_v61 = vsub.f32 %v9189_v49, %v9197_v48  ;;  %9420 = vmatprep.mubr.bf16.mxu0 %v14911_v59 }
 0xb2a   : > { %v11206_v33 = vpop.eup %11205  ;;  %v9247_v6 = vmul.f32 %v14560_v11, %v9233_v46  ;;  %10443 = vmatpush3.bf16.msra.mxu1 %v11066_v20 }
 0xb2b   : > { %v9221_v47 = vadd.f32 1e-05, %v9205_v61  ;;  %v9234_v42 = vmul.f32 %v11206_v33, %v9210_v5  ;;  %10444 = vmatprep.subr.bf16.mxu1 %v11067_v27 }
 0xb2c   : > { %v14583_v52 = vadd.f32 %v10216_v21, %v9247_v6 }
 0xb2d   : > { %11211 = vrsqrt.f32 %v9221_v47  ;;  %v9248_v38 = vmul.f32 %v14560_v11, %v9234_v42 }
 0xb2e   : > { %v9267_v4 = vpack.c.bf16 %v14583_v52, %v14581_v58  ;;  %10445 = vmatpush3.bf16.msra.mxu1 %v11068_v37 }
 0xb2f   : > { %v11208_v60 = vpop.eup %11207  ;;  %v14592_v0 = vadd.f32 %v10216_v21, %v9248_v38 }
 0xb30   : > { %9421 = vmatmul.mubr.bf16.gmra.mrb[44].mxu0 %v9267_v4  ;;  %v9235_v62 = vmul.f32 %v11208_v60, %v9211_v34 }
 0xb31   : > { %9430 = vmatprep.mubr.bf16.mxu0 %v14911_v59 }
 0xb32   : > { %v11210_v10 = vpop.eup %11209  ;;  %v9249_v39 = vmul.f32 %v14560_v11, %v9235_v62 }
 0xb33   : > { %v9236_v14 = vmul.f32 %v11210_v10, %v9212_v40 }
 0xb34   : > { %v14594_v29 = vadd.f32 %v10216_v21, %v9249_v39 }
 0xb35   : > { %v9250_v3 = vmul.f32 %v14560_v11, %v9236_v14 }
 0xb36   : > { %v9268_v30 = vpack.c.bf16 %v14594_v29, %v14592_v0 }
 0xb37   : > { %v11212_v22 = vpop.eup %11211  ;;  %v14602_v53 = vadd.f32 %v10216_v21, %v9250_v3 }
 0xb38   : > { %9431 = vmatmul.mubr.bf16.gmra.mrb[48].mxu0 %v9268_v30  ;;  %v9237_v32 = vmul.f32 %v11212_v22, %v9213_v19 }
 0xb39   : > { %9440 = vmatprep.mubr.bf16.mxu0 %v14911_v59  ;;  %v9290_v59 = vsub.s32 0, %v13353_v54 }
 0xb3a   : > { %v9251_v35 = vmul.f32 %v14560_v11, %v9237_v32  ;;  %v9286_v11 = vld [vmem:[%s14915_s5] sm:$0x3]  ;;  %s14921_s5 = sld [smem:[#allocation55_spill]] }
 0xb3b   : > { %v9291_v45 = vrot.slane %v9286_v11, %v9290_v59  ;;  %v9295_v25 = vrot.slane %v9286_v11, %v9294_v57 }
 0xb3c   : > { %v14604_v36 = vadd.f32 %v10216_v21, %v9251_v35 }
 0xb3e   : > { %v9269_v51 = vpack.c.bf16 %v14604_v36, %v14602_v53 }
 0xb40   : > { %9441 = vmatmul.mubr.bf16.gmra.mrb[52].mxu0 %v9269_v51  ;;  %s14718_s10 = scalar_lea.hbm %s14921_s5, %s10255_s15 }
 0xbfb   : > { %v9412_v26 = vpop.f32.mrb[40].mxu0 }
 0xbfc   : > { %v9413_v23 = vadd.f32 %v9412_v26, %v9291_v45  ;;  %v9414_v56 = vpop.f32.mrb[41].mxu0 }
 0xbfd   : > { %v9415_v12 = vadd.f32 %v9414_v56, %v9295_v25  ;;  %v9416_v21 = vpop.f32.mrb[42].mxu0 }
 0xbfe   : > { %v9417_v13 = vadd.f32 %v9416_v21, %v9291_v45  ;;  %v9418_v63 = vpop.f32.mrb[43].mxu0  ;;  %v9451_v17 = vmax.f32 %v9413_v23, 0.0 }
 0xbff   : > { %v9419_v1 = vadd.f32 %v9418_v63, %v9295_v25  ;;  %v9452_v18 = vmax.f32 %v9415_v12, 0.0  ;;  %v10233_v12 = vld [vmem:[%s14916_s27] ss:$0 sm:$0xff]  ;;  %s11495_s27 = scalar_lea.vmem %s14711_s9, 1024 }
 0xc00   : > { %v9453_v31 = vmax.f32 %v9417_v13, 0.0  ;;  %p11496_p0 = scmp.ne.s32.totalorder %s14711_s9, %s11495_s27 }
 0xc01   : > { %v9454_v50 = vmax.f32 %v9419_v1, 0.0 }
 0xc02   : > { %v9467_v24 = vpack.c.bf16 %v9453_v31, %v9451_v17  ;;  %p11497_p3 = pnand %p11496_p0, %p14922_p9 }
 0xc03   : > { %v9468_v7 = vpack.c.bf16 %v9454_v50, %v9452_v18  ;;  %v9422_v2 = vpop.f32.mrb[44].mxu0 }
 0xc04   : > { %v9423_v15 = vadd.f32 %v9422_v2, %v9291_v45  ;;  %v9424_v41 = vpop.f32.mrb[45].mxu0  ;;  %p11498_p11 = pneg %p11497_p3 }
 0xc05   : > { %v9425_v54 = vadd.f32 %v9424_v41, %v9295_v25  ;;  %v9426_v9 = vpop.f32.mrb[46].mxu0  ;;  %9642 = vmatprep.mubr.bf16.mxu1 %v9468_v7 }
 0xc06   : > { %v9427_v55 = vadd.f32 %v9426_v9, %v9291_v45  ;;  %v9428_v48 = vpop.f32.mrb[47].mxu0  ;;  %9643 = vmatmul.mubr.bf16.vlgmr.msra.gmra.mrb[40].mxu1 %v9467_v24  ;;  %v9455_v46 = vmax.f32 %v9423_v15, 0.0 }
 0xc07   : > { %v9429_v49 = vadd.f32 %v9428_v48, %v9295_v25  ;;  %v9456_v61 = vmax.f32 %v9425_v54, 0.0 }
 0xc08   : > { %v9457_v44 = vmax.f32 %v9427_v55, 0.0 }
 0xc09   : > { %v9458_v33 = vmax.f32 %v9429_v49, 0.0 }
 0xc0a   : > { %v9469_v5 = vpack.c.bf16 %v9457_v44, %v9455_v46 }
 0xc0b   : > { %v9470_v6 = vpack.c.bf16 %v9458_v33, %v9456_v61  ;;  %v9432_v47 = vpop.f32.mrb[48].mxu0 }
 0xc0c   : > { %v9433_v42 = vadd.f32 %v9432_v47, %v9291_v45  ;;  %v9434_v34 = vpop.f32.mrb[49].mxu0 }
 0xc0d   : > { %v9435_v4 = vadd.f32 %v9434_v34, %v9295_v25  ;;  %v9436_v60 = vpop.f32.mrb[50].mxu0  ;;  %9650 = vmatprep.mubr.bf16.mxu1 %v9470_v6 }
 0xc0e   : > { %v9437_v62 = vadd.f32 %v9436_v60, %v9291_v45  ;;  %v9438_v38 = vpop.f32.mrb[51].mxu0  ;;  %9651 = vmatmul.mubr.bf16.gmra.mrb[44].mxu1 %v9469_v5  ;;  %v9459_v40 = vmax.f32 %v9433_v42, 0.0 }
 0xc0f   : > { %v9439_v10 = vadd.f32 %v9438_v38, %v9295_v25  ;;  %v9460_v14 = vmax.f32 %v9435_v4, 0.0 }
 0xc10   : > { %v9461_v39 = vmax.f32 %v9437_v62, 0.0 }
 0xc11   : > { %v9462_v19 = vmax.f32 %v9439_v10, 0.0 }
 0xc12   : > { %v9471_v30 = vpack.c.bf16 %v9461_v39, %v9459_v40 }
 0xc13   : > { %v9472_v22 = vpack.c.bf16 %v9462_v19, %v9460_v14  ;;  %v9442_v32 = vpop.f32.mrb[52].mxu0 }
 0xc14   : > { %v9443_v3 = vadd.f32 %v9442_v32, %v9291_v45  ;;  %v9444_v35 = vpop.f32.mrb[53].mxu0 }
 0xc15   : > { %v9445_v51 = vadd.f32 %v9444_v35, %v9295_v25  ;;  %v9446_v28 = vpop.f32.mrb[54].mxu0  ;;  %9658 = vmatprep.mubr.bf16.mxu1 %v9472_v22 }
 0xc16   : > { %v9447_v43 = vadd.f32 %v9446_v28, %v9291_v45  ;;  %v9448_v20 = vpop.f32.mrb[55].mxu0  ;;  %9659 = vmatmul.mubr.bf16.gmra.mrb[48].mxu1 %v9471_v30  ;;  %v9463_v37 = vmax.f32 %v9443_v3, 0.0 }
 0xc17   : > { %v9449_v27 = vadd.f32 %v9448_v20, %v9295_v25  ;;  %v9464_v11 = vmax.f32 %v9445_v51, 0.0 }
 0xc18   : > { %v9465_v59 = vmax.f32 %v9447_v43, 0.0 }
 0xc19   : > { %v9466_v57 = vmax.f32 %v9449_v27, 0.0 }
 0xc1a   : > { %v9473_v26 = vpack.c.bf16 %v9465_v59, %v9463_v37 }
 0xc1b   : > { %v9474_v23 = vpack.c.bf16 %v9466_v57, %v9464_v11 }
 0xc1d   : > { %9666 = vmatprep.mubr.bf16.mxu1 %v9474_v23 }
 0xc1e   : > { %9667 = vmatmul.mubr.bf16.gmra.mrb[52].mxu1 %v9473_v26 }
 0xcd9   : > { %v10446_v56 = vpop.f32.mrb[40].mxu1 }
 0xcda   : > { %v10447_v21 = vpop.f32.mrb[41].mxu1 }
 0xcdb   : > { %v10448_v13 = vadd.f32 %v10447_v21, %v10446_v56  ;;  %v10449_v63 = vpop.f32.mrb[42].mxu1 }
 0xcdc   : > { %v10450_v45 = vpop.f32.mrb[43].mxu1 }
 0xcdd   : > { %v9645_v1 = vadd.f32 %v10448_v13, %v10233_v12  ;;  %v10451_v17 = vadd.f32 %v10450_v45, %v10449_v63 }
 0xcdf   : > { %v9648_v25 = vadd.f32 %v10451_v17, %v10233_v12  ;;  %v14617_v31 = vadd.f32 %v9645_v1, %v14569_v8 }
 0xce1   : > { %9685 = vadd.xlane.f32.xlu1 %v14617_v31  ;;  %v10452_v18 = vpop.f32.mrb[44].mxu1  ;;  %v14621_v50 = vadd.f32 %v9648_v25, %v14571_v16  ;;  %v9709_v15 = vmul.f32 %v14617_v31, %v14617_v31 }
 0xce2   : > { %v10453_v24 = vpop.f32.mrb[45].mxu1 }
 0xce3   : > { %v10454_v7 = vadd.f32 %v10453_v24, %v10452_v18  ;;  %9687 = vadd.xlane.f32.xlu0 %v14621_v50  ;;  %v10455_v2 = vpop.f32.mrb[46].mxu1  ;;  %v9710_v8 = vmul.f32 %v14621_v50, %v14621_v50 }
 0xce4   : > { %v10456_v41 = vpop.f32.mrb[47].mxu1 }
 0xce5   : > { %v9653_v54 = vadd.f32 %v10454_v7, %v10233_v12  ;;  %v10457_v9 = vadd.f32 %v10456_v41, %v10455_v2  ;;  %9717 = vadd.xlane.f32.xlu1 %v9709_v15 }
 0xce7   : > { %v9656_v55 = vadd.f32 %v10457_v9, %v10233_v12  ;;  %9719 = vadd.xlane.f32.xlu0 %v9710_v8  ;;  %v14629_v16 = vadd.f32 %v9653_v54, %v14581_v58 }
 0xce9   : > { %9689 = vadd.xlane.f32.xlu1 %v14629_v16  ;;  %v10458_v48 = vpop.f32.mrb[48].mxu1  ;;  %v14633_v49 = vadd.f32 %v9656_v55, %v14583_v52  ;;  %v9711_v33 = vmul.f32 %v14629_v16, %v14629_v16 }
 0xcea   : > { %v10459_v46 = vpop.f32.mrb[49].mxu1 }
 0xceb   : > { %v10460_v44 = vadd.f32 %v10459_v46, %v10458_v48  ;;  %9691 = vadd.xlane.f32.xlu0 %v14633_v49  ;;  %v10461_v61 = vpop.f32.mrb[50].mxu1  ;;  %v9712_v58 = vmul.f32 %v14633_v49, %v14633_v49  ;;  %v14670_v46 = vld [vmem:[%s14917_s18] ss:$0 sm:$0xff]  ;;  %s11501_s18 = scalar_lea.vmem %s11500_s7, 2048 }
 0xcec   : > { %v10462_v5 = vpop.f32.mrb[51].mxu1  ;;  %p11503_p12 = scmp.lt.s32.totalorder %s11501_s18, %s11495_s27 }
 0xced   : > { %v9661_v6 = vadd.f32 %v10460_v44, %v10233_v12  ;;  %v10463_v47 = vadd.f32 %v10462_v5, %v10461_v61  ;;  %9721 = vadd.xlane.f32.xlu1 %v9711_v33 }
 0xcee   : > { %p11504_p5 = por %p11503_p12, %p11502_p7 }
 0xcef   : > { %v9664_v42 = vadd.f32 %v10463_v47, %v10233_v12  ;;  %9723 = vadd.xlane.f32.xlu0 %v9712_v58  ;;  %v14641_v52 = vadd.f32 %v9661_v6, %v14592_v0 }
 0xcf0   : > { %p11505_p13 = pnand %p11504_p5, %p11498_p11 }
 0xcf1   : > { %9693 = vadd.xlane.f32.xlu1 %v14641_v52  ;;  %v10464_v34 = vpop.f32.mrb[52].mxu1  ;;  %v14645_v4 = vadd.f32 %v9664_v42, %v14594_v29  ;;  %v9713_v10 = vmul.f32 %v14641_v52, %v14641_v52 }
 0xcf2   : > { %v10465_v60 = vpop.f32.mrb[53].mxu1 }
 0xcf3   : > { %v10466_v62 = vadd.f32 %v10465_v60, %v10464_v34  ;;  %9695 = vadd.xlane.f32.xlu0 %v14645_v4  ;;  %v10467_v38 = vpop.f32.mrb[54].mxu1  ;;  %v9714_v0 = vmul.f32 %v14645_v4, %v14645_v4 }
 0xcf4   : > { %v10468_v40 = vpop.f32.mrb[55].mxu1 }
 0xcf5   : > { %v9669_v39 = vadd.f32 %v10466_v62, %v10233_v12  ;;  %v10469_v14 = vadd.f32 %v10468_v40, %v10467_v38  ;;  %9725 = vadd.xlane.f32.xlu1 %v9713_v10 }
 0xcf7   : > { %v9672_v19 = vadd.f32 %v10469_v14, %v10233_v12  ;;  %9727 = vadd.xlane.f32.xlu0 %v9714_v0  ;;  %v14653_v29 = vadd.f32 %v9669_v39, %v14602_v53 }
 0xcf9   : > { %9697 = vadd.xlane.f32.xlu1 %v14653_v29  ;;  %v14657_v30 = vadd.f32 %v9672_v19, %v14604_v36  ;;  %v9715_v22 = vmul.f32 %v14653_v29, %v14653_v29 }
 0xcfb   : > { %9699 = vadd.xlane.f32.xlu0 %v14657_v30  ;;  %v9716_v32 = vmul.f32 %v14657_v30, %v14657_v30 }
 0xcfd   : > { %9729 = vadd.xlane.f32.xlu1 %v9715_v22 }
 0xcff   : > { %9731 = vadd.xlane.f32.xlu0 %v9716_v32 }
 0xd6e   : > { %v9686_v3 = vpop.xlane.xlu1 %9685 }
 0xd6f   : > { %v9701_v35 = vmul.f32 0.0078125, %v9686_v3 }
 0xd70   : > { %v9688_v51 = vpop.xlane.xlu0 %9687 }
 0xd71   : > { %v9702_v53 = vmul.f32 0.0078125, %v9688_v51  ;;  %v9741_v43 = vmul.f32 %v9701_v35, %v9701_v35  ;;  %v9757_v9 = vsub.f32 %v14617_v31, %v9701_v35  ;;  %v14678_v31 = vld [vmem:[%s14918_s13] ss:$0 sm:$0xff] }
 0xd72   : > { %v9718_v28 = vpop.xlane.xlu1 %9717 }
 0xd73   : > { %v9733_v20 = vmul.f32 0.0078125, %v9718_v28  ;;  %v9742_v36 = vmul.f32 %v9702_v53, %v9702_v53  ;;  %v9758_v33 = vsub.f32 %v14621_v50, %v9702_v53 }
 0xd74   : > { %v9720_v27 = vpop.xlane.xlu0 %9719 }
 0xd75   : > { %v9749_v37 = vsub.f32 %v9733_v20, %v9741_v43  ;;  %v9734_v59 = vmul.f32 0.0078125, %v9720_v27 }
 0xd76   : > { %v9690_v11 = vpop.xlane.xlu1 %9689 }
 0xd77   : > { %v9765_v57 = vadd.f32 1e-05, %v9749_v37  ;;  %v9750_v26 = vsub.f32 %v9734_v59, %v9742_v36  ;;  %v9703_v23 = vmul.f32 0.0078125, %v9690_v11 }
 0xd78   : > { %v9692_v56 = vpop.xlane.xlu0 %9691 }
 0xd79   : > { %11213 = vrsqrt.f32 %v9765_v57  ;;  %v9766_v12 = vadd.f32 1e-05, %v9750_v26  ;;  %v9704_v21 = vmul.f32 0.0078125, %v9692_v56  ;;  %v9743_v63 = vmul.f32 %v9703_v23, %v9703_v23 }
 0xd7a   : > { %v9722_v13 = vpop.xlane.xlu1 %9721  ;;  %v9759_v32 = vsub.f32 %v14629_v16, %v9703_v23 }
 0xd7b   : > { %11215 = vrsqrt.f32 %v9766_v12  ;;  %v9735_v45 = vmul.f32 0.0078125, %v9722_v13  ;;  %v9744_v17 = vmul.f32 %v9704_v21, %v9704_v21  ;;  %v9760_v43 = vsub.f32 %v14633_v49, %v9704_v21 }
 0xd7c   : > { %v9724_v1 = vpop.xlane.xlu0 %9723 }
 0xd7d   : > { %v9751_v25 = vsub.f32 %v9735_v45, %v9743_v63  ;;  %v9736_v18 = vmul.f32 0.0078125, %v9724_v1 }
 0xd7e   : > { %v9694_v24 = vpop.xlane.xlu1 %9693 }
 0xd7f   : > { %v9767_v7 = vadd.f32 1e-05, %v9751_v25  ;;  %v9752_v2 = vsub.f32 %v9736_v18, %v9744_v17  ;;  %v14664_v15 = vmul.f32 0.0078125, %v9694_v24 }
 0xd80   : > { %v9696_v41 = vpop.xlane.xlu0 %9695 }
 0xd81   : > { %11217 = vrsqrt.f32 %v9767_v7  ;;  %v9768_v54 = vadd.f32 1e-05, %v9752_v2  ;;  %v9706_v8 = vmul.f32 0.0078125, %v9696_v41  ;;  %v9745_v44 = vmul.f32 %v14664_v15, %v14664_v15 }
 0xd82   : > { %v9726_v55 = vpop.xlane.xlu1 %9725  ;;  %v9761_v13 = vsub.f32 %v14641_v52, %v14664_v15 }
 0xd83   : > { %v11214_v48 = vpop.eup %11213  ;;  %11219 = vrsqrt.f32 %v9768_v54  ;;  %v9737_v61 = vmul.f32 0.0078125, %v9726_v55  ;;  %v9746_v58 = vmul.f32 %v9706_v8, %v9706_v8  ;;  %v9762_v45 = vsub.f32 %v14645_v4, %v9706_v8 }
 0xd84   : > { %v9781_v5 = vmul.f32 %v11214_v48, %v9757_v9  ;;  %v9728_v6 = vpop.xlane.xlu0 %9727 }
 0xd85   : > { %v11216_v47 = vpop.eup %11215  ;;  %v9753_v42 = vsub.f32 %v9737_v61, %v9745_v44  ;;  %v9738_v34 = vmul.f32 0.0078125, %v9728_v6 }
 0xd86   : > { %v9795_v60 = vmul.f32 %v14670_v46, %v9781_v5  ;;  %v9782_v62 = vmul.f32 %v11216_v47, %v9758_v33  ;;  %v9698_v38 = vpop.xlane.xlu1 %9697 }
 0xd87   : > { %v9769_v10 = vadd.f32 1e-05, %v9753_v42  ;;  %v9754_v40 = vsub.f32 %v9738_v34, %v9746_v58  ;;  %v9707_v50 = vmul.f32 0.0078125, %v9698_v38 }
 0xd88   : > { %v9809_v39 = vadd.f32 %v14678_v31, %v9795_v60  ;;  %v9796_v14 = vmul.f32 %v14670_v46, %v9782_v62  ;;  %v9700_v0 = vpop.xlane.xlu0 %9699 }
 0xd89   : > { %11221 = vrsqrt.f32 %v9769_v10  ;;  %v9770_v19 = vadd.f32 1e-05, %v9754_v40  ;;  %v9708_v3 = vmul.f32 0.0078125, %v9700_v0  ;;  %v9747_v53 = vmul.f32 %v9707_v50, %v9707_v50 }
 0xd8a   : > { %9817 = vst [vmem:[%s12235_s0] sm:$0xff] %v9809_v39  ;;  %v9810_v22 = vadd.f32 %v14678_v31, %v9796_v14  ;;  %v9730_v35 = vpop.xlane.xlu1 %9729  ;;  %v9763_v2 = vsub.f32 %v14653_v29, %v9707_v50 }
 0xd8b   : > { %v11218_v51 = vpop.eup %11217  ;;  %11223 = vrsqrt.f32 %v9770_v19  ;;  %v9739_v28 = vmul.f32 0.0078125, %v9730_v35  ;;  %v9748_v37 = vmul.f32 %v9708_v3, %v9708_v3  ;;  %v9764_v4 = vsub.f32 %v14657_v30, %v9708_v3 }
 0xd8c   : > { %9818 = vst [vmem:[%s12235_s0 + $0x8] sm:$0xff] %v9810_v22  ;;  %v9783_v20 = vmul.f32 %v11218_v51, %v9759_v32  ;;  %v9732_v27 = vpop.xlane.xlu0 %9731 }
 0xd8d   : > { %v11220_v36 = vpop.eup %11219  ;;  %v9755_v59 = vsub.f32 %v9739_v28, %v9747_v53  ;;  %v9740_v11 = vmul.f32 0.0078125, %v9732_v27 }
 0xd8e   : > { %v9797_v57 = vmul.f32 %v14670_v46, %v9783_v20  ;;  %v9784_v16 = vmul.f32 %v11220_v36, %v9760_v43 }
 0xd8f   : > { %v9771_v26 = vadd.f32 1e-05, %v9755_v59  ;;  %v9756_v23 = vsub.f32 %v9740_v11, %v9748_v37 }
 0xd90   : > { %v9811_v56 = vadd.f32 %v14678_v31, %v9797_v57  ;;  %v9798_v12 = vmul.f32 %v14670_v46, %v9784_v16 }
 0xd91   : > { %11225 = vrsqrt.f32 %v9771_v26  ;;  %v9772_v49 = vadd.f32 1e-05, %v9756_v23 }
 0xd92   : > { %9819 = vst [vmem:[%s12235_s0 + $0x10] sm:$0xff] %v9811_v56  ;;  %v9812_v21 = vadd.f32 %v14678_v31, %v9798_v12 }
 0xd93   : > { %v11222_v63 = vpop.eup %11221  ;;  %11227 = vrsqrt.f32 %v9772_v49 }
 0xd94   : > { %9820 = vst [vmem:[%s12235_s0 + $0x18] sm:$0xff] %v9812_v21  ;;  %v9785_v1 = vmul.f32 %v11222_v63, %v9761_v13 }
 0xd95   : > { %v11224_v17 = vpop.eup %11223 }
 0xd96   : > { %v9799_v25 = vmul.f32 %v14670_v46, %v9785_v1  ;;  %v9786_v18 = vmul.f32 %v11224_v17, %v9762_v45 }
 0xd98   : > { %v9813_v24 = vadd.f32 %v14678_v31, %v9799_v25  ;;  %v9800_v7 = vmul.f32 %v14670_v46, %v9786_v18 }
 0xd9a   : > { %9821 = vst [vmem:[%s12235_s0 + $0x20] sm:$0xff] %v9813_v24  ;;  %v9814_v52 = vadd.f32 %v14678_v31, %v9800_v7 }
 0xd9b   : > { %v11226_v15 = vpop.eup %11225 }
 0xd9c   : > { %9822 = vst [vmem:[%s12235_s0 + $0x28] sm:$0xff] %v9814_v52  ;;  %v9787_v41 = vmul.f32 %v11226_v15, %v9763_v2 }
 0xd9d   : > { %v11228_v54 = vpop.eup %11227 }
 0xd9e   : > { %v9801_v9 = vmul.f32 %v14670_v46, %v9787_v41  ;;  %v9788_v8 = vmul.f32 %v11228_v54, %v9764_v4 }
 0xda0   : > { %v9815_v55 = vadd.f32 %v14678_v31, %v9801_v9  ;;  %v9802_v48 = vmul.f32 %v14670_v46, %v9788_v8 }
 0xda2   : > { %9823 = vst [vmem:[%s12235_s0 + $0x30] sm:$0xff] %v9815_v55  ;;  %v9816_v29 = vadd.f32 %v14678_v31, %v9802_v48 }
 0xda4   : > { %9824 = vst [vmem:[%s12235_s0 + $0x38] sm:$0xff] %v9816_v29 }
 0xda5   : > { %11508 = shalt.err (!%p11505_p13)
}
 0xda6   : > { %s11509_s0 = scalar_lea.hbm %s14718_s10, 1024  ;;  %s11513_s13 = scalar_lea.hbm %s14921_s5, 4096 }
 0xda7   : > { %p11510_p1 = scmp.ne.s32.totalorder %s14718_s10, %s11509_s0  ;;  %p11514_p4 = scmp.lt.u32.totalorder %s14718_s10, %s14921_s5 }
 0xda8   : > { %p11515_p6 = scmp.lt.u32.totalorder %s11513_s13, %s11509_s0  ;;  %p11517_p0 = scmp.lt.u32.totalorder %s11509_s0, %s14718_s10 }
 0xda9   : > { %p11511_p2 = pnand %p11510_p1, %p14922_p9 }
 0xdaa   : > { %p11516_p10 = por %p11515_p6, %p11514_p4 }
 0xdab   : > { %p11512_p8 = pneg %p11511_p2 }
 0xdac   : > { %p11518_p3 = por %p11517_p0, %p11516_p10 }
 0xdae   : > { %p11519_p11 = pnand %p11518_p3, %p11512_p8 }
 0xdb0   : > { %11522 = shalt.err (!%p11519_p11)
}
 0xdb1   : > { %s11665_s26 = smov 128   ;;  %s11666_s6 = smov 8  }
 0xdb2   : > { %10836 = dma.vmem_to_hbm [thread:$0]  (%p14922_p9), %s14711_s9, 1024, %s14718_s10, %s9826_s29, %s11665_s26, %s11665_s26, %s11666_s6  }
 0xdb3 PF: > { %s14923_s14 = sld [smem:[#allocation27_spill]]  ;;  %s14924_s15 = sld [smem:[#allocation35_spill]] }
 0xdb4   : > { %p10884_p7 = scmp.ge.s32.totalorder %s11637_s3, 2 }
 0xdb9   : > { %s9856_s28 = sand.u32 1, %s14923_s14   ;;  %p14925_p12 = scmp.ne.s32.totalorder %s14924_s15, 0 }
 0xdba   : > { %s9857_s25 = scalar_lea.sflag [#allocation6], %s9856_s28 }
 0xdbb   : > { %p10868_p5 = pnand %p10884_p7, %p14925_p12 }
 0xdbd   : > { %11592 = dma.done.wait (!%p10868_p5), %s9857_s25, 1024  }
 0xdbe   : > { %11594 = vsyncadd (!%p10868_p5), %s9857_s25, 4294966272  ;;  %s41_s3 = sadd.s32 1, %s11637_s3   ;;  %s14926_s23 = sld [smem:[#allocation30_spill]] }
 0xdbf   : > { %p38_p13 = scmp.ge.s32.totalorder %s41_s3, 6   ;;  %s14927_s17 = sld [smem:[#allocation33_spill]] }
 0xdc0   : > { %s14928_s25 = sld [smem:[#allocation34_spill]]  ;;  %s14929_s0 = smov %s11601_s30 }
 0xdc1   : > { %s14930_s30 = smov %s11605_s20  ;;  %s14931_s20 = smov %s12101_s8 }
 0xdc2   : > { %s14932_s21 = smov %s11613_s1  ;;  %s14933_s1 = smov %s11617_s22 }
 0xdc3   : > { %s14934_s22 = smov %s12104_s19  ;;  %s14935_s2 = smov %s11629_s24 }
 0xdc4   :  { %40 = sbr.rel (!%p38_p13) target bundleno = 35 (0x23), region = 193 }
 0xdc5   : > { %s14936_s24 = smov %s14927_s17 }
 0xdcb   :  { %9862 = vsyncpa [#allocation5], 1 }
 0xdcc   :  { %9864 = vsyncpa [#allocation5 + $0x1], 1 }
 0xdcd   :  { %9865 = vsyncpa [#allocation8], 1 }
 0xdce   :  { %9867 = vsyncpa [#allocation8 + $0x1], 1 }
 0xdcf   :  { %9868 = vsyncpa [#allocation11], 1 }
 0xdd0   :  { %9869 = vsyncpa [#allocation14], 1 }
 0xdd1   :  { %9870 = vsyncpa [#allocation17], 1 }
 0xdd2   :  { %9871 = vsyncpa [#allocation6], 1 }
 0xdd3   :  { %9873 = vsyncpa [#allocation6 + $0x1], 1 }

</bundles_post_ra>
